<compile_context>
chip_gen: v5e
topology: v5e:2x2
jax: 0.10.0
libtpu: 0.0.40
codegen_flags: <defaults>
</compile_context>

<pallas_src>
import functools

import numpy as np
import jax
import jax.numpy as jnp
from jax.experimental import pallas as pl
from jax.experimental.pallas import tpu as pltpu

N_SAMPLES = 2 ** 14        # matches `n_samples = 2 ** 14` in the module
N_BANDS = 256              # MelScale bands implied by the encoder conv stack
TIME_STEPS = 64            # MelScale time steps implied by the encoder conv stack
LEAK = 0.2


def _detect_dual_tc():
    """True on chips with 2 TensorCores (v7x, and megacore v4/v5p)."""
    try:
        kind = jax.devices()[0].device_kind.lower()
    except Exception:
        return False
    return any(tag in kind for tag in ("v7", "7x", "v4", "v5p"))


_DUAL_TC = _detect_dual_tc()


# --------------------------------------------------------------------------------------
# Pallas kernel: fused matmul + bias + (optional) LeakyReLU
# --------------------------------------------------------------------------------------
def _mm_kernel(x_ref, w_ref, b_ref, o_ref, *, neg_slope):
    acc = jnp.dot(x_ref[...], w_ref[...], preferred_element_type=jnp.float32)
    acc = acc + b_ref[...]                      # b is (1,N) or (M,1); broadcast works
    if neg_slope is not None:
        acc = jnp.where(acc >= 0, acc, jnp.float32(neg_slope) * acc)
    o_ref[...] = acc.astype(o_ref.dtype)


def matmul_bias_act(x, w, b, neg_slope=None, out_dtype=jnp.bfloat16):
    """y = x @ w + b (optional LeakyReLU).

    x:(M,K), w:(K,N), b:(1,N) or (M,1).  The caller arranges operands so N (the lane
    axis of the output) is the large, 128-aligned dimension (lane-dense stores)."""
    M, K = x.shape
    Kw, N = w.shape
    assert K == Kw
    if x.dtype != jnp.bfloat16:
        x = x.astype(jnp.bfloat16)
    if w.dtype != jnp.bfloat16:
        w = w.astype(jnp.bfloat16)
    if b.dtype != jnp.float32:
        b = b.astype(jnp.float32)

    # Dual-TC chips: split the lane axis into 2 "parallel" blocks when it is big enough.
    nj = 2 if (_DUAL_TC and N >= 2048 and N % 256 == 0) else 1
    tn = N // nj

    if b.shape[0] == 1:                               # bias along N -> tile with output
        b_spec = pl.BlockSpec((1, tn), lambda j: (0, j))
    else:                                             # bias along M -> resident
        b_spec = pl.BlockSpec((b.shape[0], 1), lambda j: (0, 0))

    out_isize = np.dtype(out_dtype).itemsize
    cost = pl.CostEstimate(
        flops=int(2 * M * K * N),
        transcendentals=0,
        bytes_accessed=int(M * K * 2 + K * N * 2 + b.size * 4 + M * N * out_isize),
    )
    return pl.pallas_call(
        functools.partial(_mm_kernel, neg_slope=neg_slope),
        out_shape=jax.ShapeDtypeStruct((M, N), out_dtype),
        grid=(nj,),
        in_specs=[
            pl.BlockSpec((M, K), lambda j: (0, 0)),   # full first operand resident
            pl.BlockSpec((K, tn), lambda j: (0, j)),
            b_spec,
        ],
        out_specs=pl.BlockSpec((M, tn), lambda j: (0, j)),
        compiler_params=pltpu.CompilerParams(dimension_semantics=("parallel",)),
        cost_estimate=cost,
    )(x, w, b)


# --------------------------------------------------------------------------------------
# Conv layers (im2col glue in JAX, matmul in Pallas) -- two layouts
# --------------------------------------------------------------------------------------
def conv2d_cf(x, wt, bt, ksize, stride, padding, neg_slope=None, out_dtype=jnp.bfloat16):
    """Channel-first conv:  x:(Cin,B,H,W) -> (Cout,B,Ho,Wo).   Lane axis = B*Ho*Wo.

    wt:(Cout, Cin*kh*kw) (torch flatten order), bt:(Cout,1)."""
    Cin, B, H, W = x.shape
    kh, kw = ksize
    sh, sw = stride
    ph, pw = padding
    Cout = wt.shape[0]
    Ho = (H + 2 * ph - kh) // sh + 1
    Wo = (W + 2 * pw - kw) // sw + 1
    xp = jnp.pad(x, ((0, 0), (0, 0), (ph, ph), (pw, pw)))
    patches = [xp[:, :, i:i + sh * Ho:sh, j:j + sw * Wo:sw]
               for i in range(kh) for j in range(kw)]
    p = jnp.stack(patches, axis=1).reshape(Cin * kh * kw, B * Ho * Wo)   # (K, M)
    out = matmul_bias_act(wt, p, bt, neg_slope=neg_slope, out_dtype=out_dtype)
    return out.reshape(Cout, B, Ho, Wo)


def conv2d_cl(x, wn, bn, ksize, stride, padding, neg_slope=None, out_dtype=jnp.bfloat16):
    """Channel-last conv:  x:(B,H,W,Cin) -> (B,Ho,Wo,Cout).   Lane axis = Cout.

    wn:(kh*kw*Cin, Cout), bn:(1,Cout)."""
    B, H, W, Cin = x.shape
    kh, kw = ksize
    sh, sw = stride
    ph, pw = padding
    Cout = wn.shape[1]
    Ho = (H + 2 * ph - kh) // sh + 1
    Wo = (W + 2 * pw - kw) // sw + 1
    xp = jnp.pad(x, ((0, 0), (ph, ph), (pw, pw), (0, 0)))
    patches = [xp[:, i:i + sh * Ho:sh, j:j + sw * Wo:sw, :]
               for i in range(kh) for j in range(kw)]
    p = jnp.stack(patches, axis=3).reshape(B * Ho * Wo, kh * kw * Cin)   # (M, K)
    out = matmul_bias_act(p, wn, bn, neg_slope=neg_slope, out_dtype=out_dtype)
    return out.reshape(B, Ho, Wo, Cout)


def _convT_taps(k, s, p):
    ds = [(q + p - kk) // s for q in range(s) for kk in range(k) if (q + p - kk) % s == 0]
    return min(ds), max(ds)


def _convT_meta(ksize, stride, padding):
    (KH, KW), (sh, sw), (ph, pw) = ksize, stride, padding
    assert KH - 2 * ph == sh and KW - 2 * pw == sw, "phase-split needs k - 2p == s"
    dlh, dhh = _convT_taps(KH, sh, ph)
    dlw, dhw = _convT_taps(KW, sw, pw)
    assert dlh <= 0 <= dhh and dlw <= 0 <= dhw
    return (dhh - dlh + 1, dhw - dlw + 1, dlh, dlw, sh, sw)      # (Th, Tw, dlh, dlw, sh, sw)


def conv_transpose2d_cl(x, wn, bn, meta, neg_slope=LEAK, out_dtype=jnp.bfloat16):
    """Phase-split ConvTranspose2d, channel-last: (B,H,W,Cin) -> (B,H*sh,W*sw,Cout).

    wn:(Th*Tw*Cin, sh*sw*Cout) K-order (r,c,ci), N-order (qh,qw,co); bn:(1, sh*sw*Cout)."""
    B, H, W, Cin = x.shape
    Th, Tw, dlh, dlw, sh, sw = meta
    Cout = wn.shape[1] // (sh * sw)
    plh, phh = -dlh, Th - 1 + dlh
    plw, phw = -dlw, Tw - 1 + dlw
    xp = jnp.pad(x, ((0, 0), (plh, phh), (plw, phw), (0, 0)))
    patches = [xp[:, r:r + H, c:c + W, :] for r in range(Th) for c in range(Tw)]
    p = jnp.stack(patches, axis=3).reshape(B * H * W, Th * Tw * Cin)     # (M, K)
    out = matmul_bias_act(p, wn, bn, neg_slope=neg_slope, out_dtype=out_dtype)
    out = out.reshape(B, H, W, sh, sw, Cout).transpose(0, 1, 3, 2, 4, 5)
    return out.reshape(B, H * sh, W * sw, Cout)


def conv_transpose2d_cf(x, wt, bt, meta, neg_slope=LEAK, out_dtype=jnp.bfloat16):
    """Phase-split ConvTranspose2d, channel-first: (Cin,B,H,W) -> (Cout,B,H*sh,W*sw).

    Lane axis = B*H*W.  wt:(sh*sw*Cout, Cin*Th*Tw) K-order (ci,r,c); bt:(sh*sw*Cout, 1)."""
    Cin, B, H, W = x.shape
    Th, Tw, dlh, dlw, sh, sw = meta
    Cout = wt.shape[0] // (sh * sw)
    plh, phh = -dlh, Th - 1 + dlh
    plw, phw = -dlw, Tw - 1 + dlw
    xp = jnp.pad(x, ((0, 0), (0, 0), (plh, phh), (plw, phw)))
    patches = [xp[:, :, r:r + H, c:c + W] for r in range(Th) for c in range(Tw)]
    p = jnp.stack(patches, axis=1).reshape(Cin * Th * Tw, B * H * W)     # (K, M)
    out = matmul_bias_act(wt, p, bt, neg_slope=neg_slope, out_dtype=out_dtype)
    out = out.reshape(sh, sw, Cout, B, H, W).transpose(2, 3, 4, 0, 5, 1)
    return out.reshape(Cout, B, H * sh, W * sw)


# --------------------------------------------------------------------------------------
# Model configuration (static)
# --------------------------------------------------------------------------------------
ENC_CFG = [(1, 8, (3, 3)), (8, 16, (3, 3)), (16, 32, (3, 3)), (32, 64, (3, 3)),
           (64, 128, (3, 3)), (128, 256, (3, 3)), (256, 128, (4, 1))]
ENC_STRIDES = [(2, 2)] * 6 + [(4, 1)]
ENC_PADS = [(1, 1)] * 6 + [(0, 0)]
N_ENC_CF = 4                # encoder layers 0-3 run channel-first (small Cout, big M)

UP_CFG = [(128, 64, (4, 4)), (64, 32, (4, 4)), (32, 16, (4, 4)),
          (16, 8, (4, 4)), (8, 4, (4, 4)), (4, 1, (4, 1))]
UP_STRIDES = [(2, 2)] * 5 + [(2, 1)]
UP_PADS = [(1, 1)] * 5 + [(1, 0)]
UP_META = tuple(_convT_meta(k, s, p)
                for (_, _, k), s, p in zip(UP_CFG, UP_STRIDES, UP_PADS))
N_UP_CL = 2                 # decoder layers 0-1 run channel-last (big Cout, tiny M)


# --------------------------------------------------------------------------------------
# Parameter init: raw PyTorch-layout weights -> matmul-ready bf16 matrices (once)
# --------------------------------------------------------------------------------------
def _phase_split_weight(w, li):
    """torch ConvTranspose2d weight (Cin,Cout,KH,KW) -> Wc (Cin,Th,Tw,sh,sw,Cout)."""
    w = np.asarray(w, np.float32)
    Cin, Cout, KH, KW = w.shape
    sh, sw = UP_STRIDES[li]
    ph, pw = UP_PADS[li]
    Th, Tw, dlh, dlw, _, _ = UP_META[li]
    Wc = np.zeros((Cin, Th, Tw, sh, sw, Cout), np.float32)
    for qh in range(sh):
        for r in range(Th):
            kh = qh + ph - sh * (dlh + r)
            if not 0 <= kh < KH:
                continue
            for qw in range(sw):
                for c in range(Tw):
                    kw = qw + pw - sw * (dlw + c)
                    if not 0 <= kw < KW:
                        continue
                    Wc[:, r, c, qh, qw, :] = w[:, :, kh, kw]
    return Wc


def init_params(key):
    """Deterministic init mirroring make_initializer(0.18): uniform in [-0.18, 0.18]."""
    keys = iter(jax.random.split(key, 64))

    def uni(shape):
        return np.asarray(jax.random.uniform(next(keys), shape, jnp.float32, -0.18, 0.18))

    params = {"enc": [], "up": []}

    # Encoder convs.
    for li, (cin, cout, (kh, kw)) in enumerate(ENC_CFG):
        w = uni((cout, cin, kh, kw))
        b = uni((cout,))
        if li < N_ENC_CF:                                     # channel-first / transposed
            wk = w.reshape(cout, cin * kh * kw)               # K-order (ci, i, j)
            bk = b[:, None]
        else:                                                 # channel-last / normal
            wk = w.transpose(2, 3, 1, 0).reshape(kh * kw * cin, cout)   # K-order (i, j, ci)
            bk = b[None, :]
        params["enc"].append({"w": jnp.asarray(wk, jnp.bfloat16),
                              "b": jnp.asarray(bk, jnp.float32)})

    # Linear(128 -> 512): permute output columns so reshape gives channel-last (B,2,2,128).
    lw, lb = uni((512, 128)), uni((512,))
    perm = np.arange(512).reshape(128, 2, 2).transpose(1, 2, 0).reshape(-1)
    params["ln_w"] = jnp.asarray(lw.T[:, perm], jnp.bfloat16)
    params["ln_b"] = jnp.asarray(lb[perm][None, :], jnp.float32)

    # Decoder ConvTranspose2d layers (phase-split weights).
    for li, (cin, cout, k) in enumerate(UP_CFG):
        w = uni((cin, cout) + k)
        b = uni((cout,))
        Wc = _phase_split_weight(w, li)
        sh, sw = UP_STRIDES[li]
        Th, Tw = UP_META[li][0], UP_META[li][1]
        bt = np.tile(b, sh * sw)                              # N-order (qh, qw, co)
        if li < N_UP_CL:                                      # channel-last / normal
            wk = Wc.transpose(1, 2, 0, 3, 4, 5).reshape(Th * Tw * cin, sh * sw * cout)
            bk = bt[None, :]
        else:                                                 # channel-first / transposed
            wk = Wc.transpose(3, 4, 5, 0, 1, 2).reshape(sh * sw * cout, cin * Th * Tw)
            bk = bt[:, None]
        params["up"].append({"w": jnp.asarray(wk, jnp.bfloat16),
                             "b": jnp.asarray(bk, jnp.float32)})

    # Fused harm | noise 1x1 Conv1d -> single (128, 256) matmul.
    hw, hb = uni((128, 128, 1)), uni((128,))
    nw, nb = uni((128, 128, 1)), uni((128,))
    params["hn_w"] = jnp.asarray(
        np.concatenate([hw.reshape(128, 128).T, nw.reshape(128, 128).T], axis=1),
        jnp.bfloat16)
    params["hn_b"] = jnp.asarray(np.concatenate([hb, nb])[None, :], jnp.float32)

    # TODO(synk): zounds MelScale.to_frequency_domain is unavailable; approximated by a
    # deterministic real cosine (DCT-II-like) frame transform with the same output shape.
    frame = N_SAMPLES // TIME_STEPS
    n = np.arange(frame, dtype=np.float32)
    kk = np.arange(N_BANDS, dtype=np.float32)
    basis = np.cos(np.pi * (n[:, None] + 0.5) * kk[None, :] / frame) / frame
    params["dct_w"] = jnp.asarray(basis, jnp.bfloat16)
    params["dct_b"] = jnp.zeros((1, N_BANDS), jnp.float32)
    return params


# --------------------------------------------------------------------------------------
# Forward passes
# --------------------------------------------------------------------------------------
def encoder_fwd(params, x):
    x = x.reshape(-1, N_SAMPLES)
    B = x.shape[0]
    frame = N_SAMPLES // TIME_STEPS
    frames = x.reshape(B * TIME_STEPS, frame).astype(jnp.bfloat16)
    spec = matmul_bias_act(frames, params["dct_w"], params["dct_b"],
                           out_dtype=jnp.bfloat16)                   # (B*T, n_bands), N=256
    # permute(0,2,1): -> (B, n_bands, T); then channel-first (1, B, n_bands, T)
    spec = spec.reshape(B, TIME_STEPS, N_BANDS).transpose(0, 2, 1)   # tiny (32 KiB)
    h = spec.reshape(1, B, N_BANDS, TIME_STEPS)

    # Layers 0-3: channel-first (lane axis = B*Ho*Wo = 8192..128), LeakyReLU(0.2).
    for li in range(N_ENC_CF):
        layer = params["enc"][li]
        h = conv2d_cf(h, layer["w"], layer["b"], ENC_CFG[li][2],
                      ENC_STRIDES[li], ENC_PADS[li], neg_slope=LEAK)

    # Layout switch on a tiny (64,B,16,4) tensor -> channel-last.
    h = h.transpose(1, 2, 3, 0)

    # Layers 4-6: channel-last (lane axis = Cout = 128/256/128); last layer: no activation.
    for li in range(N_ENC_CF, len(ENC_CFG)):
        layer = params["enc"][li]
        last = li == len(ENC_CFG) - 1
        h = conv2d_cl(h, layer["w"], layer["b"], ENC_CFG[li][2],
                      ENC_STRIDES[li], ENC_PADS[li],
                      neg_slope=None if last else LEAK,
                      out_dtype=jnp.float32 if last else jnp.bfloat16)
    return h.reshape(B, 128)


def generator_fwd(params, z):
    B = z.shape[0]
    x = matmul_bias_act(z.astype(jnp.bfloat16), params["ln_w"], params["ln_b"],
                        out_dtype=jnp.bfloat16)                      # (B, 512), permuted cols
    x = x.reshape(B, 2, 2, 128)                                      # channel-last directly

    # up0-1: channel-last (lane axis = sh*sw*Cout = 256/128).
    for li in range(N_UP_CL):
        x = conv_transpose2d_cl(x, params["up"][li]["w"], params["up"][li]["b"],
                                UP_META[li], neg_slope=LEAK)

    # Layout switch on a tiny (B,8,8,32) tensor -> channel-first.
    x = x.transpose(3, 0, 1, 2)

    # up2-5: channel-first (lane axis = B*H*W = 128..8192).
    for li in range(N_UP_CL, len(UP_CFG)):
        x = conv_transpose2d_cf(x, params["up"][li]["w"], params["up"][li]["b"],
                                UP_META[li], neg_slope=LEAK)

    # (1, B, 128, 64) -> (B, 128, 64): matches torch x.view(B, 128, 64).
    x = x.reshape(B, 128, 64)
    xm = x.transpose(0, 2, 1).reshape(B * 64, 128)                   # tiny transpose
    hn = matmul_bias_act(xm, params["hn_w"], params["hn_b"], out_dtype=jnp.float32)
    hn = hn.reshape(B, 64, 256).transpose(0, 2, 1)                   # (B, 256, 64)
    h, n = hn[:, :128, :], hn[:, 128:, :]
    # TODO(synk): OscillatorBank / NoiseModel audio synthesis modules are external and
    # undefined in the reference; returning the (B,128,64) harmonic/noise control tensors.
    return h, n


@jax.jit
def autoencoder_fwd(params, x):
    encoded = encoder_fwd(params, x)
    decoded = generator_fwd(params, encoded)
    return encoded, decoded


if __name__ == "__main__":
    key = jax.random.PRNGKey(0)
    pkey, xkey = jax.random.split(key)
    params = init_params(pkey)
    x = jax.random.normal(xkey, (2, N_SAMPLES), dtype=jnp.float32)

    encoded, (h, n) = autoencoder_fwd(params, x)
    jax.block_until_ready((encoded, h, n))

    assert encoded.shape == (2, 128)
    assert h.shape == (2, 128, 64)
    assert n.shape == (2, 128, 64)
    assert bool(jnp.all(jnp.isfinite(encoded)))
    print("KERNEL_OK")
</pallas_src>

<mosaic_0001>
module attributes {stable_mosaic.version = 11 : i64} {
  func.func @_mm_kernel(%arg0: i32, %arg1: memref<128x256xbf16, #tpu.memory_space<vmem>>, %arg2: memref<256x256xbf16, #tpu.memory_space<vmem>>, %arg3: memref<1x256xf32, #tpu.memory_space<vmem>>, %arg4: memref<128x256xbf16, #tpu.memory_space<vmem>>) attributes {dimension_semantics = [#tpu.dimension_semantics<parallel>], iteration_bounds = array<i64: 1>, scalar_prefetch = 0 : i64, scratch_operands = 0 : i64, tpu.core_type = #tpu.core_type<tc>, window_params = [{pipeline_mode = #tpu.pipeline_mode<synchronous>, transform_indices = @transform_0, window_bounds = array<i64: 128, 256>}, {transform_indices = @transform_1, window_bounds = array<i64: 256, 256>}, {transform_indices = @transform_2, window_bounds = array<i64: 1, 256>}, {transform_indices = @transform_3, window_bounds = array<i64: 128, 256>}]} {
    %c0 = arith.constant 0 : index
    %c0_0 = arith.constant 0 : index
    %0 = vector.load %arg1[%c0, %c0_0] : memref<128x256xbf16, #tpu.memory_space<vmem>>, vector<128x256xbf16>
    %c0_1 = arith.constant 0 : index
    %c0_2 = arith.constant 0 : index
    %1 = vector.load %arg2[%c0_1, %c0_2] : memref<256x256xbf16, #tpu.memory_space<vmem>>, vector<256x256xbf16>
    %cst = arith.constant dense<0.000000e+00> : vector<128x256xf32>
    %2 = tpu.matmul %0, %1, %cst {dimension_numbers = #tpu.dot_dimension_numbers<[1], [0], [0], [1], [0, 0, 1, 1], [], []>} : vector<128x256xbf16>, vector<256x256xbf16>, vector<128x256xf32> -> vector<128x256xf32>
    %c0_3 = arith.constant 0 : index
    %c0_4 = arith.constant 0 : index
    %3 = vector.load %arg3[%c0_3, %c0_4] : memref<1x256xf32, #tpu.memory_space<vmem>>, vector<1x256xf32>
    %4 = vector.broadcast %3 : vector<1x256xf32> to vector<128x256xf32>
    %5 = arith.addf %2, %4 : vector<128x256xf32>
    %6 = arith.truncf %5 : vector<128x256xf32> to vector<128x256xbf16>
    %c0_5 = arith.constant 0 : index
    %c0_6 = arith.constant 0 : index
    %7 = vector.load %arg4[%c0_5, %c0_6] : memref<128x256xbf16, #tpu.memory_space<vmem>>, vector<128x256xbf16>
    tpu.vector_store %arg4[%c0_5, %c0_6], %6 {strides = array<i32>} : memref<128x256xbf16, #tpu.memory_space<vmem>>, vector<128x256xbf16>,
    return
  }
  func.func @transform_0(%arg0: i32) -> (i32, i32) {
    %c0_i32 = arith.constant 0 : i32
    %c0_i32_0 = arith.constant 0 : i32
    %c0_i32_1 = arith.constant 0 : i32
    return %c0_i32, %c0_i32_0 : i32, i32
  }
  func.func @transform_1(%arg0: i32) -> (i32, i32) {
    %c0_i32 = arith.constant 0 : i32
    %c0_i32_0 = arith.constant 0 : i32
    return %c0_i32, %arg0 : i32, i32
  }
  func.func @transform_2(%arg0: i32) -> (i32, i32) {
    %c0_i32 = arith.constant 0 : i32
    %c0_i32_0 = arith.constant 0 : i32
    return %c0_i32, %arg0 : i32, i32
  }
  func.func @transform_3(%arg0: i32) -> (i32, i32) {
    %c0_i32 = arith.constant 0 : i32
    %c0_i32_0 = arith.constant 0 : i32
    return %c0_i32, %arg0 : i32, i32
  }
}

module attributes {stable_mosaic.version = 11 : i64} {
  func.func @_mm_kernel(%arg0: i32, %arg1: memref<8x9xbf16, #tpu.memory_space<vmem>>, %arg2: memref<9x8192xbf16, #tpu.memory_space<vmem>>, %arg3: memref<8x1xf32, #tpu.memory_space<vmem>>, %arg4: memref<8x8192xbf16, #tpu.memory_space<vmem>>) attributes {dimension_semantics = [#tpu.dimension_semantics<parallel>], iteration_bounds = array<i64: 1>, scalar_prefetch = 0 : i64, scratch_operands = 0 : i64, tpu.core_type = #tpu.core_type<tc>, window_params = [{pipeline_mode = #tpu.pipeline_mode<synchronous>, transform_indices = @transform_0, window_bounds = array<i64: 8, 9>}, {transform_indices = @transform_1, window_bounds = array<i64: 9, 8192>}, {pipeline_mode = #tpu.pipeline_mode<synchronous>, transform_indices = @transform_2, window_bounds = array<i64: 8, 1>}, {transform_indices = @transform_3, window_bounds = array<i64: 8, 8192>}]} {
    %c0 = arith.constant 0 : index
    %c0_0 = arith.constant 0 : index
    %0 = vector.load %arg1[%c0, %c0_0] : memref<8x9xbf16, #tpu.memory_space<vmem>>, vector<8x9xbf16>
    %c0_1 = arith.constant 0 : index
    %c0_2 = arith.constant 0 : index
    %1 = vector.load %arg2[%c0_1, %c0_2] : memref<9x8192xbf16, #tpu.memory_space<vmem>>, vector<9x8192xbf16>
    %cst = arith.constant dense<0.000000e+00> : vector<8x8192xf32>
    %2 = tpu.matmul %0, %1, %cst {dimension_numbers = #tpu.dot_dimension_numbers<[1], [0], [0], [1], [0, 0, 1, 1], [], []>} : vector<8x9xbf16>, vector<9x8192xbf16>, vector<8x8192xf32> -> vector<8x8192xf32>
    %c0_3 = arith.constant 0 : index
    %c0_4 = arith.constant 0 : index
    %3 = vector.load %arg3[%c0_3, %c0_4] : memref<8x1xf32, #tpu.memory_space<vmem>>, vector<8x1xf32>
    %4 = vector.broadcast %3 : vector<8x1xf32> to vector<8x8192xf32>
    %5 = arith.addf %2, %4 : vector<8x8192xf32>
    %cst_5 = arith.constant 0.000000e+00 : f32
    %6 = vector.broadcast %cst_5 : f32 to vector<8x8192xf32>
    %7 = arith.cmpf oge, %5, %6 : vector<8x8192xf32>
    %cst_6 = arith.constant 2.000000e-01 : f32
    %8 = vector.broadcast %cst_6 : f32 to vector<8x8192xf32>
    %9 = arith.mulf %8, %5 : vector<8x8192xf32>
    %10 = arith.select %7, %5, %9 : vector<8x8192xi1>, vector<8x8192xf32>
    %11 = arith.truncf %10 : vector<8x8192xf32> to vector<8x8192xbf16>
    %c0_7 = arith.constant 0 : index
    %c0_8 = arith.constant 0 : index
    %12 = vector.load %arg4[%c0_7, %c0_8] : memref<8x8192xbf16, #tpu.memory_space<vmem>>, vector<8x8192xbf16>
    tpu.vector_store %arg4[%c0_7, %c0_8], %11 {strides = array<i32>} : memref<8x8192xbf16, #tpu.memory_space<vmem>>, vector<8x8192xbf16>,
    return
  }
  func.func @transform_0(%arg0: i32) -> (i32, i32) {
    %c0_i32 = arith.constant 0 : i32
    %c0_i32_0 = arith.constant 0 : i32
    %c0_i32_1 = arith.constant 0 : i32
    return %c0_i32, %c0_i32_0 : i32, i32
  }
  func.func @transform_1(%arg0: i32) -> (i32, i32) {
    %c0_i32 = arith.constant 0 : i32
    %c0_i32_0 = arith.constant 0 : i32
    return %c0_i32, %arg0 : i32, i32
  }
  func.func @transform_2(%arg0: i32) -> (i32, i32) {
    %c0_i32 = arith.constant 0 : i32
    %c0_i32_0 = arith.constant 0 : i32
    %c0_i32_1 = arith.constant 0 : i32
    return %c0_i32, %c0_i32_0 : i32, i32
  }
  func.func @transform_3(%arg0: i32) -> (i32, i32) {
    %c0_i32 = arith.constant 0 : i32
    %c0_i32_0 = arith.constant 0 : i32
    return %c0_i32, %arg0 : i32, i32
  }
}

module attributes {stable_mosaic.version = 11 : i64} {
  func.func @_mm_kernel(%arg0: i32, %arg1: memref<16x72xbf16, #tpu.memory_space<vmem>>, %arg2: memref<72x2048xbf16, #tpu.memory_space<vmem>>, %arg3: memref<16x1xf32, #tpu.memory_space<vmem>>, %arg4: memref<16x2048xbf16, #tpu.memory_space<vmem>>) attributes {dimension_semantics = [#tpu.dimension_semantics<parallel>], iteration_bounds = array<i64: 1>, scalar_prefetch = 0 : i64, scratch_operands = 0 : i64, tpu.core_type = #tpu.core_type<tc>, window_params = [{pipeline_mode = #tpu.pipeline_mode<synchronous>, transform_indices = @transform_0, window_bounds = array<i64: 16, 72>}, {transform_indices = @transform_1, window_bounds = array<i64: 72, 2048>}, {pipeline_mode = #tpu.pipeline_mode<synchronous>, transform_indices = @transform_2, window_bounds = array<i64: 16, 1>}, {transform_indices = @transform_3, window_bounds = array<i64: 16, 2048>}]} {
    %c0 = arith.constant 0 : index
    %c0_0 = arith.constant 0 : index
    %0 = vector.load %arg1[%c0, %c0_0] : memref<16x72xbf16, #tpu.memory_space<vmem>>, vector<16x72xbf16>
    %c0_1 = arith.constant 0 : index
    %c0_2 = arith.constant 0 : index
    %1 = vector.load %arg2[%c0_1, %c0_2] : memref<72x2048xbf16, #tpu.memory_space<vmem>>, vector<72x2048xbf16>
    %cst = arith.constant dense<0.000000e+00> : vector<16x2048xf32>
    %2 = tpu.matmul %0, %1, %cst {dimension_numbers = #tpu.dot_dimension_numbers<[1], [0], [0], [1], [0, 0, 1, 1], [], []>} : vector<16x72xbf16>, vector<72x2048xbf16>, vector<16x2048xf32> -> vector<16x2048xf32>
    %c0_3 = arith.constant 0 : index
    %c0_4 = arith.constant 0 : index
    %3 = vector.load %arg3[%c0_3, %c0_4] : memref<16x1xf32, #tpu.memory_space<vmem>>, vector<16x1xf32>
    %4 = vector.broadcast %3 : vector<16x1xf32> to vector<16x2048xf32>
    %5 = arith.addf %2, %4 : vector<16x2048xf32>
    %cst_5 = arith.constant 0.000000e+00 : f32
    %6 = vector.broadcast %cst_5 : f32 to vector<16x2048xf32>
    %7 = arith.cmpf oge, %5, %6 : vector<16x2048xf32>
    %cst_6 = arith.constant 2.000000e-01 : f32
    %8 = vector.broadcast %cst_6 : f32 to vector<16x2048xf32>
    %9 = arith.mulf %8, %5 : vector<16x2048xf32>
    %10 = arith.select %7, %5, %9 : vector<16x2048xi1>, vector<16x2048xf32>
    %11 = arith.truncf %10 : vector<16x2048xf32> to vector<16x2048xbf16>
    %c0_7 = arith.constant 0 : index
    %c0_8 = arith.constant 0 : index
    %12 = vector.load %arg4[%c0_7, %c0_8] : memref<16x2048xbf16, #tpu.memory_space<vmem>>, vector<16x2048xbf16>
    tpu.vector_store %arg4[%c0_7, %c0_8], %11 {strides = array<i32>} : memref<16x2048xbf16, #tpu.memory_space<vmem>>, vector<16x2048xbf16>,
    return
  }
  func.func @transform_0(%arg0: i32) -> (i32, i32) {
    %c0_i32 = arith.constant 0 : i32
    %c0_i32_0 = arith.constant 0 : i32
    %c0_i32_1 = arith.constant 0 : i32
    return %c0_i32, %c0_i32_0 : i32, i32
  }
  func.func @transform_1(%arg0: i32) -> (i32, i32) {
    %c0_i32 = arith.constant 0 : i32
    %c0_i32_0 = arith.constant 0 : i32
    return %c0_i32, %arg0 : i32, i32
  }
  func.func @transform_2(%arg0: i32) -> (i32, i32) {
    %c0_i32 = arith.constant 0 : i32
    %c0_i32_0 = arith.constant 0 : i32
    %c0_i32_1 = arith.constant 0 : i32
    return %c0_i32, %c0_i32_0 : i32, i32
  }
  func.func @transform_3(%arg0: i32) -> (i32, i32) {
    %c0_i32 = arith.constant 0 : i32
    %c0_i32_0 = arith.constant 0 : i32
    return %c0_i32, %arg0 : i32, i32
  }
}

module attributes {stable_mosaic.version = 11 : i64} {
  func.func @_mm_kernel(%arg0: i32, %arg1: memref<32x144xbf16, #tpu.memory_space<vmem>>, %arg2: memref<144x512xbf16, #tpu.memory_space<vmem>>, %arg3: memref<32x1xf32, #tpu.memory_space<vmem>>, %arg4: memref<32x512xbf16, #tpu.memory_space<vmem>>) attributes {dimension_semantics = [#tpu.dimension_semantics<parallel>], iteration_bounds = array<i64: 1>, scalar_prefetch = 0 : i64, scratch_operands = 0 : i64, tpu.core_type = #tpu.core_type<tc>, window_params = [{pipeline_mode = #tpu.pipeline_mode<synchronous>, transform_indices = @transform_0, window_bounds = array<i64: 32, 144>}, {transform_indices = @transform_1, window_bounds = array<i64: 144, 512>}, {pipeline_mode = #tpu.pipeline_mode<synchronous>, transform_indices = @transform_2, window_bounds = array<i64: 32, 1>}, {transform_indices = @transform_3, window_bounds = array<i64: 32, 512>}]} {
    %c0 = arith.constant 0 : index
    %c0_0 = arith.constant 0 : index
    %0 = vector.load %arg1[%c0, %c0_0] : memref<32x144xbf16, #tpu.memory_space<vmem>>, vector<32x144xbf16>
    %c0_1 = arith.constant 0 : index
    %c0_2 = arith.constant 0 : index
    %1 = vector.load %arg2[%c0_1, %c0_2] : memref<144x512xbf16, #tpu.memory_space<vmem>>, vector<144x512xbf16>
    %cst = arith.constant dense<0.000000e+00> : vector<32x512xf32>
    %2 = tpu.matmul %0, %1, %cst {dimension_numbers = #tpu.dot_dimension_numbers<[1], [0], [0], [1], [0, 0, 1, 1], [], []>} : vector<32x144xbf16>, vector<144x512xbf16>, vector<32x512xf32> -> vector<32x512xf32>
    %c0_3 = arith.constant 0 : index
    %c0_4 = arith.constant 0 : index
    %3 = vector.load %arg3[%c0_3, %c0_4] : memref<32x1xf32, #tpu.memory_space<vmem>>, vector<32x1xf32>
    %4 = vector.broadcast %3 : vector<32x1xf32> to vector<32x512xf32>
    %5 = arith.addf %2, %4 : vector<32x512xf32>
    %cst_5 = arith.constant 0.000000e+00 : f32
    %6 = vector.broadcast %cst_5 : f32 to vector<32x512xf32>
    %7 = arith.cmpf oge, %5, %6 : vector<32x512xf32>
    %cst_6 = arith.constant 2.000000e-01 : f32
    %8 = vector.broadcast %cst_6 : f32 to vector<32x512xf32>
    %9 = arith.mulf %8, %5 : vector<32x512xf32>
    %10 = arith.select %7, %5, %9 : vector<32x512xi1>, vector<32x512xf32>
    %11 = arith.truncf %10 : vector<32x512xf32> to vector<32x512xbf16>
    %c0_7 = arith.constant 0 : index
    %c0_8 = arith.constant 0 : index
    %12 = vector.load %arg4[%c0_7, %c0_8] : memref<32x512xbf16, #tpu.memory_space<vmem>>, vector<32x512xbf16>
    tpu.vector_store %arg4[%c0_7, %c0_8], %11 {strides = array<i32>} : memref<32x512xbf16, #tpu.memory_space<vmem>>, vector<32x512xbf16>,
    return
  }
  func.func @transform_0(%arg0: i32) -> (i32, i32) {
    %c0_i32 = arith.constant 0 : i32
    %c0_i32_0 = arith.constant 0 : i32
    %c0_i32_1 = arith.constant 0 : i32
    return %c0_i32, %c0_i32_0 : i32, i32
  }
  func.func @transform_1(%arg0: i32) -> (i32, i32) {
    %c0_i32 = arith.constant 0 : i32
    %c0_i32_0 = arith.constant 0 : i32
    return %c0_i32, %arg0 : i32, i32
  }
  func.func @transform_2(%arg0: i32) -> (i32, i32) {
    %c0_i32 = arith.constant 0 : i32
    %c0_i32_0 = arith.constant 0 : i32
    %c0_i32_1 = arith.constant 0 : i32
    return %c0_i32, %c0_i32_0 : i32, i32
  }
  func.func @transform_3(%arg0: i32) -> (i32, i32) {
    %c0_i32 = arith.constant 0 : i32
    %c0_i32_0 = arith.constant 0 : i32
    return %c0_i32, %arg0 : i32, i32
  }
}

module attributes {stable_mosaic.version = 11 : i64} {
  func.func @_mm_kernel(%arg0: i32, %arg1: memref<64x288xbf16, #tpu.memory_space<vmem>>, %arg2: memref<288x128xbf16, #tpu.memory_space<vmem>>, %arg3: memref<64x1xf32, #tpu.memory_space<vmem>>, %arg4: memref<64x128xbf16, #tpu.memory_space<vmem>>) attributes {dimension_semantics = [#tpu.dimension_semantics<parallel>], iteration_bounds = array<i64: 1>, scalar_prefetch = 0 : i64, scratch_operands = 0 : i64, tpu.core_type = #tpu.core_type<tc>, window_params = [{pipeline_mode = #tpu.pipeline_mode<synchronous>, transform_indices = @transform_0, window_bounds = array<i64: 64, 288>}, {transform_indices = @transform_1, window_bounds = array<i64: 288, 128>}, {pipeline_mode = #tpu.pipeline_mode<synchronous>, transform_indices = @transform_2, window_bounds = array<i64: 64, 1>}, {transform_indices = @transform_3, window_bounds = array<i64: 64, 128>}]} {
    %c0 = arith.constant 0 : index
    %c0_0 = arith.constant 0 : index
    %0 = vector.load %arg1[%c0, %c0_0] : memref<64x288xbf16, #tpu.memory_space<vmem>>, vector<64x288xbf16>
    %c0_1 = arith.constant 0 : index
    %c0_2 = arith.constant 0 : index
    %1 = vector.load %arg2[%c0_1, %c0_2] : memref<288x128xbf16, #tpu.memory_space<vmem>>, vector<288x128xbf16>
    %cst = arith.constant dense<0.000000e+00> : vector<64x128xf32>
    %2 = tpu.matmul %0, %1, %cst {dimension_numbers = #tpu.dot_dimension_numbers<[1], [0], [0], [1], [0, 0, 1, 1], [], []>} : vector<64x288xbf16>, vector<288x128xbf16>, vector<64x128xf32> -> vector<64x128xf32>
    %c0_3 = arith.constant 0 : index
    %c0_4 = arith.constant 0 : index
    %3 = vector.load %arg3[%c0_3, %c0_4] : memref<64x1xf32, #tpu.memory_space<vmem>>, vector<64x1xf32>
    %4 = vector.broadcast %3 : vector<64x1xf32> to vector<64x128xf32>
    %5 = arith.addf %2, %4 : vector<64x128xf32>
    %cst_5 = arith.constant 0.000000e+00 : f32
    %6 = vector.broadcast %cst_5 : f32 to vector<64x128xf32>
    %7 = arith.cmpf oge, %5, %6 : vector<64x128xf32>
    %cst_6 = arith.constant 2.000000e-01 : f32
    %8 = vector.broadcast %cst_6 : f32 to vector<64x128xf32>
    %9 = arith.mulf %8, %5 : vector<64x128xf32>
    %10 = arith.select %7, %5, %9 : vector<64x128xi1>, vector<64x128xf32>
    %11 = arith.truncf %10 : vector<64x128xf32> to vector<64x128xbf16>
    %c0_7 = arith.constant 0 : index
    %c0_8 = arith.constant 0 : index
    %12 = vector.load %arg4[%c0_7, %c0_8] : memref<64x128xbf16, #tpu.memory_space<vmem>>, vector<64x128xbf16>
    tpu.vector_store %arg4[%c0_7, %c0_8], %11 {strides = array<i32>} : memref<64x128xbf16, #tpu.memory_space<vmem>>, vector<64x128xbf16>,
    return
  }
  func.func @transform_0(%arg0: i32) -> (i32, i32) {
    %c0_i32 = arith.constant 0 : i32
    %c0_i32_0 = arith.constant 0 : i32
    %c0_i32_1 = arith.constant 0 : i32
    return %c0_i32, %c0_i32_0 : i32, i32
  }
  func.func @transform_1(%arg0: i32) -> (i32, i32) {
    %c0_i32 = arith.constant 0 : i32
    %c0_i32_0 = arith.constant 0 : i32
    return %c0_i32, %arg0 : i32, i32
  }
  func.func @transform_2(%arg0: i32) -> (i32, i32) {
    %c0_i32 = arith.constant 0 : i32
    %c0_i32_0 = arith.constant 0 : i32
    %c0_i32_1 = arith.constant 0 : i32
    return %c0_i32, %c0_i32_0 : i32, i32
  }
  func.func @transform_3(%arg0: i32) -> (i32, i32) {
    %c0_i32 = arith.constant 0 : i32
    %c0_i32_0 = arith.constant 0 : i32
    return %c0_i32, %arg0 : i32, i32
  }
}

module attributes {stable_mosaic.version = 11 : i64} {
  func.func @_mm_kernel(%arg0: i32, %arg1: memref<32x576xbf16, #tpu.memory_space<vmem>>, %arg2: memref<576x128xbf16, #tpu.memory_space<vmem>>, %arg3: memref<1x128xf32, #tpu.memory_space<vmem>>, %arg4: memref<32x128xbf16, #tpu.memory_space<vmem>>) attributes {dimension_semantics = [#tpu.dimension_semantics<parallel>], iteration_bounds = array<i64: 1>, scalar_prefetch = 0 : i64, scratch_operands = 0 : i64, tpu.core_type = #tpu.core_type<tc>, window_params = [{pipeline_mode = #tpu.pipeline_mode<synchronous>, transform_indices = @transform_0, window_bounds = array<i64: 32, 576>}, {transform_indices = @transform_1, window_bounds = array<i64: 576, 128>}, {transform_indices = @transform_2, window_bounds = array<i64: 1, 128>}, {transform_indices = @transform_3, window_bounds = array<i64: 32, 128>}]} {
    %c0 = arith.constant 0 : index
    %c0_0 = arith.constant 0 : index
    %0 = vector.load %arg1[%c0, %c0_0] : memref<32x576xbf16, #tpu.memory_space<vmem>>, vector<32x576xbf16>
    %c0_1 = arith.constant 0 : index
    %c0_2 = arith.constant 0 : index
    %1 = vector.load %arg2[%c0_1, %c0_2] : memref<576x128xbf16, #tpu.memory_space<vmem>>, vector<576x128xbf16>
    %cst = arith.constant dense<0.000000e+00> : vector<32x128xf32>
    %2 = tpu.matmul %0, %1, %cst {dimension_numbers = #tpu.dot_dimension_numbers<[1], [0], [0], [1], [0, 0, 1, 1], [], []>} : vector<32x576xbf16>, vector<576x128xbf16>, vector<32x128xf32> -> vector<32x128xf32>
    %c0_3 = arith.constant 0 : index
    %c0_4 = arith.constant 0 : index
    %3 = vector.load %arg3[%c0_3, %c0_4] : memref<1x128xf32, #tpu.memory_space<vmem>>, vector<1x128xf32>
    %4 = vector.broadcast %3 : vector<1x128xf32> to vector<32x128xf32>
    %5 = arith.addf %2, %4 : vector<32x128xf32>
    %cst_5 = arith.constant 0.000000e+00 : f32
    %6 = vector.broadcast %cst_5 : f32 to vector<32x128xf32>
    %7 = arith.cmpf oge, %5, %6 : vector<32x128xf32>
    %cst_6 = arith.constant 2.000000e-01 : f32
    %8 = vector.broadcast %cst_6 : f32 to vector<32x128xf32>
    %9 = arith.mulf %8, %5 : vector<32x128xf32>
    %10 = arith.select %7, %5, %9 : vector<32x128xi1>, vector<32x128xf32>
    %11 = arith.truncf %10 : vector<32x128xf32> to vector<32x128xbf16>
    %c0_7 = arith.constant 0 : index
    %c0_8 = arith.constant 0 : index
    %12 = vector.load %arg4[%c0_7, %c0_8] : memref<32x128xbf16, #tpu.memory_space<vmem>>, vector<32x128xbf16>
    tpu.vector_store %arg4[%c0_7, %c0_8], %11 {strides = array<i32>} : memref<32x128xbf16, #tpu.memory_space<vmem>>, vector<32x128xbf16>,
    return
  }
  func.func @transform_0(%arg0: i32) -> (i32, i32) {
    %c0_i32 = arith.constant 0 : i32
    %c0_i32_0 = arith.constant 0 : i32
    %c0_i32_1 = arith.constant 0 : i32
    return %c0_i32, %c0_i32_0 : i32, i32
  }
  func.func @transform_1(%arg0: i32) -> (i32, i32) {
    %c0_i32 = arith.constant 0 : i32
    %c0_i32_0 = arith.constant 0 : i32
    return %c0_i32, %arg0 : i32, i32
  }
  func.func @transform_2(%arg0: i32) -> (i32, i32) {
    %c0_i32 = arith.constant 0 : i32
    %c0_i32_0 = arith.constant 0 : i32
    return %c0_i32, %arg0 : i32, i32
  }
  func.func @transform_3(%arg0: i32) -> (i32, i32) {
    %c0_i32 = arith.constant 0 : i32
    %c0_i32_0 = arith.constant 0 : i32
    return %c0_i32, %arg0 : i32, i32
  }
}

module attributes {stable_mosaic.version = 11 : i64} {
  func.func @_mm_kernel(%arg0: i32, %arg1: memref<8x1152xbf16, #tpu.memory_space<vmem>>, %arg2: memref<1152x256xbf16, #tpu.memory_space<vmem>>, %arg3: memref<1x256xf32, #tpu.memory_space<vmem>>, %arg4: memref<8x256xbf16, #tpu.memory_space<vmem>>) attributes {dimension_semantics = [#tpu.dimension_semantics<parallel>], iteration_bounds = array<i64: 1>, scalar_prefetch = 0 : i64, scratch_operands = 0 : i64, tpu.core_type = #tpu.core_type<tc>, window_params = [{pipeline_mode = #tpu.pipeline_mode<synchronous>, transform_indices = @transform_0, window_bounds = array<i64: 8, 1152>}, {transform_indices = @transform_1, window_bounds = array<i64: 1152, 256>}, {transform_indices = @transform_2, window_bounds = array<i64: 1, 256>}, {transform_indices = @transform_3, window_bounds = array<i64: 8, 256>}]} {
    %c0 = arith.constant 0 : index
    %c0_0 = arith.constant 0 : index
    %0 = vector.load %arg1[%c0, %c0_0] : memref<8x1152xbf16, #tpu.memory_space<vmem>>, vector<8x1152xbf16>
    %c0_1 = arith.constant 0 : index
    %c0_2 = arith.constant 0 : index
    %1 = vector.load %arg2[%c0_1, %c0_2] : memref<1152x256xbf16, #tpu.memory_space<vmem>>, vector<1152x256xbf16>
    %cst = arith.constant dense<0.000000e+00> : vector<8x256xf32>
    %2 = tpu.matmul %0, %1, %cst {dimension_numbers = #tpu.dot_dimension_numbers<[1], [0], [0], [1], [0, 0, 1, 1], [], []>} : vector<8x1152xbf16>, vector<1152x256xbf16>, vector<8x256xf32> -> vector<8x256xf32>
    %c0_3 = arith.constant 0 : index
    %c0_4 = arith.constant 0 : index
    %3 = vector.load %arg3[%c0_3, %c0_4] : memref<1x256xf32, #tpu.memory_space<vmem>>, vector<1x256xf32>
    %4 = vector.broadcast %3 : vector<1x256xf32> to vector<8x256xf32>
    %5 = arith.addf %2, %4 : vector<8x256xf32>
    %cst_5 = arith.constant 0.000000e+00 : f32
    %6 = vector.broadcast %cst_5 : f32 to vector<8x256xf32>
    %7 = arith.cmpf oge, %5, %6 : vector<8x256xf32>
    %cst_6 = arith.constant 2.000000e-01 : f32
    %8 = vector.broadcast %cst_6 : f32 to vector<8x256xf32>
    %9 = arith.mulf %8, %5 : vector<8x256xf32>
    %10 = arith.select %7, %5, %9 : vector<8x256xi1>, vector<8x256xf32>
    %11 = arith.truncf %10 : vector<8x256xf32> to vector<8x256xbf16>
    %c0_7 = arith.constant 0 : index
    %c0_8 = arith.constant 0 : index
    %12 = vector.load %arg4[%c0_7, %c0_8] : memref<8x256xbf16, #tpu.memory_space<vmem>>, vector<8x256xbf16>
    tpu.vector_store %arg4[%c0_7, %c0_8], %11 {strides = array<i32>} : memref<8x256xbf16, #tpu.memory_space<vmem>>, vector<8x256xbf16>,
    return
  }
  func.func @transform_0(%arg0: i32) -> (i32, i32) {
    %c0_i32 = arith.constant 0 : i32
    %c0_i32_0 = arith.constant 0 : i32
    %c0_i32_1 = arith.constant 0 : i32
    return %c0_i32, %c0_i32_0 : i32, i32
  }
  func.func @transform_1(%arg0: i32) -> (i32, i32) {
    %c0_i32 = arith.constant 0 : i32
    %c0_i32_0 = arith.constant 0 : i32
    return %c0_i32, %arg0 : i32, i32
  }
  func.func @transform_2(%arg0: i32) -> (i32, i32) {
    %c0_i32 = arith.constant 0 : i32
    %c0_i32_0 = arith.constant 0 : i32
    return %c0_i32, %arg0 : i32, i32
  }
  func.func @transform_3(%arg0: i32) -> (i32, i32) {
    %c0_i32 = arith.constant 0 : i32
    %c0_i32_0 = arith.constant 0 : i32
    return %c0_i32, %arg0 : i32, i32
  }
}

module attributes {stable_mosaic.version = 11 : i64} {
  func.func @_mm_kernel(%arg0: i32, %arg1: memref<2x1024xbf16, #tpu.memory_space<vmem>>, %arg2: memref<1024x128xbf16, #tpu.memory_space<vmem>>, %arg3: memref<1x128xf32, #tpu.memory_space<vmem>>, %arg4: memref<2x128xf32, #tpu.memory_space<vmem>>) attributes {dimension_semantics = [#tpu.dimension_semantics<parallel>], iteration_bounds = array<i64: 1>, scalar_prefetch = 0 : i64, scratch_operands = 0 : i64, tpu.core_type = #tpu.core_type<tc>, window_params = [{pipeline_mode = #tpu.pipeline_mode<synchronous>, transform_indices = @transform_0, window_bounds = array<i64: 2, 1024>}, {transform_indices = @transform_1, window_bounds = array<i64: 1024, 128>}, {transform_indices = @transform_2, window_bounds = array<i64: 1, 128>}, {transform_indices = @transform_3, window_bounds = array<i64: 2, 128>}]} {
    %c0 = arith.constant 0 : index
    %c0_0 = arith.constant 0 : index
    %0 = vector.load %arg1[%c0, %c0_0] : memref<2x1024xbf16, #tpu.memory_space<vmem>>, vector<2x1024xbf16>
    %c0_1 = arith.constant 0 : index
    %c0_2 = arith.constant 0 : index
    %1 = vector.load %arg2[%c0_1, %c0_2] : memref<1024x128xbf16, #tpu.memory_space<vmem>>, vector<1024x128xbf16>
    %cst = arith.constant dense<0.000000e+00> : vector<2x128xf32>
    %2 = tpu.matmul %0, %1, %cst {dimension_numbers = #tpu.dot_dimension_numbers<[1], [0], [0], [1], [0, 0, 1, 1], [], []>} : vector<2x1024xbf16>, vector<1024x128xbf16>, vector<2x128xf32> -> vector<2x128xf32>
    %c0_3 = arith.constant 0 : index
    %c0_4 = arith.constant 0 : index
    %3 = vector.load %arg3[%c0_3, %c0_4] : memref<1x128xf32, #tpu.memory_space<vmem>>, vector<1x128xf32>
    %4 = vector.broadcast %3 : vector<1x128xf32> to vector<2x128xf32>
    %5 = arith.addf %2, %4 : vector<2x128xf32>
    %c0_5 = arith.constant 0 : index
    %c0_6 = arith.constant 0 : index
    %6 = vector.load %arg4[%c0_5, %c0_6] : memref<2x128xf32, #tpu.memory_space<vmem>>, vector<2x128xf32>
    tpu.vector_store %arg4[%c0_5, %c0_6], %5 {strides = array<i32>} : memref<2x128xf32, #tpu.memory_space<vmem>>, vector<2x128xf32>,
    return
  }
  func.func @transform_0(%arg0: i32) -> (i32, i32) {
    %c0_i32 = arith.constant 0 : i32
    %c0_i32_0 = arith.constant 0 : i32
    %c0_i32_1 = arith.constant 0 : i32
    return %c0_i32, %c0_i32_0 : i32, i32
  }
  func.func @transform_1(%arg0: i32) -> (i32, i32) {
    %c0_i32 = arith.constant 0 : i32
    %c0_i32_0 = arith.constant 0 : i32
    return %c0_i32, %arg0 : i32, i32
  }
  func.func @transform_2(%arg0: i32) -> (i32, i32) {
    %c0_i32 = arith.constant 0 : i32
    %c0_i32_0 = arith.constant 0 : i32
    return %c0_i32, %arg0 : i32, i32
  }
  func.func @transform_3(%arg0: i32) -> (i32, i32) {
    %c0_i32 = arith.constant 0 : i32
    %c0_i32_0 = arith.constant 0 : i32
    return %c0_i32, %arg0 : i32, i32
  }
}

module attributes {stable_mosaic.version = 11 : i64} {
  func.func @_mm_kernel(%arg0: i32, %arg1: memref<2x128xbf16, #tpu.memory_space<vmem>>, %arg2: memref<128x512xbf16, #tpu.memory_space<vmem>>, %arg3: memref<1x512xf32, #tpu.memory_space<vmem>>, %arg4: memref<2x512xbf16, #tpu.memory_space<vmem>>) attributes {dimension_semantics = [#tpu.dimension_semantics<parallel>], iteration_bounds = array<i64: 1>, scalar_prefetch = 0 : i64, scratch_operands = 0 : i64, tpu.core_type = #tpu.core_type<tc>, window_params = [{pipeline_mode = #tpu.pipeline_mode<synchronous>, transform_indices = @transform_0, window_bounds = array<i64: 2, 128>}, {transform_indices = @transform_1, window_bounds = array<i64: 128, 512>}, {transform_indices = @transform_2, window_bounds = array<i64: 1, 512>}, {transform_indices = @transform_3, window_bounds = array<i64: 2, 512>}]} {
    %c0 = arith.constant 0 : index
    %c0_0 = arith.constant 0 : index
    %0 = vector.load %arg1[%c0, %c0_0] : memref<2x128xbf16, #tpu.memory_space<vmem>>, vector<2x128xbf16>
    %c0_1 = arith.constant 0 : index
    %c0_2 = arith.constant 0 : index
    %1 = vector.load %arg2[%c0_1, %c0_2] : memref<128x512xbf16, #tpu.memory_space<vmem>>, vector<128x512xbf16>
    %cst = arith.constant dense<0.000000e+00> : vector<2x512xf32>
    %2 = tpu.matmul %0, %1, %cst {dimension_numbers = #tpu.dot_dimension_numbers<[1], [0], [0], [1], [0, 0, 1, 1], [], []>} : vector<2x128xbf16>, vector<128x512xbf16>, vector<2x512xf32> -> vector<2x512xf32>
    %c0_3 = arith.constant 0 : index
    %c0_4 = arith.constant 0 : index
    %3 = vector.load %arg3[%c0_3, %c0_4] : memref<1x512xf32, #tpu.memory_space<vmem>>, vector<1x512xf32>
    %4 = vector.broadcast %3 : vector<1x512xf32> to vector<2x512xf32>
    %5 = arith.addf %2, %4 : vector<2x512xf32>
    %6 = arith.truncf %5 : vector<2x512xf32> to vector<2x512xbf16>
    %c0_5 = arith.constant 0 : index
    %c0_6 = arith.constant 0 : index
    %7 = vector.load %arg4[%c0_5, %c0_6] : memref<2x512xbf16, #tpu.memory_space<vmem>>, vector<2x512xbf16>
    tpu.vector_store %arg4[%c0_5, %c0_6], %6 {strides = array<i32>} : memref<2x512xbf16, #tpu.memory_space<vmem>>, vector<2x512xbf16>,
    return
  }
  func.func @transform_0(%arg0: i32) -> (i32, i32) {
    %c0_i32 = arith.constant 0 : i32
    %c0_i32_0 = arith.constant 0 : i32
    %c0_i32_1 = arith.constant 0 : i32
    return %c0_i32, %c0_i32_0 : i32, i32
  }
  func.func @transform_1(%arg0: i32) -> (i32, i32) {
    %c0_i32 = arith.constant 0 : i32
    %c0_i32_0 = arith.constant 0 : i32
    return %c0_i32, %arg0 : i32, i32
  }
  func.func @transform_2(%arg0: i32) -> (i32, i32) {
    %c0_i32 = arith.constant 0 : i32
    %c0_i32_0 = arith.constant 0 : i32
    return %c0_i32, %arg0 : i32, i32
  }
  func.func @transform_3(%arg0: i32) -> (i32, i32) {
    %c0_i32 = arith.constant 0 : i32
    %c0_i32_0 = arith.constant 0 : i32
    return %c0_i32, %arg0 : i32, i32
  }
}

module attributes {stable_mosaic.version = 11 : i64} {
  func.func @_mm_kernel(%arg0: i32, %arg1: memref<2x12xbf16, #tpu.memory_space<vmem>>, %arg2: memref<12x8192xbf16, #tpu.memory_space<vmem>>, %arg3: memref<2x1xf32, #tpu.memory_space<vmem>>, %arg4: memref<2x8192xbf16, #tpu.memory_space<vmem>>) attributes {dimension_semantics = [#tpu.dimension_semantics<parallel>], iteration_bounds = array<i64: 1>, scalar_prefetch = 0 : i64, scratch_operands = 0 : i64, tpu.core_type = #tpu.core_type<tc>, window_params = [{pipeline_mode = #tpu.pipeline_mode<synchronous>, transform_indices = @transform_0, window_bounds = array<i64: 2, 12>}, {transform_indices = @transform_1, window_bounds = array<i64: 12, 8192>}, {pipeline_mode = #tpu.pipeline_mode<synchronous>, transform_indices = @transform_2, window_bounds = array<i64: 2, 1>}, {transform_indices = @transform_3, window_bounds = array<i64: 2, 8192>}]} {
    %c0 = arith.constant 0 : index
    %c0_0 = arith.constant 0 : index
    %0 = vector.load %arg1[%c0, %c0_0] : memref<2x12xbf16, #tpu.memory_space<vmem>>, vector<2x12xbf16>
    %c0_1 = arith.constant 0 : index
    %c0_2 = arith.constant 0 : index
    %1 = vector.load %arg2[%c0_1, %c0_2] : memref<12x8192xbf16, #tpu.memory_space<vmem>>, vector<12x8192xbf16>
    %cst = arith.constant dense<0.000000e+00> : vector<2x8192xf32>
    %2 = tpu.matmul %0, %1, %cst {dimension_numbers = #tpu.dot_dimension_numbers<[1], [0], [0], [1], [0, 0, 1, 1], [], []>} : vector<2x12xbf16>, vector<12x8192xbf16>, vector<2x8192xf32> -> vector<2x8192xf32>
    %c0_3 = arith.constant 0 : index
    %c0_4 = arith.constant 0 : index
    %3 = vector.load %arg3[%c0_3, %c0_4] : memref<2x1xf32, #tpu.memory_space<vmem>>, vector<2x1xf32>
    %4 = vector.broadcast %3 : vector<2x1xf32> to vector<2x8192xf32>
    %5 = arith.addf %2, %4 : vector<2x8192xf32>
    %cst_5 = arith.constant 0.000000e+00 : f32
    %6 = vector.broadcast %cst_5 : f32 to vector<2x8192xf32>
    %7 = arith.cmpf oge, %5, %6 : vector<2x8192xf32>
    %cst_6 = arith.constant 2.000000e-01 : f32
    %8 = vector.broadcast %cst_6 : f32 to vector<2x8192xf32>
    %9 = arith.mulf %8, %5 : vector<2x8192xf32>
    %10 = arith.select %7, %5, %9 : vector<2x8192xi1>, vector<2x8192xf32>
    %11 = arith.truncf %10 : vector<2x8192xf32> to vector<2x8192xbf16>
    %c0_7 = arith.constant 0 : index
    %c0_8 = arith.constant 0 : index
    %12 = vector.load %arg4[%c0_7, %c0_8] : memref<2x8192xbf16, #tpu.memory_space<vmem>>, vector<2x8192xbf16>
    tpu.vector_store %arg4[%c0_7, %c0_8], %11 {strides = array<i32>} : memref<2x8192xbf16, #tpu.memory_space<vmem>>, vector<2x8192xbf16>,
    return
  }
  func.func @transform_0(%arg0: i32) -> (i32, i32) {
    %c0_i32 = arith.constant 0 : i32
    %c0_i32_0 = arith.constant 0 : i32
    %c0_i32_1 = arith.constant 0 : i32
    return %c0_i32, %c0_i32_0 : i32, i32
  }
  func.func @transform_1(%arg0: i32) -> (i32, i32) {
    %c0_i32 = arith.constant 0 : i32
    %c0_i32_0 = arith.constant 0 : i32
    return %c0_i32, %arg0 : i32, i32
  }
  func.func @transform_2(%arg0: i32) -> (i32, i32) {
    %c0_i32 = arith.constant 0 : i32
    %c0_i32_0 = arith.constant 0 : i32
    %c0_i32_1 = arith.constant 0 : i32
    return %c0_i32, %c0_i32_0 : i32, i32
  }
  func.func @transform_3(%arg0: i32) -> (i32, i32) {
    %c0_i32 = arith.constant 0 : i32
    %c0_i32_0 = arith.constant 0 : i32
    return %c0_i32, %arg0 : i32, i32
  }
}

module attributes {stable_mosaic.version = 11 : i64} {
  func.func @_mm_kernel(%arg0: i32, %arg1: memref<128x128xbf16, #tpu.memory_space<vmem>>, %arg2: memref<128x256xbf16, #tpu.memory_space<vmem>>, %arg3: memref<1x256xf32, #tpu.memory_space<vmem>>, %arg4: memref<128x256xf32, #tpu.memory_space<vmem>>) attributes {dimension_semantics = [#tpu.dimension_semantics<parallel>], iteration_bounds = array<i64: 1>, scalar_prefetch = 0 : i64, scratch_operands = 0 : i64, tpu.core_type = #tpu.core_type<tc>, window_params = [{pipeline_mode = #tpu.pipeline_mode<synchronous>, transform_indices = @transform_0, window_bounds = array<i64: 128, 128>}, {transform_indices = @transform_1, window_bounds = array<i64: 128, 256>}, {transform_indices = @transform_2, window_bounds = array<i64: 1, 256>}, {transform_indices = @transform_3, window_bounds = array<i64: 128, 256>}]} {
    %c0 = arith.constant 0 : index
    %c0_0 = arith.constant 0 : index
    %0 = vector.load %arg1[%c0, %c0_0] : memref<128x128xbf16, #tpu.memory_space<vmem>>, vector<128x128xbf16>
    %c0_1 = arith.constant 0 : index
    %c0_2 = arith.constant 0 : index
    %1 = vector.load %arg2[%c0_1, %c0_2] : memref<128x256xbf16, #tpu.memory_space<vmem>>, vector<128x256xbf16>
    %cst = arith.constant dense<0.000000e+00> : vector<128x256xf32>
    %2 = tpu.matmul %0, %1, %cst {dimension_numbers = #tpu.dot_dimension_numbers<[1], [0], [0], [1], [0, 0, 1, 1], [], []>} : vector<128x128xbf16>, vector<128x256xbf16>, vector<128x256xf32> -> vector<128x256xf32>
    %c0_3 = arith.constant 0 : index
    %c0_4 = arith.constant 0 : index
    %3 = vector.load %arg3[%c0_3, %c0_4] : memref<1x256xf32, #tpu.memory_space<vmem>>, vector<1x256xf32>
    %4 = vector.broadcast %3 : vector<1x256xf32> to vector<128x256xf32>
    %5 = arith.addf %2, %4 : vector<128x256xf32>
    %c0_5 = arith.constant 0 : index
    %c0_6 = arith.constant 0 : index
    %6 = vector.load %arg4[%c0_5, %c0_6] : memref<128x256xf32, #tpu.memory_space<vmem>>, vector<128x256xf32>
    tpu.vector_store %arg4[%c0_5, %c0_6], %5 {strides = array<i32>} : memref<128x256xf32, #tpu.memory_space<vmem>>, vector<128x256xf32>,
    return
  }
  func.func @transform_0(%arg0: i32) -> (i32, i32) {
    %c0_i32 = arith.constant 0 : i32
    %c0_i32_0 = arith.constant 0 : i32
    %c0_i32_1 = arith.constant 0 : i32
    return %c0_i32, %c0_i32_0 : i32, i32
  }
  func.func @transform_1(%arg0: i32) -> (i32, i32) {
    %c0_i32 = arith.constant 0 : i32
    %c0_i32_0 = arith.constant 0 : i32
    return %c0_i32, %arg0 : i32, i32
  }
  func.func @transform_2(%arg0: i32) -> (i32, i32) {
    %c0_i32 = arith.constant 0 : i32
    %c0_i32_0 = arith.constant 0 : i32
    return %c0_i32, %arg0 : i32, i32
  }
  func.func @transform_3(%arg0: i32) -> (i32, i32) {
    %c0_i32 = arith.constant 0 : i32
    %c0_i32_0 = arith.constant 0 : i32
    return %c0_i32, %arg0 : i32, i32
  }
}

</mosaic_0001>

<bundles_post_ra>
// kernel: autoencoder_fwd.16
= control target key start
LH: loop header
LB: loop body
LE: loop exit
PB: predicated region body
PF: predicated region fallthrough
CT: control target
= control target key end

     0   :  { %8 = vsyncpa [#allocation3], 0  ;;  %s1078_s0 = inlined_call_operand.vmem [shape: bf16[128,256], index: 0, kind: input, shape index: {}]   ;;  %s1079_s1 = inlined_call_operand.hbm [shape: bf16[256,256], index: 1, kind: input, shape index: {}]   ;;  %s1080_s2 = inlined_call_operand.hbm [shape: f32[1,256], index: 2, kind: input, shape index: {}]   ;;  %s1081_s3 = inlined_call_operand.vmem [shape: bf16[128,256], index: 3, kind: output, shape index: {}]  }
   0x1   :  { %s16_s14 = sshll.u32 %s1079_s1, 4  ;;  %s17_s14 = int_to_ptr.hbm [resolvable:$true] %s16_s14 }
   0x2   :  { %9 = vsyncpa [#allocation5], 0  ;;  %s868_s15 = smov [#allocation2]   ;;  %s30_s19 = sshll.u32 %s1080_s2, 4  ;;  %s31_s19 = int_to_ptr.hbm [resolvable:$true] %s30_s19 }
   0x3   :  { %s18_s16 = sshll.u32 %s868_s15, 4  ;;  %s869_s20 = smov 128   ;;  %s19_s16 = int_to_ptr.vmem [resolvable:$true] %s18_s16 }
   0x4   :  { %s870_s21 = smov 8   ;;  %s871_s22 = smov [#allocation4]  }
   0x5   :  { %24 = dma.hbm_to_vmem [thread:$0]  %s17_s14, 4096, %s19_s16, [#allocation3], %s869_s20, %s869_s20, %s870_s21  }
   0x6   :  { %s32_s23 = sshll.u32 %s871_s22, 4  ;;  %s33_s23 = int_to_ptr.vmem [resolvable:$true] %s32_s23 }
   0x7   :  { %35 = dma.hbm_to_vmem [thread:$0]  %s31_s19, 32, %s33_s23, [#allocation5]  }
   0x8   :  { %864 = dma.done.wait [#allocation3], 4096  }
   0x9   :  { %865 = vsyncadd [#allocation3], 4294963200 }
   0xa   :  { %866 = dma.done.wait [#allocation5], 32  }
   0xb   :  { %867 = vsyncadd [#allocation5], 4294967264  ;;  %v694_v0 = vld [vmem:[#allocation2 + $0x70] sm:$0xf]  ;;  %v795_v1 = vld [vmem:[#allocation2 + $0x74] sm:$0xf0] }
   0xc   :  { %v758_v2 = vld [vmem:[#allocation2 + $0xf0] sm:$0xf]  ;;  %v695_v3 = vor.u32 %v795_v1, %v694_v0  ;;  %v811_v4 = vld [vmem:[#allocation2 + $0xf4] sm:$0xf0]  ;;  %v794_v5 = vld [vmem:[#allocation2 + $0x74] sm:$0xf] }
   0xd   :  { %v696_v6 = vld [vmem:[#allocation2 + $0x78] sm:$0xf0]  ;;  %v759_v7 = vor.u32 %v811_v4, %v758_v2  ;;  %v810_v9 = vld [vmem:[#allocation2 + $0xf4] sm:$0xf]  ;;  %v686_v11 = vld [vmem:[#allocation2 + $0x60] sm:$0xf] }
   0xe   :  { %v699_v8 = vor.u32 %v794_v5, %v696_v6  ;;  %v760_v10 = vld [vmem:[#allocation2 + $0xf8] sm:$0xf0]  ;;  %338 = vmatpush.bf16.msra.mxu0 %v695_v3  ;;  %v793_v13 = vld [vmem:[#allocation2 + $0x64] sm:$0xf0]  ;;  %v750_v14 = vld [vmem:[#allocation2 + $0xe0] sm:$0xf] }
   0xf   :  { %v763_v12 = vor.u32 %v810_v9, %v760_v10  ;;  %v809_v15 = vld [vmem:[#allocation2 + $0xe4] sm:$0xf0]  ;;  %387 = vmatpush.bf16.msra.mxu1 %v759_v7  ;;  %v687_v16 = vor.u32 %v793_v13, %v686_v11  ;;  %v792_v18 = vld [vmem:[#allocation2 + $0x64] sm:$0xf]  ;;  %v688_v19 = vld [vmem:[#allocation2 + $0x68] sm:$0xf0] }
  0x10   :  { %436 = vmatpush.bf16.msra.mxu2 %v699_v8  ;;  %v751_v17 = vor.u32 %v809_v15, %v750_v14  ;;  %v808_v20 = vld [vmem:[#allocation2 + $0xe4] sm:$0xf]  ;;  %v691_v21 = vor.u32 %v792_v18, %v688_v19  ;;  %v752_v22 = vld [vmem:[#allocation2 + $0xe8] sm:$0xf0]  ;;  %v678_v23 = vld [vmem:[#allocation2 + $0x50] sm:$0xf] }
  0x11   :  { %485 = vmatpush.bf16.msra.mxu3 %v763_v12  ;;  %v791_v24 = vld [vmem:[#allocation2 + $0x54] sm:$0xf0]  ;;  %v755_v25 = vor.u32 %v808_v20, %v752_v22  ;;  %v742_v26 = vld [vmem:[#allocation2 + $0xd0] sm:$0xf]  ;;  %v790_v28 = vld [vmem:[#allocation2 + $0x54] sm:$0xf] }
  0x12   :  { %v807_v27 = vld [vmem:[#allocation2 + $0xd4] sm:$0xf0]  ;;  %339 = vmatpush.bf16.msra.mxu0 %v687_v16  ;;  %v679_v29 = vor.u32 %v791_v24, %v678_v23  ;;  %v680_v30 = vld [vmem:[#allocation2 + $0x58] sm:$0xf0]  ;;  %v806_v31 = vld [vmem:[#allocation2 + $0xd4] sm:$0xf] }
  0x13   :  { %v744_v32 = vld [vmem:[#allocation2 + $0xd8] sm:$0xf0]  ;;  %388 = vmatpush.bf16.msra.mxu1 %v751_v17  ;;  %v743_v33 = vor.u32 %v807_v27, %v742_v26  ;;  %v683_v34 = vor.u32 %v790_v28, %v680_v30  ;;  %v670_v35 = vld [vmem:[#allocation2 + $0x40] sm:$0xf]  ;;  %v789_v36 = vld [vmem:[#allocation2 + $0x44] sm:$0xf0] }
  0x14   :  { %437 = vmatpush.bf16.msra.mxu2 %v691_v21  ;;  %v734_v37 = vld [vmem:[#allocation2 + $0xc0] sm:$0xf]  ;;  %v747_v38 = vor.u32 %v806_v31, %v744_v32  ;;  %v805_v39 = vld [vmem:[#allocation2 + $0xc4] sm:$0xf0]  ;;  %v788_v40 = vld [vmem:[#allocation2 + $0x44] sm:$0xf]  ;;  %v671_v44 = vor.u32 %v789_v36, %v670_v35 }
  0x15   :  { %486 = vmatpush.bf16.msra.mxu3 %v755_v25  ;;  %v672_v41 = vld [vmem:[#allocation2 + $0x48] sm:$0xf0]  ;;  %v804_v42 = vld [vmem:[#allocation2 + $0xc4] sm:$0xf]  ;;  %v735_v45 = vor.u32 %v805_v39, %v734_v37  ;;  %v662_v47 = vld [vmem:[#allocation2 + $0x30] sm:$0xf] }
  0x16   :  { %v736_v43 = vld [vmem:[#allocation2 + $0xc8] sm:$0xf0]  ;;  %340 = vmatpush.bf16.msra.mxu0 %v679_v29  ;;  %v675_v46 = vor.u32 %v788_v40, %v672_v41  ;;  %v787_v48 = vld [vmem:[#allocation2 + $0x34] sm:$0xf0]  ;;  %v726_v49 = vld [vmem:[#allocation2 + $0xb0] sm:$0xf] }
  0x17   :  { %389 = vmatpush.bf16.msra.mxu1 %v743_v33  ;;  %v739_v50 = vor.u32 %v804_v42, %v736_v43  ;;  %v803_v51 = vld [vmem:[#allocation2 + $0xb4] sm:$0xf0]  ;;  %v786_v52 = vld [vmem:[#allocation2 + $0x34] sm:$0xf]  ;;  %v664_v53 = vld [vmem:[#allocation2 + $0x38] sm:$0xf0]  ;;  %v663_v56 = vor.u32 %v787_v48, %v662_v47 }
  0x18   :  { %438 = vmatpush.bf16.msra.mxu2 %v683_v34  ;;  %v802_v54 = vld [vmem:[#allocation2 + $0xb4] sm:$0xf]  ;;  %v728_v55 = vld [vmem:[#allocation2 + $0xb8] sm:$0xf0]  ;;  %v727_v57 = vor.u32 %v803_v51, %v726_v49  ;;  %v667_v58 = vor.u32 %v786_v52, %v664_v53  ;;  %v654_v59 = vld [vmem:[#allocation2 + $0x20] sm:$0xf] }
  0x19   :  { %487 = vmatpush.bf16.msra.mxu3 %v747_v38  ;;  %v785_v60 = vld [vmem:[#allocation2 + $0x24] sm:$0xf0]  ;;  %v718_v61 = vld [vmem:[#allocation2 + $0xa0] sm:$0xf]  ;;  %v731_v62 = vor.u32 %v802_v54, %v728_v55  ;;  %v784_v0 = vld [vmem:[#allocation2 + $0x24] sm:$0xf] }
  0x1a   :  { %341 = vmatpush.bf16.msra.mxu0 %v671_v44  ;;  %v801_v63 = vld [vmem:[#allocation2 + $0xa4] sm:$0xf0]  ;;  %v656_v1 = vld [vmem:[#allocation2 + $0x28] sm:$0xf0]  ;;  %v800_v2 = vld [vmem:[#allocation2 + $0xa4] sm:$0xf]  ;;  %v655_v4 = vor.u32 %v785_v60, %v654_v59 }
  0x1b   :  { %390 = vmatpush.bf16.msra.mxu1 %v735_v45  ;;  %v720_v3 = vld [vmem:[#allocation2 + $0xa8] sm:$0xf0]  ;;  %v719_v5 = vor.u32 %v801_v63, %v718_v61  ;;  %v659_v6 = vor.u32 %v784_v0, %v656_v1  ;;  %v646_v7 = vld [vmem:[#allocation2 + $0x10] sm:$0xf]  ;;  %v783_v8 = vld [vmem:[#allocation2 + $0x14] sm:$0xf0] }
  0x1c   :  { %439 = vmatpush.bf16.msra.mxu2 %v675_v46  ;;  %v710_v9 = vld [vmem:[#allocation2 + $0x90] sm:$0xf]  ;;  %v723_v10 = vor.u32 %v800_v2, %v720_v3  ;;  %v799_v11 = vld [vmem:[#allocation2 + $0x94] sm:$0xf0]  ;;  %v782_v12 = vld [vmem:[#allocation2 + $0x14] sm:$0xf]  ;;  %v647_v16 = vor.u32 %v783_v8, %v646_v7 }
  0x1d   :  { %488 = vmatpush.bf16.msra.mxu3 %v739_v50  ;;  %v648_v13 = vld [vmem:[#allocation2 + $0x18] sm:$0xf0]  ;;  %v798_v14 = vld [vmem:[#allocation2 + $0x94] sm:$0xf]  ;;  %v711_v17 = vor.u32 %v799_v11, %v710_v9  ;;  %v638_v19 = vld [vmem:[#allocation2] sm:$0xf] }
  0x1e   :  { %342 = vmatpush.bf16.msra.mxu0 %v663_v56  ;;  %v712_v15 = vld [vmem:[#allocation2 + $0x98] sm:$0xf0]  ;;  %v651_v18 = vor.u32 %v782_v12, %v648_v13  ;;  %v781_v20 = vld [vmem:[#allocation2 + $0x4] sm:$0xf0]  ;;  %v702_v21 = vld [vmem:[#allocation2 + $0x80] sm:$0xf] }
  0x1f   :  { %391 = vmatpush.bf16.msra.mxu1 %v727_v57  ;;  %v715_v22 = vor.u32 %v798_v14, %v712_v15  ;;  %v797_v23 = vld [vmem:[#allocation2 + $0x84] sm:$0xf0]  ;;  %v780_v24 = vld [vmem:[#allocation2 + $0x4] sm:$0xf]  ;;  %v640_v25 = vld [vmem:[#allocation2 + $0x8] sm:$0xf0]  ;;  %v639_v28 = vor.u32 %v781_v20, %v638_v19 }
  0x20   :  { %440 = vmatpush.bf16.msra.mxu2 %v667_v58  ;;  %v796_v26 = vld [vmem:[#allocation2 + $0x84] sm:$0xf]  ;;  %v704_v27 = vld [vmem:[#allocation2 + $0x88] sm:$0xf0]  ;;  %v574_v29 = vld [vmem:[%s1078_s0] sm:$0xf]  ;;  %v703_v31 = vor.u32 %v797_v23, %v702_v21  ;;  %v643_v32 = vor.u32 %v780_v24, %v640_v25 }
  0x21   :  { %489 = vmatpush.bf16.msra.mxu3 %v731_v62  ;;  %v765_v30 = vld [vmem:[%s1078_s0 + $0x4] sm:$0xf0]  ;;  %v764_v33 = vld [vmem:[%s1078_s0 + $0x4] sm:$0xf]  ;;  %v576_v34 = vld [vmem:[%s1078_s0 + $0x8] sm:$0xf0]  ;;  %v707_v35 = vor.u32 %v796_v26, %v704_v27 }
  0x22   :  { %343 = vmatpush.bf16.msra.mxu0 %v655_v4  ;;  %v575_v36 = vor.u32 %v765_v30, %v574_v29  ;;  %v579_v37 = vor.u32 %v764_v33, %v576_v34  ;;  %v582_v38 = vld [vmem:[%s1078_s0 + $0x10] sm:$0xf]  ;;  %v767_v39 = vld [vmem:[%s1078_s0 + $0x14] sm:$0xf0]  ;;  %v766_v40 = vld [vmem:[%s1078_s0 + $0x14] sm:$0xf] }
  0x23   :  { %392 = vmatpush.bf16.msra.mxu1 %v719_v5  ;;  %v584_v41 = vld [vmem:[%s1078_s0 + $0x18] sm:$0xf0]  ;;  %v583_v42 = vor.u32 %v767_v39, %v582_v38  ;;  %v590_v44 = vld [vmem:[%s1078_s0 + $0x20] sm:$0xf]  ;;  %v769_v45 = vld [vmem:[%s1078_s0 + $0x24] sm:$0xf0] }
  0x24   :  { %441 = vmatpush.bf16.msra.mxu2 %v659_v6  ;;  %v587_v43 = vor.u32 %v766_v40, %v584_v41  ;;  %v768_v46 = vld [vmem:[%s1078_s0 + $0x24] sm:$0xf]  ;;  %v592_v47 = vld [vmem:[%s1078_s0 + $0x28] sm:$0xf0]  ;;  %v591_v48 = vor.u32 %v769_v45, %v590_v44  ;;  %v598_v50 = vld [vmem:[%s1078_s0 + $0x30] sm:$0xf] }
  0x25   :  { %490 = vmatpush.bf16.msra.mxu3 %v723_v10  ;;  %v595_v49 = vor.u32 %v768_v46, %v592_v47  ;;  %v771_v51 = vld [vmem:[%s1078_s0 + $0x34] sm:$0xf0]  ;;  %v770_v52 = vld [vmem:[%s1078_s0 + $0x34] sm:$0xf]  ;;  %v600_v53 = vld [vmem:[%s1078_s0 + $0x38] sm:$0xf0] }
  0x26   :  { %344 = vmatpush.bf16.msra.mxu0 %v647_v16  ;;  %v599_v54 = vor.u32 %v771_v51, %v598_v50  ;;  %v603_v55 = vor.u32 %v770_v52, %v600_v53  ;;  %v606_v56 = vld [vmem:[%s1078_s0 + $0x40] sm:$0xf]  ;;  %v773_v57 = vld [vmem:[%s1078_s0 + $0x44] sm:$0xf0]  ;;  %v772_v58 = vld [vmem:[%s1078_s0 + $0x44] sm:$0xf] }
  0x27   :  { %393 = vmatpush.bf16.msra.mxu1 %v711_v17  ;;  %v608_v59 = vld [vmem:[%s1078_s0 + $0x48] sm:$0xf0]  ;;  %v607_v60 = vor.u32 %v773_v57, %v606_v56  ;;  %v614_v62 = vld [vmem:[%s1078_s0 + $0x50] sm:$0xf]  ;;  %v775_v63 = vld [vmem:[%s1078_s0 + $0x54] sm:$0xf0] }
  0x28   :  { %442 = vmatpush.bf16.msra.mxu2 %v651_v18  ;;  %v611_v61 = vor.u32 %v772_v58, %v608_v59  ;;  %v774_v0 = vld [vmem:[%s1078_s0 + $0x54] sm:$0xf]  ;;  %v616_v1 = vld [vmem:[%s1078_s0 + $0x58] sm:$0xf0]  ;;  %v615_v2 = vor.u32 %v775_v63, %v614_v62  ;;  %v622_v4 = vld [vmem:[%s1078_s0 + $0x60] sm:$0xf] }
  0x29   :  { %491 = vmatpush.bf16.msra.mxu3 %v715_v22  ;;  %v619_v3 = vor.u32 %v774_v0, %v616_v1  ;;  %v777_v5 = vld [vmem:[%s1078_s0 + $0x64] sm:$0xf0]  ;;  %v776_v6 = vld [vmem:[%s1078_s0 + $0x64] sm:$0xf]  ;;  %v624_v7 = vld [vmem:[%s1078_s0 + $0x68] sm:$0xf0] }
  0x2a   :  { %345 = vmatpush.bf16.msra.mxu0 %v639_v28  ;;  %v623_v8 = vor.u32 %v777_v5, %v622_v4  ;;  %v627_v9 = vor.u32 %v776_v6, %v624_v7  ;;  %v630_v10 = vld [vmem:[%s1078_s0 + $0x70] sm:$0xf]  ;;  %v779_v11 = vld [vmem:[%s1078_s0 + $0x74] sm:$0xf0]  ;;  %v778_v12 = vld [vmem:[%s1078_s0 + $0x74] sm:$0xf] }
  0x2b   :  { %394 = vmatpush.bf16.msra.mxu1 %v703_v31  ;;  %v632_v13 = vld [vmem:[%s1078_s0 + $0x78] sm:$0xf0]  ;;  %v631_v14 = vor.u32 %v779_v11, %v630_v10  ;;  %v92_v16 = vld [vmem:[#allocation4] sm:$0x3] }
  0x2c   :  { %443 = vmatpush.bf16.msra.mxu2 %v643_v32  ;;  %v635_v15 = vor.u32 %v778_v12, %v632_v13  ;;  %v994_v17 = vperm.slane %v92_v16, 0  ;;  %v997_v21 = vperm.slane %v92_v16, 1 }
  0x2d   :  { %492 = vmatpush.bf16.msra.mxu3 %v707_v35  ;;  %346 = vmatmul.bf16.vlgmr.msra.gmra.mxu0 %v575_v36 }
  0x2e   :  { %395 = vmatmul.bf16.vlgmr.msra.gmra.mxu1 %v579_v37 }
  0x2f   :  { %444 = vmatmul.bf16.vlgmr.msra.gmra.mxu2 %v575_v36 }
  0x30   :  { %493 = vmatmul.bf16.vlgmr.msra.gmra.mxu3 %v579_v37 }
  0x3d   :  { %351 = vmatmul.bf16.gmra.mxu0 %v583_v42 }
  0x3e   :  { %400 = vmatmul.bf16.gmra.mxu1 %v587_v43 }
  0x3f   :  { %449 = vmatmul.bf16.gmra.mxu2 %v583_v42 }
  0x40   :  { %498 = vmatmul.bf16.gmra.mxu3 %v587_v43 }
  0x4d   :  { %356 = vmatmul.bf16.gmra.mxu0 %v591_v48 }
  0x4e   :  { %405 = vmatmul.bf16.gmra.mxu1 %v595_v49 }
  0x4f   :  { %454 = vmatmul.bf16.gmra.mxu2 %v591_v48 }
  0x50   :  { %503 = vmatmul.bf16.gmra.mxu3 %v595_v49 }
  0x5d   :  { %361 = vmatmul.bf16.gmra.mxu0 %v599_v54 }
  0x5e   :  { %410 = vmatmul.bf16.gmra.mxu1 %v603_v55 }
  0x5f   :  { %459 = vmatmul.bf16.gmra.mxu2 %v599_v54 }
  0x60   :  { %508 = vmatmul.bf16.gmra.mxu3 %v603_v55 }
  0x6d   :  { %366 = vmatmul.bf16.gmra.mxu0 %v607_v60 }
  0x6e   :  { %415 = vmatmul.bf16.gmra.mxu1 %v611_v61 }
  0x6f   :  { %464 = vmatmul.bf16.gmra.mxu2 %v607_v60 }
  0x70   :  { %513 = vmatmul.bf16.gmra.mxu3 %v611_v61 }
  0x7d   :  { %371 = vmatmul.bf16.gmra.mxu0 %v615_v2 }
  0x7e   :  { %420 = vmatmul.bf16.gmra.mxu1 %v619_v3 }
  0x7f   :  { %469 = vmatmul.bf16.gmra.mxu2 %v615_v2 }
  0x80   :  { %518 = vmatmul.bf16.gmra.mxu3 %v619_v3 }
  0x8d   :  { %376 = vmatmul.bf16.gmra.mxu0 %v623_v8 }
  0x8e   :  { %425 = vmatmul.bf16.gmra.mxu1 %v627_v9 }
  0x8f   :  { %474 = vmatmul.bf16.gmra.mxu2 %v623_v8 }
  0x90   :  { %523 = vmatmul.bf16.gmra.mxu3 %v627_v9 }
  0x9d   :  { %381 = vmatmul.bf16.gmra.mxu0 %v631_v14 }
  0x9e   :  { %430 = vmatmul.bf16.gmra.mxu1 %v635_v15 }
  0x9f   :  { %479 = vmatmul.bf16.gmra.mxu2 %v631_v14 }
  0xa0   :  { %528 = vmatmul.bf16.gmra.mxu3 %v635_v15 }
  0xaa   :  { %v347_v18 = vpop.f32.mrf.mxu0 }
  0xab   :  { %v396_v19 = vpop.f32.mrf.mxu1  ;;  %v348_v20 = vadd.f32 %v347_v18, %v994_v17 }
  0xad   :  { %v397_v23 = vadd.f32 %v396_v19, %v348_v20 }
  0xb2   :  { %v445_v22 = vpop.f32.mrf.mxu2  ;;  %v349_v26 = vpop.f32.mrf.mxu0 }
  0xb3   :  { %v446_v24 = vadd.f32 %v445_v22, %v997_v21  ;;  %v494_v25 = vpop.f32.mrf.mxu3  ;;  %v398_v27 = vpop.f32.mrf.mxu1  ;;  %v350_v30 = vadd.f32 %v349_v26, %v994_v17 }
  0xb5   :  { %v495_v28 = vadd.f32 %v494_v25, %v446_v24  ;;  %v399_v36 = vadd.f32 %v398_v27, %v350_v30 }
  0xb7   :  { %v534_v29 = vpack.c.bf16 %v495_v28, %v397_v23 }
  0xb9   :  { %550 = vst [vmem:[%s1081_s3] sm:$0xff] %v534_v29 }
  0xba   :  { %v447_v31 = vpop.f32.mrf.mxu2  ;;  %v352_v34 = vpop.f32.mrf.mxu0 }
  0xbb   :  { %v448_v32 = vadd.f32 %v447_v31, %v997_v21  ;;  %v496_v33 = vpop.f32.mrf.mxu3  ;;  %v401_v35 = vpop.f32.mrf.mxu1  ;;  %v353_v39 = vadd.f32 %v352_v34, %v994_v17 }
  0xbd   :  { %v497_v37 = vadd.f32 %v496_v33, %v448_v32  ;;  %v402_v41 = vadd.f32 %v401_v35, %v353_v39 }
  0xbf   :  { %v535_v38 = vpack.c.bf16 %v497_v37, %v399_v36 }
  0xc1   :  { %551 = vst [vmem:[%s1081_s3 + $0x8] sm:$0xff] %v535_v38 }
  0xc2   :  { %v450_v40 = vpop.f32.mrf.mxu2  ;;  %v354_v44 = vpop.f32.mrf.mxu0 }
  0xc3   :  { %v451_v42 = vadd.f32 %v450_v40, %v997_v21  ;;  %v499_v43 = vpop.f32.mrf.mxu3  ;;  %v403_v45 = vpop.f32.mrf.mxu1  ;;  %v355_v48 = vadd.f32 %v354_v44, %v994_v17 }
  0xc5   :  { %v500_v46 = vadd.f32 %v499_v43, %v451_v42  ;;  %v404_v54 = vadd.f32 %v403_v45, %v355_v48 }
  0xc7   :  { %v536_v47 = vpack.c.bf16 %v500_v46, %v402_v41 }
  0xc9   :  { %552 = vst [vmem:[%s1081_s3 + $0x10] sm:$0xff] %v536_v47 }
  0xca   :  { %v452_v49 = vpop.f32.mrf.mxu2  ;;  %v357_v52 = vpop.f32.mrf.mxu0 }
  0xcb   :  { %v453_v50 = vadd.f32 %v452_v49, %v997_v21  ;;  %v501_v51 = vpop.f32.mrf.mxu3  ;;  %v406_v53 = vpop.f32.mrf.mxu1  ;;  %v358_v57 = vadd.f32 %v357_v52, %v994_v17 }
  0xcd   :  { %v502_v55 = vadd.f32 %v501_v51, %v453_v50  ;;  %v407_v59 = vadd.f32 %v406_v53, %v358_v57 }
  0xcf   :  { %v537_v56 = vpack.c.bf16 %v502_v55, %v404_v54 }
  0xd1   :  { %553 = vst [vmem:[%s1081_s3 + $0x18] sm:$0xff] %v537_v56 }
  0xd2   :  { %v455_v58 = vpop.f32.mrf.mxu2  ;;  %v359_v62 = vpop.f32.mrf.mxu0 }
  0xd3   :  { %v456_v60 = vadd.f32 %v455_v58, %v997_v21  ;;  %v504_v61 = vpop.f32.mrf.mxu3  ;;  %v408_v63 = vpop.f32.mrf.mxu1  ;;  %v360_v2 = vadd.f32 %v359_v62, %v994_v17 }
  0xd5   :  { %v505_v0 = vadd.f32 %v504_v61, %v456_v60  ;;  %v409_v8 = vadd.f32 %v408_v63, %v360_v2 }
  0xd7   :  { %v538_v1 = vpack.c.bf16 %v505_v0, %v407_v59 }
  0xd9   :  { %554 = vst [vmem:[%s1081_s3 + $0x20] sm:$0xff] %v538_v1 }
  0xda   :  { %v457_v3 = vpop.f32.mrf.mxu2  ;;  %v362_v6 = vpop.f32.mrf.mxu0 }
  0xdb   :  { %v458_v4 = vadd.f32 %v457_v3, %v997_v21  ;;  %v506_v5 = vpop.f32.mrf.mxu3  ;;  %v411_v7 = vpop.f32.mrf.mxu1  ;;  %v363_v11 = vadd.f32 %v362_v6, %v994_v17 }
  0xdd   :  { %v507_v9 = vadd.f32 %v506_v5, %v458_v4  ;;  %v412_v13 = vadd.f32 %v411_v7, %v363_v11 }
  0xdf   :  { %v539_v10 = vpack.c.bf16 %v507_v9, %v409_v8 }
  0xe1   :  { %555 = vst [vmem:[%s1081_s3 + $0x28] sm:$0xff] %v539_v10 }
  0xe2   :  { %v460_v12 = vpop.f32.mrf.mxu2  ;;  %v364_v16 = vpop.f32.mrf.mxu0 }
  0xe3   :  { %v461_v14 = vadd.f32 %v460_v12, %v997_v21  ;;  %v509_v15 = vpop.f32.mrf.mxu3  ;;  %v413_v18 = vpop.f32.mrf.mxu1  ;;  %v365_v22 = vadd.f32 %v364_v16, %v994_v17 }
  0xe5   :  { %v510_v19 = vadd.f32 %v509_v15, %v461_v14  ;;  %v414_v28 = vadd.f32 %v413_v18, %v365_v22 }
  0xe7   :  { %v540_v20 = vpack.c.bf16 %v510_v19, %v412_v13 }
  0xe9   :  { %556 = vst [vmem:[%s1081_s3 + $0x30] sm:$0xff] %v540_v20 }
  0xea   :  { %v462_v23 = vpop.f32.mrf.mxu2  ;;  %v367_v26 = vpop.f32.mrf.mxu0 }
  0xeb   :  { %v463_v24 = vadd.f32 %v462_v23, %v997_v21  ;;  %v511_v25 = vpop.f32.mrf.mxu3  ;;  %v416_v27 = vpop.f32.mrf.mxu1  ;;  %v368_v31 = vadd.f32 %v367_v26, %v994_v17 }
  0xed   :  { %v512_v29 = vadd.f32 %v511_v25, %v463_v24  ;;  %v417_v33 = vadd.f32 %v416_v27, %v368_v31 }
  0xef   :  { %v541_v30 = vpack.c.bf16 %v512_v29, %v414_v28 }
  0xf1   :  { %557 = vst [vmem:[%s1081_s3 + $0x38] sm:$0xff] %v541_v30 }
  0xf2   :  { %v465_v32 = vpop.f32.mrf.mxu2  ;;  %v369_v36 = vpop.f32.mrf.mxu0 }
  0xf3   :  { %v466_v34 = vadd.f32 %v465_v32, %v997_v21  ;;  %v514_v35 = vpop.f32.mrf.mxu3  ;;  %v418_v37 = vpop.f32.mrf.mxu1  ;;  %v370_v40 = vadd.f32 %v369_v36, %v994_v17 }
  0xf5   :  { %v515_v38 = vadd.f32 %v514_v35, %v466_v34  ;;  %v419_v46 = vadd.f32 %v418_v37, %v370_v40 }
  0xf7   :  { %v542_v39 = vpack.c.bf16 %v515_v38, %v417_v33 }
  0xf9   :  { %558 = vst [vmem:[%s1081_s3 + $0x40] sm:$0xff] %v542_v39 }
  0xfa   :  { %v467_v41 = vpop.f32.mrf.mxu2  ;;  %v372_v44 = vpop.f32.mrf.mxu0 }
  0xfb   :  { %v468_v42 = vadd.f32 %v467_v41, %v997_v21  ;;  %v516_v43 = vpop.f32.mrf.mxu3  ;;  %v421_v45 = vpop.f32.mrf.mxu1  ;;  %v373_v49 = vadd.f32 %v372_v44, %v994_v17 }
  0xfd   :  { %v517_v47 = vadd.f32 %v516_v43, %v468_v42  ;;  %v422_v51 = vadd.f32 %v421_v45, %v373_v49 }
  0xff   :  { %v543_v48 = vpack.c.bf16 %v517_v47, %v419_v46 }
 0x101   :  { %559 = vst [vmem:[%s1081_s3 + $0x48] sm:$0xff] %v543_v48 }
 0x102   :  { %v470_v50 = vpop.f32.mrf.mxu2  ;;  %v374_v54 = vpop.f32.mrf.mxu0 }
 0x103   :  { %v471_v52 = vadd.f32 %v470_v50, %v997_v21  ;;  %v519_v53 = vpop.f32.mrf.mxu3  ;;  %v423_v55 = vpop.f32.mrf.mxu1  ;;  %v375_v58 = vadd.f32 %v374_v54, %v994_v17 }
 0x105   :  { %v520_v56 = vadd.f32 %v519_v53, %v471_v52  ;;  %v424_v63 = vadd.f32 %v423_v55, %v375_v58 }
 0x107   :  { %v544_v57 = vpack.c.bf16 %v520_v56, %v422_v51 }
 0x109   :  { %560 = vst [vmem:[%s1081_s3 + $0x50] sm:$0xff] %v544_v57 }
 0x10a   :  { %v472_v59 = vpop.f32.mrf.mxu2  ;;  %v377_v62 = vpop.f32.mrf.mxu0 }
 0x10b   :  { %v473_v60 = vadd.f32 %v472_v59, %v997_v21  ;;  %v521_v61 = vpop.f32.mrf.mxu3  ;;  %v426_v1 = vpop.f32.mrf.mxu1  ;;  %v378_v3 = vadd.f32 %v377_v62, %v994_v17 }
 0x10d   :  { %v522_v0 = vadd.f32 %v521_v61, %v473_v60  ;;  %v427_v5 = vadd.f32 %v426_v1, %v378_v3 }
 0x10f   :  { %v545_v2 = vpack.c.bf16 %v522_v0, %v424_v63 }
 0x111   :  { %561 = vst [vmem:[%s1081_s3 + $0x58] sm:$0xff] %v545_v2 }
 0x112   :  { %v475_v4 = vpop.f32.mrf.mxu2  ;;  %v379_v8 = vpop.f32.mrf.mxu0 }
 0x113   :  { %v476_v6 = vadd.f32 %v475_v4, %v997_v21  ;;  %v524_v7 = vpop.f32.mrf.mxu3  ;;  %v428_v11 = vpop.f32.mrf.mxu1  ;;  %v380_v12 = vadd.f32 %v379_v8, %v994_v17 }
 0x115   :  { %v525_v9 = vadd.f32 %v524_v7, %v476_v6  ;;  %v429_v18 = vadd.f32 %v428_v11, %v380_v12 }
 0x117   :  { %v546_v10 = vpack.c.bf16 %v525_v9, %v427_v5 }
 0x119   :  { %562 = vst [vmem:[%s1081_s3 + $0x60] sm:$0xff] %v546_v10 }
 0x11a   :  { %v477_v13 = vpop.f32.mrf.mxu2  ;;  %v382_v16 = vpop.f32.mrf.mxu0 }
 0x11b   :  { %v478_v14 = vadd.f32 %v477_v13, %v997_v21  ;;  %v526_v15 = vpop.f32.mrf.mxu3  ;;  %v383_v22 = vadd.f32 %v382_v16, %v994_v17  ;;  %v431_v23 = vpop.f32.mrf.mxu1 }
 0x11d   :  { %v527_v19 = vadd.f32 %v526_v15, %v478_v14  ;;  %v432_v25 = vadd.f32 %v431_v23, %v383_v22 }
 0x11f   :  { %v547_v20 = vpack.c.bf16 %v527_v19, %v429_v18 }
 0x121   :  { %563 = vst [vmem:[%s1081_s3 + $0x68] sm:$0xff] %v547_v20 }
 0x122   :  { %v480_v24 = vpop.f32.mrf.mxu2  ;;  %v384_v29 = vpop.f32.mrf.mxu0 }
 0x123   :  { %v481_v26 = vadd.f32 %v480_v24, %v997_v21  ;;  %v529_v27 = vpop.f32.mrf.mxu3  ;;  %v385_v31 = vadd.f32 %v384_v29, %v994_v17  ;;  %v433_v34 = vpop.f32.mrf.mxu1 }
 0x125   :  { %v530_v28 = vadd.f32 %v529_v27, %v481_v26  ;;  %v434_v36 = vadd.f32 %v433_v34, %v385_v31 }
 0x127   :  { %v548_v30 = vpack.c.bf16 %v530_v28, %v432_v25 }
 0x129   :  { %564 = vst [vmem:[%s1081_s3 + $0x70] sm:$0xff] %v548_v30 }
 0x12a   :  { %v482_v32 = vpop.f32.mrf.mxu2 }
 0x12b   :  { %v483_v33 = vadd.f32 %v482_v32, %v997_v21  ;;  %v531_v35 = vpop.f32.mrf.mxu3 }
 0x12d   :  { %v532_v37 = vadd.f32 %v531_v35, %v483_v33 }
 0x12f   :  { %v549_v38 = vpack.c.bf16 %v532_v37, %v434_v36 }
 0x131   :  { %565 = vst [vmem:[%s1081_s3 + $0x78] sm:$0xff] %v549_v38 }
 0x132   :  { %570 = vsyncpa [#allocation3], 1 }
 0x133   :  { %571 = vsyncpa [#allocation5], 1 }

// kernel: autoencoder_fwd.17
= control target key start
LH: loop header
LB: loop body
LE: loop exit
PB: predicated region body
PF: predicated region fallthrough
CT: control target
= control target key end

     0   :  { %vm346_vm0 = vcmask 1043456   ;;  %vm347_vm1 = vcmask 1044480   ;;  %vm342_vm2 = vcmask 72704   ;;  %v2022_v2 = vmov 65535   ;;  %s2797_s1 = inlined_call_operand.vmem [shape: bf16[9,8192], index: 1, kind: input, shape index: {}]   ;;  %s2798_s2 = inlined_call_operand.vmem [shape: f32[8,1], index: 2, kind: input, shape index: {}]   ;;  %s2799_s0 = inlined_call_operand.vmem [shape: bf16[8,9], index: 0, kind: input, shape index: {}]   ;;  %s2800_s3 = inlined_call_operand.vmem [shape: bf16[8,8192], index: 3, kind: output, shape index: {}]  }
   0x1   :  { %v1636_v0 = vld [vmem:[%s2797_s1] sm:$0xf]  ;;  %v348_v3 = vsel %vm346_vm0, 4294967295, %v2022_v2  ;;  %v1954_v6 = vld [vmem:[%s2797_s1 + $0x4] sm:$0xf]  ;;  %v2023_v8 = vmov 0  }
   0x2   :  { %v1986_v1 = vld [vmem:[%s2797_s1 + $0xfc] sm:$0x10]  ;;  %v2050_v5 = vsel %vm347_vm1, %v348_v3, 0  ;;  %v1638_v7 = vld [vmem:[%s2797_s1 + $0x100] sm:$0x10]  ;;  %2020 = vset.pattern.permute.xlu0 %v2023_v8 }
   0x3   :  { %v1637_v4 = vor.u32 %v1986_v1, %v1636_v0  ;;  %v80_v9 = vld [vmem:[%s2798_s2] sm:$0xff]  ;;  %v1641_v10 = vor.u32 %v1954_v6, %v1638_v7  ;;  %v1644_v11 = vld [vmem:[%s2797_s1 + $0x8] sm:$0xf]  ;;  %v1955_v13 = vld [vmem:[%s2797_s1 + $0xc] sm:$0xf] }
   0x4   :  { %v1987_v12 = vld [vmem:[%s2797_s1 + $0x104] sm:$0x10]  ;;  %83 = vperm.xlu0 %2020, %v80_v9   ;;  %v1646_v16 = vld [vmem:[%s2797_s1 + $0x108] sm:$0x10]  ;;  %v2077_v17 = vld [vmem:[%s2799_s0] sm:$0xf] }
   0x5   :  { %v351_v14 = vand.u32 %v1637_v4, %v2050_v5  ;;  %v1645_v15 = vor.u32 %v1987_v12, %v1644_v11  ;;  %v1660_v18 = vld [vmem:[%s2797_s1 + $0x18] sm:$0xf]  ;;  %v354_v19 = vand.u32 %v1641_v10, %v2050_v5  ;;  %v1649_v20 = vor.u32 %v1955_v13, %v1646_v16  ;;  %v1957_v22 = vld [vmem:[%s2797_s1 + $0x1c] sm:$0xf]  ;;  %v1652_v27 = vld [vmem:[%s2797_s1 + $0x10] sm:$0xf] }
   0x6   :  { %v1989_v21 = vld [vmem:[%s2797_s1 + $0x114] sm:$0x10]  ;;  %v1662_v23 = vld [vmem:[%s2797_s1 + $0x118] sm:$0x10]  ;;  %v1988_v28 = vld [vmem:[%s2797_s1 + $0x10c] sm:$0x10] }
   0x7   :  { %549 = vmatpush.bf16.msra.mxu0 %v351_v14  ;;  %v357_v24 = vand.u32 %v1645_v15, %v2050_v5  ;;  %v1661_v25 = vor.u32 %v1989_v21, %v1660_v18  ;;  %v1665_v26 = vor.u32 %v1957_v22, %v1662_v23  ;;  %v1956_v29 = vld [vmem:[%s2797_s1 + $0x14] sm:$0xf]  ;;  %562 = vmatpush.bf16.msra.mxu1 %v354_v19  ;;  %v1676_v33 = vld [vmem:[%s2797_s1 + $0x28] sm:$0xf]  ;;  %v1959_v39 = vld [vmem:[%s2797_s1 + $0x2c] sm:$0xf] }
   0x8   :  { %v360_v30 = vand.u32 %v1649_v20, %v2050_v5  ;;  %v1653_v31 = vor.u32 %v1988_v28, %v1652_v27  ;;  %v1654_v32 = vld [vmem:[%s2797_s1 + $0x110] sm:$0x10]  ;;  %v1991_v34 = vld [vmem:[%s2797_s1 + $0x124] sm:$0x10]  ;;  %v1678_v40 = vld [vmem:[%s2797_s1 + $0x128] sm:$0x10] }
   0x9   :  { %575 = vmatpush.bf16.msra.mxu2 %v357_v24  ;;  %v369_v35 = vand.u32 %v1661_v25, %v2050_v5  ;;  %v372_v36 = vand.u32 %v1665_v26, %v2050_v5  ;;  %v1657_v37 = vor.u32 %v1956_v29, %v1654_v32  ;;  %v1677_v38 = vor.u32 %v1991_v34, %v1676_v33  ;;  %v1668_v41 = vld [vmem:[%s2797_s1 + $0x20] sm:$0xf]  ;;  %v1958_v45 = vld [vmem:[%s2797_s1 + $0x24] sm:$0xf]  ;;  %v1684_v54 = vld [vmem:[%s2797_s1 + $0x30] sm:$0xf] }
   0xa   :  { %588 = vmatpush.bf16.msra.mxu3 %v360_v30  ;;  %1890 = vmatmul.msk.bf16.vlgmr.msra.gmra.mxu0 %vm342_vm2, %v2077_v17  ;;  %v363_v42 = vand.u32 %v1653_v31, %v2050_v5  ;;  %v1681_v43 = vor.u32 %v1959_v39, %v1678_v40  ;;  %v1990_v44 = vld [vmem:[%s2797_s1 + $0x11c] sm:$0x10]  ;;  %v1670_v46 = vld [vmem:[%s2797_s1 + $0x120] sm:$0x10]  ;;  %v1992_v55 = vld [vmem:[%s2797_s1 + $0x12c] sm:$0x10] }
   0xb   :  { %1891 = vmatmul.msk.bf16.vlgmr.msra.gmra.mxu1 %vm342_vm2, %v2077_v17  ;;  %v366_v47 = vand.u32 %v1657_v37, %v2050_v5  ;;  %v381_v48 = vand.u32 %v1677_v38, %v2050_v5  ;;  %v1669_v49 = vor.u32 %v1990_v44, %v1668_v41  ;;  %v1673_v51 = vor.u32 %v1958_v45, %v1670_v46  ;;  %v1960_v56 = vld [vmem:[%s2797_s1 + $0x34] sm:$0xf]  ;;  %v1692_v58 = vld [vmem:[%s2797_s1 + $0x38] sm:$0xf]  ;;  %v1961_v60 = vld [vmem:[%s2797_s1 + $0x3c] sm:$0xf] }
   0xc   :  { %1892 = vmatmul.msk.bf16.vlgmr.msra.gmra.mxu2 %vm342_vm2, %v2077_v17  ;;  %v384_v50 = vand.u32 %v1681_v43, %v2050_v5  ;;  %601 = vmatpush.bf16.msrb.mxu0 %v363_v42  ;;  %v1686_v57 = vld [vmem:[%s2797_s1 + $0x130] sm:$0x10]  ;;  %v1993_v59 = vld [vmem:[%s2797_s1 + $0x134] sm:$0x10]  ;;  %v1694_v61 = vld [vmem:[%s2797_s1 + $0x138] sm:$0x10]  ;;  %v1685_v62 = vor.u32 %v1992_v55, %v1684_v54 }
   0xd   :  { %627 = vmatpush.bf16.msrb.mxu2 %v369_v35  ;;  %1893 = vmatmul.msk.bf16.vlgmr.msra.gmra.mxu3 %vm342_vm2, %v2077_v17  ;;  %v375_v52 = vand.u32 %v1669_v49, %v2050_v5  ;;  %v378_v53 = vand.u32 %v1673_v51, %v2050_v5  ;;  %v1689_v63 = vor.u32 %v1960_v56, %v1686_v57  ;;  %v1700_v7 = vld [vmem:[%s2797_s1 + $0x40] sm:$0xf]  ;;  %v1962_v9 = vld [vmem:[%s2797_s1 + $0x44] sm:$0xf]  ;;  %v1708_v11 = vld [vmem:[%s2797_s1 + $0x48] sm:$0xf] }
   0xe   :  { %640 = vmatpush.bf16.msrb.mxu3 %v372_v36  ;;  %614 = vmatpush.bf16.msrb.mxu1 %v366_v47  ;;  %v1693_v0 = vor.u32 %v1993_v59, %v1692_v58  ;;  %v1697_v1 = vor.u32 %v1961_v60, %v1694_v61  ;;  %v387_v2 = vand.u32 %v1685_v62, %v2050_v5  ;;  %v1994_v8 = vld [vmem:[%s2797_s1 + $0x13c] sm:$0x10]  ;;  %v1702_v10 = vld [vmem:[%s2797_s1 + $0x140] sm:$0x10]  ;;  %v1995_v12 = vld [vmem:[%s2797_s1 + $0x144] sm:$0x10] }
   0xf   :  { %v390_v3 = vand.u32 %v1689_v63, %v2050_v5  ;;  %v1963_v13 = vld [vmem:[%s2797_s1 + $0x4c] sm:$0xf]  ;;  %v1701_v15 = vor.u32 %v1994_v8, %v1700_v7  ;;  %v1705_v16 = vor.u32 %v1962_v9, %v1702_v10  ;;  %v1709_v18 = vor.u32 %v1995_v12, %v1708_v11  ;;  %v1716_v24 = vld [vmem:[%s2797_s1 + $0x50] sm:$0xf]  ;;  %v1964_v26 = vld [vmem:[%s2797_s1 + $0x54] sm:$0xf] }
  0x10   :  { %653 = vmatpush.bf16.msra.mxu0 %v375_v52  ;;  %v393_v4 = vand.u32 %v1693_v0, %v2050_v5  ;;  %v396_v6 = vand.u32 %v1697_v1, %v2050_v5  ;;  %v1710_v14 = vld [vmem:[%s2797_s1 + $0x148] sm:$0x10]  ;;  %v1996_v25 = vld [vmem:[%s2797_s1 + $0x14c] sm:$0x10]  ;;  %v1718_v27 = vld [vmem:[%s2797_s1 + $0x150] sm:$0x10] }
  0x11   :  { %679 = vmatpush.bf16.msra.mxu2 %v381_v48  ;;  %v1713_v19 = vor.u32 %v1963_v13, %v1710_v14  ;;  %v399_v20 = vand.u32 %v1701_v15, %v2050_v5  ;;  %v402_v21 = vand.u32 %v1705_v16, %v2050_v5  ;;  %v405_v22 = vand.u32 %v1709_v18, %v2050_v5  ;;  %v1724_v28 = vld [vmem:[%s2797_s1 + $0x58] sm:$0xf]  ;;  %v1965_v30 = vld [vmem:[%s2797_s1 + $0x5c] sm:$0xf]  ;;  %v1732_v40 = vld [vmem:[%s2797_s1 + $0x60] sm:$0xf] }
  0x12   :  { %692 = vmatpush.bf16.msra.mxu3 %v384_v50  ;;  %666 = vmatpush.bf16.msra.mxu1 %v378_v53  ;;  %v1997_v29 = vld [vmem:[%s2797_s1 + $0x154] sm:$0x10]  ;;  %v1726_v31 = vld [vmem:[%s2797_s1 + $0x158] sm:$0x10]  ;;  %v1717_v32 = vor.u32 %v1996_v25, %v1716_v24  ;;  %v1721_v33 = vor.u32 %v1964_v26, %v1718_v27  ;;  %v1998_v41 = vld [vmem:[%s2797_s1 + $0x15c] sm:$0x10] }
  0x13   :  { %v408_v23 = vand.u32 %v1713_v19, %v2050_v5  ;;  %v1725_v34 = vor.u32 %v1997_v29, %v1724_v28  ;;  %v1729_v35 = vor.u32 %v1965_v30, %v1726_v31  ;;  %v1966_v42 = vld [vmem:[%s2797_s1 + $0x64] sm:$0xf]  ;;  %v1740_v44 = vld [vmem:[%s2797_s1 + $0x68] sm:$0xf]  ;;  %v1967_v46 = vld [vmem:[%s2797_s1 + $0x6c] sm:$0xf]  ;;  %v1733_v48 = vor.u32 %v1998_v41, %v1732_v40 }
  0x14   :  { %v411_v36 = vand.u32 %v1717_v32, %v2050_v5  ;;  %v414_v37 = vand.u32 %v1721_v33, %v2050_v5  ;;  %v1734_v43 = vld [vmem:[%s2797_s1 + $0x160] sm:$0x10]  ;;  %v1999_v45 = vld [vmem:[%s2797_s1 + $0x164] sm:$0x10]  ;;  %v1742_v47 = vld [vmem:[%s2797_s1 + $0x168] sm:$0x10] }
  0x15   :  { %v417_v38 = vand.u32 %v1725_v34, %v2050_v5  ;;  %v420_v39 = vand.u32 %v1729_v35, %v2050_v5  ;;  %v1737_v49 = vor.u32 %v1966_v42, %v1734_v43  ;;  %v1741_v50 = vor.u32 %v1999_v45, %v1740_v44  ;;  %v1748_v56 = vld [vmem:[%s2797_s1 + $0x70] sm:$0xf]  ;;  %v1968_v58 = vld [vmem:[%s2797_s1 + $0x74] sm:$0xf]  ;;  %v1756_v60 = vld [vmem:[%s2797_s1 + $0x78] sm:$0xf] }
  0x16   :  { %v1745_v51 = vor.u32 %v1967_v46, %v1742_v47  ;;  %v423_v52 = vand.u32 %v1733_v48, %v2050_v5  ;;  %v2000_v57 = vld [vmem:[%s2797_s1 + $0x16c] sm:$0x10]  ;;  %v1750_v59 = vld [vmem:[%s2797_s1 + $0x170] sm:$0x10]  ;;  %v2001_v61 = vld [vmem:[%s2797_s1 + $0x174] sm:$0x10] }
  0x17   :  { %v426_v53 = vand.u32 %v1737_v49, %v2050_v5  ;;  %v429_v54 = vand.u32 %v1741_v50, %v2050_v5  ;;  %v1969_v62 = vld [vmem:[%s2797_s1 + $0x7c] sm:$0xf]  ;;  %v1749_v0 = vor.u32 %v2000_v57, %v1748_v56  ;;  %v1753_v1 = vor.u32 %v1968_v58, %v1750_v59  ;;  %v1764_v9 = vld [vmem:[%s2797_s1 + $0x80] sm:$0xf]  ;;  %v1970_v11 = vld [vmem:[%s2797_s1 + $0x84] sm:$0xf] }
  0x18   :  { %v432_v55 = vand.u32 %v1745_v51, %v2050_v5  ;;  %v1758_v63 = vld [vmem:[%s2797_s1 + $0x178] sm:$0x10]  ;;  %v2002_v10 = vld [vmem:[%s2797_s1 + $0x17c] sm:$0x10]  ;;  %v1766_v12 = vld [vmem:[%s2797_s1 + $0x180] sm:$0x10] }
  0x19   :  { %v1772_v13 = vld [vmem:[%s2797_s1 + $0x88] sm:$0xf]  ;;  %v1971_v15 = vld [vmem:[%s2797_s1 + $0x8c] sm:$0xf]  ;;  %v1765_v18 = vor.u32 %v2002_v10, %v1764_v9  ;;  %v1769_v19 = vor.u32 %v1970_v11, %v1766_v12  ;;  %v1788_v26 = vld [vmem:[%s2797_s1 + $0x98] sm:$0xf] }
  0x1a   :  { %1894 = vmatmul.msk.bf16.vlgmr.msrb.gmra.mxu0 %vm342_vm2, %v2077_v17  ;;  %v2003_v14 = vld [vmem:[%s2797_s1 + $0x184] sm:$0x10]  ;;  %v1774_v16 = vld [vmem:[%s2797_s1 + $0x188] sm:$0x10]  ;;  %v2005_v27 = vld [vmem:[%s2797_s1 + $0x194] sm:$0x10] }
  0x1b   :  { %1895 = vmatmul.msk.bf16.vlgmr.msrb.gmra.mxu1 %vm342_vm2, %v2077_v17  ;;  %705 = vmatpush.bf16.msrb.mxu0 %v387_v2  ;;  %v1757_v2 = vor.u32 %v2001_v61, %v1756_v60  ;;  %v1973_v28 = vld [vmem:[%s2797_s1 + $0x9c] sm:$0xf]  ;;  %v1789_v30 = vor.u32 %v2005_v27, %v1788_v26  ;;  %v1780_v31 = vld [vmem:[%s2797_s1 + $0x90] sm:$0xf]  ;;  %v1972_v33 = vld [vmem:[%s2797_s1 + $0x94] sm:$0xf] }
  0x1c   :  { %1896 = vmatmul.msk.bf16.vlgmr.msrb.gmra.mxu2 %vm342_vm2, %v2077_v17  ;;  %718 = vmatpush.bf16.msrb.mxu1 %v390_v3  ;;  %v1761_v3 = vor.u32 %v1969_v62, %v1758_v63  ;;  %v1790_v29 = vld [vmem:[%s2797_s1 + $0x198] sm:$0x10]  ;;  %v2004_v32 = vld [vmem:[%s2797_s1 + $0x18c] sm:$0x10]  ;;  %v1804_v42 = vld [vmem:[%s2797_s1 + $0xa8] sm:$0xf] }
  0x1d   :  { %1897 = vmatmul.msk.bf16.vlgmr.msrb.gmra.mxu3 %vm342_vm2, %v2077_v17  ;;  %731 = vmatpush.bf16.msrb.mxu2 %v393_v4  ;;  %v435_v4 = vand.u32 %v1749_v0, %v2050_v5  ;;  %v441_v7 = vand.u32 %v1757_v2, %v2050_v5  ;;  %v1793_v34 = vor.u32 %v1973_v28, %v1790_v29  ;;  %v2007_v43 = vld [vmem:[%s2797_s1 + $0x1a4] sm:$0x10]  ;;  %v1975_v44 = vld [vmem:[%s2797_s1 + $0xac] sm:$0xf]  ;;  %v1796_v48 = vld [vmem:[%s2797_s1 + $0xa0] sm:$0xf] }
  0x1e   :  { %744 = vmatpush.bf16.msrb.mxu3 %v396_v6  ;;  %v438_v6 = vand.u32 %v1753_v1, %v2050_v5  ;;  %v444_v8 = vand.u32 %v1761_v3, %v2050_v5  ;;  %v1781_v35 = vor.u32 %v2004_v32, %v1780_v31  ;;  %v1806_v45 = vld [vmem:[%s2797_s1 + $0x1a8] sm:$0x10]  ;;  %v1805_v47 = vor.u32 %v2007_v43, %v1804_v42  ;;  %v2006_v49 = vld [vmem:[%s2797_s1 + $0x19c] sm:$0x10]  ;;  %v1974_v50 = vld [vmem:[%s2797_s1 + $0xa4] sm:$0xf] }
  0x1f   :  { %v468_v41 = vand.u32 %v1793_v34, %v2050_v5  ;;  %v1809_v51 = vor.u32 %v1975_v44, %v1806_v45  ;;  %v1820_v11 = vld [vmem:[%s2797_s1 + $0xb8] sm:$0xf]  ;;  %v1814_v27 = vld [vmem:[%s2797_s1 + $0x1b0] sm:$0x10] }
  0x20   :  { %v477_v60 = vand.u32 %v1805_v47, %v2050_v5  ;;  %v2009_v12 = vld [vmem:[%s2797_s1 + $0x1b4] sm:$0x10] }
  0x21   :  { %v480_v63 = vand.u32 %v1809_v51, %v2050_v5  ;;  %v1836_v51 = vld [vmem:[%s2797_s1 + $0xc8] sm:$0xf] }
  0x2a   :  { %1898 = vmatmul.msk.bf16.vlgmr.msra.gmra.mxu0 %vm342_vm2, %v2077_v17 }
  0x2b   :  { %1899 = vmatmul.msk.bf16.vlgmr.msra.gmra.mxu1 %vm342_vm2, %v2077_v17  ;;  %757 = vmatpush.bf16.msra.mxu0 %v399_v20  ;;  %v1773_v20 = vor.u32 %v2003_v14, %v1772_v13  ;;  %v1977_v14 = vld [vmem:[%s2797_s1 + $0xbc] sm:$0xf] }
  0x2c   :  { %1900 = vmatmul.msk.bf16.vlgmr.msra.gmra.mxu2 %vm342_vm2, %v2077_v17  ;;  %770 = vmatpush.bf16.msra.mxu1 %v402_v21  ;;  %v1777_v21 = vor.u32 %v1971_v15, %v1774_v16  ;;  %v1822_v16 = vld [vmem:[%s2797_s1 + $0x1b8] sm:$0x10] }
  0x2d   :  { %1901 = vmatmul.msk.bf16.vlgmr.msra.gmra.mxu3 %vm342_vm2, %v2077_v17  ;;  %783 = vmatpush.bf16.msra.mxu2 %v405_v22  ;;  %v447_v22 = vand.u32 %v1765_v18, %v2050_v5  ;;  %v453_v24 = vand.u32 %v1773_v20, %v2050_v5  ;;  %v1821_v20 = vor.u32 %v2009_v12, %v1820_v11 }
  0x2e   :  { %796 = vmatpush.bf16.msra.mxu3 %v408_v23  ;;  %v450_v23 = vand.u32 %v1769_v19, %v2050_v5  ;;  %v456_v25 = vand.u32 %v1777_v21, %v2050_v5  ;;  %v1812_v21 = vld [vmem:[%s2797_s1 + $0xb0] sm:$0xf] }
  0x3a   :  { %1902 = vmatmul.msk.bf16.vlgmr.msrb.gmra.mxu0 %vm342_vm2, %v2077_v17 }
  0x3b   :  { %1903 = vmatmul.msk.bf16.vlgmr.msrb.gmra.mxu1 %vm342_vm2, %v2077_v17  ;;  %809 = vmatpush.bf16.msrb.mxu0 %v411_v36  ;;  %v1782_v36 = vld [vmem:[%s2797_s1 + $0x190] sm:$0x10] }
  0x3c   :  { %1904 = vmatmul.msk.bf16.vlgmr.msrb.gmra.mxu2 %vm342_vm2, %v2077_v17  ;;  %822 = vmatpush.bf16.msrb.mxu1 %v414_v37  ;;  %v1785_v37 = vor.u32 %v1972_v33, %v1782_v36  ;;  %v489_v36 = vand.u32 %v1821_v20, %v2050_v5 }
  0x3d   :  { %1905 = vmatmul.msk.bf16.vlgmr.msrb.gmra.mxu3 %vm342_vm2, %v2077_v17  ;;  %835 = vmatpush.bf16.msrb.mxu2 %v417_v38  ;;  %v459_v38 = vand.u32 %v1781_v35, %v2050_v5 }
  0x3e   :  { %848 = vmatpush.bf16.msrb.mxu3 %v420_v39  ;;  %v465_v39 = vand.u32 %v1789_v30, %v2050_v5  ;;  %v462_v40 = vand.u32 %v1785_v37, %v2050_v5 }
  0x4a   :  { %1906 = vmatmul.msk.bf16.vlgmr.msra.gmra.mxu0 %vm342_vm2, %v2077_v17 }
  0x4b   :  { %1907 = vmatmul.msk.bf16.vlgmr.msra.gmra.mxu1 %vm342_vm2, %v2077_v17  ;;  %861 = vmatpush.bf16.msra.mxu0 %v423_v52  ;;  %v1797_v52 = vor.u32 %v2006_v49, %v1796_v48 }
  0x4c   :  { %1908 = vmatmul.msk.bf16.vlgmr.msra.gmra.mxu2 %vm342_vm2, %v2077_v17  ;;  %874 = vmatpush.bf16.msra.mxu1 %v426_v53  ;;  %v1798_v53 = vld [vmem:[%s2797_s1 + $0x1a0] sm:$0x10] }
  0x4d   :  { %1909 = vmatmul.msk.bf16.vlgmr.msra.gmra.mxu3 %vm342_vm2, %v2077_v17  ;;  %887 = vmatpush.bf16.msra.mxu2 %v429_v54  ;;  %v471_v58 = vand.u32 %v1797_v52, %v2050_v5  ;;  %v2011_v52 = vld [vmem:[%s2797_s1 + $0x1c4] sm:$0x10] }
  0x4e   :  { %900 = vmatpush.bf16.msra.mxu3 %v432_v55  ;;  %v1801_v55 = vor.u32 %v1974_v50, %v1798_v53 }
  0x50   :  { %v474_v61 = vand.u32 %v1801_v55, %v2050_v5 }
  0x5a   :  { %1910 = vmatmul.msk.bf16.vlgmr.msrb.gmra.mxu0 %vm342_vm2, %v2077_v17 }
  0x5b   :  { %1911 = vmatmul.msk.bf16.vlgmr.msrb.gmra.mxu1 %vm342_vm2, %v2077_v17  ;;  %913 = vmatpush.bf16.msrb.mxu0 %v435_v4 }
  0x5c   :  { %1912 = vmatmul.msk.bf16.vlgmr.msrb.gmra.mxu2 %vm342_vm2, %v2077_v17  ;;  %926 = vmatpush.bf16.msrb.mxu1 %v438_v6 }
  0x5d   :  { %1913 = vmatmul.msk.bf16.vlgmr.msrb.gmra.mxu3 %vm342_vm2, %v2077_v17  ;;  %939 = vmatpush.bf16.msrb.mxu2 %v441_v7 }
  0x5e   :  { %952 = vmatpush.bf16.msrb.mxu3 %v444_v8 }
  0x6a   :  { %1914 = vmatmul.msk.bf16.vlgmr.msra.gmra.mxu0 %vm342_vm2, %v2077_v17 }
  0x6b   :  { %1915 = vmatmul.msk.bf16.vlgmr.msra.gmra.mxu1 %vm342_vm2, %v2077_v17  ;;  %965 = vmatpush.bf16.msra.mxu0 %v447_v22  ;;  %v2008_v22 = vld [vmem:[%s2797_s1 + $0x1ac] sm:$0x10] }
  0x6c   :  { %1916 = vmatmul.msk.bf16.vlgmr.msra.gmra.mxu2 %vm342_vm2, %v2077_v17  ;;  %978 = vmatpush.bf16.msra.mxu1 %v450_v23  ;;  %v1976_v23 = vld [vmem:[%s2797_s1 + $0xb4] sm:$0xf]  ;;  %v1813_v26 = vor.u32 %v2008_v22, %v1812_v21 }
  0x6d   :  { %1917 = vmatmul.msk.bf16.vlgmr.msra.gmra.mxu3 %vm342_vm2, %v2077_v17  ;;  %991 = vmatpush.bf16.msra.mxu2 %v453_v24  ;;  %v1817_v30 = vor.u32 %v1976_v23, %v1814_v27  ;;  %v1852_v27 = vld [vmem:[%s2797_s1 + $0xd8] sm:$0xf] }
  0x6e   :  { %1004 = vmatpush.bf16.msra.mxu3 %v456_v25  ;;  %v1825_v25 = vor.u32 %v1977_v14, %v1822_v16  ;;  %v483_v34 = vand.u32 %v1813_v26, %v2050_v5 }
  0x6f   :  { %v486_v37 = vand.u32 %v1817_v30, %v2050_v5  ;;  %v1981_v30 = vld [vmem:[%s2797_s1 + $0xdc] sm:$0xf] }
  0x76   :  { %v2410_v46 = vpop.permute.xlu0 %83 }
  0x7a   :  { %1918 = vmatmul.msk.bf16.vlgmr.msrb.gmra.mxu0 %vm342_vm2, %v2077_v17 }
  0x7b   :  { %1919 = vmatmul.msk.bf16.vlgmr.msrb.gmra.mxu1 %vm342_vm2, %v2077_v17  ;;  %1017 = vmatpush.bf16.msrb.mxu0 %v459_v38 }
  0x7c   :  { %1920 = vmatmul.msk.bf16.vlgmr.msrb.gmra.mxu2 %vm342_vm2, %v2077_v17  ;;  %1030 = vmatpush.bf16.msrb.mxu1 %v462_v40 }
  0x7d   :  { %1921 = vmatmul.msk.bf16.vlgmr.msrb.gmra.mxu3 %vm342_vm2, %v2077_v17  ;;  %1043 = vmatpush.bf16.msrb.mxu2 %v465_v39  ;;  %v492_v39 = vand.u32 %v1825_v25, %v2050_v5 }
  0x7e   :  { %1056 = vmatpush.bf16.msrb.mxu3 %v468_v41 }
  0x87   :  { %v551_v54 = vpop.f32.mrf.mxu0 }
  0x88   :  { %v564_v56 = vpop.f32.mrf.mxu1  ;;  %v552_v57 = vadd.f32 %v551_v54, %v2410_v46  ;;  %v1979_v54 = vld [vmem:[%s2797_s1 + $0xcc] sm:$0xf] }
  0x89   :  { %v565_v59 = vadd.f32 %v564_v56, %v2410_v46  ;;  %v1838_v56 = vld [vmem:[%s2797_s1 + $0x1c8] sm:$0x10] }
  0x8a   :  { %1922 = vmatmul.msk.bf16.vlgmr.msra.gmra.mxu0 %vm342_vm2, %v2077_v17  ;;  %vm1374_vm3 = vcmp.ge.f32.partialorder %v552_v57, 0.0  ;;  %v1438_v62 = vmul.f32 0.2, %v552_v57 }
  0x8b   :  { %1923 = vmatmul.msk.bf16.vlgmr.msra.gmra.mxu1 %vm342_vm2, %v2077_v17  ;;  %vm1375_vm4 = vcmp.ge.f32.partialorder %v565_v59, 0.0  ;;  %v1439_v0 = vmul.f32 0.2, %v565_v59  ;;  %1069 = vmatpush.bf16.msra.mxu0 %v471_v58 }
  0x8c   :  { %1924 = vmatmul.msk.bf16.vlgmr.msra.gmra.mxu2 %vm342_vm2, %v2077_v17  ;;  %v1502_v1 = vsel %vm1374_vm3, %v552_v57, %v1438_v62  ;;  %1082 = vmatpush.bf16.msra.mxu1 %v474_v61  ;;  %v2010_v61 = vld [vmem:[%s2797_s1 + $0x1bc] sm:$0x10]  ;;  %v1978_v62 = vld [vmem:[%s2797_s1 + $0xc4] sm:$0xf] }
  0x8d   :  { %1925 = vmatmul.msk.bf16.vlgmr.msra.gmra.mxu3 %vm342_vm2, %v2077_v17  ;;  %v1503_v2 = vsel %vm1375_vm4, %v565_v59, %v1439_v0  ;;  %1095 = vmatpush.bf16.msra.mxu2 %v477_v60  ;;  %v1837_v59 = vor.u32 %v2011_v52, %v1836_v51  ;;  %v1828_v60 = vld [vmem:[%s2797_s1 + $0xc0] sm:$0xf]  ;;  %v1841_v0 = vor.u32 %v1979_v54, %v1838_v56 }
  0x8e   :  { %v1566_v3 = vpack.c.bf16 %v1503_v2, %v1502_v1  ;;  %1108 = vmatpush.bf16.msra.mxu3 %v480_v63  ;;  %v1829_v1 = vor.u32 %v2010_v61, %v1828_v60  ;;  %v1830_v2 = vld [vmem:[%s2797_s1 + $0x1c0] sm:$0x10] }
  0x8f   :  { %v577_v4 = vpop.f32.mrf.mxu2  ;;  %v553_v6 = vpop.f32.mrf.mxu0  ;;  %v501_v12 = vand.u32 %v1837_v59, %v2050_v5 }
  0x90   :  { %1598 = vst [vmem:[%s2800_s3] sm:$0xff] %v1566_v3  ;;  %v578_v7 = vadd.f32 %v577_v4, %v2410_v46  ;;  %v590_v8 = vpop.f32.mrf.mxu3  ;;  %v566_v9 = vpop.f32.mrf.mxu1  ;;  %v1833_v6 = vor.u32 %v1978_v62, %v1830_v2  ;;  %v1868_v2 = vld [vmem:[%s2797_s1 + $0xe8] sm:$0xf] }
  0x91   :  { %v591_v10 = vadd.f32 %v590_v8, %v2410_v46 }
  0x92   :  { %vm1376_vm5 = vcmp.ge.f32.partialorder %v578_v7, 0.0  ;;  %v1440_v13 = vmul.f32 0.2, %v578_v7 }
  0x93   :  { %vm1377_vm6 = vcmp.ge.f32.partialorder %v591_v10, 0.0  ;;  %v1441_v15 = vmul.f32 0.2, %v591_v10 }
  0x94   :  { %v1504_v18 = vsel %vm1376_vm5, %v578_v7, %v1440_v13  ;;  %v498_v13 = vand.u32 %v1833_v6, %v2050_v5  ;;  %v1983_v6 = vld [vmem:[%s2797_s1 + $0xec] sm:$0xf] }
  0x95   :  { %v1505_v19 = vsel %vm1377_vm6, %v591_v10, %v1441_v15  ;;  %v495_v10 = vand.u32 %v1829_v1, %v2050_v5  ;;  %v504_v15 = vand.u32 %v1841_v0, %v2050_v5 }
  0x96   :  { %v1567_v24 = vpack.c.bf16 %v1505_v19, %v1504_v18 }
  0x97   :  { %v579_v28 = vpop.f32.mrf.mxu2  ;;  %v603_v29 = vpop.f32.mrf.mxu0 }
  0x98   :  { %1599 = vst [vmem:[%s2800_s3 + $0x8] sm:$0xff] %v1567_v24  ;;  %v592_v31 = vpop.f32.mrf.mxu3  ;;  %v604_v32 = vadd.f32 %v603_v29, %v2410_v46  ;;  %v616_v33 = vpop.f32.mrf.mxu1  ;;  %v2013_v28 = vld [vmem:[%s2797_s1 + $0x1d4] sm:$0x10] }
  0x99   :  { %v617_v35 = vadd.f32 %v616_v33, %v2410_v46 }
  0x9a   :  { %vm1378_vm7 = vcmp.ge.f32.partialorder %v604_v32, 0.0  ;;  %v1442_v38 = vmul.f32 0.2, %v604_v32  ;;  %1926 = vmatmul.msk.bf16.vlgmr.msrb.gmra.mxu0 %vm342_vm2, %v2077_v17 }
  0x9b   :  { %vm1379_vm8 = vcmp.ge.f32.partialorder %v617_v35, 0.0  ;;  %v1443_v40 = vmul.f32 0.2, %v617_v35  ;;  %1927 = vmatmul.msk.bf16.vlgmr.msrb.gmra.mxu1 %vm342_vm2, %v2077_v17  ;;  %1121 = vmatpush.bf16.msrb.mxu0 %v483_v34 }
  0x9c   :  { %v1506_v41 = vsel %vm1378_vm7, %v604_v32, %v1442_v38  ;;  %1928 = vmatmul.msk.bf16.vlgmr.msrb.gmra.mxu2 %vm342_vm2, %v2077_v17  ;;  %1134 = vmatpush.bf16.msrb.mxu1 %v486_v37  ;;  %v1854_v32 = vld [vmem:[%s2797_s1 + $0x1d8] sm:$0x10]  ;;  %v2012_v37 = vld [vmem:[%s2797_s1 + $0x1cc] sm:$0x10]  ;;  %v1980_v38 = vld [vmem:[%s2797_s1 + $0xd4] sm:$0xf] }
  0x9d   :  { %v1507_v42 = vsel %vm1379_vm8, %v617_v35, %v1443_v40  ;;  %1929 = vmatmul.msk.bf16.vlgmr.msrb.gmra.mxu3 %vm342_vm2, %v2077_v17  ;;  %1147 = vmatpush.bf16.msrb.mxu2 %v489_v36  ;;  %v1853_v35 = vor.u32 %v2013_v28, %v1852_v27  ;;  %v1844_v36 = vld [vmem:[%s2797_s1 + $0xd0] sm:$0xf]  ;;  %v1857_v40 = vor.u32 %v1981_v30, %v1854_v32 }
  0x9e   :  { %v1568_v43 = vpack.c.bf16 %v1507_v42, %v1506_v41  ;;  %1160 = vmatpush.bf16.msrb.mxu3 %v492_v39  ;;  %v1845_v41 = vor.u32 %v2012_v37, %v1844_v36  ;;  %v1846_v42 = vld [vmem:[%s2797_s1 + $0x1d0] sm:$0x10] }
  0x9f   :  { %v629_v44 = vpop.f32.mrf.mxu2  ;;  %v605_v45 = vpop.f32.mrf.mxu0  ;;  %v513_v52 = vand.u32 %v1853_v35, %v2050_v5 }
  0xa0   :  { %1600 = vst [vmem:[%s2800_s3 + $0x10] sm:$0xff] %v1568_v43  ;;  %v630_v47 = vadd.f32 %v629_v44, %v2410_v46  ;;  %v642_v48 = vpop.f32.mrf.mxu3  ;;  %v618_v49 = vpop.f32.mrf.mxu1  ;;  %v1849_v45 = vor.u32 %v1980_v38, %v1846_v42  ;;  %v1884_v42 = vld [vmem:[%s2797_s1 + $0xf8] sm:$0xf] }
  0xa1   :  { %v643_v50 = vadd.f32 %v642_v48, %v2410_v46 }
  0xa2   :  { %vm1380_vm9 = vcmp.ge.f32.partialorder %v630_v47, 0.0  ;;  %v1444_v53 = vmul.f32 0.2, %v630_v47 }
  0xa3   :  { %vm1381_vm10 = vcmp.ge.f32.partialorder %v643_v50, 0.0  ;;  %v1445_v55 = vmul.f32 0.2, %v643_v50 }
  0xa4   :  { %v1508_v57 = vsel %vm1380_vm9, %v630_v47, %v1444_v53  ;;  %v510_v53 = vand.u32 %v1849_v45, %v2050_v5  ;;  %v1985_v45 = vld [vmem:[%s2797_s1 + $0xfc] sm:$0xf] }
  0xa5   :  { %v1509_v58 = vsel %vm1381_vm10, %v643_v50, %v1445_v55  ;;  %v507_v50 = vand.u32 %v1845_v41, %v2050_v5  ;;  %v516_v55 = vand.u32 %v1857_v40, %v2050_v5 }
  0xa6   :  { %v1569_v63 = vpack.c.bf16 %v1509_v58, %v1508_v57 }
  0xa7   :  { %v631_v3 = vpop.f32.mrf.mxu2  ;;  %v655_v4 = vpop.f32.mrf.mxu0 }
  0xa8   :  { %1601 = vst [vmem:[%s2800_s3 + $0x18] sm:$0xff] %v1569_v63  ;;  %v644_v7 = vpop.f32.mrf.mxu3  ;;  %v656_v8 = vadd.f32 %v655_v4, %v2410_v46  ;;  %v668_v9 = vpop.f32.mrf.mxu1  ;;  %v2015_v3 = vld [vmem:[%s2797_s1 + $0x1e4] sm:$0x10] }
  0xa9   :  { %v669_v11 = vadd.f32 %v668_v9, %v2410_v46 }
  0xaa   :  { %vm1382_vm11 = vcmp.ge.f32.partialorder %v656_v8, 0.0  ;;  %v1446_v14 = vmul.f32 0.2, %v656_v8  ;;  %1930 = vmatmul.msk.bf16.vlgmr.msra.gmra.mxu0 %vm342_vm2, %v2077_v17 }
  0xab   :  { %vm1383_vm12 = vcmp.ge.f32.partialorder %v669_v11, 0.0  ;;  %v1447_v16 = vmul.f32 0.2, %v669_v11  ;;  %1931 = vmatmul.msk.bf16.vlgmr.msra.gmra.mxu1 %vm342_vm2, %v2077_v17  ;;  %1173 = vmatpush.bf16.msra.mxu0 %v495_v10 }
  0xac   :  { %v1510_v18 = vsel %vm1382_vm11, %v656_v8, %v1446_v14  ;;  %1932 = vmatmul.msk.bf16.vlgmr.msra.gmra.mxu2 %vm342_vm2, %v2077_v17  ;;  %1186 = vmatpush.bf16.msra.mxu1 %v498_v13  ;;  %v1870_v8 = vld [vmem:[%s2797_s1 + $0x1e8] sm:$0x10]  ;;  %v2014_v13 = vld [vmem:[%s2797_s1 + $0x1dc] sm:$0x10]  ;;  %v1982_v14 = vld [vmem:[%s2797_s1 + $0xe4] sm:$0xf] }
  0xad   :  { %v1511_v19 = vsel %vm1383_vm12, %v669_v11, %v1447_v16  ;;  %1933 = vmatmul.msk.bf16.vlgmr.msra.gmra.mxu3 %vm342_vm2, %v2077_v17  ;;  %1199 = vmatpush.bf16.msra.mxu2 %v501_v12  ;;  %v1869_v11 = vor.u32 %v2015_v3, %v1868_v2  ;;  %v1860_v12 = vld [vmem:[%s2797_s1 + $0xe0] sm:$0xf]  ;;  %v1873_v16 = vor.u32 %v1983_v6, %v1870_v8 }
  0xae   :  { %v1570_v20 = vpack.c.bf16 %v1511_v19, %v1510_v18  ;;  %1212 = vmatpush.bf16.msra.mxu3 %v504_v15  ;;  %v1861_v18 = vor.u32 %v2014_v13, %v1860_v12  ;;  %v1862_v19 = vld [vmem:[%s2797_s1 + $0x1e0] sm:$0x10] }
  0xaf   :  { %v681_v21 = vpop.f32.mrf.mxu2  ;;  %v657_v22 = vpop.f32.mrf.mxu0  ;;  %v525_v28 = vand.u32 %v1869_v11, %v2050_v5  ;;  %v2669_v11 = vld [vmem:[%s2799_s0] sm:$0xf] }
  0xb0   :  { %1602 = vst [vmem:[%s2800_s3 + $0x20] sm:$0xff] %v1570_v20  ;;  %v682_v23 = vadd.f32 %v681_v21, %v2410_v46  ;;  %v694_v24 = vpop.f32.mrf.mxu3  ;;  %v670_v25 = vpop.f32.mrf.mxu1  ;;  %v1865_v22 = vor.u32 %v1982_v14, %v1862_v19 }
  0xb1   :  { %v695_v26 = vadd.f32 %v694_v24, %v2410_v46 }
  0xb2   :  { %vm1384_vm13 = vcmp.ge.f32.partialorder %v682_v23, 0.0  ;;  %v1448_v29 = vmul.f32 0.2, %v682_v23 }
  0xb3   :  { %vm1385_vm14 = vcmp.ge.f32.partialorder %v695_v26, 0.0  ;;  %v1449_v31 = vmul.f32 0.2, %v695_v26 }
  0xb4   :  { %v1512_v33 = vsel %vm1384_vm13, %v682_v23, %v1448_v29  ;;  %v522_v29 = vand.u32 %v1865_v22, %v2050_v5 }
  0xb5   :  { %v1513_v34 = vsel %vm1385_vm14, %v695_v26, %v1449_v31  ;;  %v519_v26 = vand.u32 %v1861_v18, %v2050_v5  ;;  %v528_v31 = vand.u32 %v1873_v16, %v2050_v5 }
  0xb6   :  { %v1571_v39 = vpack.c.bf16 %v1513_v34, %v1512_v33 }
  0xb7   :  { %v683_v43 = vpop.f32.mrf.mxu2  ;;  %v707_v44 = vpop.f32.mrf.mxu0 }
  0xb8   :  { %1603 = vst [vmem:[%s2800_s3 + $0x28] sm:$0xff] %v1571_v39  ;;  %v696_v47 = vpop.f32.mrf.mxu3  ;;  %v708_v48 = vadd.f32 %v707_v44, %v2410_v46  ;;  %v720_v49 = vpop.f32.mrf.mxu1  ;;  %v2017_v43 = vld [vmem:[%s2797_s1 + $0x1f4] sm:$0x10] }
  0xb9   :  { %v721_v51 = vadd.f32 %v720_v49, %v2410_v46 }
  0xba   :  { %vm1386_vm15 = vcmp.ge.f32.partialorder %v708_v48, 0.0  ;;  %v1450_v54 = vmul.f32 0.2, %v708_v48  ;;  %1934 = vmatmul.msk.bf16.vlgmr.msrb.gmra.mxu0 %vm342_vm2, %v2077_v17 }
  0xbb   :  { %vm1387_vm0 = vcmp.ge.f32.partialorder %v721_v51, 0.0  ;;  %v1451_v56 = vmul.f32 0.2, %v721_v51  ;;  %1935 = vmatmul.msk.bf16.vlgmr.msrb.gmra.mxu1 %vm342_vm2, %v2077_v17  ;;  %1225 = vmatpush.bf16.msrb.mxu0 %v507_v50 }
  0xbc   :  { %v1514_v57 = vsel %vm1386_vm15, %v708_v48, %v1450_v54  ;;  %1936 = vmatmul.msk.bf16.vlgmr.msrb.gmra.mxu2 %vm342_vm2, %v2077_v17  ;;  %1238 = vmatpush.bf16.msrb.mxu1 %v510_v53  ;;  %v1886_v48 = vld [vmem:[%s2797_s1 + $0x1f8] sm:$0x10]  ;;  %v2016_v53 = vld [vmem:[%s2797_s1 + $0x1ec] sm:$0x10]  ;;  %v1984_v54 = vld [vmem:[%s2797_s1 + $0xf4] sm:$0xf] }
  0xbd   :  { %v1515_v58 = vsel %vm1387_vm0, %v721_v51, %v1451_v56  ;;  %1937 = vmatmul.msk.bf16.vlgmr.msrb.gmra.mxu3 %vm342_vm2, %v2077_v17  ;;  %1251 = vmatpush.bf16.msrb.mxu2 %v513_v52  ;;  %v1885_v51 = vor.u32 %v2017_v43, %v1884_v42  ;;  %v1876_v52 = vld [vmem:[%s2797_s1 + $0xf0] sm:$0xf]  ;;  %v1889_v56 = vor.u32 %v1985_v45, %v1886_v48 }
  0xbe   :  { %v1572_v59 = vpack.c.bf16 %v1515_v58, %v1514_v57  ;;  %1264 = vmatpush.bf16.msrb.mxu3 %v516_v55  ;;  %v1877_v57 = vor.u32 %v2016_v53, %v1876_v52  ;;  %v1878_v58 = vld [vmem:[%s2797_s1 + $0x1f0] sm:$0x10] }
  0xbf   :  { %v733_v60 = vpop.f32.mrf.mxu2  ;;  %v709_v61 = vpop.f32.mrf.mxu0  ;;  %v537_v3 = vand.u32 %v1885_v51, %v2050_v5 }
  0xc0   :  { %1604 = vst [vmem:[%s2800_s3 + $0x30] sm:$0xff] %v1572_v59  ;;  %v734_v62 = vadd.f32 %v733_v60, %v2410_v46  ;;  %v746_v63 = vpop.f32.mrf.mxu3  ;;  %v722_v0 = vpop.f32.mrf.mxu1  ;;  %v1881_v61 = vor.u32 %v1984_v54, %v1878_v58 }
  0xc1   :  { %v747_v1 = vadd.f32 %v746_v63, %v2410_v46 }
  0xc2   :  { %vm1388_vm1 = vcmp.ge.f32.partialorder %v734_v62, 0.0  ;;  %v1452_v4 = vmul.f32 0.2, %v734_v62 }
  0xc3   :  { %vm1389_vm3 = vcmp.ge.f32.partialorder %v747_v1, 0.0  ;;  %v1453_v7 = vmul.f32 0.2, %v747_v1 }
  0xc4   :  { %v1516_v9 = vsel %vm1388_vm1, %v734_v62, %v1452_v4  ;;  %v534_v4 = vand.u32 %v1881_v61, %v2050_v5 }
  0xc5   :  { %v1517_v10 = vsel %vm1389_vm3, %v747_v1, %v1453_v7  ;;  %v531_v1 = vand.u32 %v1877_v57, %v2050_v5  ;;  %v540_v7 = vand.u32 %v1889_v56, %v2050_v5 }
  0xc6   :  { %v1573_v15 = vpack.c.bf16 %v1517_v10, %v1516_v9 }
  0xc7   :  { %v735_v20 = vpop.f32.mrf.mxu2  ;;  %v759_v21 = vpop.f32.mrf.mxu0 }
  0xc8   :  { %1605 = vst [vmem:[%s2800_s3 + $0x38] sm:$0xff] %v1573_v15  ;;  %v748_v23 = vpop.f32.mrf.mxu3  ;;  %v760_v24 = vadd.f32 %v759_v21, %v2410_v46  ;;  %v772_v25 = vpop.f32.mrf.mxu1 }
  0xc9   :  { %v773_v27 = vadd.f32 %v772_v25, %v2410_v46 }
  0xca   :  { %vm1390_vm4 = vcmp.ge.f32.partialorder %v760_v24, 0.0  ;;  %v1454_v30 = vmul.f32 0.2, %v760_v24  ;;  %1938 = vmatmul.msk.bf16.vlgmr.msra.gmra.mxu0 %vm342_vm2, %v2077_v17 }
  0xcb   :  { %vm1391_vm5 = vcmp.ge.f32.partialorder %v773_v27, 0.0  ;;  %v1455_v32 = vmul.f32 0.2, %v773_v27  ;;  %1939 = vmatmul.msk.bf16.vlgmr.msra.gmra.mxu1 %vm342_vm2, %v2077_v17  ;;  %1277 = vmatpush.bf16.msra.mxu0 %v519_v26 }
  0xcc   :  { %v1518_v33 = vsel %vm1390_vm4, %v760_v24, %v1454_v30  ;;  %1940 = vmatmul.msk.bf16.vlgmr.msra.gmra.mxu2 %vm342_vm2, %v2077_v17  ;;  %1290 = vmatpush.bf16.msra.mxu1 %v522_v29 }
  0xcd   :  { %v1519_v34 = vsel %vm1391_vm5, %v773_v27, %v1455_v32  ;;  %1941 = vmatmul.msk.bf16.vlgmr.msra.gmra.mxu3 %vm342_vm2, %v2077_v17  ;;  %1303 = vmatpush.bf16.msra.mxu2 %v525_v28 }
  0xce   :  { %v1574_v35 = vpack.c.bf16 %v1519_v34, %v1518_v33  ;;  %1316 = vmatpush.bf16.msra.mxu3 %v528_v31 }
  0xcf   :  { %v785_v36 = vpop.f32.mrf.mxu2  ;;  %v761_v37 = vpop.f32.mrf.mxu0 }
  0xd0   :  { %1606 = vst [vmem:[%s2800_s3 + $0x40] sm:$0xff] %v1574_v35  ;;  %v786_v38 = vadd.f32 %v785_v36, %v2410_v46  ;;  %v798_v39 = vpop.f32.mrf.mxu3  ;;  %v774_v40 = vpop.f32.mrf.mxu1 }
  0xd1   :  { %v799_v41 = vadd.f32 %v798_v39, %v2410_v46 }
  0xd2   :  { %vm1392_vm6 = vcmp.ge.f32.partialorder %v786_v38, 0.0  ;;  %v1456_v44 = vmul.f32 0.2, %v786_v38 }
  0xd3   :  { %vm1393_vm7 = vcmp.ge.f32.partialorder %v799_v41, 0.0  ;;  %v1457_v47 = vmul.f32 0.2, %v799_v41 }
  0xd4   :  { %v1520_v49 = vsel %vm1392_vm6, %v786_v38, %v1456_v44 }
  0xd5   :  { %v1521_v50 = vsel %vm1393_vm7, %v799_v41, %v1457_v47 }
  0xd6   :  { %v1575_v55 = vpack.c.bf16 %v1521_v50, %v1520_v49 }
  0xd7   :  { %v787_v59 = vpop.f32.mrf.mxu2  ;;  %v811_v60 = vpop.f32.mrf.mxu0 }
  0xd8   :  { %1607 = vst [vmem:[%s2800_s3 + $0x48] sm:$0xff] %v1575_v55  ;;  %v800_v62 = vpop.f32.mrf.mxu3  ;;  %v812_v63 = vadd.f32 %v811_v60, %v2410_v46  ;;  %v824_v0 = vpop.f32.mrf.mxu1 }
  0xd9   :  { %v825_v2 = vadd.f32 %v824_v0, %v2410_v46 }
  0xda   :  { %vm1394_vm8 = vcmp.ge.f32.partialorder %v812_v63, 0.0  ;;  %v1458_v6 = vmul.f32 0.2, %v812_v63  ;;  %1942 = vmatmul.msk.bf16.vlgmr.msrb.gmra.mxu0 %vm342_vm2, %v2077_v17 }
  0xdb   :  { %vm1395_vm9 = vcmp.ge.f32.partialorder %v825_v2, 0.0  ;;  %v1459_v8 = vmul.f32 0.2, %v825_v2  ;;  %1943 = vmatmul.msk.bf16.vlgmr.msrb.gmra.mxu1 %vm342_vm2, %v2077_v17  ;;  %1329 = vmatpush.bf16.msrb.mxu0 %v531_v1 }
  0xdc   :  { %v1522_v9 = vsel %vm1394_vm8, %v812_v63, %v1458_v6  ;;  %1944 = vmatmul.msk.bf16.vlgmr.msrb.gmra.mxu2 %vm342_vm2, %v2077_v17  ;;  %1342 = vmatpush.bf16.msrb.mxu1 %v534_v4 }
  0xdd   :  { %v1523_v10 = vsel %vm1395_vm9, %v825_v2, %v1459_v8  ;;  %1945 = vmatmul.msk.bf16.vlgmr.msrb.gmra.mxu3 %vm342_vm2, %v2669_v11  ;;  %1355 = vmatpush.bf16.msrb.mxu2 %v537_v3 }
  0xde   :  { %v1576_v5 = vpack.c.bf16 %v1523_v10, %v1522_v9  ;;  %1368 = vmatpush.bf16.msrb.mxu3 %v540_v7 }
  0xdf   :  { %v837_v12 = vpop.f32.mrf.mxu2  ;;  %v813_v13 = vpop.f32.mrf.mxu0 }
  0xe0   :  { %1608 = vst [vmem:[%s2800_s3 + $0x50] sm:$0xff] %v1576_v5  ;;  %v838_v17 = vadd.f32 %v837_v12, %v2410_v46  ;;  %v850_v14 = vpop.f32.mrf.mxu3  ;;  %v826_v15 = vpop.f32.mrf.mxu1 }
  0xe1   :  { %v851_v16 = vadd.f32 %v850_v14, %v2410_v46 }
  0xe2   :  { %vm1396_vm10 = vcmp.ge.f32.partialorder %v838_v17, 0.0  ;;  %v1460_v18 = vmul.f32 0.2, %v838_v17 }
  0xe3   :  { %vm1397_vm11 = vcmp.ge.f32.partialorder %v851_v16, 0.0  ;;  %v1461_v19 = vmul.f32 0.2, %v851_v16 }
  0xe4   :  { %v1524_v20 = vsel %vm1396_vm10, %v838_v17, %v1460_v18 }
  0xe5   :  { %v1525_v21 = vsel %vm1397_vm11, %v851_v16, %v1461_v19 }
  0xe6   :  { %v1577_v22 = vpack.c.bf16 %v1525_v21, %v1524_v20 }
  0xe7   :  { %v839_v23 = vpop.f32.mrf.mxu2  ;;  %v863_v24 = vpop.f32.mrf.mxu0 }
  0xe8   :  { %1609 = vst [vmem:[%s2800_s3 + $0x58] sm:$0xff] %v1577_v22  ;;  %v852_v25 = vpop.f32.mrf.mxu3  ;;  %v864_v26 = vadd.f32 %v863_v24, %v2410_v46  ;;  %v876_v27 = vpop.f32.mrf.mxu1 }
  0xe9   :  { %v877_v28 = vadd.f32 %v876_v27, %v2410_v46 }
  0xea   :  { %vm1398_vm12 = vcmp.ge.f32.partialorder %v864_v26, 0.0  ;;  %v1462_v29 = vmul.f32 0.2, %v864_v26  ;;  %1946 = vmatmul.msk.bf16.vlgmr.msra.gmra.mxu0 %vm342_vm2, %v2669_v11 }
  0xeb   :  { %vm1399_vm13 = vcmp.ge.f32.partialorder %v877_v28, 0.0  ;;  %v1463_v30 = vmul.f32 0.2, %v877_v28  ;;  %1947 = vmatmul.msk.bf16.vlgmr.msra.gmra.mxu1 %vm342_vm2, %v2669_v11 }
  0xec   :  { %v1526_v31 = vsel %vm1398_vm12, %v864_v26, %v1462_v29  ;;  %1948 = vmatmul.msk.bf16.vlgmr.msra.gmra.mxu2 %vm342_vm2, %v2669_v11 }
  0xed   :  { %v1527_v32 = vsel %vm1399_vm13, %v877_v28, %v1463_v30  ;;  %1949 = vmatmul.msk.bf16.vlgmr.msra.gmra.mxu3 %vm342_vm2, %v2669_v11 }
  0xee   :  { %v1578_v33 = vpack.c.bf16 %v1527_v32, %v1526_v31 }
  0xef   :  { %v889_v34 = vpop.f32.mrf.mxu2  ;;  %v865_v35 = vpop.f32.mrf.mxu0 }
  0xf0   :  { %1610 = vst [vmem:[%s2800_s3 + $0x60] sm:$0xff] %v1578_v33  ;;  %v890_v36 = vadd.f32 %v889_v34, %v2410_v46  ;;  %v902_v37 = vpop.f32.mrf.mxu3  ;;  %v878_v38 = vpop.f32.mrf.mxu1 }
  0xf1   :  { %v903_v39 = vadd.f32 %v902_v37, %v2410_v46 }
  0xf2   :  { %vm1400_vm14 = vcmp.ge.f32.partialorder %v890_v36, 0.0  ;;  %v1464_v40 = vmul.f32 0.2, %v890_v36 }
  0xf3   :  { %vm1401_vm15 = vcmp.ge.f32.partialorder %v903_v39, 0.0  ;;  %v1465_v41 = vmul.f32 0.2, %v903_v39 }
  0xf4   :  { %v1528_v42 = vsel %vm1400_vm14, %v890_v36, %v1464_v40 }
  0xf5   :  { %v1529_v43 = vsel %vm1401_vm15, %v903_v39, %v1465_v41 }
  0xf6   :  { %v1579_v44 = vpack.c.bf16 %v1529_v43, %v1528_v42 }
  0xf7   :  { %v891_v45 = vpop.f32.mrf.mxu2  ;;  %v915_v47 = vpop.f32.mrf.mxu0 }
  0xf8   :  { %1611 = vst [vmem:[%s2800_s3 + $0x68] sm:$0xff] %v1579_v44  ;;  %v904_v48 = vpop.f32.mrf.mxu3  ;;  %v916_v49 = vadd.f32 %v915_v47, %v2410_v46  ;;  %v928_v50 = vpop.f32.mrf.mxu1 }
  0xf9   :  { %v929_v51 = vadd.f32 %v928_v50, %v2410_v46 }
  0xfa   :  { %vm1402_vm0 = vcmp.ge.f32.partialorder %v916_v49, 0.0  ;;  %v1466_v52 = vmul.f32 0.2, %v916_v49  ;;  %1950 = vmatmul.msk.bf16.vlgmr.msrb.gmra.mxu0 %vm342_vm2, %v2669_v11 }
  0xfb   :  { %vm1403_vm1 = vcmp.ge.f32.partialorder %v929_v51, 0.0  ;;  %v1467_v53 = vmul.f32 0.2, %v929_v51  ;;  %1951 = vmatmul.msk.bf16.vlgmr.msrb.gmra.mxu1 %vm342_vm2, %v2669_v11 }
  0xfc   :  { %v1530_v54 = vsel %vm1402_vm0, %v916_v49, %v1466_v52  ;;  %1952 = vmatmul.msk.bf16.vlgmr.msrb.gmra.mxu2 %vm342_vm2, %v2669_v11 }
  0xfd   :  { %v1531_v55 = vsel %vm1403_vm1, %v929_v51, %v1467_v53  ;;  %1953 = vmatmul.msk.bf16.vlgmr.msrb.gmra.mxu3 %vm342_vm2, %v2669_v11 }
  0xfe   :  { %v1580_v56 = vpack.c.bf16 %v1531_v55, %v1530_v54 }
  0xff   :  { %v941_v57 = vpop.f32.mrf.mxu2  ;;  %v917_v58 = vpop.f32.mrf.mxu0 }
 0x100   :  { %1612 = vst [vmem:[%s2800_s3 + $0x70] sm:$0xff] %v1580_v56  ;;  %v942_v59 = vadd.f32 %v941_v57, %v2410_v46  ;;  %v954_v60 = vpop.f32.mrf.mxu3  ;;  %v930_v61 = vpop.f32.mrf.mxu1 }
 0x101   :  { %v955_v62 = vadd.f32 %v954_v60, %v2410_v46 }
 0x102   :  { %vm1404_vm3 = vcmp.ge.f32.partialorder %v942_v59, 0.0  ;;  %v1468_v63 = vmul.f32 0.2, %v942_v59 }
 0x103   :  { %vm1405_vm4 = vcmp.ge.f32.partialorder %v955_v62, 0.0  ;;  %v1469_v0 = vmul.f32 0.2, %v955_v62 }
 0x104   :  { %v1532_v1 = vsel %vm1404_vm3, %v942_v59, %v1468_v63 }
 0x105   :  { %v1533_v2 = vsel %vm1405_vm4, %v955_v62, %v1469_v0 }
 0x106   :  { %v1581_v3 = vpack.c.bf16 %v1533_v2, %v1532_v1 }
 0x107   :  { %v943_v4 = vpop.f32.mrf.mxu2  ;;  %v967_v6 = vpop.f32.mrf.mxu0 }
 0x108   :  { %1613 = vst [vmem:[%s2800_s3 + $0x78] sm:$0xff] %v1581_v3  ;;  %v956_v7 = vpop.f32.mrf.mxu3  ;;  %v968_v8 = vadd.f32 %v967_v6, %v2410_v46  ;;  %v980_v9 = vpop.f32.mrf.mxu1 }
 0x109   :  { %v981_v10 = vadd.f32 %v980_v9, %v2410_v46 }
 0x10a   :  { %vm1406_vm2 = vcmp.ge.f32.partialorder %v968_v8, 0.0  ;;  %v1470_v11 = vmul.f32 0.2, %v968_v8 }
 0x10b   :  { %vm1407_vm5 = vcmp.ge.f32.partialorder %v981_v10, 0.0  ;;  %v1471_v5 = vmul.f32 0.2, %v981_v10 }
 0x10c   :  { %v1534_v12 = vsel %vm1406_vm2, %v968_v8, %v1470_v11 }
 0x10d   :  { %v1535_v13 = vsel %vm1407_vm5, %v981_v10, %v1471_v5 }
 0x10e   :  { %v1582_v17 = vpack.c.bf16 %v1535_v13, %v1534_v12 }
 0x10f   :  { %v993_v14 = vpop.f32.mrf.mxu2  ;;  %v969_v15 = vpop.f32.mrf.mxu0 }
 0x110   :  { %1614 = vst [vmem:[%s2800_s3 + $0x80] sm:$0xff] %v1582_v17  ;;  %v994_v16 = vadd.f32 %v993_v14, %v2410_v46  ;;  %v1006_v18 = vpop.f32.mrf.mxu3  ;;  %v982_v19 = vpop.f32.mrf.mxu1 }
 0x111   :  { %v1007_v20 = vadd.f32 %v1006_v18, %v2410_v46 }
 0x112   :  { %vm1408_vm6 = vcmp.ge.f32.partialorder %v994_v16, 0.0  ;;  %v1472_v21 = vmul.f32 0.2, %v994_v16 }
 0x113   :  { %vm1409_vm7 = vcmp.ge.f32.partialorder %v1007_v20, 0.0  ;;  %v1473_v22 = vmul.f32 0.2, %v1007_v20 }
 0x114   :  { %v1536_v23 = vsel %vm1408_vm6, %v994_v16, %v1472_v21 }
 0x115   :  { %v1537_v24 = vsel %vm1409_vm7, %v1007_v20, %v1473_v22 }
 0x116   :  { %v1583_v25 = vpack.c.bf16 %v1537_v24, %v1536_v23 }
 0x117   :  { %v995_v26 = vpop.f32.mrf.mxu2  ;;  %v1019_v27 = vpop.f32.mrf.mxu0 }
 0x118   :  { %1615 = vst [vmem:[%s2800_s3 + $0x88] sm:$0xff] %v1583_v25  ;;  %v1008_v28 = vpop.f32.mrf.mxu3  ;;  %v1020_v29 = vadd.f32 %v1019_v27, %v2410_v46  ;;  %v1032_v30 = vpop.f32.mrf.mxu1 }
 0x119   :  { %v1033_v31 = vadd.f32 %v1032_v30, %v2410_v46 }
 0x11a   :  { %vm1410_vm8 = vcmp.ge.f32.partialorder %v1020_v29, 0.0  ;;  %v1474_v32 = vmul.f32 0.2, %v1020_v29 }
 0x11b   :  { %vm1411_vm9 = vcmp.ge.f32.partialorder %v1033_v31, 0.0  ;;  %v1475_v33 = vmul.f32 0.2, %v1033_v31 }
 0x11c   :  { %v1538_v34 = vsel %vm1410_vm8, %v1020_v29, %v1474_v32 }
 0x11d   :  { %v1539_v35 = vsel %vm1411_vm9, %v1033_v31, %v1475_v33 }
 0x11e   :  { %v1584_v36 = vpack.c.bf16 %v1539_v35, %v1538_v34 }
 0x11f   :  { %v1045_v37 = vpop.f32.mrf.mxu2  ;;  %v1021_v38 = vpop.f32.mrf.mxu0 }
 0x120   :  { %1616 = vst [vmem:[%s2800_s3 + $0x90] sm:$0xff] %v1584_v36  ;;  %v1046_v39 = vadd.f32 %v1045_v37, %v2410_v46  ;;  %v1058_v40 = vpop.f32.mrf.mxu3  ;;  %v1034_v41 = vpop.f32.mrf.mxu1 }
 0x121   :  { %v1059_v42 = vadd.f32 %v1058_v40, %v2410_v46 }
 0x122   :  { %vm1412_vm10 = vcmp.ge.f32.partialorder %v1046_v39, 0.0  ;;  %v1476_v43 = vmul.f32 0.2, %v1046_v39 }
 0x123   :  { %vm1413_vm11 = vcmp.ge.f32.partialorder %v1059_v42, 0.0  ;;  %v1477_v44 = vmul.f32 0.2, %v1059_v42 }
 0x124   :  { %v1540_v45 = vsel %vm1412_vm10, %v1046_v39, %v1476_v43 }
 0x125   :  { %v1541_v47 = vsel %vm1413_vm11, %v1059_v42, %v1477_v44 }
 0x126   :  { %v1585_v48 = vpack.c.bf16 %v1541_v47, %v1540_v45 }
 0x127   :  { %v1047_v49 = vpop.f32.mrf.mxu2  ;;  %v1071_v50 = vpop.f32.mrf.mxu0 }
 0x128   :  { %1617 = vst [vmem:[%s2800_s3 + $0x98] sm:$0xff] %v1585_v48  ;;  %v1060_v51 = vpop.f32.mrf.mxu3  ;;  %v1072_v52 = vadd.f32 %v1071_v50, %v2410_v46  ;;  %v1084_v53 = vpop.f32.mrf.mxu1 }
 0x129   :  { %v1085_v54 = vadd.f32 %v1084_v53, %v2410_v46 }
 0x12a   :  { %vm1414_vm12 = vcmp.ge.f32.partialorder %v1072_v52, 0.0  ;;  %v1478_v55 = vmul.f32 0.2, %v1072_v52 }
 0x12b   :  { %vm1415_vm13 = vcmp.ge.f32.partialorder %v1085_v54, 0.0  ;;  %v1479_v56 = vmul.f32 0.2, %v1085_v54 }
 0x12c   :  { %v1542_v57 = vsel %vm1414_vm12, %v1072_v52, %v1478_v55 }
 0x12d   :  { %v1543_v58 = vsel %vm1415_vm13, %v1085_v54, %v1479_v56 }
 0x12e   :  { %v1586_v59 = vpack.c.bf16 %v1543_v58, %v1542_v57 }
 0x12f   :  { %v1097_v60 = vpop.f32.mrf.mxu2  ;;  %v1073_v61 = vpop.f32.mrf.mxu0 }
 0x130   :  { %1618 = vst [vmem:[%s2800_s3 + $0xa0] sm:$0xff] %v1586_v59  ;;  %v1098_v62 = vadd.f32 %v1097_v60, %v2410_v46  ;;  %v1110_v63 = vpop.f32.mrf.mxu3  ;;  %v1086_v0 = vpop.f32.mrf.mxu1 }
 0x131   :  { %v1111_v1 = vadd.f32 %v1110_v63, %v2410_v46 }
 0x132   :  { %vm1416_vm14 = vcmp.ge.f32.partialorder %v1098_v62, 0.0  ;;  %v1480_v2 = vmul.f32 0.2, %v1098_v62 }
 0x133   :  { %vm1417_vm15 = vcmp.ge.f32.partialorder %v1111_v1, 0.0  ;;  %v1481_v3 = vmul.f32 0.2, %v1111_v1 }
 0x134   :  { %v1544_v4 = vsel %vm1416_vm14, %v1098_v62, %v1480_v2 }
 0x135   :  { %v1545_v6 = vsel %vm1417_vm15, %v1111_v1, %v1481_v3 }
 0x136   :  { %v1587_v7 = vpack.c.bf16 %v1545_v6, %v1544_v4 }
 0x137   :  { %v1099_v8 = vpop.f32.mrf.mxu2  ;;  %v1123_v9 = vpop.f32.mrf.mxu0 }
 0x138   :  { %1619 = vst [vmem:[%s2800_s3 + $0xa8] sm:$0xff] %v1587_v7  ;;  %v1112_v10 = vpop.f32.mrf.mxu3  ;;  %v1124_v11 = vadd.f32 %v1123_v9, %v2410_v46  ;;  %v1136_v5 = vpop.f32.mrf.mxu1 }
 0x139   :  { %v1137_v12 = vadd.f32 %v1136_v5, %v2410_v46 }
 0x13a   :  { %vm1418_vm0 = vcmp.ge.f32.partialorder %v1124_v11, 0.0  ;;  %v1482_v13 = vmul.f32 0.2, %v1124_v11 }
 0x13b   :  { %vm1419_vm1 = vcmp.ge.f32.partialorder %v1137_v12, 0.0  ;;  %v1483_v17 = vmul.f32 0.2, %v1137_v12 }
 0x13c   :  { %v1546_v14 = vsel %vm1418_vm0, %v1124_v11, %v1482_v13 }
 0x13d   :  { %v1547_v15 = vsel %vm1419_vm1, %v1137_v12, %v1483_v17 }
 0x13e   :  { %v1588_v16 = vpack.c.bf16 %v1547_v15, %v1546_v14 }
 0x13f   :  { %v1149_v18 = vpop.f32.mrf.mxu2  ;;  %v1125_v19 = vpop.f32.mrf.mxu0 }
 0x140   :  { %1620 = vst [vmem:[%s2800_s3 + $0xb0] sm:$0xff] %v1588_v16  ;;  %v1150_v20 = vadd.f32 %v1149_v18, %v2410_v46  ;;  %v1162_v21 = vpop.f32.mrf.mxu3  ;;  %v1138_v22 = vpop.f32.mrf.mxu1 }
 0x141   :  { %v1163_v23 = vadd.f32 %v1162_v21, %v2410_v46 }
 0x142   :  { %vm1420_vm3 = vcmp.ge.f32.partialorder %v1150_v20, 0.0  ;;  %v1484_v24 = vmul.f32 0.2, %v1150_v20 }
 0x143   :  { %vm1421_vm4 = vcmp.ge.f32.partialorder %v1163_v23, 0.0  ;;  %v1485_v25 = vmul.f32 0.2, %v1163_v23 }
 0x144   :  { %v1548_v26 = vsel %vm1420_vm3, %v1150_v20, %v1484_v24 }
 0x145   :  { %v1549_v27 = vsel %vm1421_vm4, %v1163_v23, %v1485_v25 }
 0x146   :  { %v1589_v28 = vpack.c.bf16 %v1549_v27, %v1548_v26 }
 0x147   :  { %v1151_v29 = vpop.f32.mrf.mxu2  ;;  %v1175_v30 = vpop.f32.mrf.mxu0 }
 0x148   :  { %1621 = vst [vmem:[%s2800_s3 + $0xb8] sm:$0xff] %v1589_v28  ;;  %v1164_v31 = vpop.f32.mrf.mxu3  ;;  %v1176_v32 = vadd.f32 %v1175_v30, %v2410_v46  ;;  %v1188_v33 = vpop.f32.mrf.mxu1 }
 0x149   :  { %v1189_v34 = vadd.f32 %v1188_v33, %v2410_v46 }
 0x14a   :  { %vm1422_vm2 = vcmp.ge.f32.partialorder %v1176_v32, 0.0  ;;  %v1486_v35 = vmul.f32 0.2, %v1176_v32 }
 0x14b   :  { %vm1423_vm5 = vcmp.ge.f32.partialorder %v1189_v34, 0.0  ;;  %v1487_v36 = vmul.f32 0.2, %v1189_v34 }
 0x14c   :  { %v1550_v37 = vsel %vm1422_vm2, %v1176_v32, %v1486_v35 }
 0x14d   :  { %v1551_v38 = vsel %vm1423_vm5, %v1189_v34, %v1487_v36 }
 0x14e   :  { %v1590_v39 = vpack.c.bf16 %v1551_v38, %v1550_v37 }
 0x14f   :  { %v1201_v40 = vpop.f32.mrf.mxu2  ;;  %v1177_v41 = vpop.f32.mrf.mxu0 }
 0x150   :  { %1622 = vst [vmem:[%s2800_s3 + $0xc0] sm:$0xff] %v1590_v39  ;;  %v1202_v42 = vadd.f32 %v1201_v40, %v2410_v46  ;;  %v1214_v43 = vpop.f32.mrf.mxu3  ;;  %v1190_v44 = vpop.f32.mrf.mxu1 }
 0x151   :  { %v1215_v45 = vadd.f32 %v1214_v43, %v2410_v46 }
 0x152   :  { %vm1424_vm6 = vcmp.ge.f32.partialorder %v1202_v42, 0.0  ;;  %v1488_v47 = vmul.f32 0.2, %v1202_v42 }
 0x153   :  { %vm1425_vm7 = vcmp.ge.f32.partialorder %v1215_v45, 0.0  ;;  %v1489_v48 = vmul.f32 0.2, %v1215_v45 }
 0x154   :  { %v1552_v49 = vsel %vm1424_vm6, %v1202_v42, %v1488_v47 }
 0x155   :  { %v1553_v50 = vsel %vm1425_vm7, %v1215_v45, %v1489_v48 }
 0x156   :  { %v1591_v51 = vpack.c.bf16 %v1553_v50, %v1552_v49 }
 0x157   :  { %v1203_v52 = vpop.f32.mrf.mxu2  ;;  %v1227_v53 = vpop.f32.mrf.mxu0 }
 0x158   :  { %1623 = vst [vmem:[%s2800_s3 + $0xc8] sm:$0xff] %v1591_v51  ;;  %v1216_v54 = vpop.f32.mrf.mxu3  ;;  %v1228_v55 = vadd.f32 %v1227_v53, %v2410_v46  ;;  %v1240_v56 = vpop.f32.mrf.mxu1 }
 0x159   :  { %v1241_v57 = vadd.f32 %v1240_v56, %v2410_v46 }
 0x15a   :  { %vm1426_vm8 = vcmp.ge.f32.partialorder %v1228_v55, 0.0  ;;  %v1490_v58 = vmul.f32 0.2, %v1228_v55 }
 0x15b   :  { %vm1427_vm9 = vcmp.ge.f32.partialorder %v1241_v57, 0.0  ;;  %v1491_v59 = vmul.f32 0.2, %v1241_v57 }
 0x15c   :  { %v1554_v60 = vsel %vm1426_vm8, %v1228_v55, %v1490_v58 }
 0x15d   :  { %v1555_v61 = vsel %vm1427_vm9, %v1241_v57, %v1491_v59 }
 0x15e   :  { %v1592_v62 = vpack.c.bf16 %v1555_v61, %v1554_v60 }
 0x15f   :  { %v1253_v63 = vpop.f32.mrf.mxu2  ;;  %v1229_v0 = vpop.f32.mrf.mxu0 }
 0x160   :  { %1624 = vst [vmem:[%s2800_s3 + $0xd0] sm:$0xff] %v1592_v62  ;;  %v1254_v1 = vadd.f32 %v1253_v63, %v2410_v46  ;;  %v1266_v2 = vpop.f32.mrf.mxu3  ;;  %v1242_v3 = vpop.f32.mrf.mxu1 }
 0x161   :  { %v1267_v4 = vadd.f32 %v1266_v2, %v2410_v46 }
 0x162   :  { %vm1428_vm10 = vcmp.ge.f32.partialorder %v1254_v1, 0.0  ;;  %v1492_v6 = vmul.f32 0.2, %v1254_v1 }
 0x163   :  { %vm1429_vm11 = vcmp.ge.f32.partialorder %v1267_v4, 0.0  ;;  %v1493_v7 = vmul.f32 0.2, %v1267_v4 }
 0x164   :  { %v1556_v8 = vsel %vm1428_vm10, %v1254_v1, %v1492_v6 }
 0x165   :  { %v1557_v9 = vsel %vm1429_vm11, %v1267_v4, %v1493_v7 }
 0x166   :  { %v1593_v10 = vpack.c.bf16 %v1557_v9, %v1556_v8 }
 0x167   :  { %v1255_v11 = vpop.f32.mrf.mxu2  ;;  %v1279_v5 = vpop.f32.mrf.mxu0 }
 0x168   :  { %1625 = vst [vmem:[%s2800_s3 + $0xd8] sm:$0xff] %v1593_v10  ;;  %v1268_v12 = vpop.f32.mrf.mxu3  ;;  %v1280_v13 = vadd.f32 %v1279_v5, %v2410_v46  ;;  %v1292_v17 = vpop.f32.mrf.mxu1 }
 0x169   :  { %v1293_v14 = vadd.f32 %v1292_v17, %v2410_v46 }
 0x16a   :  { %vm1430_vm12 = vcmp.ge.f32.partialorder %v1280_v13, 0.0  ;;  %v1494_v15 = vmul.f32 0.2, %v1280_v13 }
 0x16b   :  { %vm1431_vm13 = vcmp.ge.f32.partialorder %v1293_v14, 0.0  ;;  %v1495_v16 = vmul.f32 0.2, %v1293_v14 }
 0x16c   :  { %v1558_v18 = vsel %vm1430_vm12, %v1280_v13, %v1494_v15 }
 0x16d   :  { %v1559_v19 = vsel %vm1431_vm13, %v1293_v14, %v1495_v16 }
 0x16e   :  { %v1594_v20 = vpack.c.bf16 %v1559_v19, %v1558_v18 }
 0x16f   :  { %v1305_v21 = vpop.f32.mrf.mxu2  ;;  %v1281_v22 = vpop.f32.mrf.mxu0 }
 0x170   :  { %1626 = vst [vmem:[%s2800_s3 + $0xe0] sm:$0xff] %v1594_v20  ;;  %v1306_v23 = vadd.f32 %v1305_v21, %v2410_v46  ;;  %v1318_v24 = vpop.f32.mrf.mxu3  ;;  %v1294_v25 = vpop.f32.mrf.mxu1 }
 0x171   :  { %v1319_v26 = vadd.f32 %v1318_v24, %v2410_v46 }
 0x172   :  { %vm1432_vm14 = vcmp.ge.f32.partialorder %v1306_v23, 0.0  ;;  %v1496_v27 = vmul.f32 0.2, %v1306_v23 }
 0x173   :  { %vm1433_vm15 = vcmp.ge.f32.partialorder %v1319_v26, 0.0  ;;  %v1497_v28 = vmul.f32 0.2, %v1319_v26 }
 0x174   :  { %v1560_v29 = vsel %vm1432_vm14, %v1306_v23, %v1496_v27 }
 0x175   :  { %v1561_v30 = vsel %vm1433_vm15, %v1319_v26, %v1497_v28 }
 0x176   :  { %v1595_v31 = vpack.c.bf16 %v1561_v30, %v1560_v29 }
 0x177   :  { %v1307_v32 = vpop.f32.mrf.mxu2  ;;  %v1331_v33 = vpop.f32.mrf.mxu0 }
 0x178   :  { %1627 = vst [vmem:[%s2800_s3 + $0xe8] sm:$0xff] %v1595_v31  ;;  %v1320_v34 = vpop.f32.mrf.mxu3  ;;  %v1332_v35 = vadd.f32 %v1331_v33, %v2410_v46  ;;  %v1344_v36 = vpop.f32.mrf.mxu1 }
 0x179   :  { %v1345_v37 = vadd.f32 %v1344_v36, %v2410_v46 }
 0x17a   :  { %vm1434_vm0 = vcmp.ge.f32.partialorder %v1332_v35, 0.0  ;;  %v1498_v38 = vmul.f32 0.2, %v1332_v35 }
 0x17b   :  { %vm1435_vm1 = vcmp.ge.f32.partialorder %v1345_v37, 0.0  ;;  %v1499_v39 = vmul.f32 0.2, %v1345_v37 }
 0x17c   :  { %v1562_v40 = vsel %vm1434_vm0, %v1332_v35, %v1498_v38 }
 0x17d   :  { %v1563_v41 = vsel %vm1435_vm1, %v1345_v37, %v1499_v39 }
 0x17e   :  { %v1596_v42 = vpack.c.bf16 %v1563_v41, %v1562_v40 }
 0x17f   :  { %v1357_v43 = vpop.f32.mrf.mxu2  ;;  %v1333_v44 = vpop.f32.mrf.mxu0 }
 0x180   :  { %1628 = vst [vmem:[%s2800_s3 + $0xf0] sm:$0xff] %v1596_v42  ;;  %v1358_v45 = vadd.f32 %v1357_v43, %v2410_v46  ;;  %v1370_v47 = vpop.f32.mrf.mxu3  ;;  %v1346_v48 = vpop.f32.mrf.mxu1 }
 0x181   :  { %v1371_v49 = vadd.f32 %v1370_v47, %v2410_v46 }
 0x182   :  { %vm1436_vm3 = vcmp.ge.f32.partialorder %v1358_v45, 0.0  ;;  %v1500_v50 = vmul.f32 0.2, %v1358_v45 }
 0x183   :  { %vm1437_vm4 = vcmp.ge.f32.partialorder %v1371_v49, 0.0  ;;  %v1501_v51 = vmul.f32 0.2, %v1371_v49 }
 0x184   :  { %v1564_v52 = vsel %vm1436_vm3, %v1358_v45, %v1500_v50 }
 0x185   :  { %v1565_v53 = vsel %vm1437_vm4, %v1371_v49, %v1501_v51 }
 0x186   :  { %v1597_v54 = vpack.c.bf16 %v1565_v53, %v1564_v52 }
 0x187   :  { %v1359_v55 = vpop.f32.mrf.mxu2 }
 0x188   :  { %1629 = vst [vmem:[%s2800_s3 + $0xf8] sm:$0xff] %v1597_v54  ;;  %v1372_v56 = vpop.f32.mrf.mxu3 }

// kernel: autoencoder_fwd.18
= control target key start
LH: loop header
LB: loop body
LE: loop exit
PB: predicated region body
PF: predicated region fallthrough
CT: control target
= control target key end

     0   :  { %vm470_vm0 = vcmask 1043456   ;;  %v1218_v50 = vmov 0   ;;  %vm466_vm1 = vcmask 588800   ;;  %s1790_s1 = inlined_call_operand.vmem [shape: bf16[72,2048], index: 1, kind: input, shape index: {}]   ;;  %s1791_s2 = inlined_call_operand.vmem [shape: f32[16,1], index: 2, kind: input, shape index: {}]   ;;  %s1792_s0 = inlined_call_operand.vmem [shape: bf16[16,72], index: 0, kind: input, shape index: {}]   ;;  %s1793_s3 = inlined_call_operand.vmem [shape: bf16[16,2048], index: 3, kind: output, shape index: {}]  }
   0x1   :  { %v81_v0 = vld [vmem:[%s1790_s1 + $0x200] sm:$0xff]  ;;  %v82_v1 = vld [vmem:[%s1790_s1 + $0x208] sm:$0xff]  ;;  %v83_v46 = vld [vmem:[%s1790_s1 + $0x210] sm:$0xff]  ;;  %1217 = vset.pattern.permute.xlu0 %v1218_v50 }
   0x2   :  { %v306_v2 = vunpack.c.l.b16 %v81_v0  ;;  %v307_v3 = vunpack.c.h.b16 %v81_v0  ;;  %v308_v4 = vunpack.c.l.b16 %v82_v1  ;;  %v309_v5 = vunpack.c.h.b16 %v82_v1  ;;  %v1073_v6 = vld [vmem:[%s1790_s1 + $0x180] sm:$0xf]  ;;  %v1200_v12 = vld [vmem:[%s1790_s1 + $0x184] sm:$0xf]  ;;  %v1081_v14 = vld [vmem:[%s1790_s1 + $0x188] sm:$0xf] }
   0x3   :  { %v1208_v7 = vld [vmem:[%s1790_s1 + $0x1bc] sm:$0xf0]  ;;  %v1075_v13 = vld [vmem:[%s1790_s1 + $0x1c0] sm:$0xf0]  ;;  %v1209_v15 = vld [vmem:[%s1790_s1 + $0x1c4] sm:$0xf0]  ;;  %v310_v48 = vunpack.c.l.b16 %v83_v46  ;;  %v311_v49 = vunpack.c.h.b16 %v83_v46 }
   0x4   :  { %v386_v8 = vpack.c.b16 %v306_v2, %v306_v2  ;;  %v387_v9 = vpack.c.b16 %v307_v3, %v307_v3  ;;  %v388_v10 = vpack.c.b16 %v308_v4, %v308_v4  ;;  %v389_v11 = vpack.c.b16 %v309_v5, %v309_v5  ;;  %v1201_v16 = vld [vmem:[%s1790_s1 + $0x18c] sm:$0xf]  ;;  %v1009_v24 = vld [vmem:[%s1790_s1 + $0x100] sm:$0xf]  ;;  %v1184_v28 = vld [vmem:[%s1790_s1 + $0x104] sm:$0xf] }
   0x5   :  { %v1083_v17 = vld [vmem:[%s1790_s1 + $0x1c8] sm:$0xf0]  ;;  %v1074_v22 = vor.u32 %v1208_v7, %v1073_v6  ;;  %v1078_v23 = vor.u32 %v1200_v12, %v1075_v13  ;;  %v1192_v25 = vld [vmem:[%s1790_s1 + $0x13c] sm:$0xf0]  ;;  %v1082_v26 = vor.u32 %v1209_v15, %v1081_v14  ;;  %v1011_v29 = vld [vmem:[%s1790_s1 + $0x140] sm:$0xf0]  ;;  %v390_v2 = vpack.c.b16 %v310_v48, %v310_v48 }
   0x6   :  { %v472_v18 = vsel %vm470_vm0, %v386_v8, 0  ;;  %v475_v19 = vsel %vm470_vm0, %v387_v9, 0  ;;  %v478_v20 = vsel %vm470_vm0, %v388_v10, 0  ;;  %v481_v21 = vsel %vm470_vm0, %v389_v11, 0  ;;  %v1017_v30 = vld [vmem:[%s1790_s1 + $0x108] sm:$0xf] }
   0x7   :  { %522 = vmatpush.bf16.msra.mxu0 %v472_v18  ;;  %536 = vmatpush.bf16.msra.mxu1 %v475_v19  ;;  %v1086_v27 = vor.u32 %v1201_v16, %v1083_v17  ;;  %v1193_v31 = vld [vmem:[%s1790_s1 + $0x144] sm:$0xf0]  ;;  %v1185_v32 = vld [vmem:[%s1790_s1 + $0x10c] sm:$0xf]  ;;  %v945_v34 = vld [vmem:[%s1790_s1 + $0x80] sm:$0xf]  ;;  %v1010_v35 = vor.u32 %v1192_v25, %v1009_v24  ;;  %v1014_v36 = vor.u32 %v1184_v28, %v1011_v29 }
   0x8   :  { %550 = vmatpush.bf16.msra.mxu2 %v478_v20  ;;  %564 = vmatpush.bf16.msra.mxu3 %v481_v21  ;;  %v1019_v33 = vld [vmem:[%s1790_s1 + $0x148] sm:$0xf0]  ;;  %v1176_v37 = vld [vmem:[%s1790_s1 + $0xbc] sm:$0xf0]  ;;  %v1168_v38 = vld [vmem:[%s1790_s1 + $0x84] sm:$0xf]  ;;  %v1018_v40 = vor.u32 %v1193_v31, %v1017_v30  ;;  %v391_v3 = vpack.c.b16 %v311_v49, %v311_v49 }
   0x9   :  { %v947_v39 = vld [vmem:[%s1790_s1 + $0xc0] sm:$0xf0]  ;;  %v1022_v41 = vor.u32 %v1185_v32, %v1019_v33  ;;  %v953_v42 = vld [vmem:[%s1790_s1 + $0x88] sm:$0xf]  ;;  %v1169_v44 = vld [vmem:[%s1790_s1 + $0x8c] sm:$0xf]  ;;  %v946_v51 = vor.u32 %v1176_v37, %v945_v34 }
   0xa   :  { %v1177_v43 = vld [vmem:[%s1790_s1 + $0xc4] sm:$0xf0]  ;;  %v955_v45 = vld [vmem:[%s1790_s1 + $0xc8] sm:$0xf0]  ;;  %v84_v47 = vld [vmem:[%s1790_s1 + $0x218] sm:$0xff]  ;;  %v950_v52 = vor.u32 %v1168_v38, %v947_v39  ;;  %v484_v15 = vsel %vm470_vm0, %v390_v2, 0 }
   0xb   :  { %523 = vmatpush.bf16.msra.mxu0 %v1074_v22  ;;  %537 = vmatpush.bf16.msra.mxu1 %v1078_v23  ;;  %v881_v53 = vld [vmem:[%s1790_s1] sm:$0xf]  ;;  %v312_v55 = vunpack.c.l.b16 %v84_v47  ;;  %v313_v56 = vunpack.c.h.b16 %v84_v47  ;;  %v954_v57 = vor.u32 %v1177_v43, %v953_v42  ;;  %v958_v58 = vor.u32 %v1169_v44, %v955_v45  ;;  %v1152_v59 = vld [vmem:[%s1790_s1 + $0x4] sm:$0xf]  ;;  %v889_v61 = vld [vmem:[%s1790_s1 + $0x8] sm:$0xf] }
   0xc   :  { %551 = vmatpush.bf16.msra.mxu2 %v1082_v26  ;;  %565 = vmatpush.bf16.msra.mxu3 %v1086_v27  ;;  %v1160_v54 = vld [vmem:[%s1790_s1 + $0x3c] sm:$0xf0]  ;;  %v883_v60 = vld [vmem:[%s1790_s1 + $0x40] sm:$0xf0]  ;;  %v1161_v62 = vld [vmem:[%s1790_s1 + $0x44] sm:$0xf0] }
   0xd   :  { %v1153_v63 = vld [vmem:[%s1790_s1 + $0xc] sm:$0xf]  ;;  %v882_v1 = vor.u32 %v1160_v54, %v881_v53  ;;  %v89_v4 = vld [vmem:[%s1791_s2] sm:$0xff]  ;;  %v886_v5 = vor.u32 %v1152_v59, %v883_v60  ;;  %v392_v6 = vpack.c.b16 %v312_v55, %v312_v55  ;;  %v393_v7 = vpack.c.b16 %v313_v56, %v313_v56  ;;  %v1089_v10 = vld [vmem:[%s1790_s1 + $0x190] sm:$0xf] }
   0xe   :  { %v891_v0 = vld [vmem:[%s1790_s1 + $0x48] sm:$0xf0]  ;;  %v890_v8 = vor.u32 %v1161_v62, %v889_v61  ;;  %v1360_v11 = vld [vmem:[%s1792_s0] sm:$0xff]  ;;  %v1210_v12 = vld [vmem:[%s1790_s1 + $0x1cc] sm:$0xf0]  ;;  %93 = vperm.xlu0 %1217, %v89_v4   ;;  %v487_v16 = vsel %vm470_vm0, %v391_v3, 0 }
   0xf   :  { %524 = vmatpush.bf16.msra.mxu0 %v1010_v35  ;;  %538 = vmatpush.bf16.msra.mxu1 %v1014_v36  ;;  %v894_v9 = vor.u32 %v1153_v63, %v891_v0  ;;  %v1202_v13 = vld [vmem:[%s1790_s1 + $0x194] sm:$0xf]  ;;  %v1097_v17 = vld [vmem:[%s1790_s1 + $0x198] sm:$0xf]  ;;  %v490_v19 = vsel %vm470_vm0, %v392_v6, 0  ;;  %v493_v20 = vsel %vm470_vm0, %v393_v7, 0  ;;  %v1090_v23 = vor.u32 %v1210_v12, %v1089_v10 }
  0x10   :  { %552 = vmatpush.bf16.msra.mxu2 %v1018_v40  ;;  %566 = vmatpush.bf16.msra.mxu3 %v1022_v41  ;;  %v1091_v14 = vld [vmem:[%s1790_s1 + $0x1d0] sm:$0xf0]  ;;  %v1211_v18 = vld [vmem:[%s1790_s1 + $0x1d4] sm:$0xf0]  ;;  %v1203_v21 = vld [vmem:[%s1790_s1 + $0x19c] sm:$0xf] }
  0x11   :  { %v1099_v22 = vld [vmem:[%s1790_s1 + $0x1d8] sm:$0xf0]  ;;  %v1094_v24 = vor.u32 %v1202_v13, %v1091_v14  ;;  %v1025_v25 = vld [vmem:[%s1790_s1 + $0x110] sm:$0xf]  ;;  %v1186_v27 = vld [vmem:[%s1790_s1 + $0x114] sm:$0xf]  ;;  %v1098_v28 = vor.u32 %v1211_v18, %v1097_v17 }
  0x12   :  { %v1194_v26 = vld [vmem:[%s1790_s1 + $0x14c] sm:$0xf0]  ;;  %v1102_v29 = vor.u32 %v1203_v21, %v1099_v22  ;;  %v1027_v30 = vld [vmem:[%s1790_s1 + $0x150] sm:$0xf0]  ;;  %v1033_v31 = vld [vmem:[%s1790_s1 + $0x118] sm:$0xf] }
  0x13   :  { %525 = vmatpush.bf16.msra.mxu0 %v946_v51  ;;  %539 = vmatpush.bf16.msra.mxu1 %v950_v52  ;;  %v85_v32 = vld [vmem:[%s1790_s1 + $0x220] sm:$0xff]  ;;  %v1195_v33 = vld [vmem:[%s1790_s1 + $0x154] sm:$0xf0]  ;;  %v1187_v34 = vld [vmem:[%s1790_s1 + $0x11c] sm:$0xf]  ;;  %v1026_v37 = vor.u32 %v1194_v26, %v1025_v25  ;;  %v1030_v38 = vor.u32 %v1186_v27, %v1027_v30 }
  0x14   :  { %553 = vmatpush.bf16.msra.mxu2 %v954_v57  ;;  %567 = vmatpush.bf16.msra.mxu3 %v958_v58  ;;  %v1035_v35 = vld [vmem:[%s1790_s1 + $0x158] sm:$0xf0]  ;;  %v90_v36 = vld [vmem:[%s1791_s2 + $0x8] sm:$0xff]  ;;  %v961_v39 = vld [vmem:[%s1790_s1 + $0x90] sm:$0xf]  ;;  %v314_v42 = vunpack.c.l.b16 %v85_v32  ;;  %v1034_v43 = vor.u32 %v1195_v33, %v1033_v31  ;;  %v315_v47 = vunpack.c.h.b16 %v85_v32 }
  0x15   :  { %v1178_v40 = vld [vmem:[%s1790_s1 + $0xcc] sm:$0xf0]  ;;  %v1170_v41 = vld [vmem:[%s1790_s1 + $0x94] sm:$0xf]  ;;  %v1038_v44 = vor.u32 %v1187_v34, %v1035_v35  ;;  %v969_v46 = vld [vmem:[%s1790_s1 + $0x98] sm:$0xf] }
  0x16   :  { %v963_v45 = vld [vmem:[%s1790_s1 + $0xd0] sm:$0xf0]  ;;  %v86_v48 = vld [vmem:[%s1790_s1 + $0x228] sm:$0xff]  ;;  %v1179_v49 = vld [vmem:[%s1790_s1 + $0xd4] sm:$0xf0]  ;;  %98 = vperm.xlu0 %1217, %v90_v36   ;;  %v962_v52 = vor.u32 %v1178_v40, %v961_v39  ;;  %v394_v56 = vpack.c.b16 %v314_v42, %v314_v42  ;;  %v395_v0 = vpack.c.b16 %v315_v47, %v315_v47 }
  0x17   :  { %526 = vmatpush.bf16.msra.mxu0 %v882_v1  ;;  %540 = vmatpush.bf16.msra.mxu1 %v886_v5  ;;  %v1171_v50 = vld [vmem:[%s1790_s1 + $0x9c] sm:$0xf]  ;;  %v966_v53 = vor.u32 %v1170_v41, %v963_v45  ;;  %v897_v54 = vld [vmem:[%s1790_s1 + $0x10] sm:$0xf]  ;;  %v316_v57 = vunpack.c.l.b16 %v86_v48  ;;  %v317_v58 = vunpack.c.h.b16 %v86_v48  ;;  %v970_v59 = vor.u32 %v1179_v49, %v969_v46  ;;  %v1154_v61 = vld [vmem:[%s1790_s1 + $0x14] sm:$0xf] }
  0x18   :  { %554 = vmatpush.bf16.msra.mxu2 %v890_v8  ;;  %568 = vmatpush.bf16.msra.mxu3 %v894_v9  ;;  %v971_v51 = vld [vmem:[%s1790_s1 + $0xd8] sm:$0xf0]  ;;  %v1162_v55 = vld [vmem:[%s1790_s1 + $0x4c] sm:$0xf0]  ;;  %v899_v62 = vld [vmem:[%s1790_s1 + $0x50] sm:$0xf0] }
  0x19   :  { %v974_v60 = vor.u32 %v1171_v50, %v971_v51  ;;  %v905_v63 = vld [vmem:[%s1790_s1 + $0x18] sm:$0xf]  ;;  %v1155_v2 = vld [vmem:[%s1790_s1 + $0x1c] sm:$0xf]  ;;  %v898_v4 = vor.u32 %v1162_v55, %v897_v54  ;;  %v902_v5 = vor.u32 %v1154_v61, %v899_v62  ;;  %v396_v6 = vpack.c.b16 %v316_v57, %v316_v57  ;;  %v1105_v13 = vld [vmem:[%s1790_s1 + $0x1a0] sm:$0xf] }
  0x1a   :  { %1135 = vmatmul.msk.bf16.vlgmr.msra.gmra.mxu0 %vm466_vm1, %v1360_v11  ;;  %1136 = vmatmul.msk.bf16.vlgmr.msra.gmra.mxu1 %vm466_vm1, %v1360_v11  ;;  %v1163_v1 = vld [vmem:[%s1790_s1 + $0x54] sm:$0xf0]  ;;  %v907_v3 = vld [vmem:[%s1790_s1 + $0x58] sm:$0xf0]  ;;  %v397_v7 = vpack.c.b16 %v317_v58, %v317_v58  ;;  %v496_v10 = vsel %vm470_vm0, %v394_v56, 0  ;;  %v499_v12 = vsel %vm470_vm0, %v395_v0, 0 }
  0x1b   :  { %578 = vmatpush.bf16.msrb.mxu0 %v484_v15  ;;  %592 = vmatpush.bf16.msrb.mxu1 %v487_v16  ;;  %v906_v8 = vor.u32 %v1163_v1, %v905_v63  ;;  %v910_v9 = vor.u32 %v1155_v2, %v907_v3  ;;  %v1212_v14 = vld [vmem:[%s1790_s1 + $0x1dc] sm:$0xf0]  ;;  %v1204_v15 = vld [vmem:[%s1790_s1 + $0x1a4] sm:$0xf]  ;;  %v1113_v17 = vld [vmem:[%s1790_s1 + $0x1a8] sm:$0xf] }
  0x1c   :  { %606 = vmatpush.bf16.msrb.mxu2 %v490_v19  ;;  %620 = vmatpush.bf16.msrb.mxu3 %v493_v20  ;;  %v1107_v16 = vld [vmem:[%s1790_s1 + $0x1e0] sm:$0xf0]  ;;  %v1213_v18 = vld [vmem:[%s1790_s1 + $0x1e4] sm:$0xf0]  ;;  %v502_v19 = vsel %vm470_vm0, %v396_v6, 0  ;;  %v505_v20 = vsel %vm470_vm0, %v397_v7, 0 }
  0x1d   :  { %1137 = vmatmul.msk.bf16.vlgmr.msra.gmra.mxu2 %vm466_vm1, %v1360_v11  ;;  %1138 = vmatmul.msk.bf16.vlgmr.msra.gmra.mxu3 %vm466_vm1, %v1360_v11  ;;  %v1205_v21 = vld [vmem:[%s1790_s1 + $0x1ac] sm:$0xf]  ;;  %v1041_v25 = vld [vmem:[%s1790_s1 + $0x120] sm:$0xf]  ;;  %v1114_v27 = vor.u32 %v1213_v18, %v1113_v17  ;;  %v1043_v30 = vld [vmem:[%s1790_s1 + $0x160] sm:$0xf0] }
  0x1e   :  { %v1115_v22 = vld [vmem:[%s1790_s1 + $0x1e8] sm:$0xf0]  ;;  %v1196_v26 = vld [vmem:[%s1790_s1 + $0x15c] sm:$0xf0]  ;;  %v1049_v31 = vld [vmem:[%s1790_s1 + $0x128] sm:$0xf] }
  0x1f   :  { %579 = vmatpush.bf16.msrb.mxu0 %v1090_v23  ;;  %593 = vmatpush.bf16.msrb.mxu1 %v1094_v24  ;;  %v1106_v23 = vor.u32 %v1212_v14, %v1105_v13  ;;  %v1110_v24 = vor.u32 %v1204_v15, %v1107_v16  ;;  %v1197_v32 = vld [vmem:[%s1790_s1 + $0x164] sm:$0xf0]  ;;  %v1189_v33 = vld [vmem:[%s1790_s1 + $0x12c] sm:$0xf]  ;;  %v977_v35 = vld [vmem:[%s1790_s1 + $0xa0] sm:$0xf]  ;;  %v1042_v36 = vor.u32 %v1196_v26, %v1041_v25 }
  0x20   :  { %607 = vmatpush.bf16.msrb.mxu2 %v1098_v28  ;;  %621 = vmatpush.bf16.msrb.mxu3 %v1102_v29  ;;  %v1118_v28 = vor.u32 %v1205_v21, %v1115_v22  ;;  %v1188_v29 = vld [vmem:[%s1790_s1 + $0x124] sm:$0xf]  ;;  %v1051_v34 = vld [vmem:[%s1790_s1 + $0x168] sm:$0xf0]  ;;  %v87_v40 = vld [vmem:[%s1790_s1 + $0x230] sm:$0xff]  ;;  %v1050_v41 = vor.u32 %v1197_v32, %v1049_v31 }
  0x21   :  { %v1172_v39 = vld [vmem:[%s1790_s1 + $0xa4] sm:$0xf]  ;;  %v1054_v42 = vor.u32 %v1189_v33, %v1051_v34  ;;  %v88_v45 = vld [vmem:[%s1790_s1 + $0x238] sm:$0xff]  ;;  %v1181_v46 = vld [vmem:[%s1790_s1 + $0xe4] sm:$0xf0]  ;;  %v318_v49 = vunpack.c.l.b16 %v87_v40  ;;  %v319_v50 = vunpack.c.h.b16 %v87_v40 }
  0x22   :  { %v1173_v47 = vld [vmem:[%s1790_s1 + $0xac] sm:$0xf]  ;;  %v1164_v54 = vld [vmem:[%s1790_s1 + $0x5c] sm:$0xf0]  ;;  %v320_v55 = vunpack.c.l.b16 %v88_v45  ;;  %v321_v56 = vunpack.c.h.b16 %v88_v45  ;;  %v921_v61 = vld [vmem:[%s1790_s1 + $0x28] sm:$0xf] }
  0x23   :  { %580 = vmatpush.bf16.msrb.mxu0 %v1026_v37  ;;  %594 = vmatpush.bf16.msrb.mxu1 %v1030_v38  ;;  %v1046_v37 = vor.u32 %v1188_v29, %v1043_v30  ;;  %v1180_v38 = vld [vmem:[%s1790_s1 + $0xdc] sm:$0xf0]  ;;  %v987_v48 = vld [vmem:[%s1790_s1 + $0xe8] sm:$0xf0]  ;;  %v1165_v62 = vld [vmem:[%s1790_s1 + $0x64] sm:$0xf0]  ;;  %v398_v2 = vpack.c.b16 %v318_v49, %v318_v49  ;;  %v399_v3 = vpack.c.b16 %v319_v50, %v319_v50 }
  0x24   :  { %608 = vmatpush.bf16.msrb.mxu2 %v1034_v43  ;;  %622 = vmatpush.bf16.msrb.mxu3 %v1038_v44  ;;  %v979_v43 = vld [vmem:[%s1790_s1 + $0xe0] sm:$0xf0]  ;;  %v985_v44 = vld [vmem:[%s1790_s1 + $0xa8] sm:$0xf]  ;;  %v978_v51 = vor.u32 %v1180_v38, %v977_v35  ;;  %v990_v58 = vor.u32 %v1173_v47, %v987_v48  ;;  %v1157_v63 = vld [vmem:[%s1790_s1 + $0x2c] sm:$0xf]  ;;  %v401_v6 = vpack.c.b16 %v321_v56, %v321_v56 }
  0x25   :  { %v986_v57 = vor.u32 %v1181_v46, %v985_v44  ;;  %v923_v0 = vld [vmem:[%s1790_s1 + $0x68] sm:$0xf0]  ;;  %v922_v7 = vor.u32 %v1165_v62, %v921_v61  ;;  %v1123_v13 = vld [vmem:[%s1790_s1 + $0x1f0] sm:$0xf0]  ;;  %v508_v14 = vsel %vm470_vm0, %v398_v2, 0  ;;  %v511_v15 = vsel %vm470_vm0, %v399_v3, 0 }
  0x26   :  { %v1129_v16 = vld [vmem:[%s1790_s1 + $0x1b8] sm:$0xf]  ;;  %v1131_v21 = vld [vmem:[%s1790_s1 + $0x1f8] sm:$0xf0]  ;;  %v1198_v25 = vld [vmem:[%s1790_s1 + $0x16c] sm:$0xf0] }
  0x27   :  { %581 = vmatpush.bf16.msrb.mxu0 %v962_v52  ;;  %595 = vmatpush.bf16.msrb.mxu1 %v966_v53  ;;  %v982_v52 = vor.u32 %v1172_v39, %v979_v43  ;;  %v913_v53 = vld [vmem:[%s1790_s1 + $0x20] sm:$0xf]  ;;  %v1215_v17 = vld [vmem:[%s1790_s1 + $0x1f4] sm:$0xf0]  ;;  %v1059_v29 = vld [vmem:[%s1790_s1 + $0x170] sm:$0xf0] }
  0x28   :  { %609 = vmatpush.bf16.msrb.mxu2 %v970_v59  ;;  %623 = vmatpush.bf16.msrb.mxu3 %v974_v60  ;;  %v1156_v59 = vld [vmem:[%s1790_s1 + $0x24] sm:$0xf]  ;;  %v914_v1 = vor.u32 %v1164_v54, %v913_v53  ;;  %v1130_v26 = vor.u32 %v1215_v17, %v1129_v16  ;;  %v1065_v30 = vld [vmem:[%s1790_s1 + $0x138] sm:$0xf]  ;;  %v1191_v32 = vld [vmem:[%s1790_s1 + $0x13c] sm:$0xf] }
  0x29   :  { %v915_v60 = vld [vmem:[%s1790_s1 + $0x60] sm:$0xf0]  ;;  %v1199_v31 = vld [vmem:[%s1790_s1 + $0x174] sm:$0xf0]  ;;  %v1067_v33 = vld [vmem:[%s1790_s1 + $0x178] sm:$0xf0] }
  0x2a   :  { %v1066_v38 = vor.u32 %v1199_v31, %v1065_v30  ;;  %v1070_v39 = vor.u32 %v1191_v32, %v1067_v33  ;;  %v1174_v40 = vld [vmem:[%s1790_s1 + $0xb4] sm:$0xf]  ;;  %v1183_v43 = vld [vmem:[%s1790_s1 + $0xf4] sm:$0xf0]  ;;  %v1175_v44 = vld [vmem:[%s1790_s1 + $0xbc] sm:$0xf] }
  0x2b   :  { %582 = vmatpush.bf16.msrb.mxu0 %v898_v4  ;;  %596 = vmatpush.bf16.msrb.mxu1 %v902_v5  ;;  %v918_v4 = vor.u32 %v1156_v59, %v915_v60  ;;  %v400_v5 = vpack.c.b16 %v320_v55, %v320_v55  ;;  %v1003_v45 = vld [vmem:[%s1790_s1 + $0xf8] sm:$0xf0]  ;;  %v929_v48 = vld [vmem:[%s1790_s1 + $0x30] sm:$0xf]  ;;  %v931_v53 = vld [vmem:[%s1790_s1 + $0x70] sm:$0xf0] }
  0x2c   :  { %610 = vmatpush.bf16.msrb.mxu2 %v906_v8  ;;  %624 = vmatpush.bf16.msrb.mxu3 %v910_v9  ;;  %v926_v8 = vor.u32 %v1157_v63, %v923_v0  ;;  %v1121_v9 = vld [vmem:[%s1790_s1 + $0x1b0] sm:$0xf]  ;;  %v937_v54 = vld [vmem:[%s1790_s1 + $0x38] sm:$0xf]  ;;  %v1159_v56 = vld [vmem:[%s1790_s1 + $0x3c] sm:$0xf] }
  0x2d   :  { %v514_v18 = vsel %vm470_vm0, %v400_v5, 0  ;;  %v1166_v49 = vld [vmem:[%s1790_s1 + $0x6c] sm:$0xf0]  ;;  %v1167_v55 = vld [vmem:[%s1790_s1 + $0x74] sm:$0xf0] }
  0x2e   :  { %1139 = vmatmul.msk.bf16.vlgmr.msrb.gmra.mxu0 %vm466_vm1, %v1360_v11  ;;  %1140 = vmatmul.msk.bf16.vlgmr.msrb.gmra.mxu1 %vm466_vm1, %v1360_v11  ;;  %v938_v60 = vor.u32 %v1167_v55, %v937_v54 }
  0x2f   :  { %634 = vmatpush.bf16.msra.mxu0 %v496_v10  ;;  %648 = vmatpush.bf16.msra.mxu1 %v499_v12  ;;  %v1214_v10 = vld [vmem:[%s1790_s1 + $0x1ec] sm:$0xf0]  ;;  %v1206_v12 = vld [vmem:[%s1790_s1 + $0x1b4] sm:$0xf] }
  0x30   :  { %662 = vmatpush.bf16.msra.mxu2 %v502_v19  ;;  %676 = vmatpush.bf16.msra.mxu3 %v505_v20  ;;  %v517_v19 = vsel %vm470_vm0, %v401_v6, 0  ;;  %v1207_v20 = vld [vmem:[%s1790_s1 + $0x1bc] sm:$0xf]  ;;  %v1122_v22 = vor.u32 %v1214_v10, %v1121_v9 }
  0x31   :  { %1141 = vmatmul.msk.bf16.vlgmr.msrb.gmra.mxu2 %vm466_vm1, %v1360_v11  ;;  %1142 = vmatmul.msk.bf16.vlgmr.msrb.gmra.mxu3 %vm466_vm1, %v1360_v11 }
  0x33   :  { %635 = vmatpush.bf16.msra.mxu0 %v1106_v23  ;;  %649 = vmatpush.bf16.msra.mxu1 %v1110_v24  ;;  %v1126_v23 = vor.u32 %v1206_v12, %v1123_v13  ;;  %v1057_v24 = vld [vmem:[%s1790_s1 + $0x130] sm:$0xf] }
  0x34   :  { %663 = vmatpush.bf16.msra.mxu2 %v1114_v27  ;;  %677 = vmatpush.bf16.msra.mxu3 %v1118_v28  ;;  %v1134_v27 = vor.u32 %v1207_v20, %v1131_v21  ;;  %v1190_v28 = vld [vmem:[%s1790_s1 + $0x134] sm:$0xf]  ;;  %v1058_v34 = vor.u32 %v1198_v25, %v1057_v24 }
  0x35   :  { %v1062_v35 = vor.u32 %v1190_v28, %v1059_v29 }
  0x37   :  { %636 = vmatpush.bf16.msra.mxu0 %v1042_v36  ;;  %650 = vmatpush.bf16.msra.mxu1 %v1046_v37  ;;  %v993_v36 = vld [vmem:[%s1790_s1 + $0xb0] sm:$0xf] }
  0x38   :  { %664 = vmatpush.bf16.msra.mxu2 %v1050_v41  ;;  %678 = vmatpush.bf16.msra.mxu3 %v1054_v42  ;;  %v1182_v37 = vld [vmem:[%s1790_s1 + $0xec] sm:$0xf0]  ;;  %v995_v41 = vld [vmem:[%s1790_s1 + $0xf0] sm:$0xf0]  ;;  %v1001_v42 = vld [vmem:[%s1790_s1 + $0xb8] sm:$0xf] }
  0x39   :  { %v994_v46 = vor.u32 %v1182_v37, %v993_v36  ;;  %v998_v47 = vor.u32 %v1174_v40, %v995_v41  ;;  %v1002_v50 = vor.u32 %v1183_v43, %v1001_v42 }
  0x3b   :  { %637 = vmatpush.bf16.msra.mxu0 %v978_v51  ;;  %651 = vmatpush.bf16.msra.mxu1 %v982_v52  ;;  %v1006_v51 = vor.u32 %v1175_v44, %v1003_v45  ;;  %v1158_v52 = vld [vmem:[%s1790_s1 + $0x34] sm:$0xf] }
  0x3c   :  { %665 = vmatpush.bf16.msra.mxu2 %v986_v57  ;;  %679 = vmatpush.bf16.msra.mxu3 %v990_v58  ;;  %v939_v57 = vld [vmem:[%s1790_s1 + $0x78] sm:$0xf0]  ;;  %v930_v58 = vor.u32 %v1166_v49, %v929_v48  ;;  %v934_v59 = vor.u32 %v1158_v52, %v931_v53 }
  0x3d   :  { %v942_v61 = vor.u32 %v1159_v56, %v939_v57 }
  0x3f   :  { %638 = vmatpush.bf16.msra.mxu0 %v914_v1  ;;  %652 = vmatpush.bf16.msra.mxu1 %v918_v4 }
  0x40   :  { %666 = vmatpush.bf16.msra.mxu2 %v922_v7  ;;  %680 = vmatpush.bf16.msra.mxu3 %v926_v8 }
  0x42   :  { %1143 = vmatmul.msk.bf16.vlgmr.msra.gmra.mxu0 %vm466_vm1, %v1360_v11  ;;  %1144 = vmatmul.msk.bf16.vlgmr.msra.gmra.mxu1 %vm466_vm1, %v1360_v11 }
  0x43   :  { %690 = vmatpush.bf16.msrb.mxu0 %v508_v14  ;;  %704 = vmatpush.bf16.msrb.mxu1 %v511_v15 }
  0x44   :  { %718 = vmatpush.bf16.msrb.mxu2 %v514_v18  ;;  %732 = vmatpush.bf16.msrb.mxu3 %v517_v19 }
  0x45   :  { %1145 = vmatmul.msk.bf16.vlgmr.msra.gmra.mxu2 %vm466_vm1, %v1360_v11  ;;  %1146 = vmatmul.msk.bf16.vlgmr.msra.gmra.mxu3 %vm466_vm1, %v1360_v11 }
  0x47   :  { %691 = vmatpush.bf16.msrb.mxu0 %v1122_v22  ;;  %705 = vmatpush.bf16.msrb.mxu1 %v1126_v23 }
  0x48   :  { %719 = vmatpush.bf16.msrb.mxu2 %v1130_v26  ;;  %733 = vmatpush.bf16.msrb.mxu3 %v1134_v27 }
  0x4b   :  { %692 = vmatpush.bf16.msrb.mxu0 %v1058_v34  ;;  %706 = vmatpush.bf16.msrb.mxu1 %v1062_v35 }
  0x4c   :  { %720 = vmatpush.bf16.msrb.mxu2 %v1066_v38  ;;  %734 = vmatpush.bf16.msrb.mxu3 %v1070_v39 }
  0x4f   :  { %693 = vmatpush.bf16.msrb.mxu0 %v994_v46  ;;  %707 = vmatpush.bf16.msrb.mxu1 %v998_v47 }
  0x50   :  { %721 = vmatpush.bf16.msrb.mxu2 %v1002_v50  ;;  %735 = vmatpush.bf16.msrb.mxu3 %v1006_v51 }
  0x53   :  { %694 = vmatpush.bf16.msrb.mxu0 %v930_v58  ;;  %708 = vmatpush.bf16.msrb.mxu1 %v934_v59 }
  0x54   :  { %722 = vmatpush.bf16.msrb.mxu2 %v938_v60  ;;  %736 = vmatpush.bf16.msrb.mxu3 %v942_v61 }
  0x56   :  { %1147 = vmatmul.msk.bf16.vlgmr.msrb.gmra.mxu0 %vm466_vm1, %v1360_v11  ;;  %1148 = vmatmul.msk.bf16.vlgmr.msrb.gmra.mxu1 %vm466_vm1, %v1360_v11 }
  0x57   :  { %1149 = vmatmul.msk.bf16.vlgmr.msrb.gmra.mxu2 %vm466_vm1, %v1360_v11  ;;  %1150 = vmatmul.msk.bf16.vlgmr.msrb.gmra.mxu3 %vm466_vm1, %v1360_v11 }
  0x80   :  { %v1706_v62 = vpop.permute.xlu0 %93 }
  0x88   :  { %v1710_v8 = vpop.permute.xlu0 %98 }
  0x97   :  { %v528_v63 = vpop.f32.mrf.mxu0  ;;  %v542_v0 = vpop.f32.mrf.mxu1 }
  0x98   :  { %v529_v1 = vadd.f32 %v528_v63, %v1706_v62  ;;  %v543_v2 = vadd.f32 %v542_v0, %v1706_v62 }
  0x9a   :  { %vm743_vm2 = vcmp.ge.f32.partialorder %v529_v1, 0.0  ;;  %v775_v3 = vmul.f32 0.2, %v529_v1  ;;  %vm744_vm3 = vcmp.ge.f32.partialorder %v543_v2, 0.0  ;;  %v776_v4 = vmul.f32 0.2, %v543_v2 }
  0x9c   :  { %v807_v5 = vsel %vm743_vm2, %v529_v1, %v775_v3  ;;  %v808_v6 = vsel %vm744_vm3, %v543_v2, %v776_v4 }
  0x9d   :  { %v839_v7 = vpack.c.bf16 %v808_v6, %v807_v5 }
  0x9f   :  { %855 = vst [vmem:[%s1793_s3] sm:$0xff] %v839_v7  ;;  %v530_v13 = vpop.f32.mrf.mxu0  ;;  %v544_v14 = vpop.f32.mrf.mxu1 }
  0xa0   :  { %v556_v9 = vpop.f32.mrf.mxu2  ;;  %v570_v10 = vpop.f32.mrf.mxu3  ;;  %v531_v15 = vadd.f32 %v530_v13, %v1710_v8  ;;  %v545_v16 = vadd.f32 %v544_v14, %v1710_v8 }
  0xa1   :  { %v557_v11 = vadd.f32 %v556_v9, %v1706_v62  ;;  %v571_v12 = vadd.f32 %v570_v10, %v1706_v62 }
  0xa2   :  { %vm759_vm6 = vcmp.ge.f32.partialorder %v531_v15, 0.0  ;;  %v791_v19 = vmul.f32 0.2, %v531_v15  ;;  %vm760_vm7 = vcmp.ge.f32.partialorder %v545_v16, 0.0  ;;  %v792_v20 = vmul.f32 0.2, %v545_v16 }
  0xa3   :  { %vm745_vm4 = vcmp.ge.f32.partialorder %v557_v11, 0.0  ;;  %v777_v17 = vmul.f32 0.2, %v557_v11  ;;  %vm746_vm5 = vcmp.ge.f32.partialorder %v571_v12, 0.0  ;;  %v778_v18 = vmul.f32 0.2, %v571_v12 }
  0xa4   :  { %v823_v24 = vsel %vm759_vm6, %v531_v15, %v791_v19  ;;  %v824_v25 = vsel %vm760_vm7, %v545_v16, %v792_v20 }
  0xa5   :  { %v809_v21 = vsel %vm745_vm4, %v557_v11, %v777_v17  ;;  %v810_v22 = vsel %vm746_vm5, %v571_v12, %v778_v18  ;;  %v847_v26 = vpack.c.bf16 %v824_v25, %v823_v24 }
  0xa6   :  { %v840_v23 = vpack.c.bf16 %v810_v22, %v809_v21 }
  0xa7   :  { %863 = vst [vmem:[%s1793_s3 + $0x40] sm:$0xff] %v847_v26 }
  0xa8   :  { %856 = vst [vmem:[%s1793_s3 + $0x8] sm:$0xff] %v840_v23  ;;  %v558_v27 = vpop.f32.mrf.mxu2  ;;  %v572_v28 = vpop.f32.mrf.mxu3 }
  0xa9   :  { %v559_v29 = vadd.f32 %v558_v27, %v1710_v8  ;;  %v573_v30 = vadd.f32 %v572_v28, %v1710_v8 }
  0xab   :  { %vm761_vm8 = vcmp.ge.f32.partialorder %v559_v29, 0.0  ;;  %v793_v31 = vmul.f32 0.2, %v559_v29  ;;  %vm762_vm9 = vcmp.ge.f32.partialorder %v573_v30, 0.0  ;;  %v794_v32 = vmul.f32 0.2, %v573_v30  ;;  %v584_v33 = vpop.f32.mrf.mxu0  ;;  %v598_v34 = vpop.f32.mrf.mxu1 }
  0xac   :  { %v585_v35 = vadd.f32 %v584_v33, %v1706_v62  ;;  %v599_v36 = vadd.f32 %v598_v34, %v1706_v62 }
  0xad   :  { %v825_v37 = vsel %vm761_vm8, %v559_v29, %v793_v31  ;;  %v826_v38 = vsel %vm762_vm9, %v573_v30, %v794_v32 }
  0xae   :  { %v848_v39 = vpack.c.bf16 %v826_v38, %v825_v37  ;;  %vm747_vm10 = vcmp.ge.f32.partialorder %v585_v35, 0.0  ;;  %v779_v40 = vmul.f32 0.2, %v585_v35  ;;  %vm748_vm11 = vcmp.ge.f32.partialorder %v599_v36, 0.0 }
  0xaf   :  { %v780_v41 = vmul.f32 0.2, %v599_v36 }
  0xb0   :  { %864 = vst [vmem:[%s1793_s3 + $0x48] sm:$0xff] %v848_v39  ;;  %v811_v42 = vsel %vm747_vm10, %v585_v35, %v779_v40 }
  0xb1   :  { %v812_v43 = vsel %vm748_vm11, %v599_v36, %v780_v41 }
  0xb2   :  { %v841_v44 = vpack.c.bf16 %v812_v43, %v811_v42 }
  0xb3   :  { %v586_v49 = vpop.f32.mrf.mxu0  ;;  %v600_v50 = vpop.f32.mrf.mxu1 }
  0xb4   :  { %v612_v45 = vpop.f32.mrf.mxu2  ;;  %v626_v46 = vpop.f32.mrf.mxu3  ;;  %857 = vst [vmem:[%s1793_s3 + $0x10] sm:$0xff] %v841_v44  ;;  %v587_v51 = vadd.f32 %v586_v49, %v1710_v8  ;;  %v601_v52 = vadd.f32 %v600_v50, %v1710_v8 }
  0xb5   :  { %v613_v47 = vadd.f32 %v612_v45, %v1706_v62  ;;  %v627_v48 = vadd.f32 %v626_v46, %v1706_v62 }
  0xb6   :  { %vm763_vm14 = vcmp.ge.f32.partialorder %v587_v51, 0.0  ;;  %v795_v55 = vmul.f32 0.2, %v587_v51  ;;  %vm764_vm15 = vcmp.ge.f32.partialorder %v601_v52, 0.0  ;;  %v796_v56 = vmul.f32 0.2, %v601_v52 }
  0xb7   :  { %vm749_vm12 = vcmp.ge.f32.partialorder %v613_v47, 0.0  ;;  %v781_v53 = vmul.f32 0.2, %v613_v47  ;;  %vm750_vm13 = vcmp.ge.f32.partialorder %v627_v48, 0.0  ;;  %v782_v54 = vmul.f32 0.2, %v627_v48 }
  0xb8   :  { %v827_v60 = vsel %vm763_vm14, %v587_v51, %v795_v55  ;;  %v828_v61 = vsel %vm764_vm15, %v601_v52, %v796_v56 }
  0xb9   :  { %v813_v57 = vsel %vm749_vm12, %v613_v47, %v781_v53  ;;  %v814_v58 = vsel %vm750_vm13, %v627_v48, %v782_v54  ;;  %v849_v63 = vpack.c.bf16 %v828_v61, %v827_v60 }
  0xba   :  { %v842_v59 = vpack.c.bf16 %v814_v58, %v813_v57 }
  0xbb   :  { %865 = vst [vmem:[%s1793_s3 + $0x50] sm:$0xff] %v849_v63 }
  0xbc   :  { %858 = vst [vmem:[%s1793_s3 + $0x18] sm:$0xff] %v842_v59  ;;  %v614_v0 = vpop.f32.mrf.mxu2  ;;  %v628_v1 = vpop.f32.mrf.mxu3 }
  0xbd   :  { %v615_v2 = vadd.f32 %v614_v0, %v1710_v8  ;;  %v629_v3 = vadd.f32 %v628_v1, %v1710_v8 }
  0xbf   :  { %vm765_vm0 = vcmp.ge.f32.partialorder %v615_v2, 0.0  ;;  %v797_v4 = vmul.f32 0.2, %v615_v2  ;;  %vm766_vm1 = vcmp.ge.f32.partialorder %v629_v3, 0.0  ;;  %v798_v5 = vmul.f32 0.2, %v629_v3  ;;  %v640_v6 = vpop.f32.mrf.mxu0  ;;  %v654_v7 = vpop.f32.mrf.mxu1 }
  0xc0   :  { %v641_v9 = vadd.f32 %v640_v6, %v1706_v62  ;;  %v655_v10 = vadd.f32 %v654_v7, %v1706_v62 }
  0xc1   :  { %v829_v11 = vsel %vm765_vm0, %v615_v2, %v797_v4  ;;  %v830_v12 = vsel %vm766_vm1, %v629_v3, %v798_v5 }
  0xc2   :  { %v850_v13 = vpack.c.bf16 %v830_v12, %v829_v11  ;;  %vm751_vm2 = vcmp.ge.f32.partialorder %v641_v9, 0.0  ;;  %v783_v14 = vmul.f32 0.2, %v641_v9  ;;  %vm752_vm3 = vcmp.ge.f32.partialorder %v655_v10, 0.0 }
  0xc3   :  { %v784_v15 = vmul.f32 0.2, %v655_v10 }
  0xc4   :  { %866 = vst [vmem:[%s1793_s3 + $0x58] sm:$0xff] %v850_v13  ;;  %v815_v16 = vsel %vm751_vm2, %v641_v9, %v783_v14 }
  0xc5   :  { %v816_v17 = vsel %vm752_vm3, %v655_v10, %v784_v15 }
  0xc6   :  { %v843_v18 = vpack.c.bf16 %v816_v17, %v815_v16 }
  0xc7   :  { %v642_v23 = vpop.f32.mrf.mxu0  ;;  %v656_v24 = vpop.f32.mrf.mxu1 }
  0xc8   :  { %v668_v19 = vpop.f32.mrf.mxu2  ;;  %v682_v20 = vpop.f32.mrf.mxu3  ;;  %859 = vst [vmem:[%s1793_s3 + $0x20] sm:$0xff] %v843_v18  ;;  %v643_v25 = vadd.f32 %v642_v23, %v1710_v8  ;;  %v657_v26 = vadd.f32 %v656_v24, %v1710_v8 }
  0xc9   :  { %v669_v21 = vadd.f32 %v668_v19, %v1706_v62  ;;  %v683_v22 = vadd.f32 %v682_v20, %v1706_v62 }
  0xca   :  { %vm767_vm6 = vcmp.ge.f32.partialorder %v643_v25, 0.0  ;;  %v799_v29 = vmul.f32 0.2, %v643_v25  ;;  %vm768_vm7 = vcmp.ge.f32.partialorder %v657_v26, 0.0  ;;  %v800_v30 = vmul.f32 0.2, %v657_v26 }
  0xcb   :  { %vm753_vm4 = vcmp.ge.f32.partialorder %v669_v21, 0.0  ;;  %v785_v27 = vmul.f32 0.2, %v669_v21  ;;  %vm754_vm5 = vcmp.ge.f32.partialorder %v683_v22, 0.0  ;;  %v786_v28 = vmul.f32 0.2, %v683_v22 }
  0xcc   :  { %v831_v34 = vsel %vm767_vm6, %v643_v25, %v799_v29  ;;  %v832_v35 = vsel %vm768_vm7, %v657_v26, %v800_v30 }
  0xcd   :  { %v817_v31 = vsel %vm753_vm4, %v669_v21, %v785_v27  ;;  %v818_v32 = vsel %vm754_vm5, %v683_v22, %v786_v28  ;;  %v851_v36 = vpack.c.bf16 %v832_v35, %v831_v34 }
  0xce   :  { %v844_v33 = vpack.c.bf16 %v818_v32, %v817_v31 }
  0xcf   :  { %867 = vst [vmem:[%s1793_s3 + $0x60] sm:$0xff] %v851_v36 }
  0xd0   :  { %860 = vst [vmem:[%s1793_s3 + $0x28] sm:$0xff] %v844_v33  ;;  %v670_v37 = vpop.f32.mrf.mxu2  ;;  %v684_v38 = vpop.f32.mrf.mxu3 }
  0xd1   :  { %v671_v39 = vadd.f32 %v670_v37, %v1710_v8  ;;  %v685_v40 = vadd.f32 %v684_v38, %v1710_v8 }
  0xd3   :  { %v696_v41 = vpop.f32.mrf.mxu0  ;;  %v710_v42 = vpop.f32.mrf.mxu1  ;;  %vm769_vm8 = vcmp.ge.f32.partialorder %v671_v39, 0.0  ;;  %v801_v43 = vmul.f32 0.2, %v671_v39  ;;  %vm770_vm9 = vcmp.ge.f32.partialorder %v685_v40, 0.0  ;;  %v802_v44 = vmul.f32 0.2, %v685_v40 }
  0xd4   :  { %v697_v45 = vadd.f32 %v696_v41, %v1706_v62  ;;  %v711_v46 = vadd.f32 %v710_v42, %v1706_v62 }
  0xd5   :  { %v833_v47 = vsel %vm769_vm8, %v671_v39, %v801_v43  ;;  %v834_v48 = vsel %vm770_vm9, %v685_v40, %v802_v44 }
  0xd6   :  { %v852_v49 = vpack.c.bf16 %v834_v48, %v833_v47  ;;  %vm755_vm10 = vcmp.ge.f32.partialorder %v697_v45, 0.0  ;;  %v787_v50 = vmul.f32 0.2, %v697_v45  ;;  %vm756_vm11 = vcmp.ge.f32.partialorder %v711_v46, 0.0 }
  0xd7   :  { %v788_v51 = vmul.f32 0.2, %v711_v46 }
  0xd8   :  { %868 = vst [vmem:[%s1793_s3 + $0x68] sm:$0xff] %v852_v49  ;;  %v819_v52 = vsel %vm755_vm10, %v697_v45, %v787_v50 }
  0xd9   :  { %v820_v53 = vsel %vm756_vm11, %v711_v46, %v788_v51 }
  0xda   :  { %v724_v54 = vpop.f32.mrf.mxu2  ;;  %v738_v55 = vpop.f32.mrf.mxu3  ;;  %v845_v56 = vpack.c.bf16 %v820_v53, %v819_v52 }
  0xdb   :  { %v725_v57 = vadd.f32 %v724_v54, %v1706_v62  ;;  %v739_v58 = vadd.f32 %v738_v55, %v1706_v62  ;;  %v698_v59 = vpop.f32.mrf.mxu0  ;;  %v712_v60 = vpop.f32.mrf.mxu1 }
  0xdc   :  { %v699_v61 = vadd.f32 %v698_v59, %v1710_v8  ;;  %v713_v63 = vadd.f32 %v712_v60, %v1710_v8  ;;  %861 = vst [vmem:[%s1793_s3 + $0x30] sm:$0xff] %v845_v56 }
  0xdd   :  { %vm757_vm12 = vcmp.ge.f32.partialorder %v725_v57, 0.0  ;;  %v789_v0 = vmul.f32 0.2, %v725_v57  ;;  %vm758_vm13 = vcmp.ge.f32.partialorder %v739_v58, 0.0  ;;  %v790_v1 = vmul.f32 0.2, %v739_v58 }
  0xde   :  { %vm771_vm14 = vcmp.ge.f32.partialorder %v699_v61, 0.0  ;;  %v803_v2 = vmul.f32 0.2, %v699_v61  ;;  %vm772_vm15 = vcmp.ge.f32.partialorder %v713_v63, 0.0  ;;  %v804_v4 = vmul.f32 0.2, %v713_v63 }
  0xdf   :  { %v821_v3 = vsel %vm757_vm12, %v725_v57, %v789_v0  ;;  %v822_v62 = vsel %vm758_vm13, %v739_v58, %v790_v1 }
  0xe0   :  { %v835_v5 = vsel %vm771_vm14, %v699_v61, %v803_v2  ;;  %v846_v6 = vpack.c.bf16 %v822_v62, %v821_v3  ;;  %v836_v7 = vsel %vm772_vm15, %v713_v63, %v804_v4 }
  0xe1   :  { %v853_v9 = vpack.c.bf16 %v836_v7, %v835_v5 }
  0xe2   :  { %v726_v10 = vpop.f32.mrf.mxu2  ;;  %v740_v11 = vpop.f32.mrf.mxu3  ;;  %862 = vst [vmem:[%s1793_s3 + $0x38] sm:$0xff] %v846_v6 }
  0xe3   :  { %v727_v12 = vadd.f32 %v726_v10, %v1710_v8  ;;  %v741_v13 = vadd.f32 %v740_v11, %v1710_v8  ;;  %869 = vst [vmem:[%s1793_s3 + $0x70] sm:$0xff] %v853_v9 }
  0xe5   :  { %vm773_vm0 = vcmp.ge.f32.partialorder %v727_v12, 0.0  ;;  %v805_v14 = vmul.f32 0.2, %v727_v12  ;;  %vm774_vm1 = vcmp.ge.f32.partialorder %v741_v13, 0.0  ;;  %v806_v15 = vmul.f32 0.2, %v741_v13 }
  0xe7   :  { %v837_v16 = vsel %vm773_vm0, %v727_v12, %v805_v14  ;;  %v838_v17 = vsel %vm774_vm1, %v741_v13, %v806_v15 }
  0xe8   :  { %v854_v18 = vpack.c.bf16 %v838_v17, %v837_v16 }
  0xea   :  { %870 = vst [vmem:[%s1793_s3 + $0x78] sm:$0xff] %v854_v18 }

// kernel: autoencoder_fwd.19
= control target key start
LH: loop header
LB: loop body
LE: loop exit
PB: predicated region body
PF: predicated region fallthrough
CT: control target
= control target key end

     0   :  { %vm277_vm0 = vcmask 130048   ;;  %s1065_s1 = inlined_call_operand.vmem [shape: bf16[144,512], index: 1, kind: input, shape index: {}]   ;;  %s1066_s0 = inlined_call_operand.vmem [shape: bf16[32,144], index: 0, kind: input, shape index: {}]   ;;  %s1067_s2 = inlined_call_operand.vmem [shape: f32[32,1], index: 2, kind: input, shape index: {}]   ;;  %s1068_s3 = inlined_call_operand.vmem [shape: bf16[32,512], index: 3, kind: output, shape index: {}]  }
   0x1   :  { %v634_v0 = vld [vmem:[%s1065_s1 + $0xe0] sm:$0xf]  ;;  %v706_v1 = vld [vmem:[%s1065_s1 + $0xec] sm:$0xf0]  ;;  %v704_v5 = vld [vmem:[%s1065_s1 + $0xe4] sm:$0xf] }
   0x2   :  { %v650_v2 = vld [vmem:[%s1065_s1 + $0x100] sm:$0xf]  ;;  %v635_v3 = vor.u32 %v706_v1, %v634_v0  ;;  %v710_v4 = vld [vmem:[%s1065_s1 + $0x10c] sm:$0xf0]  ;;  %v636_v6 = vld [vmem:[%s1065_s1 + $0xf0] sm:$0xf0] }
   0x3   :  { %v651_v7 = vor.u32 %v710_v4, %v650_v2  ;;  %v639_v8 = vor.u32 %v704_v5, %v636_v6  ;;  %v708_v9 = vld [vmem:[%s1065_s1 + $0x104] sm:$0xf]  ;;  %v652_v10 = vld [vmem:[%s1065_s1 + $0x110] sm:$0xf0]  ;;  %v508_v13 = vld [vmem:[%s1066_s0 + $0x8] sm:$0xf0] }
   0x4   :  { %v672_v11 = vld [vmem:[%s1066_s0 + $0x4] sm:$0xf]  ;;  %284 = vmatpush.bf16.msra.mxu0 %v635_v3  ;;  %v655_v12 = vor.u32 %v708_v9, %v652_v10  ;;  %v658_v14 = vld [vmem:[%s1065_s1 + $0x108] sm:$0xf]  ;;  %v711_v15 = vld [vmem:[%s1065_s1 + $0x114] sm:$0xf0] }
   0x5   :  { %310 = vmatpush.bf16.msra.mxu1 %v651_v7  ;;  %322 = vmatpush.bf16.msra.mxu2 %v639_v8  ;;  %v781_v16 = vor.u32 %v672_v11, %v508_v13  ;;  %v659_v17 = vor.u32 %v711_v15, %v658_v14  ;;  %v618_v18 = vld [vmem:[%s1065_s1 + $0xc0] sm:$0xf]  ;;  %v702_v19 = vld [vmem:[%s1065_s1 + $0xcc] sm:$0xf0]  ;;  %v700_v20 = vld [vmem:[%s1065_s1 + $0xc4] sm:$0xf] }
   0x6   :  { %348 = vmatpush.bf16.msra.mxu3 %v655_v12  ;;  %v619_v21 = vor.u32 %v702_v19, %v618_v18  ;;  %v620_v22 = vld [vmem:[%s1065_s1 + $0xd0] sm:$0xf0]  ;;  %v642_v23 = vld [vmem:[%s1065_s1 + $0xe8] sm:$0xf]  ;;  %v707_v24 = vld [vmem:[%s1065_s1 + $0xf4] sm:$0xf0] }
   0x7   :  { %v623_v25 = vor.u32 %v700_v20, %v620_v22  ;;  %v643_v26 = vor.u32 %v707_v24, %v642_v23  ;;  %v602_v27 = vld [vmem:[%s1065_s1 + $0xa0] sm:$0xf]  ;;  %v698_v28 = vld [vmem:[%s1065_s1 + $0xac] sm:$0xf0]  ;;  %v696_v29 = vld [vmem:[%s1065_s1 + $0xa4] sm:$0xf] }
   0x8   :  { %664 = vmatmul.msk.bf16.vlgmr.msra.gmra.mxu1 %vm277_vm0, %v781_v16  ;;  %285 = vmatpush.bf16.msra.mxu0 %v619_v21  ;;  %v603_v30 = vor.u32 %v698_v28, %v602_v27  ;;  %v604_v31 = vld [vmem:[%s1065_s1 + $0xb0] sm:$0xf0]  ;;  %v626_v32 = vld [vmem:[%s1065_s1 + $0xc8] sm:$0xf]  ;;  %v703_v33 = vld [vmem:[%s1065_s1 + $0xd4] sm:$0xf0] }
   0x9   :  { %666 = vmatmul.msk.bf16.vlgmr.msra.gmra.mxu3 %vm277_vm0, %v781_v16  ;;  %323 = vmatpush.bf16.msra.mxu2 %v623_v25  ;;  %v607_v34 = vor.u32 %v696_v29, %v604_v31  ;;  %v586_v35 = vld [vmem:[%s1065_s1 + $0x80] sm:$0xf]  ;;  %v694_v36 = vld [vmem:[%s1065_s1 + $0x8c] sm:$0xf0]  ;;  %v627_v37 = vor.u32 %v703_v33, %v626_v32  ;;  %v692_v38 = vld [vmem:[%s1065_s1 + $0x84] sm:$0xf] }
   0xa   :  { %386 = vmatpush.bf16.msrb.mxu3 %v659_v17  ;;  %360 = vmatpush.bf16.msrb.mxu1 %v643_v26  ;;  %v588_v39 = vld [vmem:[%s1065_s1 + $0x90] sm:$0xf0]  ;;  %v610_v40 = vld [vmem:[%s1065_s1 + $0xa8] sm:$0xf]  ;;  %v699_v41 = vld [vmem:[%s1065_s1 + $0xb4] sm:$0xf0]  ;;  %v587_v42 = vor.u32 %v694_v36, %v586_v35 }
   0xb   :  { %v591_v43 = vor.u32 %v692_v38, %v588_v39  ;;  %v570_v44 = vld [vmem:[%s1065_s1 + $0x60] sm:$0xf]  ;;  %v690_v45 = vld [vmem:[%s1065_s1 + $0x6c] sm:$0xf0]  ;;  %v611_v46 = vor.u32 %v699_v41, %v610_v40  ;;  %v688_v47 = vld [vmem:[%s1065_s1 + $0x64] sm:$0xf] }
   0xc   :  { %286 = vmatpush.bf16.msra.mxu0 %v603_v30  ;;  %v572_v48 = vld [vmem:[%s1065_s1 + $0x70] sm:$0xf0]  ;;  %v594_v49 = vld [vmem:[%s1065_s1 + $0x88] sm:$0xf]  ;;  %v695_v50 = vld [vmem:[%s1065_s1 + $0x94] sm:$0xf0]  ;;  %v571_v51 = vor.u32 %v690_v45, %v570_v44 }
   0xd   :  { %324 = vmatpush.bf16.msra.mxu2 %v607_v34  ;;  %v674_v52 = vld [vmem:[%s1066_s0 + $0x14] sm:$0xf]  ;;  %v575_v53 = vor.u32 %v688_v47, %v572_v48  ;;  %v516_v54 = vld [vmem:[%s1066_s0 + $0x18] sm:$0xf0]  ;;  %v554_v55 = vld [vmem:[%s1065_s1 + $0x40] sm:$0xf]  ;;  %v595_v57 = vor.u32 %v695_v50, %v594_v49 }
   0xe   :  { %361 = vmatpush.bf16.msrb.mxu1 %v627_v37  ;;  %v686_v56 = vld [vmem:[%s1065_s1 + $0x4c] sm:$0xf0]  ;;  %v684_v58 = vld [vmem:[%s1065_s1 + $0x44] sm:$0xf]  ;;  %v556_v59 = vld [vmem:[%s1065_s1 + $0x50] sm:$0xf0]  ;;  %v883_v62 = vor.u32 %v674_v52, %v516_v54 }
   0xf   :  { %v578_v60 = vld [vmem:[%s1065_s1 + $0x68] sm:$0xf]  ;;  %v691_v61 = vld [vmem:[%s1065_s1 + $0x74] sm:$0xf0]  ;;  %v555_v63 = vor.u32 %v686_v56, %v554_v55  ;;  %v559_v0 = vor.u32 %v684_v58, %v556_v59  ;;  %v538_v1 = vld [vmem:[%s1065_s1 + $0x20] sm:$0xf] }
  0x10   :  { %287 = vmatpush.bf16.msra.mxu0 %v587_v42  ;;  %v682_v2 = vld [vmem:[%s1065_s1 + $0x2c] sm:$0xf0]  ;;  %v709_v3 = vld [vmem:[%s1065_s1 + $0x10c] sm:$0xf]  ;;  %v579_v4 = vor.u32 %v691_v61, %v578_v60  ;;  %v680_v5 = vld [vmem:[%s1065_s1 + $0x24] sm:$0xf] }
  0x11   :  { %325 = vmatpush.bf16.msra.mxu2 %v591_v43  ;;  %v540_v6 = vld [vmem:[%s1065_s1 + $0x30] sm:$0xf0]  ;;  %v660_v7 = vld [vmem:[%s1065_s1 + $0x118] sm:$0xf0]  ;;  %v562_v8 = vld [vmem:[%s1065_s1 + $0x48] sm:$0xf]  ;;  %v539_v10 = vor.u32 %v682_v2, %v538_v1 }
  0x12   :  { %362 = vmatpush.bf16.msrb.mxu1 %v611_v46  ;;  %v687_v9 = vld [vmem:[%s1065_s1 + $0x54] sm:$0xf0]  ;;  %v522_v11 = vld [vmem:[%s1065_s1] sm:$0xf]  ;;  %v663_v12 = vor.u32 %v709_v3, %v660_v7  ;;  %v543_v13 = vor.u32 %v680_v5, %v540_v6  ;;  %v678_v14 = vld [vmem:[%s1065_s1 + $0xc] sm:$0xf0] }
  0x13   :  { %v676_v15 = vld [vmem:[%s1065_s1 + $0x4] sm:$0xf]  ;;  %v563_v18 = vor.u32 %v687_v9, %v562_v8  ;;  %v524_v19 = vld [vmem:[%s1065_s1 + $0x10] sm:$0xf0]  ;;  %v705_v20 = vld [vmem:[%s1065_s1 + $0xec] sm:$0xf]  ;;  %v523_v26 = vor.u32 %v678_v14, %v522_v11 }
  0x14   :  { %288 = vmatpush.bf16.msra.mxu0 %v571_v51  ;;  %v55_v17 = vld [vmem:[%s1067_s2] sm:$0xff]  ;;  %v644_v21 = vld [vmem:[%s1065_s1 + $0xf8] sm:$0xf0]  ;;  %720 = vmatpush.bf16.msra.mxu3 %v663_v12  ;;  %v546_v22 = vld [vmem:[%s1065_s1 + $0x28] sm:$0xf]  ;;  %v724_v24 = vmov 0   ;;  %v527_v29 = vor.u32 %v676_v15, %v524_v19 }
  0x15   :  { %326 = vmatpush.bf16.msra.mxu2 %v575_v53  ;;  %v683_v23 = vld [vmem:[%s1065_s1 + $0x34] sm:$0xf0]  ;;  %722 = vset.pattern.permute.xlu0 %v724_v24  ;;  %v57_v25 = vld [vmem:[%s1067_s2 + $0x10] sm:$0xff]  ;;  %v506_v27 = vld [vmem:[%s1066_s0] sm:$0xf]  ;;  %v647_v30 = vor.u32 %v705_v20, %v644_v21 }
  0x16   :  { %363 = vmatpush.bf16.msrb.mxu1 %v595_v57  ;;  %723 = vset.pattern.permute.xlu1 %v724_v24  ;;  %v673_v28 = vld [vmem:[%s1066_s0 + $0x4] sm:$0xf0]  ;;  %v547_v31 = vor.u32 %v683_v23, %v546_v22  ;;  %v701_v32 = vld [vmem:[%s1065_s1 + $0xcc] sm:$0xf]  ;;  %v628_v33 = vld [vmem:[%s1065_s1 + $0xd8] sm:$0xf0] }
  0x17   :  { %61 = vperm.xlu0 %722, %v55_v17   ;;  %71 = vperm.xlu1 %723, %v57_v25   ;;  %v507_v34 = vor.u32 %v673_v28, %v506_v27  ;;  %v530_v35 = vld [vmem:[%s1065_s1 + $0x8] sm:$0xf]  ;;  %v679_v36 = vld [vmem:[%s1065_s1 + $0x14] sm:$0xf0]  ;;  %v631_v37 = vor.u32 %v701_v32, %v628_v33  ;;  %v697_v40 = vld [vmem:[%s1065_s1 + $0xac] sm:$0xf] }
  0x18   :  { %665 = vmatmul.msk.bf16.gmra.mxu1 %vm277_vm0, %v883_v62  ;;  %289 = vmatpush.bf16.msra.mxu0 %v555_v63  ;;  %v56_v38 = vld [vmem:[%s1067_s2 + $0x8] sm:$0xff]  ;;  %v531_v39 = vor.u32 %v679_v36, %v530_v35  ;;  %v612_v41 = vld [vmem:[%s1065_s1 + $0xb8] sm:$0xf0]  ;;  %v514_v49 = vld [vmem:[%s1066_s0 + $0x10] sm:$0xf] }
  0x19   :  { %667 = vmatmul.msk.bf16.gmra.mxu3 %vm277_vm0, %v883_v62  ;;  %327 = vmatpush.bf16.msra.mxu2 %v559_v0  ;;  %v58_v42 = vld [vmem:[%s1067_s2 + $0x18] sm:$0xff]  ;;  %v615_v43 = vor.u32 %v697_v40, %v612_v41  ;;  %v693_v44 = vld [vmem:[%s1065_s1 + $0x8c] sm:$0xf] }
  0x1a   :  { %364 = vmatpush.bf16.msrb.mxu1 %v579_v4  ;;  %v596_v45 = vld [vmem:[%s1065_s1 + $0x98] sm:$0xf0]  ;;  %v689_v47 = vld [vmem:[%s1065_s1 + $0x6c] sm:$0xf]  ;;  %v675_v50 = vld [vmem:[%s1066_s0 + $0x14] sm:$0xf0] }
  0x1b   :  { %v599_v46 = vor.u32 %v693_v44, %v596_v45  ;;  %v580_v48 = vld [vmem:[%s1065_s1 + $0x78] sm:$0xf0]  ;;  %v515_v52 = vor.u32 %v675_v50, %v514_v49  ;;  %v685_v53 = vld [vmem:[%s1065_s1 + $0x4c] sm:$0xf] }
  0x1c   :  { %290 = vmatpush.bf16.msra.mxu0 %v539_v10  ;;  %v583_v51 = vor.u32 %v689_v47, %v580_v48  ;;  %v564_v54 = vld [vmem:[%s1065_s1 + $0x58] sm:$0xf0]  ;;  %v681_v56 = vld [vmem:[%s1065_s1 + $0x2c] sm:$0xf] }
  0x1d   :  { %328 = vmatpush.bf16.msra.mxu2 %v543_v13  ;;  %v567_v55 = vor.u32 %v685_v53, %v564_v54  ;;  %v548_v57 = vld [vmem:[%s1065_s1 + $0x38] sm:$0xf0]  ;;  %v677_v59 = vld [vmem:[%s1065_s1 + $0xc] sm:$0xf] }
  0x1e   :  { %365 = vmatpush.bf16.msrb.mxu1 %v563_v18  ;;  %v551_v58 = vor.u32 %v681_v56, %v548_v57  ;;  %v532_v60 = vld [vmem:[%s1065_s1 + $0x18] sm:$0xf0] }
  0x1f   :  { %66 = vperm.xlu0 %722, %v56_v38   ;;  %76 = vperm.xlu1 %723, %v58_v42   ;;  %v535_v61 = vor.u32 %v677_v59, %v532_v60 }
  0x20   :  { %291 = vmatpush.bf16.msra.mxu0 %v523_v26 }
  0x21   :  { %329 = vmatpush.bf16.msra.mxu2 %v527_v29 }
  0x22   :  { %366 = vmatpush.bf16.msrb.mxu1 %v547_v31 }
  0x23   :  { %292 = vmatmul.bf16.vlgmr.msra.gmra.mxu0 %v507_v34 }
  0x24   :  { %398 = vmatpush.bf16.msrb.mxu0 %v647_v30  ;;  %330 = vmatmul.bf16.vlgmr.msra.gmra.mxu2 %v507_v34 }
  0x25   :  { %424 = vmatpush.bf16.msrb.mxu2 %v663_v12 }
  0x26   :  { %367 = vmatpush.bf16.msrb.mxu1 %v531_v39 }
  0x28   :  { %399 = vmatpush.bf16.msrb.mxu0 %v631_v37 }
  0x29   :  { %368 = vmatmul.bf16.vlgmr.msrb.gmra.mxu1 %v507_v34  ;;  %668 = vmatmul.msk.bf16.vlgmr.msrb.gmra.mxu3 %vm277_vm0, %v781_v16 }
  0x2a   :  { %712 = vmatpush.bf16.msra.mxu1 %v647_v30 }
  0x2c   :  { %400 = vmatpush.bf16.msrb.mxu0 %v615_v43 }
  0x2e   :  { %713 = vmatpush.bf16.msra.mxu1 %v631_v37 }
  0x30   :  { %401 = vmatpush.bf16.msrb.mxu0 %v599_v46 }
  0x32   :  { %714 = vmatpush.bf16.msra.mxu1 %v615_v43 }
  0x33   :  { %297 = vmatmul.bf16.gmra.mxu0 %v515_v52 }
  0x34   :  { %402 = vmatpush.bf16.msrb.mxu0 %v583_v51  ;;  %335 = vmatmul.bf16.gmra.mxu2 %v515_v52 }
  0x36   :  { %715 = vmatpush.bf16.msra.mxu1 %v599_v46 }
  0x38   :  { %403 = vmatpush.bf16.msrb.mxu0 %v567_v55 }
  0x39   :  { %373 = vmatmul.bf16.gmra.mxu1 %v515_v52  ;;  %669 = vmatmul.msk.bf16.gmra.mxu3 %vm277_vm0, %v883_v62 }
  0x3a   :  { %716 = vmatpush.bf16.msra.mxu1 %v583_v51 }
  0x3c   :  { %404 = vmatpush.bf16.msrb.mxu0 %v551_v58 }
  0x3e   :  { %717 = vmatpush.bf16.msra.mxu1 %v567_v55 }
  0x40   :  { %405 = vmatpush.bf16.msrb.mxu0 %v535_v61 }
  0x42   :  { %718 = vmatpush.bf16.msra.mxu1 %v551_v58 }
  0x43   :  { %406 = vmatmul.bf16.vlgmr.msrb.gmra.mxu0 %v507_v34 }
  0x44   :  { %670 = vmatmul.msk.bf16.vlgmr.msrb.gmra.mxu2 %vm277_vm0, %v781_v16 }
  0x46   :  { %719 = vmatpush.bf16.msra.mxu1 %v535_v61 }
  0x49   :  { %411 = vmatmul.bf16.vlgmr.msra.gmra.mxu1 %v515_v52  ;;  %671 = vmatmul.msk.bf16.vlgmr.msra.gmra.mxu3 %vm277_vm0, %v883_v62 }
  0x85   :  { %v312_v63 = vpop.f32.mrf.mxu1 }
  0x89   :  { %v1017_v6 = vpop.permute.xlu0 %61  ;;  %v1024_v20 = vpop.permute.xlu1 %71 }
  0x8c   :  { %v350_v0 = vpop.f32.mrf.mxu3 }
  0x8d   :  { %v314_v1 = vpop.f32.mrf.mxu1 }
  0x91   :  { %v1020_v12 = vpop.permute.xlu0 %66  ;;  %v1031_v40 = vpop.permute.xlu1 %76 }
  0x94   :  { %v352_v2 = vpop.f32.mrf.mxu3 }
  0x95   :  { %v317_v3 = vpop.f32.mrf.mxu1 }
  0x9c   :  { %v355_v4 = vpop.f32.mrf.mxu3 }
  0x9d   :  { %v319_v5 = vpop.f32.mrf.mxu1 }
  0xa0   :  { %v293_v7 = vpop.f32.mrf.mxu0 }
  0xa1   :  { %v294_v8 = vadd.f32 %v293_v7, %v1017_v6 }
  0xa3   :  { %v313_v10 = vadd.f32 %v312_v63, %v294_v8 }
  0xa4   :  { %v357_v9 = vpop.f32.mrf.mxu3 }
  0xa5   :  { %v452_v14 = vmul.f32 0.2, %v313_v10  ;;  %vm436_vm1 = vcmp.ge.f32.partialorder %v313_v10, 0.0 }
  0xa6   :  { %v369_v11 = vpop.f32.mrf.mxu1 }
  0xa7   :  { %v331_v16 = vpop.f32.mrf.mxu2  ;;  %v468_v21 = vsel %vm436_vm1, %v313_v10, %v452_v14  ;;  %v370_v54 = vadd.f32 %v369_v11, %v1017_v6 }
  0xa8   :  { %v332_v62 = vadd.f32 %v331_v16, %v1017_v6  ;;  %v295_v13 = vpop.f32.mrf.mxu0 }
  0xa9   :  { %v296_v17 = vadd.f32 %v295_v13, %v1020_v12 }
  0xaa   :  { %v351_v15 = vadd.f32 %v350_v0, %v332_v62 }
  0xab   :  { %v315_v23 = vadd.f32 %v314_v1, %v296_v17 }
  0xac   :  { %vm437_vm2 = vcmp.ge.f32.partialorder %v351_v15, 0.0  ;;  %v453_v18 = vmul.f32 0.2, %v351_v15  ;;  %v388_v19 = vpop.f32.mrf.mxu3 }
  0xad   :  { %v456_v29 = vmul.f32 0.2, %v315_v23  ;;  %vm440_vm3 = vcmp.ge.f32.partialorder %v315_v23, 0.0  ;;  %v389_v59 = vadd.f32 %v388_v19, %v370_v54 }
  0xae   :  { %v469_v22 = vsel %vm437_vm2, %v351_v15, %v453_v18  ;;  %v371_v24 = vpop.f32.mrf.mxu1 }
  0xaf   :  { %v484_v25 = vpack.c.bf16 %v469_v22, %v468_v21  ;;  %v333_v26 = vpop.f32.mrf.mxu2  ;;  %v472_v34 = vsel %vm440_vm3, %v315_v23, %v456_v29  ;;  %v454_v7 = vmul.f32 0.2, %v389_v59  ;;  %vm438_vm9 = vcmp.ge.f32.partialorder %v389_v59, 0.0 }
  0xb0   :  { %v334_v27 = vadd.f32 %v333_v26, %v1020_v12  ;;  %v298_v28 = vpop.f32.mrf.mxu0 }
  0xb1   :  { %492 = vst [vmem:[%s1068_s3] sm:$0xff] %v484_v25  ;;  %v299_v31 = vadd.f32 %v298_v28, %v1024_v20  ;;  %v470_v62 = vsel %vm438_vm9, %v389_v59, %v454_v7 }
  0xb2   :  { %v353_v30 = vadd.f32 %v352_v2, %v334_v27 }
  0xb3   :  { %v318_v36 = vadd.f32 %v317_v3, %v299_v31 }
  0xb4   :  { %vm441_vm4 = vcmp.ge.f32.partialorder %v353_v30, 0.0  ;;  %v457_v32 = vmul.f32 0.2, %v353_v30  ;;  %v390_v33 = vpop.f32.mrf.mxu3 }
  0xb5   :  { %v460_v43 = vmul.f32 0.2, %v318_v36  ;;  %vm444_vm5 = vcmp.ge.f32.partialorder %v318_v36, 0.0 }
  0xb6   :  { %v473_v35 = vsel %vm441_vm4, %v353_v30, %v457_v32  ;;  %v374_v37 = vpop.f32.mrf.mxu1 }
  0xb7   :  { %v486_v38 = vpack.c.bf16 %v473_v35, %v472_v34  ;;  %v336_v39 = vpop.f32.mrf.mxu2  ;;  %v476_v48 = vsel %vm444_vm5, %v318_v36, %v460_v43  ;;  %v375_v0 = vadd.f32 %v374_v37, %v1024_v20 }
  0xb8   :  { %v337_v41 = vadd.f32 %v336_v39, %v1024_v20  ;;  %v300_v42 = vpop.f32.mrf.mxu0 }
  0xb9   :  { %494 = vst [vmem:[%s1068_s3 + $0x10] sm:$0xff] %v486_v38  ;;  %v301_v45 = vadd.f32 %v300_v42, %v1031_v40 }
  0xba   :  { %v356_v44 = vadd.f32 %v355_v4, %v337_v41 }
  0xbb   :  { %v320_v50 = vadd.f32 %v319_v5, %v301_v45 }
  0xbc   :  { %vm445_vm6 = vcmp.ge.f32.partialorder %v356_v44, 0.0  ;;  %v461_v46 = vmul.f32 0.2, %v356_v44  ;;  %v393_v47 = vpop.f32.mrf.mxu3 }
  0xbd   :  { %v464_v57 = vmul.f32 0.2, %v320_v50  ;;  %vm448_vm7 = vcmp.ge.f32.partialorder %v320_v50, 0.0  ;;  %v394_v10 = vadd.f32 %v393_v47, %v375_v0 }
  0xbe   :  { %v477_v49 = vsel %vm445_vm6, %v356_v44, %v461_v46  ;;  %v376_v51 = vpop.f32.mrf.mxu1 }
  0xbf   :  { %v488_v52 = vpack.c.bf16 %v477_v49, %v476_v48  ;;  %v338_v53 = vpop.f32.mrf.mxu2  ;;  %v480_v1 = vsel %vm448_vm7, %v320_v50, %v464_v57  ;;  %v462_v17 = vmul.f32 0.2, %v394_v10  ;;  %vm446_vm11 = vcmp.ge.f32.partialorder %v394_v10, 0.0 }
  0xc0   :  { %v339_v55 = vadd.f32 %v338_v53, %v1031_v40  ;;  %v407_v56 = vpop.f32.mrf.mxu0  ;;  %v377_v22 = vadd.f32 %v376_v51, %v1031_v40 }
  0xc1   :  { %496 = vst [vmem:[%s1068_s3 + $0x20] sm:$0xff] %v488_v52  ;;  %v408_v61 = vadd.f32 %v407_v56, %v1017_v6  ;;  %v372_v6 = vadd.f32 %v371_v24, %v1020_v12  ;;  %v478_v27 = vsel %vm446_vm11, %v394_v10, %v462_v17 }
  0xc2   :  { %v358_v58 = vadd.f32 %v357_v9, %v339_v55 }
  0xc3   :  { %v391_v13 = vadd.f32 %v390_v33, %v372_v6 }
  0xc4   :  { %vm449_vm8 = vcmp.ge.f32.partialorder %v358_v58, 0.0  ;;  %v465_v60 = vmul.f32 0.2, %v358_v58  ;;  %v395_v63 = vpop.f32.mrf.mxu3 }
  0xc5   :  { %v458_v24 = vmul.f32 0.2, %v391_v13  ;;  %vm442_vm13 = vcmp.ge.f32.partialorder %v391_v13, 0.0  ;;  %v396_v28 = vadd.f32 %v395_v63, %v377_v22 }
  0xc6   :  { %v481_v2 = vsel %vm449_vm8, %v358_v58, %v465_v60  ;;  %v412_v3 = vpop.f32.mrf.mxu1 }
  0xc7   :  { %v490_v4 = vpack.c.bf16 %v481_v2, %v480_v1  ;;  %v426_v5 = vpop.f32.mrf.mxu2  ;;  %v413_v9 = vadd.f32 %v412_v3, %v1024_v20  ;;  %v474_v32 = vsel %vm442_vm13, %v391_v13, %v458_v24  ;;  %v466_v35 = vmul.f32 0.2, %v396_v28 }
  0xc8   :  { %v427_v8 = vadd.f32 %v426_v5, %v408_v61  ;;  %v409_v16 = vpop.f32.mrf.mxu0  ;;  %vm450_vm15 = vcmp.ge.f32.partialorder %v396_v28, 0.0 }
  0xc9   :  { %498 = vst [vmem:[%s1068_s3 + $0x30] sm:$0xff] %v490_v4  ;;  %v410_v21 = vadd.f32 %v409_v16, %v1020_v12  ;;  %v482_v39 = vsel %vm450_vm15, %v396_v28, %v466_v35 }
  0xca   :  { %vm439_vm10 = vcmp.ge.f32.partialorder %v427_v8, 0.0  ;;  %v455_v11 = vmul.f32 0.2, %v427_v8 }
  0xcc   :  { %v471_v14 = vsel %vm439_vm10, %v427_v8, %v455_v11  ;;  %v431_v15 = vpop.f32.mrf.mxu3 }
  0xcd   :  { %v485_v18 = vpack.c.bf16 %v471_v14, %v470_v62  ;;  %v432_v19 = vadd.f32 %v431_v15, %v413_v9 }
  0xce   :  { %v414_v25 = vpop.f32.mrf.mxu1 }
  0xcf   :  { %493 = vst [vmem:[%s1068_s3 + $0x8] sm:$0xff] %v485_v18  ;;  %vm447_vm12 = vcmp.ge.f32.partialorder %v432_v19, 0.0  ;;  %v463_v20 = vmul.f32 0.2, %v432_v19  ;;  %v428_v23 = vpop.f32.mrf.mxu2  ;;  %v415_v12 = vadd.f32 %v414_v25, %v1031_v40 }
  0xd0   :  { %v429_v26 = vadd.f32 %v428_v23, %v410_v21 }
  0xd1   :  { %v479_v29 = vsel %vm447_vm12, %v432_v19, %v463_v20 }
  0xd2   :  { %v489_v30 = vpack.c.bf16 %v479_v29, %v478_v27  ;;  %vm443_vm14 = vcmp.ge.f32.partialorder %v429_v26, 0.0  ;;  %v459_v31 = vmul.f32 0.2, %v429_v26 }
  0xd4   :  { %497 = vst [vmem:[%s1068_s3 + $0x28] sm:$0xff] %v489_v30  ;;  %v475_v33 = vsel %vm443_vm14, %v429_v26, %v459_v31  ;;  %v433_v34 = vpop.f32.mrf.mxu3 }
  0xd5   :  { %v487_v36 = vpack.c.bf16 %v475_v33, %v474_v32  ;;  %v434_v37 = vadd.f32 %v433_v34, %v415_v12 }
  0xd7   :  { %495 = vst [vmem:[%s1068_s3 + $0x18] sm:$0xff] %v487_v36  ;;  %vm451_vm0 = vcmp.ge.f32.partialorder %v434_v37, 0.0  ;;  %v467_v38 = vmul.f32 0.2, %v434_v37 }
  0xd9   :  { %v483_v41 = vsel %vm451_vm0, %v434_v37, %v467_v38 }
  0xda   :  { %v491_v40 = vpack.c.bf16 %v483_v41, %v482_v39 }
  0xdc   :  { %499 = vst [vmem:[%s1068_s3 + $0x38] sm:$0xff] %v491_v40 }

// kernel: autoencoder_fwd.20
= control target key start
LH: loop header
LB: loop body
LE: loop exit
PB: predicated region body
PF: predicated region fallthrough
CT: control target
= control target key end

     0   :  { %vm283_vm0 = vcmask 261120   ;;  %v624_v15 = vmov 0   ;;  %s831_s1 = inlined_call_operand.vmem [shape: bf16[288,128], index: 1, kind: input, shape index: {}]   ;;  %s832_s0 = inlined_call_operand.vmem [shape: bf16[64,288], index: 0, kind: input, shape index: {}]   ;;  %s833_s2 = inlined_call_operand.vmem [shape: f32[64,1], index: 2, kind: input, shape index: {}]   ;;  %s834_s3 = inlined_call_operand.vmem [shape: bf16[64,128], index: 3, kind: output, shape index: {}]  }
   0x1   :  { %v570_v0 = vld [vmem:[%s831_s1 + $0x38] sm:$0xff]  ;;  %v580_v2 = vld [vmem:[%s831_s1 + $0x88] sm:$0xff]  ;;  %v569_v3 = vld [vmem:[%s831_s1 + $0x30] sm:$0xff]  ;;  %622 = vset.pattern.permute.xlu1 %v624_v15  ;;  %621 = vset.pattern.permute.xlu0 %v624_v15 }
   0x2   :  { %v651_v1 = vld [vmem:[%s831_s1 + $0x78] sm:$0xff]  ;;  %296 = vmatpush.bf16.msra.mxu0 %v570_v0  ;;  %604 = vmatpush.bf16.msra.mxu3 %v570_v0  ;;  %v663_v4 = vld [vmem:[%s831_s1 + $0x70] sm:$0xff]  ;;  %v579_v5 = vld [vmem:[%s831_s1 + $0x80] sm:$0xff] }
   0x3   :  { %612 = vmatpush.bf16.msra.mxu1 %v651_v1  ;;  %360 = vmatpush.bf16.msra.mxu2 %v580_v2  ;;  %v437_v6 = vld [vmem:[%s832_s0 + $0x8] sm:$0xf]  ;;  %v553_v7 = vld [vmem:[%s832_s0 + $0x10] sm:$0xf0]  ;;  %v567_v11 = vld [vmem:[%s831_s1 + $0x20] sm:$0xff] }
   0x4   :  { %v568_v8 = vld [vmem:[%s831_s1 + $0x28] sm:$0xff]  ;;  %v438_v10 = vor.u32 %v553_v7, %v437_v6  ;;  %v691_v12 = vld [vmem:[%s831_s1 + $0x60] sm:$0xff]  ;;  %v566_v13 = vld [vmem:[%s831_s1 + $0x18] sm:$0xff]  ;;  %623 = vset.pattern.permute.xlu2 %v624_v15 }
   0x5   :  { %v681_v9 = vld [vmem:[%s831_s1 + $0x68] sm:$0xff]  ;;  %v700_v14 = vld [vmem:[%s831_s1 + $0x58] sm:$0xff]  ;;  %v565_v16 = vld [vmem:[%s831_s1 + $0x10] sm:$0xff] }
   0x6   :  { %297 = vmatpush.bf16.msra.mxu0 %v569_v3  ;;  %605 = vmatpush.bf16.msra.mxu3 %v569_v3  ;;  %v69_v17 = vld [vmem:[%s833_s2 + $0x10] sm:$0xff]  ;;  %v449_v19 = vld [vmem:[%s832_s0 + $0x20] sm:$0xf]  ;;  %v556_v20 = vld [vmem:[%s832_s0 + $0x28] sm:$0xf0] }
   0x7   :  { %613 = vmatpush.bf16.msra.mxu1 %v663_v4  ;;  %361 = vmatpush.bf16.msra.mxu2 %v579_v5  ;;  %v573_v18 = vld [vmem:[%s831_s1 + $0x50] sm:$0xff]  ;;  %v564_v21 = vld [vmem:[%s831_s1 + $0x8] sm:$0xff]  ;;  %v450_v23 = vor.u32 %v556_v20, %v449_v19  ;;  %v67_v24 = vld [vmem:[%s833_s2] sm:$0xff] }
   0x8   :  { %87 = vperm.xlu1 %622, %v69_v17   ;;  %v572_v22 = vld [vmem:[%s831_s1 + $0x48] sm:$0xff]  ;;  %77 = vperm.xlu0 %621, %v67_v24   ;;  %v563_v25 = vld [vmem:[%s831_s1] sm:$0xff]  ;;  %v441_v26 = vld [vmem:[%s832_s0 + $0x18] sm:$0xf] }
   0x9   :  { %v70_v27 = vld [vmem:[%s833_s2 + $0x18] sm:$0xff]  ;;  %v555_v28 = vld [vmem:[%s832_s0 + $0x20] sm:$0xf0]  ;;  %v429_v29 = vld [vmem:[%s832_s0] sm:$0xf] }
   0xa   :  { %298 = vmatpush.bf16.msra.mxu0 %v568_v8  ;;  %606 = vmatpush.bf16.msra.mxu3 %v568_v8  ;;  %v552_v30 = vld [vmem:[%s832_s0 + $0x8] sm:$0xf0]  ;;  %v571_v31 = vld [vmem:[%s831_s1 + $0x40] sm:$0xff]  ;;  %v554_v32 = vld [vmem:[%s832_s0 + $0x1c] sm:$0xf]  ;;  %v442_v34 = vor.u32 %v555_v28, %v441_v26 }
   0xb   :  { %614 = vmatpush.bf16.msra.mxu1 %v681_v9  ;;  %547 = vmatmul.msk.bf16.vlgmr.msra.gmra.mxu2 %vm283_vm0, %v438_v10  ;;  %v443_v33 = vld [vmem:[%s832_s0 + $0x24] sm:$0xf0]  ;;  %v430_v35 = vor.u32 %v552_v30, %v429_v29  ;;  %v74_v38 = vld [vmem:[%s833_s2 + $0x38] sm:$0xff]  ;;  %v71_v39 = vld [vmem:[%s833_s2 + $0x20] sm:$0xff] }
   0xc   :  { %v446_v36 = vor.u32 %v554_v32, %v443_v33  ;;  %v68_v37 = vld [vmem:[%s833_s2 + $0x8] sm:$0xff]  ;;  %v461_v40 = vld [vmem:[%s832_s0 + $0x38] sm:$0xf]  ;;  %v559_v41 = vld [vmem:[%s832_s0 + $0x40] sm:$0xf0]  ;;  %97 = vperm.xlu2 %623, %v71_v39  }
   0xd   :  { %v462_v42 = vor.u32 %v559_v41, %v461_v40  ;;  %v73_v43 = vld [vmem:[%s833_s2 + $0x30] sm:$0xff]  ;;  %v72_v44 = vld [vmem:[%s833_s2 + $0x28] sm:$0xff]  ;;  %v558_v46 = vld [vmem:[%s832_s0 + $0x38] sm:$0xf0] }
   0xe   :  { %299 = vmatpush.bf16.msra.mxu0 %v567_v11  ;;  %607 = vmatpush.bf16.msra.mxu3 %v567_v11  ;;  %v453_v45 = vld [vmem:[%s832_s0 + $0x30] sm:$0xf]  ;;  %v557_v47 = vld [vmem:[%s832_s0 + $0x34] sm:$0xf]  ;;  %v455_v48 = vld [vmem:[%s832_s0 + $0x3c] sm:$0xf0] }
   0xf   :  { %615 = vmatpush.bf16.msra.mxu1 %v691_v12  ;;  %v454_v49 = vor.u32 %v558_v46, %v453_v45  ;;  %v458_v50 = vor.u32 %v557_v47, %v455_v48  ;;  %v473_v51 = vld [vmem:[%s832_s0 + $0x50] sm:$0xf]  ;;  %v562_v52 = vld [vmem:[%s832_s0 + $0x58] sm:$0xf0]  ;;  %v551_v54 = vld [vmem:[%s832_s0 + $0x4] sm:$0xf] }
  0x10   :  { %92 = vperm.xlu1 %622, %v70_v27   ;;  %82 = vperm.xlu0 %621, %v68_v37   ;;  %v474_v53 = vor.u32 %v562_v52, %v473_v51  ;;  %v431_v55 = vld [vmem:[%s832_s0 + $0xc] sm:$0xf0]  ;;  %v465_v57 = vld [vmem:[%s832_s0 + $0x48] sm:$0xf]  ;;  %v561_v58 = vld [vmem:[%s832_s0 + $0x50] sm:$0xf0] }
  0x11   :  { %v434_v56 = vor.u32 %v551_v54, %v431_v55  ;;  %v560_v59 = vld [vmem:[%s832_s0 + $0x4c] sm:$0xf]  ;;  %v467_v60 = vld [vmem:[%s832_s0 + $0x54] sm:$0xf0]  ;;  %v466_v61 = vor.u32 %v561_v58, %v465_v57 }
  0x12   :  { %300 = vmatpush.bf16.msra.mxu0 %v566_v13  ;;  %608 = vmatpush.bf16.msra.mxu3 %v566_v13  ;;  %v470_v62 = vor.u32 %v560_v59, %v467_v60 }
  0x13   :  { %616 = vmatpush.bf16.msra.mxu1 %v700_v14 }
  0x14   :  { %102 = vperm.xlu2 %623, %v72_v44  }
  0x16   :  { %301 = vmatpush.bf16.msra.mxu0 %v565_v16  ;;  %609 = vmatpush.bf16.msra.mxu3 %v565_v16 }
  0x17   :  { %617 = vmatpush.bf16.msra.mxu1 %v573_v18 }
  0x18   :  { %112 = vperm.xlu1 %622, %v74_v38   ;;  %107 = vperm.xlu0 %621, %v73_v43  }
  0x1a   :  { %302 = vmatpush.bf16.msra.mxu0 %v564_v21  ;;  %610 = vmatpush.bf16.msra.mxu3 %v564_v21 }
  0x1b   :  { %618 = vmatpush.bf16.msra.mxu1 %v572_v22  ;;  %548 = vmatmul.msk.bf16.gmra.mxu2 %vm283_vm0, %v450_v23 }
  0x1e   :  { %303 = vmatpush.bf16.msra.mxu0 %v563_v25  ;;  %611 = vmatpush.bf16.msra.mxu3 %v563_v25 }
  0x1f   :  { %619 = vmatpush.bf16.msra.mxu1 %v571_v31 }
  0x21   :  { %309 = vmatmul.bf16.vlgmr.msra.gmra.mxu3 %v442_v34  ;;  %304 = vmatmul.bf16.vlgmr.msra.gmra.mxu0 %v430_v35 }
  0x22   :  { %325 = vmatpush.bf16.msrb.mxu0 %v651_v1  ;;  %338 = vmatmul.bf16.vlgmr.msra.gmra.mxu1 %v446_v36 }
  0x26   :  { %326 = vmatpush.bf16.msrb.mxu0 %v663_v4 }
  0x2a   :  { %327 = vmatpush.bf16.msrb.mxu0 %v681_v9 }
  0x2b   :  { %549 = vmatmul.msk.bf16.gmra.mxu2 %vm283_vm0, %v462_v42 }
  0x2e   :  { %328 = vmatpush.bf16.msrb.mxu0 %v691_v12 }
  0x31   :  { %314 = vmatmul.bf16.gmra.mxu3 %v454_v49 }
  0x32   :  { %329 = vmatpush.bf16.msrb.mxu0 %v700_v14  ;;  %343 = vmatmul.bf16.gmra.mxu1 %v458_v50 }
  0x36   :  { %330 = vmatpush.bf16.msrb.mxu0 %v573_v18 }
  0x3a   :  { %331 = vmatpush.bf16.msrb.mxu0 %v572_v22 }
  0x3b   :  { %550 = vmatmul.msk.bf16.gmra.mxu2 %vm283_vm0, %v474_v53 }
  0x3e   :  { %332 = vmatpush.bf16.msrb.mxu0 %v571_v31 }
  0x41   :  { %333 = vmatmul.bf16.vlgmr.msrb.gmra.mxu0 %v434_v56  ;;  %319 = vmatmul.bf16.gmra.mxu3 %v466_v61 }
  0x42   :  { %348 = vmatmul.bf16.gmra.mxu1 %v470_v62 }
  0x66   :  { %v98_v17 = vpop.permute.xlu2 %97 }
  0x6e   :  { %v103_v31 = vpop.permute.xlu2 %102 }
  0x7a   :  { %v88_v3 = vpop.permute.xlu1 %87  ;;  %v78_v14 = vpop.permute.xlu0 %77 }
  0x82   :  { %v93_v10 = vpop.permute.xlu1 %92  ;;  %v83_v28 = vpop.permute.xlu0 %82 }
  0x8a   :  { %v108_v44 = vpop.permute.xlu0 %107  ;;  %v113_v62 = vpop.permute.xlu1 %112 }
  0x8e   :  { %v363_v63 = vpop.f32.mrf.mxu2 }
  0x96   :  { %v365_v0 = vpop.f32.mrf.mxu2 }
  0x9e   :  { %v368_v1 = vpop.f32.mrf.mxu2  ;;  %v305_v7 = vpop.f32.mrf.mxu0 }
  0x9f   :  { %v339_v2 = vpop.f32.mrf.mxu1  ;;  %v306_v33 = vadd.f32 %v305_v7, %v78_v14 }
  0xa4   :  { %v310_v4 = vpop.f32.mrf.mxu3 }
  0xa5   :  { %v311_v5 = vadd.f32 %v310_v4, %v88_v3 }
  0xa6   :  { %v370_v8 = vpop.f32.mrf.mxu2  ;;  %v307_v20 = vpop.f32.mrf.mxu0 }
  0xa7   :  { %v341_v6 = vpop.f32.mrf.mxu1  ;;  %v340_v9 = vadd.f32 %v339_v2, %v311_v5  ;;  %v308_v42 = vadd.f32 %v307_v20, %v83_v28 }
  0xa9   :  { %v369_v12 = vadd.f32 %v368_v1, %v340_v9 }
  0xab   :  { %v393_v18 = vmul.f32 0.2, %v369_v12  ;;  %vm385_vm1 = vcmp.ge.f32.partialorder %v369_v12, 0.0 }
  0xac   :  { %v312_v11 = vpop.f32.mrf.mxu3 }
  0xad   :  { %v313_v13 = vadd.f32 %v312_v11, %v93_v10  ;;  %v401_v24 = vsel %vm385_vm1, %v369_v12, %v393_v18 }
  0xae   :  { %v373_v21 = vpop.f32.mrf.mxu2 }
  0xaf   :  { %v342_v15 = vadd.f32 %v341_v6, %v313_v13  ;;  %v344_v16 = vpop.f32.mrf.mxu1 }
  0xb1   :  { %v371_v19 = vadd.f32 %v370_v8, %v342_v15 }
  0xb3   :  { %vm386_vm2 = vcmp.ge.f32.partialorder %v371_v19, 0.0  ;;  %v394_v22 = vmul.f32 0.2, %v371_v19 }
  0xb4   :  { %v315_v23 = vpop.f32.mrf.mxu3 }
  0xb5   :  { %v402_v25 = vsel %vm386_vm2, %v371_v19, %v394_v22  ;;  %v316_v26 = vadd.f32 %v315_v23, %v98_v17 }
  0xb6   :  { %v589_v27 = vpack.c.bf16 %v402_v25, %v401_v24  ;;  %v375_v34 = vpop.f32.mrf.mxu2 }
  0xb7   :  { %v345_v29 = vadd.f32 %v344_v16, %v316_v26  ;;  %v346_v30 = vpop.f32.mrf.mxu1 }
  0xb8   :  { %601 = vst [vmem:[%s834_s3 + $0x8] sm:$0xff] %v589_v27  }
  0xb9   :  { %v374_v36 = vadd.f32 %v373_v21, %v345_v29 }
  0xbb   :  { %v395_v40 = vmul.f32 0.2, %v374_v36  ;;  %vm387_vm3 = vcmp.ge.f32.partialorder %v374_v36, 0.0 }
  0xbc   :  { %v317_v35 = vpop.f32.mrf.mxu3 }
  0xbd   :  { %v318_v37 = vadd.f32 %v317_v35, %v103_v31  ;;  %v403_v50 = vsel %vm387_vm3, %v374_v36, %v395_v40 }
  0xbe   :  { %v334_v32 = vpop.f32.mrf.mxu0  ;;  %v378_v55 = vpop.f32.mrf.mxu2 }
  0xbf   :  { %v335_v38 = vadd.f32 %v334_v32, %v306_v33  ;;  %v347_v39 = vadd.f32 %v346_v30, %v318_v37  ;;  %v349_v47 = vpop.f32.mrf.mxu1 }
  0xc1   :  { %v376_v41 = vadd.f32 %v375_v34, %v347_v39  ;;  %v364_v43 = vadd.f32 %v363_v63, %v335_v38 }
  0xc3   :  { %vm388_vm4 = vcmp.ge.f32.partialorder %v376_v41, 0.0  ;;  %v396_v45 = vmul.f32 0.2, %v376_v41  ;;  %v391_v53 = vmul.f32 0.2, %v364_v43  ;;  %vm383_vm5 = vcmp.ge.f32.partialorder %v364_v43, 0.0 }
  0xc4   :  { %v320_v49 = vpop.f32.mrf.mxu3 }
  0xc5   :  { %v404_v51 = vsel %vm388_vm4, %v376_v41, %v396_v45  ;;  %v321_v52 = vadd.f32 %v320_v49, %v108_v44  ;;  %v399_v59 = vsel %vm383_vm5, %v364_v43, %v391_v53 }
  0xc6   :  { %v336_v46 = vpop.f32.mrf.mxu0  ;;  %v594_v54 = vpack.c.bf16 %v404_v51, %v403_v50  ;;  %v380_v4 = vpop.f32.mrf.mxu2 }
  0xc7   :  { %v337_v48 = vadd.f32 %v336_v46, %v308_v42  ;;  %v350_v58 = vadd.f32 %v349_v47, %v321_v52 }
  0xc8   :  { %602 = vst [vmem:[%s834_s3 + $0x10] sm:$0xff] %v594_v54  }
  0xc9   :  { %v366_v56 = vadd.f32 %v365_v0, %v337_v48  ;;  %v379_v1 = vadd.f32 %v378_v55, %v350_v58  ;;  %v351_v0 = vpop.f32.mrf.mxu1 }
  0xcb   :  { %vm384_vm6 = vcmp.ge.f32.partialorder %v366_v56, 0.0  ;;  %v392_v57 = vmul.f32 0.2, %v366_v56  ;;  %v397_v5 = vmul.f32 0.2, %v379_v1  ;;  %vm389_vm7 = vcmp.ge.f32.partialorder %v379_v1, 0.0 }
  0xcc   :  { %v322_v63 = vpop.f32.mrf.mxu3 }
  0xcd   :  { %v400_v60 = vsel %vm384_vm6, %v366_v56, %v392_v57  ;;  %v323_v2 = vadd.f32 %v322_v63, %v113_v62  ;;  %v405_v8 = vsel %vm389_vm7, %v379_v1, %v397_v5 }
  0xce   :  { %v584_v61 = vpack.c.bf16 %v400_v60, %v399_v59 }
  0xcf   :  { %v352_v3 = vadd.f32 %v351_v0, %v323_v2 }
  0xd0   :  { %585 = vst [vmem:[%s834_s3] sm:$0xff] %v584_v61  }
  0xd1   :  { %v381_v6 = vadd.f32 %v380_v4, %v352_v3 }
  0xd3   :  { %vm390_vm8 = vcmp.ge.f32.partialorder %v381_v6, 0.0  ;;  %v398_v7 = vmul.f32 0.2, %v381_v6 }
  0xd5   :  { %v406_v9 = vsel %vm390_vm8, %v381_v6, %v398_v7 }
  0xd6   :  { %v599_v10 = vpack.c.bf16 %v406_v9, %v405_v8 }
  0xd8   :  { %603 = vst [vmem:[%s834_s3 + $0x18] sm:$0xff] %v599_v10  }

// kernel: autoencoder_fwd.21
= control target key start
LH: loop header
LB: loop body
LE: loop exit
PB: predicated region body
PF: predicated region fallthrough
CT: control target
= control target key end

     0   :  { %vm369_vm0 = vcmask 523264   ;;  %s940_s1 = inlined_call_operand.vmem [shape: bf16[576,128], index: 1, kind: input, shape index: {}]   ;;  %s941_s2 = inlined_call_operand.vmem [shape: f32[1,128], index: 2, kind: input, shape index: {}]   ;;  %s942_s0 = inlined_call_operand.vmem [shape: bf16[32,576], index: 0, kind: input, shape index: {}]   ;;  %s943_s3 = inlined_call_operand.vmem [shape: bf16[32,128], index: 3, kind: output, shape index: {}]  }
   0x1   :  { %v698_v0 = vld [vmem:[%s940_s1 + $0x38] sm:$0xff]  ;;  %v697_v4 = vld [vmem:[%s940_s1 + $0x30] sm:$0xff]  ;;  %v696_v8 = vld [vmem:[%s940_s1 + $0x28] sm:$0xff] }
   0x2   :  { %v706_v1 = vld [vmem:[%s940_s1 + $0x78] sm:$0xff]  ;;  %376 = vmatpush.bf16.msra.mxu0 %v698_v0  ;;  %v705_v5 = vld [vmem:[%s940_s1 + $0x70] sm:$0xff]  ;;  %v704_v9 = vld [vmem:[%s940_s1 + $0x68] sm:$0xff] }
   0x3   :  { %v714_v2 = vld [vmem:[%s940_s1 + $0xb8] sm:$0xff]  ;;  %395 = vmatpush.bf16.msra.mxu1 %v706_v1  ;;  %v713_v6 = vld [vmem:[%s940_s1 + $0xb0] sm:$0xff]  ;;  %v712_v10 = vld [vmem:[%s940_s1 + $0xa8] sm:$0xff] }
   0x4   :  { %v722_v3 = vld [vmem:[%s940_s1 + $0xf8] sm:$0xff]  ;;  %414 = vmatpush.bf16.msra.mxu2 %v714_v2  ;;  %v721_v7 = vld [vmem:[%s940_s1 + $0xf0] sm:$0xff]  ;;  %v720_v11 = vld [vmem:[%s940_s1 + $0xe8] sm:$0xff] }
   0x5   :  { %433 = vmatpush.bf16.msra.mxu3 %v722_v3  ;;  %v695_v12 = vld [vmem:[%s940_s1 + $0x20] sm:$0xff]  ;;  %v694_v16 = vld [vmem:[%s940_s1 + $0x18] sm:$0xff]  ;;  %v693_v20 = vld [vmem:[%s940_s1 + $0x10] sm:$0xff] }
   0x6   :  { %377 = vmatpush.bf16.msra.mxu0 %v697_v4  ;;  %v703_v13 = vld [vmem:[%s940_s1 + $0x60] sm:$0xff]  ;;  %v702_v17 = vld [vmem:[%s940_s1 + $0x58] sm:$0xff]  ;;  %v701_v21 = vld [vmem:[%s940_s1 + $0x50] sm:$0xff] }
   0x7   :  { %396 = vmatpush.bf16.msra.mxu1 %v705_v5  ;;  %v711_v14 = vld [vmem:[%s940_s1 + $0xa0] sm:$0xff]  ;;  %v710_v18 = vld [vmem:[%s940_s1 + $0x98] sm:$0xff]  ;;  %v709_v22 = vld [vmem:[%s940_s1 + $0x90] sm:$0xff] }
   0x8   :  { %415 = vmatpush.bf16.msra.mxu2 %v713_v6  ;;  %v719_v15 = vld [vmem:[%s940_s1 + $0xe0] sm:$0xff]  ;;  %v718_v19 = vld [vmem:[%s940_s1 + $0xd8] sm:$0xff]  ;;  %v717_v23 = vld [vmem:[%s940_s1 + $0xd0] sm:$0xff] }
   0x9   :  { %434 = vmatpush.bf16.msra.mxu3 %v721_v7  ;;  %v692_v24 = vld [vmem:[%s940_s1 + $0x8] sm:$0xff]  ;;  %v691_v28 = vld [vmem:[%s940_s1] sm:$0xff]  ;;  %v683_v33 = vld [vmem:[%s942_s0 + $0x10] sm:$0xf0] }
   0xa   :  { %378 = vmatpush.bf16.msra.mxu0 %v696_v8  ;;  %v700_v25 = vld [vmem:[%s940_s1 + $0x48] sm:$0xff]  ;;  %v699_v29 = vld [vmem:[%s940_s1 + $0x40] sm:$0xff]  ;;  %v499_v35 = vld [vmem:[%s942_s0 + $0x14] sm:$0xf0] }
   0xb   :  { %397 = vmatpush.bf16.msra.mxu1 %v704_v9  ;;  %v708_v26 = vld [vmem:[%s940_s1 + $0x88] sm:$0xff]  ;;  %v707_v30 = vld [vmem:[%s940_s1 + $0x80] sm:$0xff]  ;;  %v684_v37 = vld [vmem:[%s942_s0 + $0x18] sm:$0xf0] }
   0xc   :  { %416 = vmatpush.bf16.msra.mxu2 %v712_v10  ;;  %v716_v27 = vld [vmem:[%s940_s1 + $0xc8] sm:$0xff]  ;;  %v715_v31 = vld [vmem:[%s940_s1 + $0xc0] sm:$0xff]  ;;  %v726_v40 = vld [vmem:[%s940_s1 + $0x118] sm:$0xff] }
   0xd   :  { %435 = vmatpush.bf16.msra.mxu3 %v720_v11  ;;  %v497_v32 = vld [vmem:[%s942_s0] sm:$0xf]  ;;  %v681_v34 = vld [vmem:[%s942_s0 + $0x4] sm:$0xf]  ;;  %v505_v36 = vld [vmem:[%s942_s0 + $0x8] sm:$0xf] }
   0xe   :  { %379 = vmatpush.bf16.msra.mxu0 %v695_v12  ;;  %v682_v38 = vld [vmem:[%s942_s0 + $0xc] sm:$0xf]  ;;  %v507_v39 = vld [vmem:[%s942_s0 + $0x1c] sm:$0xf0]  ;;  %v498_v41 = vor.u32 %v683_v33, %v497_v32  ;;  %v502_v42 = vor.u32 %v681_v34, %v499_v35  ;;  %v506_v43 = vor.u32 %v684_v37, %v505_v36  ;;  %v725_v45 = vld [vmem:[%s940_s1 + $0x110] sm:$0xff] }
   0xf   :  { %398 = vmatpush.bf16.msra.mxu1 %v703_v13  ;;  %v510_v44 = vor.u32 %v682_v38, %v507_v39  ;;  %v724_v46 = vld [vmem:[%s940_s1 + $0x108] sm:$0xff]  ;;  %v723_v47 = vld [vmem:[%s940_s1 + $0x100] sm:$0xff]  ;;  %v688_v49 = vld [vmem:[%s942_s0 + $0x38] sm:$0xf0] }
  0x10   :  { %417 = vmatpush.bf16.msra.mxu2 %v711_v14  ;;  %v517_v48 = vld [vmem:[%s942_s0 + $0x28] sm:$0xf]  ;;  %v686_v50 = vld [vmem:[%s942_s0 + $0x2c] sm:$0xf]  ;;  %v519_v51 = vld [vmem:[%s942_s0 + $0x3c] sm:$0xf0] }
  0x11   :  { %436 = vmatpush.bf16.msra.mxu3 %v719_v15  ;;  %v525_v52 = vld [vmem:[%s942_s0 + $0x30] sm:$0xf]  ;;  %v689_v53 = vld [vmem:[%s942_s0 + $0x40] sm:$0xf0]  ;;  %v687_v54 = vld [vmem:[%s942_s0 + $0x34] sm:$0xf]  ;;  %v518_v56 = vor.u32 %v688_v49, %v517_v48  ;;  %v522_v57 = vor.u32 %v686_v50, %v519_v51 }
  0x12   :  { %380 = vmatpush.bf16.msra.mxu0 %v694_v16  ;;  %v527_v55 = vld [vmem:[%s942_s0 + $0x44] sm:$0xf0]  ;;  %v526_v58 = vor.u32 %v689_v53, %v525_v52  ;;  %v513_v60 = vld [vmem:[%s942_s0 + $0x10] sm:$0xf]  ;;  %v685_v61 = vld [vmem:[%s942_s0 + $0x20] sm:$0xf0] }
  0x13   :  { %399 = vmatpush.bf16.msra.mxu1 %v702_v17  ;;  %v530_v59 = vor.u32 %v687_v54, %v527_v55  ;;  %v533_v62 = vld [vmem:[%s942_s0 + $0x38] sm:$0xf]  ;;  %v690_v63 = vld [vmem:[%s942_s0 + $0x48] sm:$0xf0]  ;;  %v514_v0 = vor.u32 %v685_v61, %v513_v60  ;;  %v742_v12 = vld [vmem:[%s941_s2] ss:$0 sm:$0xff] }
  0x14   :  { %418 = vmatpush.bf16.msra.mxu2 %v710_v18  ;;  %v534_v1 = vor.u32 %v690_v63, %v533_v62 }
  0x15   :  { %437 = vmatpush.bf16.msra.mxu3 %v718_v19 }
  0x16   :  { %381 = vmatpush.bf16.msra.mxu0 %v693_v20 }
  0x17   :  { %400 = vmatpush.bf16.msra.mxu1 %v701_v21 }
  0x18   :  { %419 = vmatpush.bf16.msra.mxu2 %v709_v22 }
  0x19   :  { %438 = vmatpush.bf16.msra.mxu3 %v717_v23 }
  0x1a   :  { %382 = vmatpush.bf16.msra.mxu0 %v692_v24 }
  0x1b   :  { %401 = vmatpush.bf16.msra.mxu1 %v700_v25 }
  0x1c   :  { %420 = vmatpush.bf16.msra.mxu2 %v708_v26 }
  0x1d   :  { %439 = vmatpush.bf16.msra.mxu3 %v716_v27 }
  0x1e   :  { %383 = vmatpush.bf16.msra.mxu0 %v691_v28 }
  0x1f   :  { %402 = vmatpush.bf16.msra.mxu1 %v699_v29 }
  0x20   :  { %421 = vmatpush.bf16.msra.mxu2 %v707_v30 }
  0x21   :  { %440 = vmatpush.bf16.msra.mxu3 %v715_v31  ;;  %384 = vmatmul.bf16.vlgmr.msra.gmra.mxu0 %v498_v41 }
  0x22   :  { %456 = vmatpush.bf16.msrb.mxu0 %v726_v40  ;;  %403 = vmatmul.bf16.vlgmr.msra.gmra.mxu1 %v502_v42 }
  0x23   :  { %738 = vmatpush.bf16.msrb.mxu1 %v726_v40  ;;  %422 = vmatmul.bf16.vlgmr.msra.gmra.mxu2 %v506_v43 }
  0x24   :  { %441 = vmatmul.bf16.vlgmr.msra.gmra.mxu3 %v510_v44 }
  0x26   :  { %457 = vmatpush.bf16.msrb.mxu0 %v725_v45 }
  0x27   :  { %739 = vmatpush.bf16.msrb.mxu1 %v725_v45 }
  0x2a   :  { %458 = vmatpush.bf16.msrb.mxu0 %v724_v46 }
  0x2b   :  { %740 = vmatpush.bf16.msrb.mxu1 %v724_v46 }
  0x2e   :  { %459 = vmatpush.bf16.msrb.mxu0 %v723_v47 }
  0x2f   :  { %741 = vmatpush.bf16.msrb.mxu1 %v723_v47 }
  0x31   :  { %389 = vmatmul.bf16.gmra.mxu0 %v518_v56 }
  0x32   :  { %408 = vmatmul.bf16.gmra.mxu1 %v522_v57 }
  0x33   :  { %427 = vmatmul.bf16.gmra.mxu2 %v526_v58 }
  0x34   :  { %446 = vmatmul.bf16.gmra.mxu3 %v530_v59 }
  0x41   :  { %679 = vmatmul.msk.bf16.vlgmr.msrb.gmra.mxu0 %vm369_vm0, %v514_v0 }
  0x42   :  { %680 = vmatmul.msk.bf16.vlgmr.msrb.gmra.mxu1 %vm369_vm0, %v534_v1 }
  0x9e   :  { %v385_v2 = vpop.f32.mrf.mxu0 }
  0x9f   :  { %v404_v3 = vpop.f32.mrf.mxu1  ;;  %v386_v16 = vadd.f32 %v742_v12, %v385_v2 }
  0xa1   :  { %v405_v19 = vadd.f32 %v404_v3, %v386_v16 }
  0xa6   :  { %v423_v4 = vpop.f32.mrf.mxu2  ;;  %v387_v6 = vpop.f32.mrf.mxu0 }
  0xa7   :  { %v442_v5 = vpop.f32.mrf.mxu3  ;;  %v406_v7 = vpop.f32.mrf.mxu1  ;;  %v388_v20 = vadd.f32 %v742_v12, %v387_v6  ;;  %v424_v23 = vadd.f32 %v423_v4, %v405_v19 }
  0xa9   :  { %v407_v28 = vadd.f32 %v406_v7, %v388_v20  ;;  %v443_v30 = vadd.f32 %v442_v5, %v424_v23 }
  0xae   :  { %v425_v8 = vpop.f32.mrf.mxu2  ;;  %v390_v9 = vpop.f32.mrf.mxu0 }
  0xaf   :  { %v409_v10 = vpop.f32.mrf.mxu1  ;;  %v444_v11 = vpop.f32.mrf.mxu3  ;;  %v391_v17 = vadd.f32 %v742_v12, %v390_v9  ;;  %v426_v31 = vadd.f32 %v425_v8, %v407_v28 }
  0xb1   :  { %v410_v21 = vadd.f32 %v409_v10, %v391_v17  ;;  %v445_v37 = vadd.f32 %v444_v11, %v426_v31 }
  0xb6   :  { %v428_v13 = vpop.f32.mrf.mxu2  ;;  %v392_v14 = vpop.f32.mrf.mxu0 }
  0xb7   :  { %v411_v15 = vpop.f32.mrf.mxu1  ;;  %v447_v18 = vpop.f32.mrf.mxu3  ;;  %v393_v22 = vadd.f32 %v742_v12, %v392_v14  ;;  %v429_v24 = vadd.f32 %v428_v13, %v410_v21 }
  0xb9   :  { %v412_v29 = vadd.f32 %v411_v15, %v393_v22  ;;  %v448_v32 = vadd.f32 %v447_v18, %v429_v24 }
  0xbe   :  { %v430_v25 = vpop.f32.mrf.mxu2  ;;  %v461_v26 = vpop.f32.mrf.mxu0 }
  0xbf   :  { %v466_v27 = vpop.f32.mrf.mxu1  ;;  %v431_v33 = vadd.f32 %v430_v25, %v412_v29  ;;  %v462_v34 = vadd.f32 %v461_v26, %v443_v30  ;;  %v449_v36 = vpop.f32.mrf.mxu3 }
  0xc0   :  { %v467_v35 = vadd.f32 %v466_v27, %v448_v32 }
  0xc1   :  { %v450_v38 = vadd.f32 %v449_v36, %v431_v33  ;;  %v475_v41 = vmul.f32 0.2, %v462_v34  ;;  %vm471_vm1 = vcmp.ge.f32.partialorder %v462_v34, 0.0 }
  0xc2   :  { %v477_v42 = vmul.f32 0.2, %v467_v35  ;;  %vm473_vm2 = vcmp.ge.f32.partialorder %v467_v35, 0.0 }
  0xc3   :  { %v479_v47 = vsel %vm471_vm1, %v462_v34, %v475_v41 }
  0xc4   :  { %v481_v48 = vsel %vm473_vm2, %v467_v35, %v477_v42 }
  0xc6   :  { %v463_v39 = vpop.f32.mrf.mxu0 }
  0xc7   :  { %v468_v40 = vpop.f32.mrf.mxu1  ;;  %v464_v43 = vadd.f32 %v463_v39, %v445_v37 }
  0xc8   :  { %v469_v44 = vadd.f32 %v468_v40, %v450_v38 }
  0xc9   :  { %vm472_vm3 = vcmp.ge.f32.partialorder %v464_v43, 0.0  ;;  %v476_v45 = vmul.f32 0.2, %v464_v43 }
  0xca   :  { %vm474_vm4 = vcmp.ge.f32.partialorder %v469_v44, 0.0  ;;  %v478_v46 = vmul.f32 0.2, %v469_v44 }
  0xcb   :  { %v480_v49 = vsel %vm472_vm3, %v464_v43, %v476_v45 }
  0xcc   :  { %v482_v50 = vsel %vm474_vm4, %v469_v44, %v478_v46  ;;  %v730_v51 = vpack.c.bf16 %v480_v49, %v479_v47 }
  0xcd   :  { %v735_v52 = vpack.c.bf16 %v482_v50, %v481_v48 }
  0xce   :  { %731 = vst [vmem:[%s943_s3] sm:$0xff] %v730_v51  }
  0xcf   :  { %737 = vst [vmem:[%s943_s3 + $0x8] sm:$0xff] %v735_v52  }

// kernel: autoencoder_fwd.22
= control target key start
LH: loop header
LB: loop body
LE: loop exit
PB: predicated region body
PF: predicated region fallthrough
CT: control target
= control target key end

     0   :  { %s2828_s1 = inlined_call_operand.vmem [shape: bf16[1152,256], index: 1, kind: input, shape index: {}]   ;;  %s2829_s0 = inlined_call_operand.vmem [shape: bf16[8,1152], index: 0, kind: input, shape index: {}]   ;;  %s2830_s2 = inlined_call_operand.vmem [shape: f32[1,256], index: 2, kind: input, shape index: {}]   ;;  %s2831_s3 = inlined_call_operand.vmem [shape: bf16[8,256], index: 3, kind: output, shape index: {}]  }
   0x1   :  { %v1225_v0 = vld [vmem:[%s2828_s1 + $0x70] sm:$0xf]  ;;  %v1758_v1 = vld [vmem:[%s2828_s1 + $0x74] sm:$0xf0]  ;;  %v1217_v9 = vld [vmem:[%s2828_s1 + $0x60] sm:$0xf] }
   0x2   :  { %v1289_v2 = vld [vmem:[%s2828_s1 + $0xf0] sm:$0xf]  ;;  %v1226_v3 = vor.u32 %v1758_v1, %v1225_v0  ;;  %v1774_v4 = vld [vmem:[%s2828_s1 + $0xf4] sm:$0xf0]  ;;  %v1756_v10 = vld [vmem:[%s2828_s1 + $0x64] sm:$0xf0] }
   0x3   :  { %v1353_v5 = vld [vmem:[%s2828_s1 + $0x170] sm:$0xf]  ;;  %v1790_v6 = vld [vmem:[%s2828_s1 + $0x174] sm:$0xf0]  ;;  %v1290_v7 = vor.u32 %v1774_v4, %v1289_v2  ;;  %v1281_v11 = vld [vmem:[%s2828_s1 + $0xe0] sm:$0xf]  ;;  %v1218_v12 = vor.u32 %v1756_v10, %v1217_v9 }
   0x4   :  { %v1354_v8 = vor.u32 %v1790_v6, %v1353_v5  ;;  %921 = vmatpush.bf16.msra.mxu0 %v1226_v3  ;;  %v1772_v13 = vld [vmem:[%s2828_s1 + $0xe4] sm:$0xf0]  ;;  %v1417_v14 = vld [vmem:[%s2828_s1 + $0x1f0] sm:$0xf]  ;;  %v1806_v15 = vld [vmem:[%s2828_s1 + $0x1f4] sm:$0xf0] }
   0x5   :  { %934 = vmatpush.bf16.msra.mxu1 %v1290_v7  ;;  %v1282_v16 = vor.u32 %v1772_v13, %v1281_v11  ;;  %v1418_v17 = vor.u32 %v1806_v15, %v1417_v14  ;;  %v1345_v18 = vld [vmem:[%s2828_s1 + $0x160] sm:$0xf]  ;;  %v1788_v19 = vld [vmem:[%s2828_s1 + $0x164] sm:$0xf0]  ;;  %v1209_v20 = vld [vmem:[%s2828_s1 + $0x50] sm:$0xf] }
   0x6   :  { %947 = vmatpush.bf16.msra.mxu2 %v1354_v8  ;;  %v1346_v21 = vor.u32 %v1788_v19, %v1345_v18  ;;  %v1754_v22 = vld [vmem:[%s2828_s1 + $0x54] sm:$0xf0]  ;;  %v1273_v23 = vld [vmem:[%s2828_s1 + $0xd0] sm:$0xf]  ;;  %v1409_v25 = vld [vmem:[%s2828_s1 + $0x1e0] sm:$0xf] }
   0x7   :  { %v1770_v24 = vld [vmem:[%s2828_s1 + $0xd4] sm:$0xf0]  ;;  %960 = vmatpush.bf16.msra.mxu3 %v1418_v17  ;;  %v1804_v26 = vld [vmem:[%s2828_s1 + $0x1e4] sm:$0xf0]  ;;  %v1337_v27 = vld [vmem:[%s2828_s1 + $0x150] sm:$0xf]  ;;  %v1210_v28 = vor.u32 %v1754_v22, %v1209_v20 }
   0x8   :  { %922 = vmatpush.bf16.msra.mxu0 %v1218_v12  ;;  %v1410_v29 = vor.u32 %v1804_v26, %v1409_v25  ;;  %v1786_v30 = vld [vmem:[%s2828_s1 + $0x154] sm:$0xf0]  ;;  %v1201_v31 = vld [vmem:[%s2828_s1 + $0x40] sm:$0xf]  ;;  %v1752_v32 = vld [vmem:[%s2828_s1 + $0x44] sm:$0xf0]  ;;  %v1274_v33 = vor.u32 %v1770_v24, %v1273_v23 }
   0x9   :  { %935 = vmatpush.bf16.msra.mxu1 %v1282_v16  ;;  %v1338_v34 = vor.u32 %v1786_v30, %v1337_v27  ;;  %v1265_v35 = vld [vmem:[%s2828_s1 + $0xc0] sm:$0xf]  ;;  %v1768_v36 = vld [vmem:[%s2828_s1 + $0xc4] sm:$0xf0]  ;;  %v1401_v37 = vld [vmem:[%s2828_s1 + $0x1d0] sm:$0xf]  ;;  %v1202_v42 = vor.u32 %v1752_v32, %v1201_v31 }
   0xa   :  { %948 = vmatpush.bf16.msra.mxu2 %v1346_v21  ;;  %v1802_v38 = vld [vmem:[%s2828_s1 + $0x1d4] sm:$0xf0]  ;;  %v1329_v39 = vld [vmem:[%s2828_s1 + $0x140] sm:$0xf]  ;;  %v1784_v40 = vld [vmem:[%s2828_s1 + $0x144] sm:$0xf0]  ;;  %v1266_v45 = vor.u32 %v1768_v36, %v1265_v35 }
   0xb   :  { %961 = vmatpush.bf16.msra.mxu3 %v1410_v29  ;;  %v1402_v41 = vor.u32 %v1802_v38, %v1401_v37  ;;  %v1393_v43 = vld [vmem:[%s2828_s1 + $0x1c0] sm:$0xf]  ;;  %v1800_v44 = vld [vmem:[%s2828_s1 + $0x1c4] sm:$0xf0]  ;;  %v1330_v46 = vor.u32 %v1784_v40, %v1329_v39  ;;  %v1193_v47 = vld [vmem:[%s2828_s1 + $0x30] sm:$0xf] }
   0xc   :  { %923 = vmatpush.bf16.msra.mxu0 %v1210_v28  ;;  %v1750_v48 = vld [vmem:[%s2828_s1 + $0x34] sm:$0xf0]  ;;  %v1257_v49 = vld [vmem:[%s2828_s1 + $0xb0] sm:$0xf]  ;;  %v1394_v53 = vor.u32 %v1800_v44, %v1393_v43  ;;  %v1185_v59 = vld [vmem:[%s2828_s1 + $0x20] sm:$0xf] }
   0xd   :  { %936 = vmatpush.bf16.msra.mxu1 %v1274_v33  ;;  %v1766_v50 = vld [vmem:[%s2828_s1 + $0xb4] sm:$0xf0]  ;;  %v1321_v51 = vld [vmem:[%s2828_s1 + $0x130] sm:$0xf]  ;;  %v1194_v54 = vor.u32 %v1750_v48, %v1193_v47  ;;  %v1748_v60 = vld [vmem:[%s2828_s1 + $0x24] sm:$0xf0] }
   0xe   :  { %949 = vmatpush.bf16.msra.mxu2 %v1338_v34  ;;  %v1782_v52 = vld [vmem:[%s2828_s1 + $0x134] sm:$0xf0]  ;;  %v1385_v55 = vld [vmem:[%s2828_s1 + $0x1b0] sm:$0xf]  ;;  %v1258_v57 = vor.u32 %v1766_v50, %v1257_v49  ;;  %v1249_v61 = vld [vmem:[%s2828_s1 + $0xa0] sm:$0xf]  ;;  %v1186_v2 = vor.u32 %v1748_v60, %v1185_v59 }
   0xf   :  { %962 = vmatpush.bf16.msra.mxu3 %v1402_v41  ;;  %v1798_v56 = vld [vmem:[%s2828_s1 + $0x1b4] sm:$0xf0]  ;;  %v1322_v58 = vor.u32 %v1782_v52, %v1321_v51  ;;  %v1764_v62 = vld [vmem:[%s2828_s1 + $0xa4] sm:$0xf0]  ;;  %v1313_v63 = vld [vmem:[%s2828_s1 + $0x120] sm:$0xf] }
  0x10   :  { %924 = vmatpush.bf16.msra.mxu0 %v1202_v42  ;;  %v1780_v0 = vld [vmem:[%s2828_s1 + $0x124] sm:$0xf0]  ;;  %v1386_v1 = vor.u32 %v1798_v56, %v1385_v55  ;;  %v1377_v3 = vld [vmem:[%s2828_s1 + $0x1a0] sm:$0xf]  ;;  %v1250_v5 = vor.u32 %v1764_v62, %v1249_v61  ;;  %v1177_v7 = vld [vmem:[%s2828_s1 + $0x10] sm:$0xf] }
  0x11   :  { %937 = vmatpush.bf16.msra.mxu1 %v1266_v45  ;;  %v1796_v4 = vld [vmem:[%s2828_s1 + $0x1a4] sm:$0xf0]  ;;  %v1314_v6 = vor.u32 %v1780_v0, %v1313_v63  ;;  %v1746_v8 = vld [vmem:[%s2828_s1 + $0x14] sm:$0xf0]  ;;  %v1241_v9 = vld [vmem:[%s2828_s1 + $0x90] sm:$0xf] }
  0x12   :  { %950 = vmatpush.bf16.msra.mxu2 %v1330_v46  ;;  %v1762_v10 = vld [vmem:[%s2828_s1 + $0x94] sm:$0xf0]  ;;  %v1305_v11 = vld [vmem:[%s2828_s1 + $0x110] sm:$0xf]  ;;  %v1378_v13 = vor.u32 %v1796_v4, %v1377_v3  ;;  %v1169_v14 = vld [vmem:[%s2828_s1] sm:$0xf]  ;;  %v1178_v15 = vor.u32 %v1746_v8, %v1177_v7 }
  0x13   :  { %963 = vmatpush.bf16.msra.mxu3 %v1394_v53  ;;  %v1778_v12 = vld [vmem:[%s2828_s1 + $0x114] sm:$0xf0]  ;;  %v1744_v16 = vld [vmem:[%s2828_s1 + $0x4] sm:$0xf0]  ;;  %v1369_v17 = vld [vmem:[%s2828_s1 + $0x190] sm:$0xf]  ;;  %v1242_v19 = vor.u32 %v1762_v10, %v1241_v9 }
  0x14   :  { %925 = vmatpush.bf16.msra.mxu0 %v1194_v54  ;;  %v1794_v18 = vld [vmem:[%s2828_s1 + $0x194] sm:$0xf0]  ;;  %v1306_v20 = vor.u32 %v1778_v12, %v1305_v11  ;;  %v1233_v21 = vld [vmem:[%s2828_s1 + $0x80] sm:$0xf]  ;;  %v1760_v22 = vld [vmem:[%s2828_s1 + $0x84] sm:$0xf0]  ;;  %v1170_v31 = vor.u32 %v1744_v16, %v1169_v14 }
  0x15   :  { %938 = vmatpush.bf16.msra.mxu1 %v1258_v57  ;;  %v1481_v23 = vld [vmem:[%s2828_s1 + $0x270] sm:$0xf]  ;;  %v1822_v24 = vld [vmem:[%s2828_s1 + $0x274] sm:$0xf0]  ;;  %v1370_v27 = vor.u32 %v1794_v18, %v1369_v17  ;;  %v1297_v28 = vld [vmem:[%s2828_s1 + $0x100] sm:$0xf]  ;;  %v1234_v35 = vor.u32 %v1760_v22, %v1233_v21 }
  0x16   :  { %951 = vmatpush.bf16.msra.mxu2 %v1322_v58  ;;  %v1545_v25 = vld [vmem:[%s2828_s1 + $0x2f0] sm:$0xf]  ;;  %v1838_v26 = vld [vmem:[%s2828_s1 + $0x2f4] sm:$0xf0]  ;;  %v1776_v29 = vld [vmem:[%s2828_s1 + $0x104] sm:$0xf0]  ;;  %v1482_v36 = vor.u32 %v1822_v24, %v1481_v23 }
  0x17   :  { %964 = vmatpush.bf16.msra.mxu3 %v1386_v1  ;;  %v1609_v30 = vld [vmem:[%s2828_s1 + $0x370] sm:$0xf]  ;;  %v1854_v32 = vld [vmem:[%s2828_s1 + $0x374] sm:$0xf0]  ;;  %v1361_v33 = vld [vmem:[%s2828_s1 + $0x180] sm:$0xf]  ;;  %v1546_v39 = vor.u32 %v1838_v26, %v1545_v25  ;;  %v1298_v40 = vor.u32 %v1776_v29, %v1297_v28 }
  0x18   :  { %926 = vmatpush.bf16.msra.mxu0 %v1186_v2  ;;  %v1792_v34 = vld [vmem:[%s2828_s1 + $0x184] sm:$0xf0]  ;;  %v1673_v37 = vld [vmem:[%s2828_s1 + $0x3f0] sm:$0xf]  ;;  %v1870_v38 = vld [vmem:[%s2828_s1 + $0x3f4] sm:$0xf0]  ;;  %v1610_v43 = vor.u32 %v1854_v32, %v1609_v30 }
  0x19   :  { %939 = vmatpush.bf16.msra.mxu1 %v1250_v5  ;;  %v1473_v41 = vld [vmem:[%s2828_s1 + $0x260] sm:$0xf]  ;;  %v1820_v42 = vld [vmem:[%s2828_s1 + $0x264] sm:$0xf0]  ;;  %v1362_v44 = vor.u32 %v1792_v34, %v1361_v33  ;;  %v1674_v47 = vor.u32 %v1870_v38, %v1673_v37  ;;  %v1465_v54 = vld [vmem:[%s2828_s1 + $0x250] sm:$0xf] }
  0x1a   :  { %952 = vmatpush.bf16.msra.mxu2 %v1314_v6  ;;  %v1537_v45 = vld [vmem:[%s2828_s1 + $0x2e0] sm:$0xf]  ;;  %v1836_v46 = vld [vmem:[%s2828_s1 + $0x2e4] sm:$0xf0]  ;;  %v1474_v50 = vor.u32 %v1820_v42, %v1473_v41  ;;  %v1818_v55 = vld [vmem:[%s2828_s1 + $0x254] sm:$0xf0] }
  0x1b   :  { %965 = vmatpush.bf16.msra.mxu3 %v1378_v13  ;;  %v1601_v48 = vld [vmem:[%s2828_s1 + $0x360] sm:$0xf]  ;;  %v1852_v49 = vld [vmem:[%s2828_s1 + $0x364] sm:$0xf0]  ;;  %v1538_v53 = vor.u32 %v1836_v46, %v1537_v45  ;;  %v1529_v58 = vld [vmem:[%s2828_s1 + $0x2d0] sm:$0xf]  ;;  %v1466_v2 = vor.u32 %v1818_v55, %v1465_v54 }
  0x1c   :  { %927 = vmatpush.bf16.msra.mxu0 %v1178_v15  ;;  %v1665_v51 = vld [vmem:[%s2828_s1 + $0x3e0] sm:$0xf]  ;;  %v1868_v52 = vld [vmem:[%s2828_s1 + $0x3e4] sm:$0xf0]  ;;  %v1602_v57 = vor.u32 %v1852_v49, %v1601_v48  ;;  %v1834_v59 = vld [vmem:[%s2828_s1 + $0x2d4] sm:$0xf0] }
  0x1d   :  { %940 = vmatpush.bf16.msra.mxu1 %v1242_v19  ;;  %v15_v56 = vld [vmem:[%s2829_s0 + $0x8] sm:$0xff]  ;;  %v1666_v62 = vor.u32 %v1868_v52, %v1665_v51  ;;  %v1593_v63 = vld [vmem:[%s2828_s1 + $0x350] sm:$0xf]  ;;  %v1850_v0 = vld [vmem:[%s2828_s1 + $0x354] sm:$0xf0]  ;;  %v1530_v8 = vor.u32 %v1834_v59, %v1529_v58 }
  0x1e   :  { %953 = vmatpush.bf16.msra.mxu2 %v1306_v20  ;;  %v176_v60 = vunpack.c.l.b16 %v15_v56  ;;  %v177_v61 = vunpack.c.h.b16 %v15_v56  ;;  %v14_v1 = vld [vmem:[%s2829_s0] sm:$0xff]  ;;  %v1657_v3 = vld [vmem:[%s2828_s1 + $0x3d0] sm:$0xf]  ;;  %v1866_v4 = vld [vmem:[%s2828_s1 + $0x3d4] sm:$0xf0]  ;;  %v1594_v12 = vor.u32 %v1850_v0, %v1593_v63 }
  0x1f   :  { %966 = vmatpush.bf16.msra.mxu3 %v1370_v27  ;;  %v174_v6 = vunpack.c.l.b16 %v14_v1  ;;  %v1457_v9 = vld [vmem:[%s2828_s1 + $0x240] sm:$0xf]  ;;  %v1816_v10 = vld [vmem:[%s2828_s1 + $0x244] sm:$0xf0]  ;;  %v175_v11 = vunpack.c.h.b16 %v14_v1  ;;  %v1658_v16 = vor.u32 %v1866_v4, %v1657_v3  ;;  %v1449_v24 = vld [vmem:[%s2828_s1 + $0x230] sm:$0xf] }
  0x20   :  { %928 = vmatpush.bf16.msra.mxu0 %v1170_v31  ;;  %v2177_v5 = vpack.c.b16 %v176_v60, %v176_v60  ;;  %v2179_v7 = vpack.c.b16 %v177_v61, %v177_v61  ;;  %v1521_v13 = vld [vmem:[%s2828_s1 + $0x2c0] sm:$0xf]  ;;  %v1832_v14 = vld [vmem:[%s2828_s1 + $0x2c4] sm:$0xf0]  ;;  %v1458_v20 = vor.u32 %v1816_v10, %v1457_v9  ;;  %v1814_v25 = vld [vmem:[%s2828_s1 + $0x234] sm:$0xf0] }
  0x21   :  { %941 = vmatpush.bf16.msra.mxu1 %v1234_v35  ;;  %v2193_v15 = vpack.c.b16 %v174_v6, %v174_v6  ;;  %v1585_v17 = vld [vmem:[%s2828_s1 + $0x340] sm:$0xf]  ;;  %v1848_v18 = vld [vmem:[%s2828_s1 + $0x344] sm:$0xf0]  ;;  %v2203_v19 = vpack.c.b16 %v175_v11, %v175_v11  ;;  %v1522_v23 = vor.u32 %v1832_v14, %v1521_v13  ;;  %v1513_v27 = vld [vmem:[%s2828_s1 + $0x2b0] sm:$0xf]  ;;  %v1450_v32 = vor.u32 %v1814_v25, %v1449_v24 }
  0x22   :  { %954 = vmatpush.bf16.msra.mxu2 %v1298_v40  ;;  %v1649_v21 = vld [vmem:[%s2828_s1 + $0x3c0] sm:$0xf]  ;;  %v1864_v22 = vld [vmem:[%s2828_s1 + $0x3c4] sm:$0xf0]  ;;  %v1586_v26 = vor.u32 %v1848_v18, %v1585_v17  ;;  %v1830_v28 = vld [vmem:[%s2828_s1 + $0x2b4] sm:$0xf0] }
  0x23   :  { %967 = vmatpush.bf16.msra.mxu3 %v1362_v44  ;;  %929 = vmatmul.bf16.vlgmr.msra.gmra.mxu0 %v2193_v15  ;;  %v1650_v29 = vor.u32 %v1864_v22, %v1649_v21  ;;  %v1577_v30 = vld [vmem:[%s2828_s1 + $0x330] sm:$0xf]  ;;  %v1846_v31 = vld [vmem:[%s2828_s1 + $0x334] sm:$0xf0]  ;;  %v1514_v35 = vor.u32 %v1830_v28, %v1513_v27  ;;  %v1812_v37 = vld [vmem:[%s2828_s1 + $0x224] sm:$0xf0] }
  0x24   :  { %973 = vmatpush.bf16.msrb.mxu0 %v1482_v36  ;;  %942 = vmatmul.bf16.vlgmr.msra.gmra.mxu1 %v2203_v19  ;;  %v1641_v33 = vld [vmem:[%s2828_s1 + $0x3b0] sm:$0xf]  ;;  %v1862_v34 = vld [vmem:[%s2828_s1 + $0x3b4] sm:$0xf0]  ;;  %v1441_v36 = vld [vmem:[%s2828_s1 + $0x220] sm:$0xf]  ;;  %v1578_v38 = vor.u32 %v1846_v31, %v1577_v30 }
  0x25   :  { %986 = vmatpush.bf16.msrb.mxu1 %v1546_v39  ;;  %955 = vmatmul.bf16.vlgmr.msra.gmra.mxu2 %v2177_v5  ;;  %v1505_v39 = vld [vmem:[%s2828_s1 + $0x2a0] sm:$0xf]  ;;  %v1828_v40 = vld [vmem:[%s2828_s1 + $0x2a4] sm:$0xf0]  ;;  %v1642_v41 = vor.u32 %v1862_v34, %v1641_v33  ;;  %v1442_v44 = vor.u32 %v1812_v37, %v1441_v36  ;;  %v1433_v48 = vld [vmem:[%s2828_s1 + $0x210] sm:$0xf] }
  0x26   :  { %999 = vmatpush.bf16.msrb.mxu2 %v1610_v43  ;;  %968 = vmatmul.bf16.vlgmr.msra.gmra.mxu3 %v2179_v7  ;;  %v1569_v42 = vld [vmem:[%s2828_s1 + $0x320] sm:$0xf]  ;;  %v1844_v43 = vld [vmem:[%s2828_s1 + $0x324] sm:$0xf0]  ;;  %v1810_v49 = vld [vmem:[%s2828_s1 + $0x214] sm:$0xf0] }
  0x27   :  { %1012 = vmatpush.bf16.msrb.mxu3 %v1674_v47  ;;  %v1633_v45 = vld [vmem:[%s2828_s1 + $0x3a0] sm:$0xf]  ;;  %v1860_v46 = vld [vmem:[%s2828_s1 + $0x3a4] sm:$0xf0]  ;;  %v1506_v47 = vor.u32 %v1828_v40, %v1505_v39  ;;  %v1497_v51 = vld [vmem:[%s2828_s1 + $0x290] sm:$0xf]  ;;  %v1434_v58 = vor.u32 %v1810_v49, %v1433_v48 }
  0x28   :  { %974 = vmatpush.bf16.msrb.mxu0 %v1474_v50  ;;  %v1570_v50 = vor.u32 %v1844_v43, %v1569_v42  ;;  %v1826_v52 = vld [vmem:[%s2828_s1 + $0x294] sm:$0xf0]  ;;  %v1634_v54 = vor.u32 %v1860_v46, %v1633_v45  ;;  %v1425_v56 = vld [vmem:[%s2828_s1 + $0x200] sm:$0xf]  ;;  %v1824_v60 = vld [vmem:[%s2828_s1 + $0x284] sm:$0xf0] }
  0x29   :  { %987 = vmatpush.bf16.msrb.mxu1 %v1538_v53  ;;  %v1561_v53 = vld [vmem:[%s2828_s1 + $0x310] sm:$0xf]  ;;  %v1842_v55 = vld [vmem:[%s2828_s1 + $0x314] sm:$0xf0]  ;;  %v1489_v59 = vld [vmem:[%s2828_s1 + $0x280] sm:$0xf]  ;;  %v1498_v63 = vor.u32 %v1826_v52, %v1497_v51 }
  0x2a   :  { %1000 = vmatpush.bf16.msrb.mxu2 %v1602_v57  ;;  %v1808_v57 = vld [vmem:[%s2828_s1 + $0x204] sm:$0xf0]  ;;  %v1625_v61 = vld [vmem:[%s2828_s1 + $0x390] sm:$0xf]  ;;  %v1886_v1 = vld [vmem:[%s2828_s1 + $0x474] sm:$0xf0]  ;;  %v1562_v3 = vor.u32 %v1842_v55, %v1561_v53 }
  0x2b   :  { %1013 = vmatpush.bf16.msrb.mxu3 %v1666_v62  ;;  %v1858_v62 = vld [vmem:[%s2828_s1 + $0x394] sm:$0xf0]  ;;  %v1737_v0 = vld [vmem:[%s2828_s1 + $0x470] sm:$0xf]  ;;  %v1757_v4 = vld [vmem:[%s2828_s1 + $0x74] sm:$0xf]  ;;  %v1426_v13 = vor.u32 %v1808_v57, %v1425_v56 }
  0x2c   :  { %975 = vmatpush.bf16.msrb.mxu0 %v1466_v2  ;;  %v16_v2 = vld [vmem:[%s2829_s0 + $0x10] sm:$0xff]  ;;  %v1227_v6 = vld [vmem:[%s2828_s1 + $0x78] sm:$0xf0]  ;;  %v1626_v9 = vor.u32 %v1858_v62, %v1625_v61  ;;  %v1553_v10 = vld [vmem:[%s2828_s1 + $0x300] sm:$0xf]  ;;  %v1738_v21 = vor.u32 %v1886_v1, %v1737_v0 }
  0x2d   :  { %988 = vmatpush.bf16.msrb.mxu1 %v1530_v8  ;;  %v17_v8 = vld [vmem:[%s2829_s0 + $0x18] sm:$0xff]  ;;  %v1840_v11 = vld [vmem:[%s2828_s1 + $0x304] sm:$0xf0]  ;;  %v178_v18 = vunpack.c.l.b16 %v16_v2  ;;  %v1789_v22 = vld [vmem:[%s2828_s1 + $0x174] sm:$0xf]  ;;  %v1230_v25 = vor.u32 %v1757_v4, %v1227_v6  ;;  %v179_v34 = vunpack.c.h.b16 %v16_v2 }
  0x2e   :  { %1001 = vmatpush.bf16.msrb.mxu2 %v1594_v12  ;;  %v1773_v12 = vld [vmem:[%s2828_s1 + $0xf4] sm:$0xf]  ;;  %v1291_v14 = vld [vmem:[%s2828_s1 + $0xf8] sm:$0xf0]  ;;  %v1856_v17 = vld [vmem:[%s2828_s1 + $0x384] sm:$0xf0]  ;;  %v180_v24 = vunpack.c.l.b16 %v17_v8 }
  0x2f   :  { %1014 = vmatpush.bf16.msrb.mxu3 %v1658_v16  ;;  %v1617_v16 = vld [vmem:[%s2828_s1 + $0x380] sm:$0xf]  ;;  %v1884_v28 = vld [vmem:[%s2828_s1 + $0x464] sm:$0xf0]  ;;  %v1294_v30 = vor.u32 %v1773_v12, %v1291_v14  ;;  %v1219_v33 = vld [vmem:[%s2828_s1 + $0x68] sm:$0xf0] }
  0x30   :  { %976 = vmatpush.bf16.msrb.mxu0 %v1458_v20  ;;  %v1490_v20 = vor.u32 %v1824_v60, %v1489_v59  ;;  %v1729_v27 = vld [vmem:[%s2828_s1 + $0x460] sm:$0xf]  ;;  %v1618_v31 = vor.u32 %v1856_v17, %v1617_v16  ;;  %v1771_v36 = vld [vmem:[%s2828_s1 + $0xe4] sm:$0xf]  ;;  %v1283_v37 = vld [vmem:[%s2828_s1 + $0xe8] sm:$0xf0]  ;;  %v2359_v40 = vpack.c.b16 %v180_v24, %v180_v24 }
  0x31   :  { %989 = vmatpush.bf16.msrb.mxu1 %v1522_v23  ;;  %v1355_v23 = vld [vmem:[%s2828_s1 + $0x178] sm:$0xf0]  ;;  %v1730_v39 = vor.u32 %v1884_v28, %v1729_v27  ;;  %v1347_v42 = vld [vmem:[%s2828_s1 + $0x168] sm:$0xf0]  ;;  %v1721_v45 = vld [vmem:[%s2828_s1 + $0x450] sm:$0xf] }
  0x32   :  { %1002 = vmatpush.bf16.msrb.mxu2 %v1586_v26  ;;  %v1554_v26 = vor.u32 %v1840_v11, %v1553_v10  ;;  %v1882_v46 = vld [vmem:[%s2828_s1 + $0x454] sm:$0xf0]  ;;  %v1753_v48 = vld [vmem:[%s2828_s1 + $0x54] sm:$0xf]  ;;  %v1211_v49 = vld [vmem:[%s2828_s1 + $0x58] sm:$0xf0] }
  0x33   :  { %1015 = vmatpush.bf16.msrb.mxu3 %v1650_v29  ;;  %v181_v29 = vunpack.c.h.b16 %v17_v8  ;;  %v1769_v52 = vld [vmem:[%s2828_s1 + $0xd4] sm:$0xf]  ;;  %v1275_v53 = vld [vmem:[%s2828_s1 + $0xd8] sm:$0xf0]  ;;  %v1214_v57 = vor.u32 %v1753_v48, %v1211_v49  ;;  %v1880_v59 = vld [vmem:[%s2828_s1 + $0x444] sm:$0xf0] }
  0x34   :  { %977 = vmatpush.bf16.msrb.mxu0 %v1450_v32  ;;  %v1755_v32 = vld [vmem:[%s2828_s1 + $0x64] sm:$0xf]  ;;  %v1785_v55 = vld [vmem:[%s2828_s1 + $0x154] sm:$0xf]  ;;  %v1339_v56 = vld [vmem:[%s2828_s1 + $0x158] sm:$0xf0]  ;;  %v1278_v60 = vor.u32 %v1769_v52, %v1275_v53 }
  0x35   :  { %990 = vmatpush.bf16.msrb.mxu1 %v1514_v35  ;;  %v1358_v35 = vor.u32 %v1789_v22, %v1355_v23  ;;  %v1222_v43 = vor.u32 %v1755_v32, %v1219_v33  ;;  %v1751_v61 = vld [vmem:[%s2828_s1 + $0x44] sm:$0xf]  ;;  %v1203_v62 = vld [vmem:[%s2828_s1 + $0x48] sm:$0xf0]  ;;  %v1705_v8 = vld [vmem:[%s2828_s1 + $0x430] sm:$0xf] }
  0x36   :  { %1003 = vmatpush.bf16.msrb.mxu2 %v1578_v38  ;;  %v2357_v38 = vpack.c.b16 %v178_v18, %v178_v18  ;;  %v1767_v0 = vld [vmem:[%s2828_s1 + $0xc4] sm:$0xf]  ;;  %v1267_v1 = vld [vmem:[%s2828_s1 + $0xc8] sm:$0xf0]  ;;  %v1206_v6 = vor.u32 %v1751_v61, %v1203_v62  ;;  %v1749_v11 = vld [vmem:[%s2828_s1 + $0x34] sm:$0xf] }
  0x37   :  { %1016 = vmatpush.bf16.msrb.mxu3 %v1642_v41  ;;  %v1787_v41 = vld [vmem:[%s2828_s1 + $0x164] sm:$0xf]  ;;  %v1331_v4 = vld [vmem:[%s2828_s1 + $0x148] sm:$0xf0]  ;;  %v1270_v10 = vor.u32 %v1767_v0, %v1267_v1  ;;  %v1195_v12 = vld [vmem:[%s2828_s1 + $0x38] sm:$0xf0] }
  0x38   :  { %978 = vmatpush.bf16.msrb.mxu0 %v1442_v44  ;;  %v2367_v44 = vpack.c.b16 %v181_v29, %v181_v29  ;;  %v1350_v51 = vor.u32 %v1787_v41, %v1347_v42  ;;  %v1765_v14 = vld [vmem:[%s2828_s1 + $0xb4] sm:$0xf]  ;;  %v1259_v16 = vld [vmem:[%s2828_s1 + $0xb8] sm:$0xf0]  ;;  %v1697_v22 = vld [vmem:[%s2828_s1 + $0x420] sm:$0xf] }
  0x39   :  { %991 = vmatpush.bf16.msrb.mxu1 %v1506_v47  ;;  %v1286_v47 = vor.u32 %v1771_v36, %v1283_v37  ;;  %v1781_v18 = vld [vmem:[%s2828_s1 + $0x134] sm:$0xf]  ;;  %v1876_v23 = vld [vmem:[%s2828_s1 + $0x424] sm:$0xf0]  ;;  %v1262_v24 = vor.u32 %v1765_v14, %v1259_v16  ;;  %v1763_v28 = vld [vmem:[%s2828_s1 + $0xa4] sm:$0xf] }
  0x3a   :  { %1004 = vmatpush.bf16.msrb.mxu2 %v1570_v50  ;;  %v2381_v50 = vpack.c.b16 %v179_v34, %v179_v34  ;;  %v1251_v29 = vld [vmem:[%s2828_s1 + $0xa8] sm:$0xf0]  ;;  %v1689_v34 = vld [vmem:[%s2828_s1 + $0x410] sm:$0xf]  ;;  %v1745_v37 = vld [vmem:[%s2828_s1 + $0x14] sm:$0xf] }
  0x3b   :  { %1017 = vmatpush.bf16.msrb.mxu3 %v1634_v54  ;;  %v1722_v54 = vor.u32 %v1882_v46, %v1721_v45  ;;  %v1315_v32 = vld [vmem:[%s2828_s1 + $0x128] sm:$0xf0]  ;;  %v1254_v36 = vor.u32 %v1763_v28, %v1251_v29  ;;  %v1761_v42 = vld [vmem:[%s2828_s1 + $0x94] sm:$0xf]  ;;  %v1681_v45 = vld [vmem:[%s2828_s1 + $0x400] sm:$0xf] }
  0x3c   :  { %979 = vmatpush.bf16.msrb.mxu0 %v1434_v58  ;;  %v1713_v58 = vld [vmem:[%s2828_s1 + $0x440] sm:$0xf]  ;;  %v1307_v48 = vld [vmem:[%s2828_s1 + $0x118] sm:$0xf0]  ;;  %v1872_v52 = vld [vmem:[%s2828_s1 + $0x404] sm:$0xf0] }
  0x3d   :  { %992 = vmatpush.bf16.msrb.mxu1 %v1498_v63  ;;  %v1342_v63 = vor.u32 %v1785_v55, %v1339_v56  ;;  %v1714_v2 = vor.u32 %v1880_v59, %v1713_v58  ;;  %v18_v49 = vld [vmem:[%s2829_s0 + $0x20] sm:$0xf]  ;;  %v1743_v53 = vld [vmem:[%s2828_s1 + $0x4] sm:$0xf]  ;;  %v1805_v56 = vld [vmem:[%s2828_s1 + $0x1f4] sm:$0xf]  ;;  %v1682_v0 = vor.u32 %v1872_v52, %v1681_v45 }
  0x3e   :  { %1005 = vmatpush.bf16.msrb.mxu2 %v1562_v3  ;;  %v1783_v3 = vld [vmem:[%s2828_s1 + $0x144] sm:$0xf]  ;;  %v1821_v58 = vld [vmem:[%s2828_s1 + $0x274] sm:$0xf]  ;;  %v182_v61 = vunpack.c.l.b16 %v18_v49  ;;  %v1611_v14 = vld [vmem:[%s2828_s1 + $0x378] sm:$0xf0] }
  0x3f   :  { %1018 = vmatpush.bf16.msrb.mxu3 %v1626_v9  ;;  %v1878_v9 = vld [vmem:[%s2828_s1 + $0x434] sm:$0xf0]  ;;  %v1759_v62 = vld [vmem:[%s2828_s1 + $0x84] sm:$0xf]  ;;  %v1837_v1 = vld [vmem:[%s2828_s1 + $0x2f4] sm:$0xf] }
  0x40   :  { %980 = vmatpush.bf16.msrb.mxu0 %v1426_v13  ;;  %v1334_v13 = vor.u32 %v1783_v3, %v1331_v4  ;;  %v1706_v17 = vor.u32 %v1878_v9, %v1705_v8  ;;  %v1299_v8 = vld [vmem:[%s2828_s1 + $0x108] sm:$0xf0]  ;;  %v1803_v9 = vld [vmem:[%s2828_s1 + $0x1e4] sm:$0xf]  ;;  %v2552_v16 = vpack.c.b16 %v182_v61, %v182_v61  ;;  %v1403_v28 = vld [vmem:[%s2828_s1 + $0x1d8] sm:$0xf0] }
  0x41   :  { %993 = vmatpush.bf16.msrb.mxu1 %v1490_v20  ;;  %v1323_v20 = vld [vmem:[%s2828_s1 + $0x138] sm:$0xf0]  ;;  %v1851_v29 = vld [vmem:[%s2828_s1 + $0x364] sm:$0xf]  ;;  %v1797_v52 = vld [vmem:[%s2828_s1 + $0x1b4] sm:$0xf] }
  0x42   :  { %1006 = vmatpush.bf16.msrb.mxu2 %v1554_v26  ;;  %v1187_v26 = vld [vmem:[%s2828_s1 + $0x28] sm:$0xf0]  ;;  %v1326_v27 = vor.u32 %v1781_v18, %v1323_v20  ;;  %v1819_v18 = vld [vmem:[%s2828_s1 + $0x264] sm:$0xf] }
  0x43   :  { %1019 = vmatpush.bf16.msrb.mxu3 %v1618_v31  ;;  %981 = vmatmul.bf16.vlgmr.msrb.gmra.mxu0 %v2357_v38  ;;  %v1779_v31 = vld [vmem:[%s2828_s1 + $0x124] sm:$0xf]  ;;  %v1475_v20 = vld [vmem:[%s2828_s1 + $0x268] sm:$0xf0] }
  0x44   :  { %1025 = vmatpush.bf16.msra.mxu0 %v1738_v21  ;;  %994 = vmatmul.bf16.vlgmr.msrb.gmra.mxu1 %v2381_v50  ;;  %v1198_v21 = vor.u32 %v1749_v11, %v1195_v12  ;;  %v1318_v41 = vor.u32 %v1779_v31, %v1315_v32  ;;  %v1411_v12 = vld [vmem:[%s2828_s1 + $0x1e8] sm:$0xf0]  ;;  %v1817_v32 = vld [vmem:[%s2828_s1 + $0x254] sm:$0xf] }
  0x45   :  { %1038 = vmatpush.bf16.msra.mxu1 %v1230_v25  ;;  %1007 = vmatmul.bf16.vlgmr.msrb.gmra.mxu2 %v2359_v40  ;;  %v1747_v25 = vld [vmem:[%s2828_s1 + $0x24] sm:$0xf] }
  0x46   :  { %1051 = vmatpush.bf16.msra.mxu2 %v1294_v30  ;;  %1020 = vmatmul.bf16.vlgmr.msrb.gmra.mxu3 %v2367_v44  ;;  %v1698_v30 = vor.u32 %v1876_v23, %v1697_v22  ;;  %v1190_v33 = vor.u32 %v1747_v25, %v1187_v26  ;;  %v1835_v22 = vld [vmem:[%s2828_s1 + $0x2e4] sm:$0xf]  ;;  %v1539_v23 = vld [vmem:[%s2828_s1 + $0x2e8] sm:$0xf0]  ;;  %v1801_v26 = vld [vmem:[%s2828_s1 + $0x1d4] sm:$0xf] }
  0x47   :  { %1064 = vmatpush.bf16.msra.mxu3 %v1358_v35  ;;  %v1874_v35 = vld [vmem:[%s2828_s1 + $0x414] sm:$0xf0]  ;;  %v1542_v31 = vor.u32 %v1835_v22, %v1539_v23  ;;  %v1809_v22 = vld [vmem:[%s2828_s1 + $0x214] sm:$0xf]  ;;  %v1435_v23 = vld [vmem:[%s2828_s1 + $0x218] sm:$0xf0] }
  0x48   :  { %1026 = vmatpush.bf16.msra.mxu0 %v1730_v39  ;;  %v1179_v39 = vld [vmem:[%s2828_s1 + $0x18] sm:$0xf0]  ;;  %v1690_v46 = vor.u32 %v1874_v35, %v1689_v34  ;;  %v1833_v34 = vld [vmem:[%s2828_s1 + $0x2d4] sm:$0xf] }
  0x49   :  { %1039 = vmatpush.bf16.msra.mxu1 %v1222_v43  ;;  %v1243_v43 = vld [vmem:[%s2828_s1 + $0x98] sm:$0xf0] }
  0x4a   :  { %1052 = vmatpush.bf16.msra.mxu2 %v1286_v47  ;;  %v1777_v47 = vld [vmem:[%s2828_s1 + $0x114] sm:$0xf]  ;;  %v1246_v55 = vor.u32 %v1761_v42, %v1243_v43  ;;  %v1531_v35 = vld [vmem:[%s2828_s1 + $0x2d8] sm:$0xf0]  ;;  %v1395_v42 = vld [vmem:[%s2828_s1 + $0x1c8] sm:$0xf0] }
  0x4b   :  { %1065 = vmatpush.bf16.msra.mxu3 %v1350_v51  ;;  %v1182_v51 = vor.u32 %v1745_v37, %v1179_v39  ;;  %v1310_v59 = vor.u32 %v1777_v47, %v1307_v48  ;;  %v1799_v39 = vld [vmem:[%s2828_s1 + $0x1c4] sm:$0xf]  ;;  %v1849_v43 = vld [vmem:[%s2828_s1 + $0x354] sm:$0xf]  ;;  %v1534_v45 = vor.u32 %v1833_v34, %v1531_v35  ;;  %v1459_v47 = vld [vmem:[%s2828_s1 + $0x248] sm:$0xf0] }
  0x4c   :  { %1027 = vmatpush.bf16.msra.mxu0 %v1722_v54  ;;  %v1171_v54 = vld [vmem:[%s2828_s1 + $0x8] sm:$0xf0]  ;;  %v1831_v48 = vld [vmem:[%s2828_s1 + $0x2c4] sm:$0xf]  ;;  %v1398_v49 = vor.u32 %v1799_v39, %v1395_v42  ;;  %v1563_v34 = vld [vmem:[%s2828_s1 + $0x318] sm:$0xf0] }
  0x4d   :  { %1040 = vmatpush.bf16.msra.mxu1 %v1214_v57  ;;  %v1419_v57 = vld [vmem:[%s2828_s1 + $0x1f8] sm:$0xf0]  ;;  %v1174_v3 = vor.u32 %v1743_v53, %v1171_v54  ;;  %v1847_v54 = vld [vmem:[%s2828_s1 + $0x344] sm:$0xf]  ;;  %v1885_v39 = vld [vmem:[%s2828_s1 + $0x474] sm:$0xf] }
  0x4e   :  { %1053 = vmatpush.bf16.msra.mxu2 %v1278_v60  ;;  %v1483_v60 = vld [vmem:[%s2828_s1 + $0x278] sm:$0xf0]  ;;  %v1422_v4 = vor.u32 %v1805_v56, %v1419_v57  ;;  %v1813_v57 = vld [vmem:[%s2828_s1 + $0x234] sm:$0xf]  ;;  %v1823_v42 = vld [vmem:[%s2828_s1 + $0x284] sm:$0xf] }
  0x4f   :  { %1066 = vmatpush.bf16.msra.mxu3 %v1342_v63  ;;  %v1235_v63 = vld [vmem:[%s2828_s1 + $0x88] sm:$0xf0] }
  0x50   :  { %1028 = vmatpush.bf16.msra.mxu0 %v1714_v2  ;;  %v1547_v2 = vld [vmem:[%s2828_s1 + $0x2f8] sm:$0xf0]  ;;  %v1238_v11 = vor.u32 %v1759_v62, %v1235_v63  ;;  %v1795_v63 = vld [vmem:[%s2828_s1 + $0x1a4] sm:$0xf] }
  0x51   :  { %1041 = vmatpush.bf16.msra.mxu1 %v1206_v6  ;;  %v1775_v6 = vld [vmem:[%s2828_s1 + $0x104] sm:$0xf] }
  0x52   :  { %1054 = vmatpush.bf16.msra.mxu2 %v1270_v10  ;;  %v1486_v10 = vor.u32 %v1821_v58, %v1483_v60  ;;  %v1451_v58 = vld [vmem:[%s2828_s1 + $0x238] sm:$0xf0] }
  0x53   :  { %1067 = vmatpush.bf16.msra.mxu3 %v1334_v13  ;;  %v1853_v13 = vld [vmem:[%s2828_s1 + $0x374] sm:$0xf]  ;;  %v1515_v60 = vld [vmem:[%s2828_s1 + $0x2b8] sm:$0xf0] }
  0x54   :  { %1029 = vmatpush.bf16.msra.mxu0 %v1706_v17  ;;  %v1550_v17 = vor.u32 %v1837_v1, %v1547_v2  ;;  %v1614_v25 = vor.u32 %v1853_v13, %v1611_v14  ;;  %v1379_v1 = vld [vmem:[%s2828_s1 + $0x1a8] sm:$0xf0]  ;;  %v1845_v2 = vld [vmem:[%s2828_s1 + $0x334] sm:$0xf] }
  0x55   :  { %1042 = vmatpush.bf16.msra.mxu1 %v1198_v21  ;;  %v1302_v21 = vor.u32 %v1775_v6, %v1299_v8  ;;  %v1811_v6 = vld [vmem:[%s2828_s1 + $0x224] sm:$0xf]  ;;  %v1443_v8 = vld [vmem:[%s2828_s1 + $0x228] sm:$0xf0]  ;;  %v1793_v13 = vld [vmem:[%s2828_s1 + $0x194] sm:$0xf] }
  0x56   :  { %1055 = vmatpush.bf16.msra.mxu2 %v1262_v24  ;;  %v1414_v24 = vor.u32 %v1803_v9, %v1411_v12  ;;  %v1827_v9 = vld [vmem:[%s2828_s1 + $0x2a4] sm:$0xf]  ;;  %v1446_v14 = vor.u32 %v1811_v6, %v1443_v8  ;;  %v1707_v6 = vld [vmem:[%s2828_s1 + $0x438] sm:$0xf0] }
  0x57   :  { %1068 = vmatpush.bf16.msra.mxu3 %v1326_v27  ;;  %v1478_v27 = vor.u32 %v1819_v18, %v1475_v20  ;;  %v1843_v18 = vld [vmem:[%s2828_s1 + $0x324] sm:$0xf]  ;;  %v1571_v20 = vld [vmem:[%s2828_s1 + $0x328] sm:$0xf0] }
  0x58   :  { %1030 = vmatpush.bf16.msra.mxu0 %v1698_v30  ;;  %v1603_v30 = vld [vmem:[%s2828_s1 + $0x368] sm:$0xf0] }
  0x59   :  { %1043 = vmatpush.bf16.msra.mxu1 %v1190_v33  ;;  %v1467_v33 = vld [vmem:[%s2828_s1 + $0x258] sm:$0xf0]  ;;  %v1606_v37 = vor.u32 %v1851_v29, %v1603_v30  ;;  %v1363_v29 = vld [vmem:[%s2828_s1 + $0x188] sm:$0xf0]  ;;  %v1807_v30 = vld [vmem:[%s2828_s1 + $0x204] sm:$0xf] }
  0x5a   :  { %1056 = vmatpush.bf16.msra.mxu2 %v1254_v36  ;;  %v1406_v36 = vor.u32 %v1801_v26, %v1403_v28  ;;  %v1791_v28 = vld [vmem:[%s2828_s1 + $0x184] sm:$0xf] }
  0x5b   :  { %1069 = vmatpush.bf16.msra.mxu3 %v1318_v41  ;;  %v1470_v41 = vor.u32 %v1817_v32, %v1467_v33  ;;  %v1427_v32 = vld [vmem:[%s2828_s1 + $0x208] sm:$0xf0]  ;;  %v1841_v33 = vld [vmem:[%s2828_s1 + $0x314] sm:$0xf] }
  0x5c   :  { %1031 = vmatpush.bf16.msra.mxu0 %v1690_v46  ;;  %v1815_v46 = vld [vmem:[%s2828_s1 + $0x244] sm:$0xf] }
  0x5d   :  { %1044 = vmatpush.bf16.msra.mxu1 %v1182_v51  ;;  %v1462_v53 = vor.u32 %v1815_v46, %v1459_v47  ;;  %v1430_v46 = vor.u32 %v1807_v30, %v1427_v32 }
  0x5e   :  { %1057 = vmatpush.bf16.msra.mxu2 %v1246_v55  ;;  %v1587_v55 = vld [vmem:[%s2828_s1 + $0x348] sm:$0xf0] }
  0x5f   :  { %1070 = vmatpush.bf16.msra.mxu3 %v1310_v59  ;;  %v1829_v59 = vld [vmem:[%s2828_s1 + $0x2b4] sm:$0xf]  ;;  %v1590_v62 = vor.u32 %v1847_v54, %v1587_v55  ;;  %v1731_v54 = vld [vmem:[%s2828_s1 + $0x468] sm:$0xf0] }
  0x60   :  { %1032 = vmatpush.bf16.msra.mxu0 %v1682_v0  ;;  %v1454_v0 = vor.u32 %v1813_v57, %v1451_v58  ;;  %v1865_v58 = vld [vmem:[%s2828_s1 + $0x3d4] sm:$0xf] }
  0x61   :  { %1045 = vmatpush.bf16.msra.mxu1 %v1174_v3  ;;  %v1579_v3 = vld [vmem:[%s2828_s1 + $0x338] sm:$0xf0] }
  0x62   :  { %1058 = vmatpush.bf16.msra.mxu2 %v1238_v11  ;;  %v1382_v11 = vor.u32 %v1795_v63, %v1379_v1  ;;  %v1582_v12 = vor.u32 %v1845_v2, %v1579_v3  ;;  %v1861_v3 = vld [vmem:[%s2828_s1 + $0x3b4] sm:$0xf] }
  0x63   :  { %1033 = vmatmul.bf16.vlgmr.msra.gmra.mxu0 %v2552_v16  ;;  %1071 = vmatpush.bf16.msra.mxu3 %v1302_v21 }
  0x64   :  { %1077 = vmatpush.bf16.msrb.mxu0 %v1422_v4  ;;  %1046 = vmatmul.bf16.vlgmr.msra.gmra.mxu1 %v2193_v15  ;;  %v1595_v15 = vld [vmem:[%s2828_s1 + $0x358] sm:$0xf0]  ;;  %v1518_v4 = vor.u32 %v1829_v59, %v1515_v60  ;;  %v1881_v60 = vld [vmem:[%s2828_s1 + $0x454] sm:$0xf] }
  0x65   :  { %1090 = vmatpush.bf16.msrb.mxu1 %v1486_v10  ;;  %1059 = vmatmul.bf16.vlgmr.msra.gmra.mxu2 %v2203_v19  ;;  %v1523_v19 = vld [vmem:[%s2828_s1 + $0x2c8] sm:$0xf0]  ;;  %v1598_v51 = vor.u32 %v1849_v43, %v1595_v15  ;;  %v1366_v15 = vor.u32 %v1791_v28, %v1363_v29  ;;  %v1659_v59 = vld [vmem:[%s2828_s1 + $0x3d8] sm:$0xf0] }
  0x66   :  { %1103 = vmatpush.bf16.msrb.mxu2 %v1550_v17  ;;  %1072 = vmatmul.bf16.vlgmr.msra.gmra.mxu3 %v2177_v5  ;;  %v1387_v5 = vld [vmem:[%s2828_s1 + $0x1b8] sm:$0xf0]  ;;  %v1526_v56 = vor.u32 %v1831_v48, %v1523_v19  ;;  %v1507_v10 = vld [vmem:[%s2828_s1 + $0x2a8] sm:$0xf0]  ;;  %v1839_v48 = vld [vmem:[%s2828_s1 + $0x304] sm:$0xf] }
  0x67   :  { %1116 = vmatpush.bf16.msrb.mxu3 %v1614_v25  ;;  %v1390_v61 = vor.u32 %v1797_v52, %v1387_v5  ;;  %v1371_v17 = vld [vmem:[%s2828_s1 + $0x198] sm:$0xf0]  ;;  %v1510_v21 = vor.u32 %v1827_v9, %v1507_v10  ;;  %v1491_v43 = vld [vmem:[%s2828_s1 + $0x288] sm:$0xf0]  ;;  %v1867_v52 = vld [vmem:[%s2828_s1 + $0x3e4] sm:$0xf] }
  0x68   :  { %1078 = vmatpush.bf16.msrb.mxu0 %v1414_v24  ;;  %v1825_v24 = vld [vmem:[%s2828_s1 + $0x294] sm:$0xf]  ;;  %v1499_v25 = vld [vmem:[%s2828_s1 + $0x298] sm:$0xf0]  ;;  %v1374_v26 = vor.u32 %v1793_v13, %v1371_v17  ;;  %v1555_v19 = vld [vmem:[%s2828_s1 + $0x308] sm:$0xf0] }
  0x69   :  { %1091 = vmatpush.bf16.msrb.mxu1 %v1478_v27  ;;  %v1574_v27 = vor.u32 %v1843_v18, %v1571_v20  ;;  %v1502_v35 = vor.u32 %v1825_v24, %v1499_v25  ;;  %v1883_v5 = vld [vmem:[%s2828_s1 + $0x464] sm:$0xf]  ;;  %v1558_v55 = vor.u32 %v1839_v48, %v1555_v19  ;;  %v1699_v13 = vld [vmem:[%s2828_s1 + $0x428] sm:$0xf0]  ;;  %v1857_v18 = vld [vmem:[%s2828_s1 + $0x394] sm:$0xf] }
  0x6a   :  { %1104 = vmatpush.bf16.msrb.mxu2 %v1542_v31  ;;  %v1438_v31 = vor.u32 %v1809_v22, %v1435_v23  ;;  %v1734_v57 = vor.u32 %v1883_v5, %v1731_v54  ;;  %v1859_v10 = vld [vmem:[%s2828_s1 + $0x3a4] sm:$0xf]  ;;  %v1627_v20 = vld [vmem:[%s2828_s1 + $0x398] sm:$0xf0]  ;;  %v1683_v28 = vld [vmem:[%s2828_s1 + $0x408] sm:$0xf0] }
  0x6b   :  { %1117 = vmatpush.bf16.msrb.mxu3 %v1606_v37  ;;  %v1675_v37 = vld [vmem:[%s2828_s1 + $0x3f8] sm:$0xf0]  ;;  %v1630_v23 = vor.u32 %v1857_v18, %v1627_v20  ;;  %v1855_v25 = vld [vmem:[%s2828_s1 + $0x384] sm:$0xf] }
  0x6c   :  { %1079 = vmatpush.bf16.msrb.mxu0 %v1406_v36  ;;  %v1869_v36 = vld [vmem:[%s2828_s1 + $0x3f4] sm:$0xf]  ;;  %v1691_v22 = vld [vmem:[%s2828_s1 + $0x418] sm:$0xf0] }
  0x6d   :  { %1092 = vmatpush.bf16.msrb.mxu1 %v1470_v41  ;;  %v1739_v41 = vld [vmem:[%s2828_s1 + $0x478] sm:$0xf0]  ;;  %v1678_v47 = vor.u32 %v1869_v36, %v1675_v37 }
  0x6e   :  { %1105 = vmatpush.bf16.msrb.mxu2 %v1534_v45  ;;  %v1566_v45 = vor.u32 %v1841_v33, %v1563_v34 }
  0x6f   :  { %1118 = vmatpush.bf16.msrb.mxu3 %v1598_v51  ;;  %v1494_v51 = vor.u32 %v1823_v42, %v1491_v43 }
  0x70   :  { %1080 = vmatpush.bf16.msrb.mxu0 %v1398_v49  ;;  %v1742_v49 = vor.u32 %v1885_v39, %v1739_v41 }
  0x71   :  { %1093 = vmatpush.bf16.msrb.mxu1 %v1462_v53  ;;  %v1667_v53 = vld [vmem:[%s2828_s1 + $0x3e8] sm:$0xf0] }
  0x72   :  { %1106 = vmatpush.bf16.msrb.mxu2 %v1526_v56  ;;  %v1670_v56 = vor.u32 %v1867_v52, %v1667_v53 }
  0x73   :  { %1119 = vmatpush.bf16.msrb.mxu3 %v1590_v62  ;;  %v1662_v62 = vor.u32 %v1865_v58, %v1659_v59 }
  0x74   :  { %1081 = vmatpush.bf16.msrb.mxu0 %v1390_v61  ;;  %v1723_v61 = vld [vmem:[%s2828_s1 + $0x458] sm:$0xf0] }
  0x75   :  { %1094 = vmatpush.bf16.msrb.mxu1 %v1454_v0  ;;  %v1726_v63 = vor.u32 %v1881_v60, %v1723_v61  ;;  %v1651_v0 = vld [vmem:[%s2828_s1 + $0x3c8] sm:$0xf0] }
  0x76   :  { %1107 = vmatpush.bf16.msrb.mxu2 %v1518_v4  ;;  %v1877_v4 = vld [vmem:[%s2828_s1 + $0x434] sm:$0xf] }
  0x77   :  { %1120 = vmatpush.bf16.msrb.mxu3 %v1582_v12  ;;  %v1710_v9 = vor.u32 %v1877_v4, %v1707_v6  ;;  %v1875_v12 = vld [vmem:[%s2828_s1 + $0x424] sm:$0xf] }
  0x78   :  { %1082 = vmatpush.bf16.msrb.mxu0 %v1382_v11  ;;  %v1635_v11 = vld [vmem:[%s2828_s1 + $0x3a8] sm:$0xf0]  ;;  %v1702_v17 = vor.u32 %v1875_v12, %v1699_v13 }
  0x79   :  { %1095 = vmatpush.bf16.msrb.mxu1 %v1446_v14  ;;  %v1638_v14 = vor.u32 %v1859_v10, %v1635_v11 }
  0x7a   :  { %1108 = vmatpush.bf16.msrb.mxu2 %v1510_v21  ;;  %v1873_v21 = vld [vmem:[%s2828_s1 + $0x414] sm:$0xf] }
  0x7b   :  { %1121 = vmatpush.bf16.msrb.mxu3 %v1574_v27  ;;  %v1694_v24 = vor.u32 %v1873_v21, %v1691_v22  ;;  %v1871_v27 = vld [vmem:[%s2828_s1 + $0x404] sm:$0xf] }
  0x7c   :  { %1083 = vmatpush.bf16.msrb.mxu0 %v1374_v26  ;;  %v1619_v26 = vld [vmem:[%s2828_s1 + $0x388] sm:$0xf0]  ;;  %v1686_v30 = vor.u32 %v1871_v27, %v1683_v28 }
  0x7d   :  { %1096 = vmatpush.bf16.msrb.mxu1 %v1438_v31  ;;  %v1622_v29 = vor.u32 %v1855_v25, %v1619_v26  ;;  %v163_v31 = vld [vmem:[%s2830_s2] sm:$0x3] }
  0x7e   :  { %1109 = vmatpush.bf16.msrb.mxu2 %v1502_v35  ;;  %v165_v32 = vperm.slane %v163_v31, 0 }
  0x7f   :  { %1122 = vmatpush.bf16.msrb.mxu3 %v1566_v45 }
  0x80   :  { %1084 = vmatpush.bf16.msrb.mxu0 %v1366_v15 }
  0x81   :  { %1097 = vmatpush.bf16.msrb.mxu1 %v1430_v46 }
  0x82   :  { %1110 = vmatpush.bf16.msrb.mxu2 %v1494_v51 }
  0x83   :  { %1085 = vmatmul.bf16.vlgmr.msrb.gmra.mxu0 %v2179_v7  ;;  %1123 = vmatpush.bf16.msrb.mxu3 %v1558_v55  ;;  %v1863_v7 = vld [vmem:[%s2828_s1 + $0x3c4] sm:$0xf] }
  0x84   :  { %1129 = vmatpush.bf16.msra.mxu0 %v1678_v47  ;;  %1098 = vmatmul.bf16.vlgmr.msrb.gmra.mxu1 %v2357_v38  ;;  %v1879_v38 = vld [vmem:[%s2828_s1 + $0x444] sm:$0xf]  ;;  %v1654_v1 = vor.u32 %v1863_v7, %v1651_v0  ;;  %v166_v7 = vperm.slane %v163_v31, 1 }
  0x85   :  { %1142 = vmatpush.bf16.msra.mxu1 %v1742_v49  ;;  %1111 = vmatmul.bf16.vlgmr.msrb.gmra.mxu2 %v2381_v50  ;;  %v1715_v50 = vld [vmem:[%s2828_s1 + $0x448] sm:$0xf0] }
  0x86   :  { %1124 = vmatmul.bf16.vlgmr.msrb.gmra.mxu3 %v2359_v40  ;;  %v1718_v2 = vor.u32 %v1879_v38, %v1715_v50  ;;  %v1643_v40 = vld [vmem:[%s2828_s1 + $0x3b8] sm:$0xf0] }
  0x87   :  { %v1646_v8 = vor.u32 %v1861_v3, %v1643_v40 }
  0x88   :  { %1130 = vmatpush.bf16.msra.mxu0 %v1670_v56 }
  0x89   :  { %1143 = vmatpush.bf16.msra.mxu1 %v1734_v57 }
  0x8c   :  { %1131 = vmatpush.bf16.msra.mxu0 %v1662_v62 }
  0x8d   :  { %1144 = vmatpush.bf16.msra.mxu1 %v1726_v63 }
  0x90   :  { %1132 = vmatpush.bf16.msra.mxu0 %v1654_v1 }
  0x91   :  { %1145 = vmatpush.bf16.msra.mxu1 %v1718_v2 }
  0x94   :  { %1133 = vmatpush.bf16.msra.mxu0 %v1646_v8 }
  0x95   :  { %1146 = vmatpush.bf16.msra.mxu1 %v1710_v9 }
  0x98   :  { %1134 = vmatpush.bf16.msra.mxu0 %v1638_v14 }
  0x99   :  { %1147 = vmatpush.bf16.msra.mxu1 %v1702_v17 }
  0x9c   :  { %1135 = vmatpush.bf16.msra.mxu0 %v1630_v23 }
  0x9d   :  { %1148 = vmatpush.bf16.msra.mxu1 %v1694_v24 }
  0xa0   :  { %1136 = vmatpush.bf16.msra.mxu0 %v1622_v29  ;;  %v930_v33 = vpop.f32.mrf.mxu0 }
  0xa1   :  { %1149 = vmatpush.bf16.msra.mxu1 %v1686_v30  ;;  %v931_v34 = vadd.f32 %v930_v33, %v165_v32  ;;  %v943_v35 = vpop.f32.mrf.mxu1 }
  0xa3   :  { %1137 = vmatmul.bf16.vlgmr.msra.gmra.mxu0 %v2367_v44  ;;  %v944_v36 = vadd.f32 %v943_v35, %v931_v34 }
  0xa4   :  { %1150 = vmatmul.bf16.vlgmr.msra.gmra.mxu1 %v2552_v16 }
  0xa8   :  { %v956_v39 = vpop.f32.mrf.mxu2  ;;  %v932_v43 = vpop.f32.mrf.mxu0 }
  0xa9   :  { %v969_v37 = vpop.f32.mrf.mxu3  ;;  %v957_v41 = vadd.f32 %v956_v39, %v944_v36  ;;  %v945_v15 = vpop.f32.mrf.mxu1 }
  0xab   :  { %v970_v42 = vadd.f32 %v969_v37, %v957_v41 }
  0xb0   :  { %v958_v46 = vpop.f32.mrf.mxu2 }
  0xb1   :  { %v971_v45 = vpop.f32.mrf.mxu3 }
  0xc0   :  { %v982_v44 = vpop.f32.mrf.mxu0 }
  0xc1   :  { %v983_v47 = vadd.f32 %v982_v44, %v970_v42  ;;  %v995_v16 = vpop.f32.mrf.mxu1 }
  0xc3   :  { %v996_v48 = vadd.f32 %v995_v16, %v983_v47 }
  0xc8   :  { %v1008_v19 = vpop.f32.mrf.mxu2  ;;  %v984_v52 = vpop.f32.mrf.mxu0 }
  0xc9   :  { %v1009_v49 = vadd.f32 %v1008_v19, %v996_v48  ;;  %v1021_v51 = vpop.f32.mrf.mxu3  ;;  %v997_v5 = vpop.f32.mrf.mxu1 }
  0xcb   :  { %v1022_v53 = vadd.f32 %v1021_v51, %v1009_v49 }
  0xd0   :  { %v1010_v54 = vpop.f32.mrf.mxu2 }
  0xd1   :  { %v1023_v55 = vpop.f32.mrf.mxu3 }
  0xe0   :  { %v1034_v56 = vpop.f32.mrf.mxu0 }
  0xe1   :  { %v1047_v57 = vpop.f32.mrf.mxu1  ;;  %v1035_v13 = vadd.f32 %v1034_v56, %v1022_v53 }
  0xe2   :  { %v1048_v50 = vadd.f32 %v1047_v57, %v166_v7 }
  0xe3   :  { %v1157_v21 = vmul.f32 0.2, %v1035_v13  ;;  %vm1155_vm0 = vcmp.ge.f32.partialorder %v1035_v13, 0.0 }
  0xe5   :  { %v1159_v24 = vsel %vm1155_vm0, %v1035_v13, %v1157_v21 }
  0xe8   :  { %v1036_v58 = vpop.f32.mrf.mxu0  ;;  %v1060_v59 = vpop.f32.mrf.mxu2 }
  0xe9   :  { %v1049_v60 = vpop.f32.mrf.mxu1  ;;  %v1073_v61 = vpop.f32.mrf.mxu3  ;;  %v1061_v1 = vadd.f32 %v1060_v59, %v1048_v50 }
  0xeb   :  { %v1074_v6 = vadd.f32 %v1073_v61, %v1061_v1 }
  0xf0   :  { %v1062_v62 = vpop.f32.mrf.mxu2 }
  0xf1   :  { %v1075_v63 = vpop.f32.mrf.mxu3 }
 0x100   :  { %v1086_v0 = vpop.f32.mrf.mxu0 }
 0x101   :  { %v1099_v38 = vpop.f32.mrf.mxu1  ;;  %v1087_v8 = vadd.f32 %v1086_v0, %v1074_v6 }
 0x103   :  { %v1100_v11 = vadd.f32 %v1099_v38, %v1087_v8 }
 0x108   :  { %v1112_v2 = vpop.f32.mrf.mxu2  ;;  %v1088_v3 = vpop.f32.mrf.mxu0 }
 0x109   :  { %v1101_v40 = vpop.f32.mrf.mxu1  ;;  %v1125_v4 = vpop.f32.mrf.mxu3  ;;  %v1113_v12 = vadd.f32 %v1112_v2, %v1100_v11 }
 0x10b   :  { %v1126_v14 = vadd.f32 %v1125_v4, %v1113_v12 }
 0x110   :  { %v1114_v9 = vpop.f32.mrf.mxu2 }
 0x111   :  { %v1127_v10 = vpop.f32.mrf.mxu3 }
 0x120   :  { %v1138_v17 = vpop.f32.mrf.mxu0 }
 0x121   :  { %v1139_v18 = vadd.f32 %v1138_v17, %v1126_v14  ;;  %v1151_v20 = vpop.f32.mrf.mxu1 }
 0x123   :  { %v1152_v22 = vadd.f32 %v1151_v20, %v1139_v18 }
 0x125   :  { %vm1156_vm1 = vcmp.ge.f32.partialorder %v1152_v22, 0.0  ;;  %v1158_v23 = vmul.f32 0.2, %v1152_v22 }
 0x127   :  { %v1160_v25 = vsel %vm1156_vm1, %v1152_v22, %v1158_v23 }
 0x128   :  { %v1161_v26 = vpack.c.bf16 %v1160_v25, %v1159_v24  ;;  %v1140_v27 = vpop.f32.mrf.mxu0 }
 0x129   :  { %v1153_v28 = vpop.f32.mrf.mxu1 }
 0x12a   :  { %1162 = vst [vmem:[%s2831_s3] sm:$0xff] %v1161_v26 }

// kernel: autoencoder_fwd.24
= control target key start
LH: loop header
LB: loop body
LE: loop exit
PB: predicated region body
PF: predicated region fallthrough
CT: control target
= control target key end

     0   :  { %vm276_vm0 = vcmask 1040384   ;;  %vm280_vm1 = vcmask 1042434   ;;  %vm284_vm2 = vcmask 1041408   ;;  %s673_s1 = inlined_call_operand.vmem [shape: bf16[128,512], index: 1, kind: input, shape index: {}]   ;;  %s674_s0 = inlined_call_operand.vmem [shape: bf16[2,128], index: 0, kind: input, shape index: {}]   ;;  %s675_s2 = inlined_call_operand.vmem [shape: f32[1,512], index: 2, kind: input, shape index: {}]   ;;  %s676_s3 = inlined_call_operand.vmem [shape: bf16[2,512], index: 3, kind: output, shape index: {}]  }
   0x1   :  { %v406_v0 = vld [vmem:[%s673_s1 + $0xe0] sm:$0xf]  ;;  %v450_v1 = vld [vmem:[%s673_s1 + $0xec] sm:$0xf0]  ;;  %v448_v2 = vld [vmem:[%s673_s1 + $0xe4] sm:$0xf] }
   0x2   :  { %v407_v3 = vor.u32 %v450_v1, %v406_v0  ;;  %v408_v4 = vld [vmem:[%s673_s1 + $0xf0] sm:$0xf0]  ;;  %v414_v5 = vld [vmem:[%s673_s1 + $0xe8] sm:$0xf]  ;;  %v451_v6 = vld [vmem:[%s673_s1 + $0xf4] sm:$0xf0] }
   0x3   :  { %v411_v7 = vor.u32 %v448_v2, %v408_v4  ;;  %v415_v8 = vor.u32 %v451_v6, %v414_v5  ;;  %v449_v9 = vld [vmem:[%s673_s1 + $0xec] sm:$0xf]  ;;  %v416_v10 = vld [vmem:[%s673_s1 + $0xf8] sm:$0xf0]  ;;  %v390_v11 = vld [vmem:[%s673_s1 + $0xc0] sm:$0xf] }
   0x4   :  { %217 = vmatpush.bf16.msra.mxu0 %v407_v3  ;;  %v419_v12 = vor.u32 %v449_v9, %v416_v10  ;;  %v446_v13 = vld [vmem:[%s673_s1 + $0xcc] sm:$0xf0]  ;;  %v444_v14 = vld [vmem:[%s673_s1 + $0xc4] sm:$0xf]  ;;  %v392_v15 = vld [vmem:[%s673_s1 + $0xd0] sm:$0xf0] }
   0x5   :  { %230 = vmatpush.bf16.msra.mxu1 %v411_v7  ;;  %243 = vmatpush.bf16.msra.mxu2 %v415_v8  ;;  %v391_v16 = vor.u32 %v446_v13, %v390_v11  ;;  %v395_v17 = vor.u32 %v444_v14, %v392_v15  ;;  %v398_v18 = vld [vmem:[%s673_s1 + $0xc8] sm:$0xf]  ;;  %v447_v19 = vld [vmem:[%s673_s1 + $0xd4] sm:$0xf0]  ;;  %v445_v20 = vld [vmem:[%s673_s1 + $0xcc] sm:$0xf] }
   0x6   :  { %256 = vmatpush.bf16.msra.mxu3 %v419_v12  ;;  %v399_v21 = vor.u32 %v447_v19, %v398_v18  ;;  %v400_v22 = vld [vmem:[%s673_s1 + $0xd8] sm:$0xf0]  ;;  %v374_v23 = vld [vmem:[%s673_s1 + $0xa0] sm:$0xf]  ;;  %v442_v24 = vld [vmem:[%s673_s1 + $0xac] sm:$0xf0] }
   0x7   :  { %v403_v25 = vor.u32 %v445_v20, %v400_v22  ;;  %v440_v26 = vld [vmem:[%s673_s1 + $0xa4] sm:$0xf]  ;;  %v376_v27 = vld [vmem:[%s673_s1 + $0xb0] sm:$0xf0]  ;;  %v382_v28 = vld [vmem:[%s673_s1 + $0xa8] sm:$0xf]  ;;  %v375_v29 = vor.u32 %v442_v24, %v374_v23 }
   0x8   :  { %218 = vmatpush.bf16.msra.mxu0 %v391_v16  ;;  %v443_v30 = vld [vmem:[%s673_s1 + $0xb4] sm:$0xf0]  ;;  %v441_v31 = vld [vmem:[%s673_s1 + $0xac] sm:$0xf]  ;;  %v384_v32 = vld [vmem:[%s673_s1 + $0xb8] sm:$0xf0]  ;;  %v379_v33 = vor.u32 %v440_v26, %v376_v27 }
   0x9   :  { %231 = vmatpush.bf16.msra.mxu1 %v395_v17  ;;  %244 = vmatpush.bf16.msra.mxu2 %v399_v21  ;;  %v383_v34 = vor.u32 %v443_v30, %v382_v28  ;;  %v358_v35 = vld [vmem:[%s673_s1 + $0x80] sm:$0xf]  ;;  %v438_v36 = vld [vmem:[%s673_s1 + $0x8c] sm:$0xf0]  ;;  %v436_v37 = vld [vmem:[%s673_s1 + $0x84] sm:$0xf]  ;;  %v387_v38 = vor.u32 %v441_v31, %v384_v32 }
   0xa   :  { %257 = vmatpush.bf16.msra.mxu3 %v403_v25  ;;  %v360_v39 = vld [vmem:[%s673_s1 + $0x90] sm:$0xf0]  ;;  %v366_v40 = vld [vmem:[%s673_s1 + $0x88] sm:$0xf]  ;;  %v439_v41 = vld [vmem:[%s673_s1 + $0x94] sm:$0xf0]  ;;  %v359_v44 = vor.u32 %v438_v36, %v358_v35 }
   0xb   :  { %v437_v42 = vld [vmem:[%s673_s1 + $0x8c] sm:$0xf]  ;;  %v368_v43 = vld [vmem:[%s673_s1 + $0x98] sm:$0xf0]  ;;  %v363_v45 = vor.u32 %v436_v37, %v360_v39  ;;  %v367_v46 = vor.u32 %v439_v41, %v366_v40  ;;  %v342_v47 = vld [vmem:[%s673_s1 + $0x60] sm:$0xf] }
   0xc   :  { %219 = vmatpush.bf16.msra.mxu0 %v375_v29  ;;  %v434_v48 = vld [vmem:[%s673_s1 + $0x6c] sm:$0xf0]  ;;  %v432_v49 = vld [vmem:[%s673_s1 + $0x64] sm:$0xf]  ;;  %v371_v50 = vor.u32 %v437_v42, %v368_v43  ;;  %v344_v51 = vld [vmem:[%s673_s1 + $0x70] sm:$0xf0] }
   0xd   :  { %232 = vmatpush.bf16.msra.mxu1 %v379_v33  ;;  %245 = vmatpush.bf16.msra.mxu2 %v383_v34  ;;  %v350_v52 = vld [vmem:[%s673_s1 + $0x68] sm:$0xf]  ;;  %v435_v53 = vld [vmem:[%s673_s1 + $0x74] sm:$0xf0]  ;;  %v433_v54 = vld [vmem:[%s673_s1 + $0x6c] sm:$0xf]  ;;  %v343_v56 = vor.u32 %v434_v48, %v342_v47  ;;  %v347_v57 = vor.u32 %v432_v49, %v344_v51 }
   0xe   :  { %258 = vmatpush.bf16.msra.mxu3 %v387_v38  ;;  %v352_v55 = vld [vmem:[%s673_s1 + $0x78] sm:$0xf0]  ;;  %v351_v58 = vor.u32 %v435_v53, %v350_v52  ;;  %v326_v59 = vld [vmem:[%s673_s1 + $0x40] sm:$0xf]  ;;  %v430_v60 = vld [vmem:[%s673_s1 + $0x4c] sm:$0xf0] }
   0xf   :  { %v428_v61 = vld [vmem:[%s673_s1 + $0x44] sm:$0xf]  ;;  %v355_v62 = vor.u32 %v433_v54, %v352_v55  ;;  %v328_v63 = vld [vmem:[%s673_s1 + $0x50] sm:$0xf0]  ;;  %v334_v0 = vld [vmem:[%s673_s1 + $0x48] sm:$0xf]  ;;  %v327_v4 = vor.u32 %v430_v60, %v326_v59 }
  0x10   :  { %220 = vmatpush.bf16.msra.mxu0 %v359_v44  ;;  %v431_v1 = vld [vmem:[%s673_s1 + $0x54] sm:$0xf0]  ;;  %v429_v2 = vld [vmem:[%s673_s1 + $0x4c] sm:$0xf]  ;;  %v336_v3 = vld [vmem:[%s673_s1 + $0x58] sm:$0xf0]  ;;  %v331_v5 = vor.u32 %v428_v61, %v328_v63 }
  0x11   :  { %233 = vmatpush.bf16.msra.mxu1 %v363_v45  ;;  %246 = vmatpush.bf16.msra.mxu2 %v367_v46  ;;  %v335_v6 = vor.u32 %v431_v1, %v334_v0  ;;  %v310_v7 = vld [vmem:[%s673_s1 + $0x20] sm:$0xf]  ;;  %v426_v8 = vld [vmem:[%s673_s1 + $0x2c] sm:$0xf0]  ;;  %v424_v9 = vld [vmem:[%s673_s1 + $0x24] sm:$0xf]  ;;  %v339_v10 = vor.u32 %v429_v2, %v336_v3 }
  0x12   :  { %259 = vmatpush.bf16.msra.mxu3 %v371_v50  ;;  %v312_v11 = vld [vmem:[%s673_s1 + $0x30] sm:$0xf0]  ;;  %v318_v12 = vld [vmem:[%s673_s1 + $0x28] sm:$0xf]  ;;  %v427_v13 = vld [vmem:[%s673_s1 + $0x34] sm:$0xf0]  ;;  %v311_v16 = vor.u32 %v426_v8, %v310_v7 }
  0x13   :  { %v425_v14 = vld [vmem:[%s673_s1 + $0x2c] sm:$0xf]  ;;  %v320_v15 = vld [vmem:[%s673_s1 + $0x38] sm:$0xf0]  ;;  %v315_v17 = vor.u32 %v424_v9, %v312_v11  ;;  %v319_v18 = vor.u32 %v427_v13, %v318_v12  ;;  %v294_v19 = vld [vmem:[%s673_s1] sm:$0xf] }
  0x14   :  { %221 = vmatpush.bf16.msra.mxu0 %v343_v56  ;;  %v422_v20 = vld [vmem:[%s673_s1 + $0xc] sm:$0xf0]  ;;  %v420_v21 = vld [vmem:[%s673_s1 + $0x4] sm:$0xf]  ;;  %v323_v22 = vor.u32 %v425_v14, %v320_v15  ;;  %v296_v23 = vld [vmem:[%s673_s1 + $0x10] sm:$0xf0] }
  0x15   :  { %234 = vmatpush.bf16.msra.mxu1 %v347_v57  ;;  %247 = vmatpush.bf16.msra.mxu2 %v351_v58  ;;  %v302_v24 = vld [vmem:[%s673_s1 + $0x8] sm:$0xf]  ;;  %v423_v25 = vld [vmem:[%s673_s1 + $0x14] sm:$0xf0]  ;;  %v421_v26 = vld [vmem:[%s673_s1 + $0xc] sm:$0xf]  ;;  %v295_v28 = vor.u32 %v422_v20, %v294_v19  ;;  %v299_v29 = vor.u32 %v420_v21, %v296_v23 }
  0x16   :  { %260 = vmatpush.bf16.msra.mxu3 %v355_v62  ;;  %v304_v27 = vld [vmem:[%s673_s1 + $0x18] sm:$0xf0]  ;;  %v303_v30 = vor.u32 %v423_v25, %v302_v24  ;;  %v14_v32 = vld [vmem:[%s674_s0] sm:$0x1] }
  0x17   :  { %v307_v31 = vor.u32 %v421_v26, %v304_v27  ;;  %v47_v33 = vld [vmem:[%s675_s2] sm:$0xf] }
  0x18   :  { %222 = vmatpush.bf16.msra.mxu0 %v327_v4  ;;  %v49_v34 = vperm.slane %v47_v33, 0  ;;  %v50_v35 = vperm.slane %v47_v33, 1  ;;  %v51_v40 = vperm.slane %v47_v33, 2  ;;  %v52_v41 = vperm.slane %v47_v33, 3 }
  0x19   :  { %235 = vmatpush.bf16.msra.mxu1 %v331_v5  ;;  %248 = vmatpush.bf16.msra.mxu2 %v335_v6 }
  0x1a   :  { %261 = vmatpush.bf16.msra.mxu3 %v339_v10 }
  0x1c   :  { %223 = vmatpush.bf16.msra.mxu0 %v311_v16 }
  0x1d   :  { %236 = vmatpush.bf16.msra.mxu1 %v315_v17  ;;  %249 = vmatpush.bf16.msra.mxu2 %v319_v18 }
  0x1e   :  { %262 = vmatpush.bf16.msra.mxu3 %v323_v22 }
  0x20   :  { %224 = vmatpush.bf16.msra.mxu0 %v295_v28 }
  0x21   :  { %237 = vmatpush.bf16.msra.mxu1 %v299_v29  ;;  %250 = vmatpush.bf16.msra.mxu2 %v303_v30 }
  0x22   :  { %263 = vmatpush.bf16.msra.mxu3 %v307_v31 }
  0x23   :  { %225 = vmatmul.bf16.vlgmr.msra.gmra.mxu0 %v14_v32 }
  0x24   :  { %238 = vmatmul.bf16.vlgmr.msra.gmra.mxu1 %v14_v32  ;;  %251 = vmatmul.bf16.vlgmr.msra.gmra.mxu2 %v14_v32 }
  0x25   :  { %264 = vmatmul.bf16.vlgmr.msra.gmra.mxu3 %v14_v32 }
  0xa0   :  { %v226_v36 = vpop.f32.mrf.mxu0 }
  0xa1   :  { %v239_v37 = vpop.f32.mrf.mxu1  ;;  %v227_v38 = vadd.f32 %v226_v36, %v49_v34 }
  0xa2   :  { %v240_v39 = vadd.f32 %v239_v37, %v50_v35 }
  0xa4   :  { %v269_v42 = vpack.c.bf16 %v240_v39, %v227_v38 }
  0xa6   :  { %v273_v49 = vrot.slane %v269_v42, 3 }
  0xa7   :  { %v252_v43 = vpop.f32.mrf.mxu2 }
  0xa8   :  { %v253_v44 = vadd.f32 %v252_v43, %v51_v40  ;;  %v265_v45 = vpop.f32.mrf.mxu3  ;;  %v228_v46 = vpop.f32.mrf.mxu0  ;;  %v279_v53 = vsel %vm276_vm0, %v269_v42, %v273_v49 }
  0xa9   :  { %v266_v47 = vadd.f32 %v265_v45, %v52_v41  ;;  %v241_v48 = vpop.f32.mrf.mxu1 }
  0xab   :  { %v270_v50 = vpack.c.bf16 %v266_v47, %v253_v44 }
  0xad   :  { %v274_v51 = vrot.slane %v270_v50, 6  ;;  %v275_v52 = vrot.slane %v270_v50, 1 }
  0xaf   :  { %v283_v54 = vsel %vm280_vm1, %v274_v51, %v275_v52  ;;  %v254_v55 = vpop.f32.mrf.mxu2 }
  0xb0   :  { %v285_v56 = vsel %vm284_vm2, %v279_v53, %v283_v54  ;;  %v267_v57 = vpop.f32.mrf.mxu3 }
  0xb1   :  { %287 = vst [vmem:[%s676_s3] sm:$0xf] %v285_v56 }

// kernel: autoencoder_fwd.23
= control target key start
LH: loop header
LB: loop body
LE: loop exit
PB: predicated region body
PF: predicated region fallthrough
CT: control target
= control target key end

     0   :  { %s1200_s1 = inlined_call_operand.vmem [shape: bf16[1024,128], index: 1, kind: input, shape index: {}]   ;;  %s1201_s0 = inlined_call_operand.vmem [shape: bf16[2,1024], index: 0, kind: input, shape index: {}]   ;;  %s1202_s2 = inlined_call_operand.vmem [shape: f32[1,128], index: 2, kind: input, shape index: {}]   ;;  %s1203_s3 = inlined_call_operand.vmem [shape: f32[2,128], index: 3, kind: output, shape index: {}]  }
   0x1   :  { %v921_v0 = vld [vmem:[%s1200_s1 + $0x38] sm:$0xff]  ;;  %v920_v4 = vld [vmem:[%s1200_s1 + $0x30] sm:$0xff]  ;;  %v919_v8 = vld [vmem:[%s1200_s1 + $0x28] sm:$0xff] }
   0x2   :  { %v929_v1 = vld [vmem:[%s1200_s1 + $0x78] sm:$0xff]  ;;  %549 = vmatpush.bf16.msra.mxu0 %v921_v0  ;;  %v928_v5 = vld [vmem:[%s1200_s1 + $0x70] sm:$0xff]  ;;  %v927_v9 = vld [vmem:[%s1200_s1 + $0x68] sm:$0xff] }
   0x3   :  { %v937_v2 = vld [vmem:[%s1200_s1 + $0xb8] sm:$0xff]  ;;  %562 = vmatpush.bf16.msra.mxu1 %v929_v1  ;;  %v936_v6 = vld [vmem:[%s1200_s1 + $0xb0] sm:$0xff]  ;;  %v935_v10 = vld [vmem:[%s1200_s1 + $0xa8] sm:$0xff] }
   0x4   :  { %v945_v3 = vld [vmem:[%s1200_s1 + $0xf8] sm:$0xff]  ;;  %575 = vmatpush.bf16.msra.mxu2 %v937_v2  ;;  %v944_v7 = vld [vmem:[%s1200_s1 + $0xf0] sm:$0xff]  ;;  %v943_v11 = vld [vmem:[%s1200_s1 + $0xe8] sm:$0xff] }
   0x5   :  { %588 = vmatpush.bf16.msra.mxu3 %v945_v3  ;;  %v918_v12 = vld [vmem:[%s1200_s1 + $0x20] sm:$0xff]  ;;  %v917_v17 = vld [vmem:[%s1200_s1 + $0x18] sm:$0xff]  ;;  %v916_v21 = vld [vmem:[%s1200_s1 + $0x10] sm:$0xff] }
   0x6   :  { %550 = vmatpush.bf16.msra.mxu0 %v920_v4  ;;  %v926_v13 = vld [vmem:[%s1200_s1 + $0x60] sm:$0xff]  ;;  %v925_v18 = vld [vmem:[%s1200_s1 + $0x58] sm:$0xff]  ;;  %v924_v22 = vld [vmem:[%s1200_s1 + $0x50] sm:$0xff] }
   0x7   :  { %563 = vmatpush.bf16.msra.mxu1 %v928_v5  ;;  %v934_v14 = vld [vmem:[%s1200_s1 + $0xa0] sm:$0xff]  ;;  %v933_v19 = vld [vmem:[%s1200_s1 + $0x98] sm:$0xff]  ;;  %v932_v23 = vld [vmem:[%s1200_s1 + $0x90] sm:$0xff] }
   0x8   :  { %576 = vmatpush.bf16.msra.mxu2 %v936_v6  ;;  %v942_v15 = vld [vmem:[%s1200_s1 + $0xe0] sm:$0xff]  ;;  %v941_v20 = vld [vmem:[%s1200_s1 + $0xd8] sm:$0xff]  ;;  %v940_v24 = vld [vmem:[%s1200_s1 + $0xd0] sm:$0xff] }
   0x9   :  { %589 = vmatpush.bf16.msra.mxu3 %v944_v7  ;;  %v14_v16 = vld [vmem:[%s1201_s0] sm:$0xff]  ;;  %v915_v25 = vld [vmem:[%s1200_s1 + $0x8] sm:$0xff]  ;;  %v953_v33 = vld [vmem:[%s1200_s1 + $0x138] sm:$0xff] }
   0xa   :  { %551 = vmatpush.bf16.msra.mxu0 %v919_v8  ;;  %148 = vst [vmem:[#allocation1] ss:$9 sm:$0xff] %v14_v16  ;;  %v923_v26 = vld [vmem:[%s1200_s1 + $0x48] sm:$0xff]  ;;  %v914_v29 = vld [vmem:[%s1200_s1] sm:$0xff]  ;;  %v961_v34 = vld [vmem:[%s1200_s1 + $0x178] sm:$0xff] }
   0xb   :  { %564 = vmatpush.bf16.msra.mxu1 %v927_v9  ;;  %v931_v27 = vld [vmem:[%s1200_s1 + $0x88] sm:$0xff]  ;;  %v922_v30 = vld [vmem:[%s1200_s1 + $0x40] sm:$0xff]  ;;  %v969_v35 = vld [vmem:[%s1200_s1 + $0x1b8] sm:$0xff] }
   0xc   :  { %577 = vmatpush.bf16.msra.mxu2 %v935_v10  ;;  %v939_v28 = vld [vmem:[%s1200_s1 + $0xc8] sm:$0xff]  ;;  %v930_v31 = vld [vmem:[%s1200_s1 + $0x80] sm:$0xff]  ;;  %v977_v36 = vld [vmem:[%s1200_s1 + $0x1f8] sm:$0xff] }
   0xd   :  { %590 = vmatpush.bf16.msra.mxu3 %v943_v11  ;;  %v938_v32 = vld [vmem:[%s1200_s1 + $0xc0] sm:$0xff]  ;;  %v952_v37 = vld [vmem:[%s1200_s1 + $0x130] sm:$0xff]  ;;  %v951_v45 = vld [vmem:[%s1200_s1 + $0x128] sm:$0xff] }
   0xe   :  { %552 = vmatpush.bf16.msra.mxu0 %v918_v12  ;;  %v960_v40 = vld [vmem:[%s1200_s1 + $0x170] sm:$0xff]  ;;  %v959_v46 = vld [vmem:[%s1200_s1 + $0x168] sm:$0xff]  ;;  %v950_v49 = vld [vmem:[%s1200_s1 + $0x120] sm:$0xff] }
   0xf   :  { %565 = vmatpush.bf16.msra.mxu1 %v926_v13  ;;  %v968_v43 = vld [vmem:[%s1200_s1 + $0x1b0] sm:$0xff]  ;;  %v967_v47 = vld [vmem:[%s1200_s1 + $0x1a8] sm:$0xff]  ;;  %v958_v50 = vld [vmem:[%s1200_s1 + $0x160] sm:$0xff] }
  0x10   :  { %578 = vmatpush.bf16.msra.mxu2 %v934_v14  ;;  %v976_v44 = vld [vmem:[%s1200_s1 + $0x1f0] sm:$0xff]  ;;  %v975_v48 = vld [vmem:[%s1200_s1 + $0x1e8] sm:$0xff]  ;;  %v966_v51 = vld [vmem:[%s1200_s1 + $0x1a0] sm:$0xff] }
  0x11   :  { %591 = vmatpush.bf16.msra.mxu3 %v942_v15  ;;  %v151_v38 = vld [vmem:[#allocation1 + $0x12] sm:$0xff]  ;;  %v152_v39 = vld [vmem:[#allocation1 + $0x1b] sm:$0xff]  ;;  %v150_v42 = vld [vmem:[#allocation1 + $0x9] sm:$0xff] }
  0x12   :  { %553 = vmatpush.bf16.msra.mxu0 %v917_v17  ;;  %v149_v41 = vld [vmem:[#allocation1] sm:$0xff]  ;;  %v949_v53 = vld [vmem:[%s1200_s1 + $0x118] sm:$0xff]  ;;  %v948_v57 = vld [vmem:[%s1200_s1 + $0x110] sm:$0xff] }
  0x13   :  { %566 = vmatpush.bf16.msra.mxu1 %v925_v18  ;;  %v974_v52 = vld [vmem:[%s1200_s1 + $0x1e0] sm:$0xff]  ;;  %v957_v54 = vld [vmem:[%s1200_s1 + $0x158] sm:$0xff]  ;;  %v956_v58 = vld [vmem:[%s1200_s1 + $0x150] sm:$0xff] }
  0x14   :  { %579 = vmatpush.bf16.msra.mxu2 %v933_v19  ;;  %v965_v55 = vld [vmem:[%s1200_s1 + $0x198] sm:$0xff]  ;;  %v964_v59 = vld [vmem:[%s1200_s1 + $0x190] sm:$0xff]  ;;  %v947_v61 = vld [vmem:[%s1200_s1 + $0x108] sm:$0xff] }
  0x15   :  { %592 = vmatpush.bf16.msra.mxu3 %v941_v20  ;;  %v973_v56 = vld [vmem:[%s1200_s1 + $0x1d8] sm:$0xff]  ;;  %v972_v60 = vld [vmem:[%s1200_s1 + $0x1d0] sm:$0xff]  ;;  %v955_v62 = vld [vmem:[%s1200_s1 + $0x148] sm:$0xff] }
  0x16   :  { %554 = vmatpush.bf16.msra.mxu0 %v916_v21  ;;  %v963_v63 = vld [vmem:[%s1200_s1 + $0x188] sm:$0xff]  ;;  %v946_v1 = vld [vmem:[%s1200_s1 + $0x100] sm:$0xff]  ;;  %v155_v7 = vld [vmem:[#allocation1 + $0x36] sm:$0xff] }
  0x17   :  { %567 = vmatpush.bf16.msra.mxu1 %v924_v22  ;;  %v971_v0 = vld [vmem:[%s1200_s1 + $0x1c8] sm:$0xff]  ;;  %v954_v2 = vld [vmem:[%s1200_s1 + $0x140] sm:$0xff] }
  0x18   :  { %580 = vmatpush.bf16.msra.mxu2 %v932_v23  ;;  %v962_v3 = vld [vmem:[%s1200_s1 + $0x180] sm:$0xff]  ;;  %v154_v6 = vld [vmem:[#allocation1 + $0x2d] sm:$0xff] }
  0x19   :  { %593 = vmatpush.bf16.msra.mxu3 %v940_v24  ;;  %v970_v4 = vld [vmem:[%s1200_s1 + $0x1c0] sm:$0xff] }
  0x1a   :  { %555 = vmatpush.bf16.msra.mxu0 %v915_v25  ;;  %v153_v5 = vld [vmem:[#allocation1 + $0x24] sm:$0xff]  ;;  %v978_v15 = vld [vmem:[%s1202_s2] ss:$0 sm:$0xff] }
  0x1b   :  { %568 = vmatpush.bf16.msra.mxu1 %v923_v26  ;;  %v156_v8 = vld [vmem:[#allocation1 + $0x3f] sm:$0xff] }
  0x1c   :  { %581 = vmatpush.bf16.msra.mxu2 %v931_v27 }
  0x1d   :  { %594 = vmatpush.bf16.msra.mxu3 %v939_v28 }
  0x1e   :  { %556 = vmatpush.bf16.msra.mxu0 %v914_v29 }
  0x1f   :  { %569 = vmatpush.bf16.msra.mxu1 %v922_v30 }
  0x20   :  { %582 = vmatpush.bf16.msra.mxu2 %v930_v31 }
  0x21   :  { %595 = vmatpush.bf16.msra.mxu3 %v938_v32  ;;  %557 = vmatmul.bf16.vlgmr.msra.gmra.mxu0 %v149_v41 }
  0x22   :  { %601 = vmatpush.bf16.msrb.mxu0 %v953_v33  ;;  %570 = vmatmul.bf16.vlgmr.msra.gmra.mxu1 %v150_v42 }
  0x23   :  { %614 = vmatpush.bf16.msrb.mxu1 %v961_v34  ;;  %583 = vmatmul.bf16.vlgmr.msra.gmra.mxu2 %v151_v38 }
  0x24   :  { %627 = vmatpush.bf16.msrb.mxu2 %v969_v35  ;;  %596 = vmatmul.bf16.vlgmr.msra.gmra.mxu3 %v152_v39 }
  0x25   :  { %640 = vmatpush.bf16.msrb.mxu3 %v977_v36 }
  0x26   :  { %602 = vmatpush.bf16.msrb.mxu0 %v952_v37 }
  0x27   :  { %615 = vmatpush.bf16.msrb.mxu1 %v960_v40 }
  0x28   :  { %628 = vmatpush.bf16.msrb.mxu2 %v968_v43 }
  0x29   :  { %641 = vmatpush.bf16.msrb.mxu3 %v976_v44 }
  0x2a   :  { %603 = vmatpush.bf16.msrb.mxu0 %v951_v45 }
  0x2b   :  { %616 = vmatpush.bf16.msrb.mxu1 %v959_v46 }
  0x2c   :  { %629 = vmatpush.bf16.msrb.mxu2 %v967_v47 }
  0x2d   :  { %642 = vmatpush.bf16.msrb.mxu3 %v975_v48 }
  0x2e   :  { %604 = vmatpush.bf16.msrb.mxu0 %v950_v49 }
  0x2f   :  { %617 = vmatpush.bf16.msrb.mxu1 %v958_v50 }
  0x30   :  { %630 = vmatpush.bf16.msrb.mxu2 %v966_v51 }
  0x31   :  { %643 = vmatpush.bf16.msrb.mxu3 %v974_v52 }
  0x32   :  { %605 = vmatpush.bf16.msrb.mxu0 %v949_v53 }
  0x33   :  { %618 = vmatpush.bf16.msrb.mxu1 %v957_v54 }
  0x34   :  { %631 = vmatpush.bf16.msrb.mxu2 %v965_v55 }
  0x35   :  { %644 = vmatpush.bf16.msrb.mxu3 %v973_v56 }
  0x36   :  { %606 = vmatpush.bf16.msrb.mxu0 %v948_v57 }
  0x37   :  { %619 = vmatpush.bf16.msrb.mxu1 %v956_v58 }
  0x38   :  { %632 = vmatpush.bf16.msrb.mxu2 %v964_v59 }
  0x39   :  { %645 = vmatpush.bf16.msrb.mxu3 %v972_v60 }
  0x3a   :  { %607 = vmatpush.bf16.msrb.mxu0 %v947_v61 }
  0x3b   :  { %620 = vmatpush.bf16.msrb.mxu1 %v955_v62 }
  0x3c   :  { %633 = vmatpush.bf16.msrb.mxu2 %v963_v63 }
  0x3d   :  { %646 = vmatpush.bf16.msrb.mxu3 %v971_v0 }
  0x3e   :  { %608 = vmatpush.bf16.msrb.mxu0 %v946_v1 }
  0x3f   :  { %621 = vmatpush.bf16.msrb.mxu1 %v954_v2 }
  0x40   :  { %634 = vmatpush.bf16.msrb.mxu2 %v962_v3 }
  0x41   :  { %647 = vmatpush.bf16.msrb.mxu3 %v970_v4  ;;  %609 = vmatmul.bf16.vlgmr.msrb.gmra.mxu0 %v153_v5 }
  0x42   :  { %622 = vmatmul.bf16.vlgmr.msrb.gmra.mxu1 %v154_v6 }
  0x43   :  { %635 = vmatmul.bf16.vlgmr.msrb.gmra.mxu2 %v155_v7 }
  0x44   :  { %648 = vmatmul.bf16.vlgmr.msrb.gmra.mxu3 %v156_v8 }
  0x9e   :  { %v558_v9 = vpop.f32.mrf.mxu0 }
  0x9f   :  { %v571_v10 = vpop.f32.mrf.mxu1  ;;  %v559_v18 = vadd.f32 %v978_v15, %v558_v9 }
  0xa1   :  { %v572_v19 = vadd.f32 %v571_v10, %v559_v18 }
  0xa6   :  { %v584_v11 = vpop.f32.mrf.mxu2  ;;  %v560_v13 = vpop.f32.mrf.mxu0 }
  0xa7   :  { %v597_v12 = vpop.f32.mrf.mxu3  ;;  %v573_v14 = vpop.f32.mrf.mxu1  ;;  %v585_v20 = vadd.f32 %v584_v11, %v572_v19 }
  0xa9   :  { %v598_v21 = vadd.f32 %v597_v12, %v585_v20 }
  0xae   :  { %v586_v16 = vpop.f32.mrf.mxu2 }
  0xaf   :  { %v599_v17 = vpop.f32.mrf.mxu3 }
  0xbe   :  { %v610_v22 = vpop.f32.mrf.mxu0 }
  0xbf   :  { %v623_v23 = vpop.f32.mrf.mxu1  ;;  %v611_v24 = vadd.f32 %v610_v22, %v598_v21 }
  0xc1   :  { %v624_v25 = vadd.f32 %v623_v23, %v611_v24 }
  0xc6   :  { %v636_v26 = vpop.f32.mrf.mxu2  ;;  %v612_v29 = vpop.f32.mrf.mxu0 }
  0xc7   :  { %v649_v27 = vpop.f32.mrf.mxu3  ;;  %v637_v28 = vadd.f32 %v636_v26, %v624_v25  ;;  %v625_v30 = vpop.f32.mrf.mxu1 }
  0xc9   :  { %v650_v31 = vadd.f32 %v649_v27, %v637_v28 }
  0xcb   :  { %653 = vst [vmem:[%s1203_s3] sm:$0x3] %v650_v31 }
  0xce   :  { %v638_v32 = vpop.f32.mrf.mxu2 }
  0xcf   :  { %v651_v33 = vpop.f32.mrf.mxu3 }

// kernel: autoencoder_fwd.30
= control target key start
LH: loop header
LB: loop body
LE: loop exit
PB: predicated region body
PF: predicated region fallthrough
CT: control target
= control target key end

     0   :  { %vm346_vm0 = vcmask 1045504   ;;  %v2217_v3 = vmov 0   ;;  %vm342_vm1 = vcmask 97280   ;;  %vm1683_vm8 = vcmask 1040384   ;;  %s2982_s1 = inlined_call_operand.vmem [shape: bf16[12,8192], index: 1, kind: input, shape index: {}]   ;;  %s2983_s0 = inlined_call_operand.vmem [shape: bf16[2,12], index: 0, kind: input, shape index: {}]   ;;  %s2984_s2 = inlined_call_operand.vmem [shape: f32[2,1], index: 2, kind: input, shape index: {}]   ;;  %s2985_s3 = inlined_call_operand.vmem [shape: bf16[2,8192], index: 3, kind: output, shape index: {}]  }
   0x1   :  { %v1832_v0 = vld [vmem:[%s2982_s1] sm:$0xf]  ;;  %v2150_v2 = vld [vmem:[%s2982_s1 + $0x4] sm:$0xf]  ;;  %2215 = vset.pattern.permute.xlu0 %v2217_v3  ;;  %v1840_v6 = vld [vmem:[%s2982_s1 + $0x8] sm:$0xf] }
   0x2   :  { %v2182_v1 = vld [vmem:[%s2982_s1 + $0xfc] sm:$0x30]  ;;  %v1834_v5 = vld [vmem:[%s2982_s1 + $0x100] sm:$0x30]  ;;  %v2183_v7 = vld [vmem:[%s2982_s1 + $0x104] sm:$0x30] }
   0x3   :  { %v1833_v4 = vor.u32 %v2182_v1, %v1832_v0  ;;  %v1837_v8 = vor.u32 %v2150_v2, %v1834_v5  ;;  %v1841_v9 = vor.u32 %v2183_v7, %v1840_v6  ;;  %v2151_v10 = vld [vmem:[%s2982_s1 + $0xc] sm:$0xf]  ;;  %v2265_v12 = vld [vmem:[%s2983_s0] sm:$0x1]  ;;  %v1856_v15 = vld [vmem:[%s2982_s1 + $0x18] sm:$0xf] }
   0x4   :  { %v1842_v11 = vld [vmem:[%s2982_s1 + $0x108] sm:$0x30]  ;;  %v2185_v16 = vld [vmem:[%s2982_s1 + $0x114] sm:$0x30]  ;;  %v2153_v20 = vld [vmem:[%s2982_s1 + $0x1c] sm:$0xf] }
   0x5   :  { %v348_v13 = vsel %vm346_vm0, %v1833_v4, 0  ;;  %v1845_v14 = vor.u32 %v2151_v10, %v1842_v11  ;;  %v351_v17 = vsel %vm346_vm0, %v1837_v8, 0  ;;  %v354_v18 = vsel %vm346_vm0, %v1841_v9, 0  ;;  %v1858_v21 = vld [vmem:[%s2982_s1 + $0x118] sm:$0x30] }
   0x6   :  { %546 = vmatpush.bf16.msra.mxu0 %v348_v13  ;;  %v1857_v19 = vor.u32 %v2185_v16, %v1856_v15  ;;  %559 = vmatpush.bf16.msra.mxu1 %v351_v17  ;;  %v1861_v23 = vor.u32 %v2153_v20, %v1858_v21  ;;  %v1848_v24 = vld [vmem:[%s2982_s1 + $0x10] sm:$0xf]  ;;  %v2152_v28 = vld [vmem:[%s2982_s1 + $0x14] sm:$0xf]  ;;  %v80_v32 = vld [vmem:[%s2984_s2] sm:$0x3] }
   0x7   :  { %572 = vmatpush.bf16.msra.mxu2 %v354_v18  ;;  %v357_v22 = vsel %vm346_vm0, %v1845_v14, 0  ;;  %v2184_v25 = vld [vmem:[%s2982_s1 + $0x10c] sm:$0x30]  ;;  %v1850_v29 = vld [vmem:[%s2982_s1 + $0x110] sm:$0x30]  ;;  %83 = vperm.xlu0 %2215, %v80_v32   ;;  %vm1687_vm9 = vcmask 1042434  }
   0x8   :  { %585 = vmatpush.bf16.msra.mxu3 %v357_v22  ;;  %v366_v26 = vsel %vm346_vm0, %v1857_v19, 0  ;;  %v1849_v27 = vor.u32 %v2184_v25, %v1848_v24  ;;  %v369_v30 = vsel %vm346_vm0, %v1861_v23, 0  ;;  %v1853_v31 = vor.u32 %v2152_v28, %v1850_v29  ;;  %v1872_v33 = vld [vmem:[%s2982_s1 + $0x28] sm:$0xf]  ;;  %v2155_v36 = vld [vmem:[%s2982_s1 + $0x2c] sm:$0xf] }
   0x9   :  { %2086 = vmatmul.msk.bf16.vlgmr.msra.gmra.mxu0 %vm342_vm1, %v2265_v12  ;;  %2087 = vmatmul.msk.bf16.vlgmr.msra.gmra.mxu1 %vm342_vm1, %v2265_v12  ;;  %v2187_v35 = vld [vmem:[%s2982_s1 + $0x124] sm:$0x30]  ;;  %v1874_v39 = vld [vmem:[%s2982_s1 + $0x128] sm:$0x30]  ;;  %v1864_v40 = vld [vmem:[%s2982_s1 + $0x20] sm:$0xf] }
   0xa   :  { %2088 = vmatmul.msk.bf16.vlgmr.msra.gmra.mxu2 %vm342_vm1, %v2265_v12  ;;  %v360_v34 = vsel %vm346_vm0, %v1849_v27, 0  ;;  %v363_v37 = vsel %vm346_vm0, %v1853_v31, 0  ;;  %v1873_v38 = vor.u32 %v2187_v35, %v1872_v33  ;;  %v1877_v41 = vor.u32 %v2155_v36, %v1874_v39  ;;  %v2186_v42 = vld [vmem:[%s2982_s1 + $0x11c] sm:$0x30]  ;;  %v2154_v43 = vld [vmem:[%s2982_s1 + $0x24] sm:$0xf] }
   0xb   :  { %624 = vmatpush.bf16.msrb.mxu2 %v366_v26  ;;  %2089 = vmatmul.msk.bf16.vlgmr.msra.gmra.mxu3 %vm342_vm1, %v2265_v12  ;;  %v1866_v44 = vld [vmem:[%s2982_s1 + $0x120] sm:$0x30]  ;;  %v1865_v46 = vor.u32 %v2186_v42, %v1864_v40  ;;  %v1888_v51 = vld [vmem:[%s2982_s1 + $0x38] sm:$0xf]  ;;  %v2157_v53 = vld [vmem:[%s2982_s1 + $0x3c] sm:$0xf] }
   0xc   :  { %598 = vmatpush.bf16.msrb.mxu0 %v360_v34  ;;  %637 = vmatpush.bf16.msrb.mxu3 %v369_v30  ;;  %v378_v45 = vsel %vm346_vm0, %v1873_v38, 0  ;;  %v1869_v47 = vor.u32 %v2154_v43, %v1866_v44  ;;  %v381_v48 = vsel %vm346_vm0, %v1877_v41, 0  ;;  %v2189_v52 = vld [vmem:[%s2982_s1 + $0x134] sm:$0x30]  ;;  %v1890_v54 = vld [vmem:[%s2982_s1 + $0x138] sm:$0x30] }
   0xd   :  { %611 = vmatpush.bf16.msrb.mxu1 %v363_v37  ;;  %v372_v49 = vsel %vm346_vm0, %v1865_v46, 0  ;;  %v1880_v55 = vld [vmem:[%s2982_s1 + $0x30] sm:$0xf]  ;;  %v2156_v57 = vld [vmem:[%s2982_s1 + $0x34] sm:$0xf]  ;;  %v1889_v59 = vor.u32 %v2189_v52, %v1888_v51  ;;  %v1893_v60 = vor.u32 %v2157_v53, %v1890_v54  ;;  %vm1691_vm10 = vcmask 1041408  }
   0xe   :  { %v375_v50 = vsel %vm346_vm0, %v1869_v47, 0  ;;  %v2188_v56 = vld [vmem:[%s2982_s1 + $0x12c] sm:$0x30]  ;;  %v1882_v58 = vld [vmem:[%s2982_s1 + $0x130] sm:$0x30]  ;;  %vm1693_vm11 = vcmask 1044484  }
   0xf   :  { %676 = vmatpush.bf16.msra.mxu2 %v378_v45  ;;  %v1881_v61 = vor.u32 %v2188_v56, %v1880_v55  ;;  %v1885_v62 = vor.u32 %v2156_v57, %v1882_v58  ;;  %v390_v63 = vsel %vm346_vm0, %v1889_v59, 0  ;;  %v393_v0 = vsel %vm346_vm0, %v1893_v60, 0  ;;  %v1904_v3 = vld [vmem:[%s2982_s1 + $0x48] sm:$0xf]  ;;  %v2159_v5 = vld [vmem:[%s2982_s1 + $0x4c] sm:$0xf] }
  0x10   :  { %689 = vmatpush.bf16.msra.mxu3 %v381_v48  ;;  %650 = vmatpush.bf16.msra.mxu0 %v372_v49  ;;  %v2191_v4 = vld [vmem:[%s2982_s1 + $0x144] sm:$0x30]  ;;  %v1906_v6 = vld [vmem:[%s2982_s1 + $0x148] sm:$0x30]  ;;  %v1896_v7 = vld [vmem:[%s2982_s1 + $0x40] sm:$0xf] }
  0x11   :  { %663 = vmatpush.bf16.msra.mxu1 %v375_v50  ;;  %v384_v1 = vsel %vm346_vm0, %v1881_v61, 0  ;;  %v387_v2 = vsel %vm346_vm0, %v1885_v62, 0  ;;  %v2190_v8 = vld [vmem:[%s2982_s1 + $0x13c] sm:$0x30]  ;;  %v2158_v9 = vld [vmem:[%s2982_s1 + $0x44] sm:$0xf]  ;;  %v1905_v11 = vor.u32 %v2191_v4, %v1904_v3  ;;  %v1909_v13 = vor.u32 %v2159_v5, %v1906_v6 }
  0x12   :  { %v1898_v10 = vld [vmem:[%s2982_s1 + $0x140] sm:$0x30]  ;;  %v1897_v14 = vor.u32 %v2190_v8, %v1896_v7  ;;  %v1920_v20 = vld [vmem:[%s2982_s1 + $0x58] sm:$0xf]  ;;  %v2161_v22 = vld [vmem:[%s2982_s1 + $0x5c] sm:$0xf] }
  0x13   :  { %v1901_v15 = vor.u32 %v2158_v9, %v1898_v10  ;;  %v402_v16 = vsel %vm346_vm0, %v1905_v11, 0  ;;  %v405_v17 = vsel %vm346_vm0, %v1909_v13, 0  ;;  %v2193_v21 = vld [vmem:[%s2982_s1 + $0x154] sm:$0x30]  ;;  %v1922_v23 = vld [vmem:[%s2982_s1 + $0x158] sm:$0x30] }
  0x14   :  { %v396_v18 = vsel %vm346_vm0, %v1897_v14, 0  ;;  %v1912_v24 = vld [vmem:[%s2982_s1 + $0x50] sm:$0xf]  ;;  %v2160_v26 = vld [vmem:[%s2982_s1 + $0x54] sm:$0xf]  ;;  %v1921_v28 = vor.u32 %v2193_v21, %v1920_v20  ;;  %v1925_v29 = vor.u32 %v2161_v22, %v1922_v23  ;;  %vm1697_vm14 = vcmask 1046534  }
  0x15   :  { %v399_v19 = vsel %vm346_vm0, %v1901_v15, 0  ;;  %v2192_v25 = vld [vmem:[%s2982_s1 + $0x14c] sm:$0x30]  ;;  %v1914_v27 = vld [vmem:[%s2982_s1 + $0x150] sm:$0x30]  ;;  %vm1701_vm15 = vcmask 1045508  }
  0x16   :  { %v1913_v30 = vor.u32 %v2192_v25, %v1912_v24  ;;  %v1917_v31 = vor.u32 %v2160_v26, %v1914_v27  ;;  %v414_v32 = vsel %vm346_vm0, %v1921_v28, 0  ;;  %v417_v33 = vsel %vm346_vm0, %v1925_v29, 0  ;;  %v1936_v36 = vld [vmem:[%s2982_s1 + $0x68] sm:$0xf]  ;;  %v2163_v38 = vld [vmem:[%s2982_s1 + $0x6c] sm:$0xf] }
  0x17   :  { %v2195_v37 = vld [vmem:[%s2982_s1 + $0x164] sm:$0x30]  ;;  %v1938_v39 = vld [vmem:[%s2982_s1 + $0x168] sm:$0x30]  ;;  %v1928_v40 = vld [vmem:[%s2982_s1 + $0x60] sm:$0xf] }
  0x18   :  { %v408_v34 = vsel %vm346_vm0, %v1913_v30, 0  ;;  %v411_v35 = vsel %vm346_vm0, %v1917_v31, 0  ;;  %v2194_v41 = vld [vmem:[%s2982_s1 + $0x15c] sm:$0x30]  ;;  %v2162_v42 = vld [vmem:[%s2982_s1 + $0x64] sm:$0xf]  ;;  %v1937_v44 = vor.u32 %v2195_v37, %v1936_v36  ;;  %v1941_v45 = vor.u32 %v2163_v38, %v1938_v39 }
  0x19   :  { %2090 = vmatmul.msk.bf16.vlgmr.msrb.gmra.mxu0 %vm342_vm1, %v2265_v12  ;;  %2091 = vmatmul.msk.bf16.vlgmr.msrb.gmra.mxu1 %vm342_vm1, %v2265_v12  ;;  %v1930_v43 = vld [vmem:[%s2982_s1 + $0x160] sm:$0x30]  ;;  %v1929_v46 = vor.u32 %v2194_v41, %v1928_v40  ;;  %v1952_v52 = vld [vmem:[%s2982_s1 + $0x78] sm:$0xf]  ;;  %v2165_v54 = vld [vmem:[%s2982_s1 + $0x7c] sm:$0xf] }
  0x1a   :  { %2092 = vmatmul.msk.bf16.vlgmr.msrb.gmra.mxu2 %vm342_vm1, %v2265_v12  ;;  %702 = vmatpush.bf16.msrb.mxu0 %v384_v1  ;;  %v1933_v47 = vor.u32 %v2162_v42, %v1930_v43  ;;  %v426_v48 = vsel %vm346_vm0, %v1937_v44, 0  ;;  %v429_v49 = vsel %vm346_vm0, %v1941_v45, 0  ;;  %v2197_v53 = vld [vmem:[%s2982_s1 + $0x174] sm:$0x30]  ;;  %v1954_v55 = vld [vmem:[%s2982_s1 + $0x178] sm:$0x30] }
  0x1b   :  { %2093 = vmatmul.msk.bf16.vlgmr.msrb.gmra.mxu3 %vm342_vm1, %v2265_v12  ;;  %728 = vmatpush.bf16.msrb.mxu2 %v390_v63  ;;  %v420_v50 = vsel %vm346_vm0, %v1929_v46, 0  ;;  %v1944_v56 = vld [vmem:[%s2982_s1 + $0x70] sm:$0xf]  ;;  %v2164_v58 = vld [vmem:[%s2982_s1 + $0x74] sm:$0xf]  ;;  %v1953_v60 = vor.u32 %v2197_v53, %v1952_v52  ;;  %v1957_v61 = vor.u32 %v2165_v54, %v1954_v55 }
  0x1c   :  { %741 = vmatpush.bf16.msrb.mxu3 %v393_v0  ;;  %715 = vmatpush.bf16.msrb.mxu1 %v387_v2  ;;  %v423_v51 = vsel %vm346_vm0, %v1933_v47, 0  ;;  %v2196_v57 = vld [vmem:[%s2982_s1 + $0x16c] sm:$0x30]  ;;  %v1946_v59 = vld [vmem:[%s2982_s1 + $0x170] sm:$0x30] }
  0x1d   :  { %v1945_v62 = vor.u32 %v2196_v57, %v1944_v56  ;;  %v1949_v63 = vor.u32 %v2164_v58, %v1946_v59  ;;  %v438_v0 = vsel %vm346_vm0, %v1953_v60, 0  ;;  %v441_v1 = vsel %vm346_vm0, %v1957_v61, 0  ;;  %v1968_v4 = vld [vmem:[%s2982_s1 + $0x88] sm:$0xf]  ;;  %v2167_v6 = vld [vmem:[%s2982_s1 + $0x8c] sm:$0xf] }
  0x1e   :  { %v2199_v5 = vld [vmem:[%s2982_s1 + $0x184] sm:$0x30]  ;;  %v1970_v7 = vld [vmem:[%s2982_s1 + $0x188] sm:$0x30]  ;;  %v1960_v8 = vld [vmem:[%s2982_s1 + $0x80] sm:$0xf] }
  0x1f   :  { %v432_v2 = vsel %vm346_vm0, %v1945_v62, 0  ;;  %v435_v3 = vsel %vm346_vm0, %v1949_v63, 0  ;;  %v2198_v9 = vld [vmem:[%s2982_s1 + $0x17c] sm:$0x30]  ;;  %v2166_v10 = vld [vmem:[%s2982_s1 + $0x84] sm:$0xf]  ;;  %v1969_v13 = vor.u32 %v2199_v5, %v1968_v4  ;;  %v1973_v14 = vor.u32 %v2167_v6, %v1970_v7 }
  0x20   :  { %v1962_v11 = vld [vmem:[%s2982_s1 + $0x180] sm:$0x30]  ;;  %v1961_v15 = vor.u32 %v2198_v9, %v1960_v8  ;;  %v1984_v21 = vld [vmem:[%s2982_s1 + $0x98] sm:$0xf]  ;;  %v2169_v23 = vld [vmem:[%s2982_s1 + $0x9c] sm:$0xf] }
  0x21   :  { %v2201_v22 = vld [vmem:[%s2982_s1 + $0x194] sm:$0x30]  ;;  %v1986_v24 = vld [vmem:[%s2982_s1 + $0x198] sm:$0x30]  ;;  %v1976_v26 = vld [vmem:[%s2982_s1 + $0x90] sm:$0xf] }
  0x22   :  { %v1985_v25 = vor.u32 %v2201_v22, %v1984_v21  ;;  %v2200_v27 = vld [vmem:[%s2982_s1 + $0x18c] sm:$0x30]  ;;  %v2168_v28 = vld [vmem:[%s2982_s1 + $0x94] sm:$0xf]  ;;  %v1989_v29 = vor.u32 %v2169_v23, %v1986_v24  ;;  %v2000_v37 = vld [vmem:[%s2982_s1 + $0xa8] sm:$0xf] }
  0x23   :  { %v1977_v30 = vor.u32 %v2200_v27, %v1976_v26  ;;  %v1978_v31 = vld [vmem:[%s2982_s1 + $0x190] sm:$0x30]  ;;  %v2203_v38 = vld [vmem:[%s2982_s1 + $0x1a4] sm:$0x30]  ;;  %v2171_v39 = vld [vmem:[%s2982_s1 + $0xac] sm:$0xf] }
  0x24   :  { %v2002_v40 = vld [vmem:[%s2982_s1 + $0x1a8] sm:$0x30]  ;;  %v2001_v41 = vor.u32 %v2203_v38, %v2000_v37  ;;  %v1992_v42 = vld [vmem:[%s2982_s1 + $0xa0] sm:$0xf]  ;;  %v2170_v46 = vld [vmem:[%s2982_s1 + $0xa4] sm:$0xf] }
  0x25   :  { %v2202_v43 = vld [vmem:[%s2982_s1 + $0x19c] sm:$0x30]  ;;  %v2005_v44 = vor.u32 %v2171_v39, %v2002_v40  ;;  %v1994_v47 = vld [vmem:[%s2982_s1 + $0x1a0] sm:$0x30]  ;;  %v2016_v62 = vld [vmem:[%s2982_s1 + $0xb8] sm:$0xf] }
  0x26   :  { %v1993_v45 = vor.u32 %v2202_v43, %v1992_v42  ;;  %v2008_v7 = vld [vmem:[%s2982_s1 + $0xb0] sm:$0xf]  ;;  %v2172_v9 = vld [vmem:[%s2982_s1 + $0xb4] sm:$0xf] }
  0x27   :  { %v477_v52 = vsel %vm346_vm0, %v2005_v44, 0  ;;  %v2204_v8 = vld [vmem:[%s2982_s1 + $0x1ac] sm:$0x30] }
  0x28   :  { %v468_v53 = vsel %vm346_vm0, %v1993_v45, 0 }
  0x29   :  { %2094 = vmatmul.msk.bf16.vlgmr.msra.gmra.mxu0 %vm342_vm1, %v2265_v12  ;;  %2095 = vmatmul.msk.bf16.vlgmr.msra.gmra.mxu1 %vm342_vm1, %v2265_v12 }
  0x2a   :  { %2096 = vmatmul.msk.bf16.vlgmr.msra.gmra.mxu2 %vm342_vm1, %v2265_v12  ;;  %754 = vmatpush.bf16.msra.mxu0 %v396_v18  ;;  %v453_v18 = vsel %vm346_vm0, %v1973_v14, 0  ;;  %v2010_v14 = vld [vmem:[%s2982_s1 + $0x1b0] sm:$0x30] }
  0x2b   :  { %2097 = vmatmul.msk.bf16.vlgmr.msra.gmra.mxu3 %vm342_vm1, %v2265_v12  ;;  %780 = vmatpush.bf16.msra.mxu2 %v402_v16  ;;  %v1965_v16 = vor.u32 %v2166_v10, %v1962_v11 }
  0x2c   :  { %793 = vmatpush.bf16.msra.mxu3 %v405_v17  ;;  %767 = vmatpush.bf16.msra.mxu1 %v399_v19  ;;  %v450_v17 = vsel %vm346_vm0, %v1969_v13, 0  ;;  %v444_v19 = vsel %vm346_vm0, %v1961_v15, 0  ;;  %v2009_v13 = vor.u32 %v2204_v8, %v2008_v7 }
  0x2d   :  { %v447_v20 = vsel %vm346_vm0, %v1965_v16, 0 }
  0x39   :  { %2098 = vmatmul.msk.bf16.vlgmr.msrb.gmra.mxu0 %vm342_vm1, %v2265_v12  ;;  %2099 = vmatmul.msk.bf16.vlgmr.msrb.gmra.mxu1 %vm342_vm1, %v2265_v12 }
  0x3a   :  { %2100 = vmatmul.msk.bf16.vlgmr.msrb.gmra.mxu2 %vm342_vm1, %v2265_v12  ;;  %806 = vmatpush.bf16.msrb.mxu0 %v408_v34  ;;  %v465_v34 = vsel %vm346_vm0, %v1989_v29, 0 }
  0x3b   :  { %2101 = vmatmul.msk.bf16.vlgmr.msrb.gmra.mxu3 %vm342_vm1, %v2265_v12  ;;  %832 = vmatpush.bf16.msrb.mxu2 %v414_v32  ;;  %v1981_v32 = vor.u32 %v2168_v28, %v1978_v31  ;;  %v480_v28 = vsel %vm346_vm0, %v2009_v13, 0 }
  0x3c   :  { %845 = vmatpush.bf16.msrb.mxu3 %v417_v33  ;;  %819 = vmatpush.bf16.msrb.mxu1 %v411_v35  ;;  %v462_v33 = vsel %vm346_vm0, %v1985_v25, 0  ;;  %v456_v35 = vsel %vm346_vm0, %v1977_v30, 0 }
  0x3d   :  { %v459_v36 = vsel %vm346_vm0, %v1981_v32, 0 }
  0x49   :  { %2102 = vmatmul.msk.bf16.vlgmr.msra.gmra.mxu0 %vm342_vm1, %v2265_v12  ;;  %2103 = vmatmul.msk.bf16.vlgmr.msra.gmra.mxu1 %vm342_vm1, %v2265_v12 }
  0x4a   :  { %2104 = vmatmul.msk.bf16.vlgmr.msra.gmra.mxu2 %vm342_vm1, %v2265_v12  ;;  %858 = vmatpush.bf16.msra.mxu0 %v420_v50 }
  0x4b   :  { %2105 = vmatmul.msk.bf16.vlgmr.msra.gmra.mxu3 %vm342_vm1, %v2265_v12  ;;  %884 = vmatpush.bf16.msra.mxu2 %v426_v48 }
  0x4c   :  { %897 = vmatpush.bf16.msra.mxu3 %v429_v49  ;;  %871 = vmatpush.bf16.msra.mxu1 %v423_v51  ;;  %v1997_v49 = vor.u32 %v2170_v46, %v1994_v47  ;;  %v474_v51 = vsel %vm346_vm0, %v2001_v41, 0 }
  0x4e   :  { %v471_v54 = vsel %vm346_vm0, %v1997_v49, 0 }
  0x59   :  { %2106 = vmatmul.msk.bf16.vlgmr.msrb.gmra.mxu0 %vm342_vm1, %v2265_v12  ;;  %2107 = vmatmul.msk.bf16.vlgmr.msrb.gmra.mxu1 %vm342_vm1, %v2265_v12 }
  0x5a   :  { %2108 = vmatmul.msk.bf16.vlgmr.msrb.gmra.mxu2 %vm342_vm1, %v2265_v12  ;;  %910 = vmatpush.bf16.msrb.mxu0 %v432_v2  ;;  %v2018_v2 = vld [vmem:[%s2982_s1 + $0x1b8] sm:$0x30] }
  0x5b   :  { %2109 = vmatmul.msk.bf16.vlgmr.msrb.gmra.mxu3 %vm342_vm1, %v2265_v12  ;;  %936 = vmatpush.bf16.msrb.mxu2 %v438_v0  ;;  %v2205_v0 = vld [vmem:[%s2982_s1 + $0x1b4] sm:$0x30] }
  0x5c   :  { %949 = vmatpush.bf16.msrb.mxu3 %v441_v1  ;;  %923 = vmatpush.bf16.msrb.mxu1 %v435_v3  ;;  %v2173_v1 = vld [vmem:[%s2982_s1 + $0xbc] sm:$0xf]  ;;  %v2017_v6 = vor.u32 %v2205_v0, %v2016_v62  ;;  %v2174_v62 = vld [vmem:[%s2982_s1 + $0xc4] sm:$0xf] }
  0x5d   :  { %v2021_v11 = vor.u32 %v2173_v1, %v2018_v2  ;;  %v2026_v2 = vld [vmem:[%s2982_s1 + $0x1c0] sm:$0x30] }
  0x5e   :  { %v486_v25 = vsel %vm346_vm0, %v2017_v6, 0  ;;  %v2029_v8 = vor.u32 %v2174_v62, %v2026_v2 }
  0x5f   :  { %v489_v27 = vsel %vm346_vm0, %v2021_v11, 0 }
  0x69   :  { %2110 = vmatmul.msk.bf16.vlgmr.msra.gmra.mxu0 %vm342_vm1, %v2265_v12  ;;  %2111 = vmatmul.msk.bf16.vlgmr.msra.gmra.mxu1 %vm342_vm1, %v2265_v12 }
  0x6a   :  { %2112 = vmatmul.msk.bf16.vlgmr.msra.gmra.mxu2 %vm342_vm1, %v2265_v12  ;;  %962 = vmatpush.bf16.msra.mxu0 %v444_v19 }
  0x6b   :  { %2113 = vmatmul.msk.bf16.vlgmr.msra.gmra.mxu3 %vm342_vm1, %v2265_v12  ;;  %988 = vmatpush.bf16.msra.mxu2 %v450_v17  ;;  %v2013_v17 = vor.u32 %v2172_v9, %v2010_v14 }
  0x6c   :  { %1001 = vmatpush.bf16.msra.mxu3 %v453_v18  ;;  %975 = vmatpush.bf16.msra.mxu1 %v447_v20 }
  0x6d   :  { %v483_v30 = vsel %vm346_vm0, %v2013_v17, 0 }
  0x79   :  { %2114 = vmatmul.msk.bf16.vlgmr.msrb.gmra.mxu0 %vm342_vm1, %v2265_v12  ;;  %2115 = vmatmul.msk.bf16.vlgmr.msrb.gmra.mxu1 %vm342_vm1, %v2265_v12  ;;  %v2626_v55 = vpop.permute.xlu0 %83 }
  0x7a   :  { %2116 = vmatmul.msk.bf16.vlgmr.msrb.gmra.mxu2 %vm342_vm1, %v2265_v12  ;;  %1014 = vmatpush.bf16.msrb.mxu0 %v456_v35 }
  0x7b   :  { %2117 = vmatmul.msk.bf16.vlgmr.msrb.gmra.mxu3 %vm342_vm1, %v2265_v12  ;;  %1040 = vmatpush.bf16.msrb.mxu2 %v462_v33 }
  0x7c   :  { %1053 = vmatpush.bf16.msrb.mxu3 %v465_v34  ;;  %1027 = vmatpush.bf16.msrb.mxu1 %v459_v36 }
  0x86   :  { %v548_v48 = vpop.f32.mrf.mxu0  ;;  %v561_v50 = vpop.f32.mrf.mxu1 }
  0x87   :  { %v549_v63 = vadd.f32 %v548_v48, %v2626_v55  ;;  %v562_v4 = vadd.f32 %v561_v50, %v2626_v55  ;;  %v2032_v48 = vld [vmem:[%s2982_s1 + $0xc8] sm:$0xf] }
  0x88   :  { %v2207_v50 = vld [vmem:[%s2982_s1 + $0x1c4] sm:$0x30] }
  0x89   :  { %2118 = vmatmul.msk.bf16.vlgmr.msra.gmra.mxu0 %vm342_vm1, %v2265_v12  ;;  %2119 = vmatmul.msk.bf16.vlgmr.msra.gmra.mxu1 %vm342_vm1, %v2265_v12  ;;  %vm1371_vm4 = vcmp.ge.f32.partialorder %v549_v63, 0.0  ;;  %vm1372_vm5 = vcmp.ge.f32.partialorder %v562_v4, 0.0  ;;  %v1435_v18 = vmul.f32 0.2, %v549_v63  ;;  %v1436_v19 = vmul.f32 0.2, %v562_v4 }
  0x8a   :  { %2120 = vmatmul.msk.bf16.vlgmr.msra.gmra.mxu2 %vm342_vm1, %v2265_v12  ;;  %1066 = vmatpush.bf16.msra.mxu0 %v468_v53 }
  0x8b   :  { %2121 = vmatmul.msk.bf16.vlgmr.msra.gmra.mxu3 %vm342_vm1, %v2265_v12  ;;  %1092 = vmatpush.bf16.msra.mxu2 %v474_v51  ;;  %v1499_v31 = vsel %vm1371_vm4, %v549_v63, %v1435_v18  ;;  %v1500_v32 = vsel %vm1372_vm5, %v562_v4, %v1436_v19  ;;  %v2175_v51 = vld [vmem:[%s2982_s1 + $0xcc] sm:$0xf] }
  0x8c   :  { %1105 = vmatpush.bf16.msra.mxu3 %v477_v52  ;;  %1079 = vmatpush.bf16.msra.mxu1 %v471_v54  ;;  %v1563_v40 = vpack.c.bf16 %v1500_v32, %v1499_v31  ;;  %v2034_v52 = vld [vmem:[%s2982_s1 + $0x1c8] sm:$0x30]  ;;  %v2050_v31 = vld [vmem:[%s2982_s1 + $0x1d8] sm:$0x30] }
  0x8d   :  { %v574_v56 = vpop.f32.mrf.mxu2  ;;  %v2037_v0 = vor.u32 %v2175_v51, %v2034_v52 }
  0x8e   :  { %v587_v57 = vpop.f32.mrf.mxu3  ;;  %v550_v58 = vpop.f32.mrf.mxu0  ;;  %v575_v59 = vadd.f32 %v574_v56, %v2626_v55  ;;  %v1627_v53 = vrot.slane %v1563_v40, 3 }
  0x8f   :  { %v588_v60 = vadd.f32 %v587_v57, %v2626_v55  ;;  %v563_v61 = vpop.f32.mrf.mxu1  ;;  %v501_v17 = vsel %vm346_vm0, %v2037_v0, 0 }
  0x90   :  { %v1437_v3 = vmul.f32 0.2, %v575_v59  ;;  %vm1373_vm2 = vcmp.ge.f32.partialorder %v575_v59, 0.0  ;;  %v2206_v61 = vld [vmem:[%s2982_s1 + $0x1bc] sm:$0x30] }
  0x91   :  { %v1438_v5 = vmul.f32 0.2, %v588_v60  ;;  %vm1374_vm3 = vcmp.ge.f32.partialorder %v588_v60, 0.0 }
  0x92   :  { %v1501_v22 = vsel %vm1373_vm2, %v575_v59, %v1437_v3  ;;  %v2033_v59 = vor.u32 %v2207_v50, %v2032_v48  ;;  %vm1703_vm2 = vcmask 1043456  }
  0x93   :  { %v1502_v23 = vsel %vm1374_vm3, %v588_v60, %v1438_v5  ;;  %v2024_v60 = vld [vmem:[%s2982_s1 + $0xc0] sm:$0xf] }
  0x94   :  { %v1564_v33 = vpack.c.bf16 %v1502_v23, %v1501_v22  ;;  %v2025_v1 = vor.u32 %v2206_v61, %v2024_v60  ;;  %v498_v14 = vsel %vm346_vm0, %v2033_v59, 0 }
  0x95   :  { %v576_v10 = vpop.f32.mrf.mxu2 }
  0x96   :  { %v589_v15 = vpop.f32.mrf.mxu3  ;;  %v600_v16 = vpop.f32.mrf.mxu0  ;;  %v1628_v44 = vrot.slane %v1564_v33, 6  ;;  %v1629_v46 = vrot.slane %v1564_v33, 1  ;;  %v1686_v10 = vsel %vm1683_vm8, %v1563_v40, %v1627_v53  ;;  %v492_v18 = vsel %vm346_vm0, %v2025_v1, 0 }
  0x97   :  { %v601_v20 = vadd.f32 %v600_v16, %v2626_v55  ;;  %v613_v21 = vpop.f32.mrf.mxu1 }
  0x98   :  { %v614_v24 = vadd.f32 %v613_v21, %v2626_v55  ;;  %v1690_v3 = vsel %vm1687_vm9, %v1628_v44, %v1629_v46 }
  0x99   :  { %vm1375_vm6 = vcmp.ge.f32.partialorder %v601_v20, 0.0  ;;  %v1439_v26 = vmul.f32 0.2, %v601_v20  ;;  %2122 = vmatmul.msk.bf16.vlgmr.msrb.gmra.mxu0 %vm342_vm1, %v2265_v12  ;;  %2123 = vmatmul.msk.bf16.vlgmr.msrb.gmra.mxu1 %vm342_vm1, %v2265_v12  ;;  %v1692_v15 = vsel %vm1691_vm10, %v1686_v10, %v1690_v3 }
  0x9a   :  { %vm1376_vm7 = vcmp.ge.f32.partialorder %v614_v24, 0.0  ;;  %v1440_v29 = vmul.f32 0.2, %v614_v24  ;;  %2124 = vmatmul.msk.bf16.vlgmr.msrb.gmra.mxu2 %vm342_vm1, %v2265_v12  ;;  %1118 = vmatpush.bf16.msrb.mxu0 %v480_v28 }
  0x9b   :  { %2125 = vmatmul.msk.bf16.vlgmr.msrb.gmra.mxu3 %vm342_vm1, %v2265_v12  ;;  %1144 = vmatpush.bf16.msrb.mxu2 %v486_v25  ;;  %v1503_v34 = vsel %vm1375_vm6, %v601_v20, %v1439_v26  ;;  %v495_v20 = vsel %vm346_vm0, %v2029_v8, 0 }
  0x9c   :  { %v1504_v35 = vsel %vm1376_vm7, %v614_v24, %v1440_v29  ;;  %1157 = vmatpush.bf16.msrb.mxu3 %v489_v27  ;;  %1131 = vmatpush.bf16.msrb.mxu1 %v483_v30  ;;  %v2048_v27 = vld [vmem:[%s2982_s1 + $0xd8] sm:$0xf]  ;;  %v2177_v30 = vld [vmem:[%s2982_s1 + $0xdc] sm:$0xf] }
  0x9d   :  { %v626_v36 = vpop.f32.mrf.mxu2  ;;  %v1565_v41 = vpack.c.bf16 %v1504_v35, %v1503_v34  ;;  %v2209_v29 = vld [vmem:[%s2982_s1 + $0x1d4] sm:$0x30]  ;;  %v2053_v40 = vor.u32 %v2177_v30, %v2050_v31  ;;  %v2058_v31 = vld [vmem:[%s2982_s1 + $0x1e0] sm:$0x30] }
  0x9e   :  { %v627_v37 = vadd.f32 %v626_v36, %v2626_v55  ;;  %v639_v38 = vpop.f32.mrf.mxu3  ;;  %v602_v39 = vpop.f32.mrf.mxu0  ;;  %v2049_v35 = vor.u32 %v2209_v29, %v2048_v27  ;;  %v2040_v36 = vld [vmem:[%s2982_s1 + $0xd0] sm:$0xf]  ;;  %v2178_v27 = vld [vmem:[%s2982_s1 + $0xe4] sm:$0xf] }
  0x9f   :  { %v640_v42 = vadd.f32 %v639_v38, %v2626_v55  ;;  %v615_v43 = vpop.f32.mrf.mxu1  ;;  %v1630_v54 = vrot.slane %v1565_v41, 4  ;;  %v1631_v56 = vrot.slane %v1565_v41, 7  ;;  %v2176_v38 = vld [vmem:[%s2982_s1 + $0xd4] sm:$0xf] }
  0xa0   :  { %vm1377_vm12 = vcmp.ge.f32.partialorder %v627_v37, 0.0  ;;  %v1441_v45 = vmul.f32 0.2, %v627_v37  ;;  %v510_v53 = vsel %vm346_vm0, %v2049_v35, 0 }
  0xa1   :  { %vm1378_vm13 = vcmp.ge.f32.partialorder %v640_v42, 0.0  ;;  %v1442_v47 = vmul.f32 0.2, %v640_v42  ;;  %v1696_v11 = vsel %vm1693_vm11, %v1630_v54, %v1631_v56  ;;  %v513_v56 = vsel %vm346_vm0, %v2053_v40, 0 }
  0xa2   :  { %v1505_v49 = vsel %vm1377_vm12, %v627_v37, %v1441_v45  ;;  %v2208_v37 = vld [vmem:[%s2982_s1 + $0x1cc] sm:$0x30] }
  0xa3   :  { %v1506_v57 = vsel %vm1378_vm13, %v640_v42, %v1442_v47  ;;  %v2041_v41 = vor.u32 %v2208_v37, %v2040_v36  ;;  %v2042_v42 = vld [vmem:[%s2982_s1 + $0x1d0] sm:$0x30]  ;;  %v2061_v37 = vor.u32 %v2178_v27, %v2058_v31 }
  0xa4   :  { %v1566_v58 = vpack.c.bf16 %v1506_v57, %v1505_v49  ;;  %v2045_v45 = vor.u32 %v2176_v38, %v2042_v42 }
  0xa5   :  { %v628_v63 = vpop.f32.mrf.mxu2  ;;  %v504_v57 = vsel %vm346_vm0, %v2041_v41, 0 }
  0xa6   :  { %v1632_v4 = vrot.slane %v1566_v58, 2  ;;  %v1633_v5 = vrot.slane %v1566_v58, 5  ;;  %v641_v6 = vpop.f32.mrf.mxu3  ;;  %v652_v7 = vpop.f32.mrf.mxu0  ;;  %v507_v59 = vsel %vm346_vm0, %v2045_v45, 0 }
  0xa7   :  { %v665_v9 = vpop.f32.mrf.mxu1  ;;  %v653_v28 = vadd.f32 %v652_v7, %v2626_v55 }
  0xa8   :  { %v1700_v13 = vsel %vm1697_vm14, %v1632_v4, %v1633_v5  ;;  %v666_v32 = vadd.f32 %v665_v9, %v2626_v55 }
  0xa9   :  { %v1702_v16 = vsel %vm1701_vm15, %v1696_v11, %v1700_v13  ;;  %2126 = vmatmul.msk.bf16.vlgmr.msra.gmra.mxu0 %vm342_vm1, %v2265_v12  ;;  %2127 = vmatmul.msk.bf16.vlgmr.msra.gmra.mxu1 %vm342_vm1, %v2265_v12  ;;  %vm1379_vm5 = vcmp.ge.f32.partialorder %v653_v28, 0.0  ;;  %v1443_v46 = vmul.f32 0.2, %v653_v28 }
  0xaa   :  { %v1704_v19 = vsel %vm1703_vm2, %v1692_v15, %v1702_v16  ;;  %2128 = vmatmul.msk.bf16.vlgmr.msra.gmra.mxu2 %vm342_vm1, %v2265_v12  ;;  %1170 = vmatpush.bf16.msra.mxu0 %v492_v18  ;;  %vm1380_vm6 = vcmp.ge.f32.partialorder %v666_v32, 0.0  ;;  %v1444_v47 = vmul.f32 0.2, %v666_v32  ;;  %v2211_v16 = vld [vmem:[%s2982_s1 + $0x1e4] sm:$0x30] }
  0xab   :  { %1818 = vst [vmem:[%s2985_s3] sm:$0xff] %v1704_v19  ;;  %2129 = vmatmul.msk.bf16.vlgmr.msra.gmra.mxu3 %vm342_vm1, %v2265_v12  ;;  %1196 = vmatpush.bf16.msra.mxu2 %v498_v14  ;;  %v1507_v60 = vsel %vm1379_vm5, %v653_v28, %v1443_v46  ;;  %v2064_v14 = vld [vmem:[%s2982_s1 + $0xe8] sm:$0xf]  ;;  %v2066_v18 = vld [vmem:[%s2982_s1 + $0x1e8] sm:$0x30] }
  0xac   :  { %1209 = vmatpush.bf16.msra.mxu3 %v501_v17  ;;  %1183 = vmatpush.bf16.msra.mxu1 %v495_v20  ;;  %v1508_v61 = vsel %vm1380_vm6, %v666_v32, %v1444_v47  ;;  %v2179_v17 = vld [vmem:[%s2982_s1 + $0xec] sm:$0xf] }
  0xad   :  { %v678_v21 = vpop.f32.mrf.mxu2  ;;  %v1567_v5 = vpack.c.bf16 %v1508_v61, %v1507_v60  ;;  %v2069_v29 = vor.u32 %v2179_v17, %v2066_v18  ;;  %v2846_v18 = vld [vmem:[%s2983_s0] sm:$0x1] }
  0xae   :  { %v691_v22 = vpop.f32.mrf.mxu3  ;;  %v654_v23 = vpop.f32.mrf.mxu0  ;;  %v679_v24 = vadd.f32 %v678_v21, %v2626_v55 }
  0xaf   :  { %v692_v25 = vadd.f32 %v691_v22, %v2626_v55  ;;  %v667_v26 = vpop.f32.mrf.mxu1  ;;  %v1634_v19 = vrot.slane %v1567_v5, 3  ;;  %v525_v45 = vsel %vm346_vm0, %v2069_v29, 0 }
  0xb0   :  { %v1445_v33 = vmul.f32 0.2, %v679_v24  ;;  %vm1381_vm3 = vcmp.ge.f32.partialorder %v679_v24, 0.0  ;;  %v2210_v26 = vld [vmem:[%s2982_s1 + $0x1dc] sm:$0x30] }
  0xb1   :  { %v1446_v34 = vmul.f32 0.2, %v692_v25  ;;  %vm1382_vm4 = vcmp.ge.f32.partialorder %v692_v25, 0.0 }
  0xb2   :  { %v1509_v50 = vsel %vm1381_vm3, %v679_v24, %v1445_v33  ;;  %v2065_v24 = vor.u32 %v2211_v16, %v2064_v14 }
  0xb3   :  { %v1510_v51 = vsel %vm1382_vm4, %v692_v25, %v1446_v34  ;;  %v2056_v25 = vld [vmem:[%s2982_s1 + $0xe0] sm:$0xf] }
  0xb4   :  { %v1568_v62 = vpack.c.bf16 %v1510_v51, %v1509_v50  ;;  %v2057_v30 = vor.u32 %v2210_v26, %v2056_v25  ;;  %v522_v42 = vsel %vm346_vm0, %v2065_v24, 0 }
  0xb5   :  { %v680_v39 = vpop.f32.mrf.mxu2 }
  0xb6   :  { %v693_v43 = vpop.f32.mrf.mxu3  ;;  %v704_v44 = vpop.f32.mrf.mxu0  ;;  %v1635_v9 = vrot.slane %v1568_v62, 6  ;;  %v1636_v11 = vrot.slane %v1568_v62, 1  ;;  %v1707_v39 = vsel %vm1683_vm8, %v1567_v5, %v1634_v19  ;;  %v516_v46 = vsel %vm346_vm0, %v2057_v30, 0  ;;  %v2072_v62 = vld [vmem:[%s2982_s1 + $0xf0] sm:$0xf] }
  0xb7   :  { %v705_v48 = vadd.f32 %v704_v44, %v2626_v55  ;;  %v717_v49 = vpop.f32.mrf.mxu1 }
  0xb8   :  { %v718_v52 = vadd.f32 %v717_v49, %v2626_v55  ;;  %v1710_v32 = vsel %vm1687_vm9, %v1635_v9, %v1636_v11 }
  0xb9   :  { %vm1383_vm7 = vcmp.ge.f32.partialorder %v705_v48, 0.0  ;;  %v1447_v54 = vmul.f32 0.2, %v705_v48  ;;  %2130 = vmatmul.msk.bf16.vlgmr.msrb.gmra.mxu0 %vm342_vm1, %v2265_v12  ;;  %2131 = vmatmul.msk.bf16.vlgmr.msrb.gmra.mxu1 %vm342_vm1, %v2265_v12  ;;  %v1711_v43 = vsel %vm1691_vm10, %v1707_v39, %v1710_v32 }
  0xba   :  { %vm1384_vm12 = vcmp.ge.f32.partialorder %v718_v52, 0.0  ;;  %v1448_v58 = vmul.f32 0.2, %v718_v52  ;;  %2132 = vmatmul.msk.bf16.vlgmr.msrb.gmra.mxu2 %vm342_vm1, %v2265_v12  ;;  %1222 = vmatpush.bf16.msrb.mxu0 %v504_v57  ;;  %v2082_v57 = vld [vmem:[%s2982_s1 + $0x1f8] sm:$0x30] }
  0xbb   :  { %2133 = vmatmul.msk.bf16.vlgmr.msrb.gmra.mxu3 %vm342_vm1, %v2265_v12  ;;  %1248 = vmatpush.bf16.msrb.mxu2 %v510_v53  ;;  %v1511_v63 = vsel %vm1383_vm7, %v705_v48, %v1447_v54  ;;  %v519_v48 = vsel %vm346_vm0, %v2061_v37, 0  ;;  %v2080_v53 = vld [vmem:[%s2982_s1 + $0xf8] sm:$0xf] }
  0xbc   :  { %v1512_v0 = vsel %vm1384_vm12, %v718_v52, %v1448_v58  ;;  %1261 = vmatpush.bf16.msrb.mxu3 %v513_v56  ;;  %1235 = vmatpush.bf16.msrb.mxu1 %v507_v59  ;;  %v2213_v56 = vld [vmem:[%s2982_s1 + $0x1f4] sm:$0x30] }
  0xbd   :  { %v730_v1 = vpop.f32.mrf.mxu2  ;;  %v1569_v6 = vpack.c.bf16 %v1512_v0, %v1511_v63  ;;  %v2081_v61 = vor.u32 %v2213_v56, %v2080_v53  ;;  %v2212_v63 = vld [vmem:[%s2982_s1 + $0x1ec] sm:$0x30]  ;;  %v2180_v0 = vld [vmem:[%s2982_s1 + $0xf4] sm:$0xf] }
  0xbe   :  { %v731_v2 = vadd.f32 %v730_v1, %v2626_v55  ;;  %v743_v3 = vpop.f32.mrf.mxu3  ;;  %v706_v4 = vpop.f32.mrf.mxu0 }
  0xbf   :  { %v744_v7 = vadd.f32 %v743_v3, %v2626_v55  ;;  %v719_v8 = vpop.f32.mrf.mxu1  ;;  %v1637_v20 = vrot.slane %v1569_v6, 4  ;;  %v1638_v21 = vrot.slane %v1569_v6, 7  ;;  %v2073_v3 = vor.u32 %v2212_v63, %v2072_v62  ;;  %v2074_v4 = vld [vmem:[%s2982_s1 + $0x1f0] sm:$0x30] }
  0xc0   :  { %vm1385_vm13 = vcmp.ge.f32.partialorder %v731_v2, 0.0  ;;  %v1449_v10 = vmul.f32 0.2, %v731_v2  ;;  %v2077_v8 = vor.u32 %v2180_v0, %v2074_v4 }
  0xc1   :  { %vm1386_vm3 = vcmp.ge.f32.partialorder %v744_v7, 0.0  ;;  %v1450_v13 = vmul.f32 0.2, %v744_v7  ;;  %v1714_v40 = vsel %vm1693_vm11, %v1637_v20, %v1638_v21  ;;  %v528_v20 = vsel %vm346_vm0, %v2073_v3, 0 }
  0xc2   :  { %v1513_v15 = vsel %vm1385_vm13, %v731_v2, %v1449_v10 }
  0xc3   :  { %v1514_v22 = vsel %vm1386_vm3, %v744_v7, %v1450_v13 }
  0xc4   :  { %v1570_v23 = vpack.c.bf16 %v1514_v22, %v1513_v15  ;;  %v534_v15 = vsel %vm346_vm0, %v2081_v61, 0  ;;  %v531_v22 = vsel %vm346_vm0, %v2077_v8, 0 }
  0xc5   :  { %v732_v28 = vpop.f32.mrf.mxu2 }
  0xc6   :  { %v1639_v33 = vrot.slane %v1570_v23, 2  ;;  %v1640_v34 = vrot.slane %v1570_v23, 5  ;;  %v745_v35 = vpop.f32.mrf.mxu3  ;;  %v756_v36 = vpop.f32.mrf.mxu0 }
  0xc7   :  { %v769_v38 = vpop.f32.mrf.mxu1  ;;  %v757_v54 = vadd.f32 %v756_v36, %v2626_v55 }
  0xc8   :  { %v1717_v41 = vsel %vm1697_vm14, %v1639_v33, %v1640_v34  ;;  %v770_v58 = vadd.f32 %v769_v38, %v2626_v55 }
  0xc9   :  { %v1718_v44 = vsel %vm1701_vm15, %v1714_v40, %v1717_v41  ;;  %2134 = vmatmul.msk.bf16.vlgmr.msra.gmra.mxu0 %vm342_vm1, %v2265_v12  ;;  %2135 = vmatmul.msk.bf16.vlgmr.msra.gmra.mxu1 %vm342_vm1, %v2265_v12  ;;  %vm1387_vm4 = vcmp.ge.f32.partialorder %v757_v54, 0.0  ;;  %v1451_v5 = vmul.f32 0.2, %v757_v54 }
  0xca   :  { %v1719_v47 = vsel %vm1703_vm2, %v1711_v43, %v1718_v44  ;;  %2136 = vmatmul.msk.bf16.vlgmr.msra.gmra.mxu2 %vm342_vm1, %v2265_v12  ;;  %1274 = vmatpush.bf16.msra.mxu0 %v516_v46  ;;  %vm1388_vm5 = vcmp.ge.f32.partialorder %v770_v58, 0.0  ;;  %v1452_v16 = vmul.f32 0.2, %v770_v58 }
  0xcb   :  { %1819 = vst [vmem:[%s2985_s3 + $0x8] sm:$0xff] %v1719_v47  ;;  %2137 = vmatmul.msk.bf16.vlgmr.msra.gmra.mxu3 %vm342_vm1, %v2265_v12  ;;  %1300 = vmatpush.bf16.msra.mxu2 %v522_v42  ;;  %v2181_v12 = vld [vmem:[%s2982_s1 + $0xfc] sm:$0xf]  ;;  %v1515_v25 = vsel %vm1387_vm4, %v757_v54, %v1451_v5 }
  0xcc   :  { %1313 = vmatpush.bf16.msra.mxu3 %v525_v45  ;;  %1287 = vmatpush.bf16.msra.mxu1 %v519_v48  ;;  %v2085_v2 = vor.u32 %v2181_v12, %v2082_v57  ;;  %v1516_v26 = vsel %vm1388_vm5, %v770_v58, %v1452_v16 }
  0xcd   :  { %v782_v49 = vpop.f32.mrf.mxu2  ;;  %v1571_v36 = vpack.c.bf16 %v1516_v26, %v1515_v25 }
  0xce   :  { %v795_v50 = vpop.f32.mrf.mxu3  ;;  %v758_v51 = vpop.f32.mrf.mxu0  ;;  %v783_v59 = vadd.f32 %v782_v49, %v2626_v55  ;;  %v537_v19 = vsel %vm346_vm0, %v2085_v2, 0 }
  0xcf   :  { %v771_v52 = vpop.f32.mrf.mxu1  ;;  %v796_v60 = vadd.f32 %v795_v50, %v2626_v55  ;;  %v1641_v44 = vrot.slane %v1571_v36, 3 }
  0xd0   :  { %v1453_v9 = vmul.f32 0.2, %v783_v59  ;;  %vm1389_vm6 = vcmp.ge.f32.partialorder %v783_v59, 0.0 }
  0xd1   :  { %v1454_v10 = vmul.f32 0.2, %v796_v60  ;;  %vm1390_vm7 = vcmp.ge.f32.partialorder %v796_v60, 0.0  ;;  %v1722_v56 = vsel %vm1683_vm8, %v1571_v36, %v1641_v44 }
  0xd2   :  { %v1517_v23 = vsel %vm1389_vm6, %v783_v59, %v1453_v9 }
  0xd3   :  { %v1518_v24 = vsel %vm1390_vm7, %v796_v60, %v1454_v10 }
  0xd4   :  { %v1572_v30 = vpack.c.bf16 %v1518_v24, %v1517_v23 }
  0xd5   :  { %v784_v1 = vpop.f32.mrf.mxu2 }
  0xd6   :  { %v797_v6 = vpop.f32.mrf.mxu3  ;;  %v808_v7 = vpop.f32.mrf.mxu0  ;;  %v1642_v40 = vrot.slane %v1572_v30, 6  ;;  %v1643_v41 = vrot.slane %v1572_v30, 1 }
  0xd7   :  { %v809_v11 = vadd.f32 %v808_v7, %v2626_v55  ;;  %v821_v13 = vpop.f32.mrf.mxu1 }
  0xd8   :  { %v822_v14 = vadd.f32 %v821_v13, %v2626_v55  ;;  %v1725_v49 = vsel %vm1687_vm9, %v1642_v40, %v1643_v41 }
  0xd9   :  { %v1455_v17 = vmul.f32 0.2, %v809_v11  ;;  %2138 = vmatmul.msk.bf16.vlgmr.msrb.gmra.mxu0 %vm342_vm1, %v2846_v18  ;;  %vm1391_vm12 = vcmp.ge.f32.partialorder %v809_v11, 0.0  ;;  %2139 = vmatmul.msk.bf16.vlgmr.msrb.gmra.mxu1 %vm342_vm1, %v2846_v18  ;;  %v1726_v58 = vsel %vm1691_vm10, %v1722_v56, %v1725_v49 }
  0xda   :  { %vm1392_vm13 = vcmp.ge.f32.partialorder %v822_v14, 0.0  ;;  %v1456_v21 = vmul.f32 0.2, %v822_v14  ;;  %2140 = vmatmul.msk.bf16.vlgmr.msrb.gmra.mxu2 %vm342_vm1, %v2846_v18  ;;  %1326 = vmatpush.bf16.msrb.mxu0 %v528_v20 }
  0xdb   :  { %2141 = vmatmul.msk.bf16.vlgmr.msrb.gmra.mxu3 %vm342_vm1, %v2846_v18  ;;  %1352 = vmatpush.bf16.msrb.mxu2 %v534_v15  ;;  %v1519_v27 = vsel %vm1391_vm12, %v809_v11, %v1455_v17 }
  0xdc   :  { %1365 = vmatpush.bf16.msrb.mxu3 %v537_v19  ;;  %v1520_v28 = vsel %vm1392_vm13, %v822_v14, %v1456_v21  ;;  %1339 = vmatpush.bf16.msrb.mxu1 %v531_v22 }
  0xdd   :  { %v834_v29 = vpop.f32.mrf.mxu2  ;;  %v1573_v37 = vpack.c.bf16 %v1520_v28, %v1519_v27 }
  0xde   :  { %v835_v31 = vadd.f32 %v834_v29, %v2626_v55  ;;  %v847_v32 = vpop.f32.mrf.mxu3  ;;  %v810_v33 = vpop.f32.mrf.mxu0 }
  0xdf   :  { %v848_v34 = vadd.f32 %v847_v32, %v2626_v55  ;;  %v823_v35 = vpop.f32.mrf.mxu1  ;;  %v1644_v45 = vrot.slane %v1573_v37, 4  ;;  %v1645_v46 = vrot.slane %v1573_v37, 7 }
  0xe0   :  { %vm1393_vm0 = vcmp.ge.f32.partialorder %v835_v31, 0.0  ;;  %v1457_v38 = vmul.f32 0.2, %v835_v31 }
  0xe1   :  { %vm1394_vm3 = vcmp.ge.f32.partialorder %v848_v34, 0.0  ;;  %v1458_v39 = vmul.f32 0.2, %v848_v34  ;;  %v1729_v12 = vsel %vm1693_vm11, %v1644_v45, %v1645_v46 }
  0xe2   :  { %v1521_v42 = vsel %vm1393_vm0, %v835_v31, %v1457_v38 }
  0xe3   :  { %v1522_v43 = vsel %vm1394_vm3, %v848_v34, %v1458_v39 }
  0xe4   :  { %v1574_v47 = vpack.c.bf16 %v1522_v43, %v1521_v42 }
  0xe5   :  { %v836_v48 = vpop.f32.mrf.mxu2 }
  0xe6   :  { %v1646_v50 = vrot.slane %v1574_v47, 2  ;;  %v1647_v51 = vrot.slane %v1574_v47, 5  ;;  %v849_v52 = vpop.f32.mrf.mxu3  ;;  %v860_v53 = vpop.f32.mrf.mxu0 }
  0xe7   :  { %v873_v54 = vpop.f32.mrf.mxu1  ;;  %v861_v3 = vadd.f32 %v860_v53, %v2626_v55 }
  0xe8   :  { %v1732_v57 = vsel %vm1697_vm14, %v1646_v50, %v1647_v51  ;;  %v874_v4 = vadd.f32 %v873_v54, %v2626_v55 }
  0xe9   :  { %v1733_v59 = vsel %vm1701_vm15, %v1729_v12, %v1732_v57  ;;  %2142 = vmatmul.msk.bf16.vlgmr.msra.gmra.mxu0 %vm342_vm1, %v2846_v18  ;;  %2143 = vmatmul.msk.bf16.vlgmr.msra.gmra.mxu1 %vm342_vm1, %v2846_v18  ;;  %vm1395_vm4 = vcmp.ge.f32.partialorder %v861_v3, 0.0  ;;  %v1459_v14 = vmul.f32 0.2, %v861_v3 }
  0xea   :  { %v1734_v60 = vsel %vm1703_vm2, %v1726_v58, %v1733_v59  ;;  %2144 = vmatmul.msk.bf16.vlgmr.msra.gmra.mxu2 %vm342_vm1, %v2846_v18  ;;  %v1460_v15 = vmul.f32 0.2, %v874_v4  ;;  %vm1396_vm7 = vcmp.ge.f32.partialorder %v874_v4, 0.0 }
  0xeb   :  { %1820 = vst [vmem:[%s2985_s3 + $0x10] sm:$0xff] %v1734_v60  ;;  %2145 = vmatmul.msk.bf16.vlgmr.msra.gmra.mxu3 %vm342_vm1, %v2846_v18  ;;  %v1523_v21 = vsel %vm1395_vm4, %v861_v3, %v1459_v14 }
  0xec   :  { %v1524_v22 = vsel %vm1396_vm7, %v874_v4, %v1460_v15 }
  0xed   :  { %v886_v61 = vpop.f32.mrf.mxu2  ;;  %v1575_v32 = vpack.c.bf16 %v1524_v22, %v1523_v21 }
  0xee   :  { %v899_v62 = vpop.f32.mrf.mxu3  ;;  %v862_v63 = vpop.f32.mrf.mxu0  ;;  %v887_v1 = vadd.f32 %v886_v61, %v2626_v55 }
  0xef   :  { %v875_v0 = vpop.f32.mrf.mxu1  ;;  %v900_v2 = vadd.f32 %v899_v62, %v2626_v55  ;;  %v1648_v39 = vrot.slane %v1575_v32, 3 }
  0xf0   :  { %v1461_v8 = vmul.f32 0.2, %v887_v1  ;;  %vm1397_vm5 = vcmp.ge.f32.partialorder %v887_v1, 0.0 }
  0xf1   :  { %v1462_v9 = vmul.f32 0.2, %v900_v2  ;;  %vm1398_vm6 = vcmp.ge.f32.partialorder %v900_v2, 0.0  ;;  %v1737_v50 = vsel %vm1683_vm8, %v1575_v32, %v1648_v39 }
  0xf2   :  { %v1525_v19 = vsel %vm1397_vm5, %v887_v1, %v1461_v8 }
  0xf3   :  { %v1526_v20 = vsel %vm1398_vm6, %v900_v2, %v1462_v9 }
  0xf4   :  { %v1576_v26 = vpack.c.bf16 %v1526_v20, %v1525_v19 }
  0xf5   :  { %v888_v5 = vpop.f32.mrf.mxu2 }
  0xf6   :  { %v901_v6 = vpop.f32.mrf.mxu3  ;;  %v912_v7 = vpop.f32.mrf.mxu0  ;;  %v1649_v35 = vrot.slane %v1576_v26, 6  ;;  %v1650_v36 = vrot.slane %v1576_v26, 1 }
  0xf7   :  { %v913_v10 = vadd.f32 %v912_v7, %v2626_v55  ;;  %v925_v11 = vpop.f32.mrf.mxu1 }
  0xf8   :  { %v926_v13 = vadd.f32 %v925_v11, %v2626_v55  ;;  %v1740_v44 = vsel %vm1687_vm9, %v1649_v35, %v1650_v36 }
  0xf9   :  { %v1463_v16 = vmul.f32 0.2, %v913_v10  ;;  %2146 = vmatmul.msk.bf16.vlgmr.msrb.gmra.mxu0 %vm342_vm1, %v2846_v18  ;;  %vm1399_vm12 = vcmp.ge.f32.partialorder %v913_v10, 0.0  ;;  %2147 = vmatmul.msk.bf16.vlgmr.msrb.gmra.mxu1 %vm342_vm1, %v2846_v18  ;;  %v1741_v53 = vsel %vm1691_vm10, %v1737_v50, %v1740_v44 }
  0xfa   :  { %vm1400_vm13 = vcmp.ge.f32.partialorder %v926_v13, 0.0  ;;  %v1464_v17 = vmul.f32 0.2, %v926_v13  ;;  %2148 = vmatmul.msk.bf16.vlgmr.msrb.gmra.mxu2 %vm342_vm1, %v2846_v18 }
  0xfb   :  { %2149 = vmatmul.msk.bf16.vlgmr.msrb.gmra.mxu3 %vm342_vm1, %v2846_v18  ;;  %v1527_v23 = vsel %vm1399_vm12, %v913_v10, %v1463_v16 }
  0xfc   :  { %v1528_v24 = vsel %vm1400_vm13, %v926_v13, %v1464_v17 }
  0xfd   :  { %v938_v25 = vpop.f32.mrf.mxu2  ;;  %v1577_v33 = vpack.c.bf16 %v1528_v24, %v1527_v23 }
  0xfe   :  { %v939_v27 = vadd.f32 %v938_v25, %v2626_v55  ;;  %v951_v28 = vpop.f32.mrf.mxu3  ;;  %v914_v29 = vpop.f32.mrf.mxu0 }
  0xff   :  { %v952_v30 = vadd.f32 %v951_v28, %v2626_v55  ;;  %v927_v31 = vpop.f32.mrf.mxu1  ;;  %v1651_v40 = vrot.slane %v1577_v33, 4  ;;  %v1652_v41 = vrot.slane %v1577_v33, 7 }
 0x100   :  { %vm1401_vm0 = vcmp.ge.f32.partialorder %v939_v27, 0.0  ;;  %v1465_v34 = vmul.f32 0.2, %v939_v27 }
 0x101   :  { %vm1402_vm3 = vcmp.ge.f32.partialorder %v952_v30, 0.0  ;;  %v1466_v18 = vmul.f32 0.2, %v952_v30  ;;  %v1744_v51 = vsel %vm1693_vm11, %v1651_v40, %v1652_v41 }
 0x102   :  { %v1529_v37 = vsel %vm1401_vm0, %v939_v27, %v1465_v34 }
 0x103   :  { %v1530_v38 = vsel %vm1402_vm3, %v952_v30, %v1466_v18 }
 0x104   :  { %v1578_v42 = vpack.c.bf16 %v1530_v38, %v1529_v37 }
 0x105   :  { %v940_v43 = vpop.f32.mrf.mxu2 }
 0x106   :  { %v1653_v45 = vrot.slane %v1578_v42, 2  ;;  %v1654_v46 = vrot.slane %v1578_v42, 5  ;;  %v953_v47 = vpop.f32.mrf.mxu3  ;;  %v964_v48 = vpop.f32.mrf.mxu0 }
 0x107   :  { %v977_v49 = vpop.f32.mrf.mxu1  ;;  %v965_v62 = vadd.f32 %v964_v48, %v2626_v55 }
 0x108   :  { %v1747_v52 = vsel %vm1697_vm14, %v1653_v45, %v1654_v46  ;;  %v978_v63 = vadd.f32 %v977_v49, %v2626_v55 }
 0x109   :  { %v1748_v54 = vsel %vm1701_vm15, %v1744_v51, %v1747_v52  ;;  %vm1403_vm1 = vcmp.ge.f32.partialorder %v965_v62, 0.0  ;;  %v1467_v8 = vmul.f32 0.2, %v965_v62 }
 0x10a   :  { %v1749_v56 = vsel %vm1703_vm2, %v1741_v53, %v1748_v54  ;;  %v1468_v9 = vmul.f32 0.2, %v978_v63  ;;  %vm1404_vm6 = vcmp.ge.f32.partialorder %v978_v63, 0.0 }
 0x10b   :  { %1821 = vst [vmem:[%s2985_s3 + $0x18] sm:$0xff] %v1749_v56  ;;  %v1531_v15 = vsel %vm1403_vm1, %v965_v62, %v1467_v8 }
 0x10c   :  { %v1532_v16 = vsel %vm1404_vm6, %v978_v63, %v1468_v9 }
 0x10d   :  { %v990_v12 = vpop.f32.mrf.mxu2  ;;  %v1579_v27 = vpack.c.bf16 %v1532_v16, %v1531_v15 }
 0x10e   :  { %v1003_v57 = vpop.f32.mrf.mxu3  ;;  %v966_v58 = vpop.f32.mrf.mxu0  ;;  %v991_v60 = vadd.f32 %v990_v12, %v2626_v55 }
 0x10f   :  { %v979_v59 = vpop.f32.mrf.mxu1  ;;  %v1004_v61 = vadd.f32 %v1003_v57, %v2626_v55  ;;  %v1655_v18 = vrot.slane %v1579_v27, 3 }
 0x110   :  { %v1469_v3 = vmul.f32 0.2, %v991_v60  ;;  %vm1405_vm4 = vcmp.ge.f32.partialorder %v991_v60, 0.0 }
 0x111   :  { %v1470_v4 = vmul.f32 0.2, %v1004_v61  ;;  %vm1406_vm5 = vcmp.ge.f32.partialorder %v1004_v61, 0.0  ;;  %v1752_v45 = vsel %vm1683_vm8, %v1579_v27, %v1655_v18 }
 0x112   :  { %v1533_v13 = vsel %vm1405_vm4, %v991_v60, %v1469_v3 }
 0x113   :  { %v1534_v14 = vsel %vm1406_vm5, %v1004_v61, %v1470_v4 }
 0x114   :  { %v1580_v21 = vpack.c.bf16 %v1534_v14, %v1533_v13 }
 0x115   :  { %v992_v0 = vpop.f32.mrf.mxu2 }
 0x116   :  { %v1005_v1 = vpop.f32.mrf.mxu3  ;;  %v1016_v2 = vpop.f32.mrf.mxu0  ;;  %v1656_v31 = vrot.slane %v1580_v21, 6  ;;  %v1657_v32 = vrot.slane %v1580_v21, 1 }
 0x117   :  { %v1017_v5 = vadd.f32 %v1016_v2, %v2626_v55  ;;  %v1029_v6 = vpop.f32.mrf.mxu1 }
 0x118   :  { %v1030_v7 = vadd.f32 %v1029_v6, %v2626_v55  ;;  %v1755_v39 = vsel %vm1687_vm9, %v1656_v31, %v1657_v32 }
 0x119   :  { %v1471_v10 = vmul.f32 0.2, %v1017_v5  ;;  %vm1407_vm7 = vcmp.ge.f32.partialorder %v1017_v5, 0.0  ;;  %v1756_v48 = vsel %vm1691_vm10, %v1752_v45, %v1755_v39 }
 0x11a   :  { %vm1408_vm12 = vcmp.ge.f32.partialorder %v1030_v7, 0.0  ;;  %v1472_v11 = vmul.f32 0.2, %v1030_v7 }
 0x11b   :  { %v1535_v17 = vsel %vm1407_vm7, %v1017_v5, %v1471_v10 }
 0x11c   :  { %v1536_v19 = vsel %vm1408_vm12, %v1030_v7, %v1472_v11 }
 0x11d   :  { %v1042_v20 = vpop.f32.mrf.mxu2  ;;  %v1581_v28 = vpack.c.bf16 %v1536_v19, %v1535_v17 }
 0x11e   :  { %v1043_v22 = vadd.f32 %v1042_v20, %v2626_v55  ;;  %v1055_v23 = vpop.f32.mrf.mxu3  ;;  %v1018_v24 = vpop.f32.mrf.mxu0 }
 0x11f   :  { %v1056_v25 = vadd.f32 %v1055_v23, %v2626_v55  ;;  %v1031_v26 = vpop.f32.mrf.mxu1  ;;  %v1658_v35 = vrot.slane %v1581_v28, 4  ;;  %v1659_v36 = vrot.slane %v1581_v28, 7 }
 0x120   :  { %vm1409_vm13 = vcmp.ge.f32.partialorder %v1043_v22, 0.0  ;;  %v1473_v29 = vmul.f32 0.2, %v1043_v22 }
 0x121   :  { %vm1410_vm0 = vcmp.ge.f32.partialorder %v1056_v25, 0.0  ;;  %v1474_v30 = vmul.f32 0.2, %v1056_v25  ;;  %v1759_v46 = vsel %vm1693_vm11, %v1658_v35, %v1659_v36 }
 0x122   :  { %v1537_v33 = vsel %vm1409_vm13, %v1043_v22, %v1473_v29 }
 0x123   :  { %v1538_v34 = vsel %vm1410_vm0, %v1056_v25, %v1474_v30 }
 0x124   :  { %v1582_v37 = vpack.c.bf16 %v1538_v34, %v1537_v33 }
 0x125   :  { %v1044_v38 = vpop.f32.mrf.mxu2 }
 0x126   :  { %v1660_v40 = vrot.slane %v1582_v37, 2  ;;  %v1661_v41 = vrot.slane %v1582_v37, 5  ;;  %v1057_v42 = vpop.f32.mrf.mxu3  ;;  %v1068_v43 = vpop.f32.mrf.mxu0 }
 0x127   :  { %v1081_v44 = vpop.f32.mrf.mxu1  ;;  %v1069_v57 = vadd.f32 %v1068_v43, %v2626_v55 }
 0x128   :  { %v1762_v47 = vsel %vm1697_vm14, %v1660_v40, %v1661_v41  ;;  %v1082_v58 = vadd.f32 %v1081_v44, %v2626_v55 }
 0x129   :  { %v1763_v49 = vsel %vm1701_vm15, %v1759_v46, %v1762_v47  ;;  %vm1411_vm3 = vcmp.ge.f32.partialorder %v1069_v57, 0.0  ;;  %v1475_v3 = vmul.f32 0.2, %v1069_v57 }
 0x12a   :  { %v1764_v50 = vsel %vm1703_vm2, %v1756_v48, %v1763_v49  ;;  %v1476_v4 = vmul.f32 0.2, %v1082_v58  ;;  %vm1412_vm5 = vcmp.ge.f32.partialorder %v1082_v58, 0.0 }
 0x12b   :  { %1822 = vst [vmem:[%s2985_s3 + $0x20] sm:$0xff] %v1764_v50  ;;  %v1539_v9 = vsel %vm1411_vm3, %v1069_v57, %v1475_v3 }
 0x12c   :  { %v1540_v10 = vsel %vm1412_vm5, %v1082_v58, %v1476_v4 }
 0x12d   :  { %v1094_v51 = vpop.f32.mrf.mxu2  ;;  %v1583_v22 = vpack.c.bf16 %v1540_v10, %v1539_v9 }
 0x12e   :  { %v1107_v52 = vpop.f32.mrf.mxu3  ;;  %v1070_v53 = vpop.f32.mrf.mxu0  ;;  %v1095_v56 = vadd.f32 %v1094_v51, %v2626_v55 }
 0x12f   :  { %v1083_v54 = vpop.f32.mrf.mxu1  ;;  %v1108_v12 = vadd.f32 %v1107_v52, %v2626_v55  ;;  %v1662_v30 = vrot.slane %v1583_v22, 3 }
 0x130   :  { %v1477_v62 = vmul.f32 0.2, %v1095_v56  ;;  %vm1413_vm1 = vcmp.ge.f32.partialorder %v1095_v56, 0.0 }
 0x131   :  { %v1478_v63 = vmul.f32 0.2, %v1108_v12  ;;  %vm1414_vm4 = vcmp.ge.f32.partialorder %v1108_v12, 0.0  ;;  %v1767_v40 = vsel %vm1683_vm8, %v1583_v22, %v1662_v30 }
 0x132   :  { %v1541_v7 = vsel %vm1413_vm1, %v1095_v56, %v1477_v62 }
 0x133   :  { %v1542_v8 = vsel %vm1414_vm4, %v1108_v12, %v1478_v63 }
 0x134   :  { %v1584_v15 = vpack.c.bf16 %v1542_v8, %v1541_v7 }
 0x135   :  { %v1096_v59 = vpop.f32.mrf.mxu2 }
 0x136   :  { %v1109_v60 = vpop.f32.mrf.mxu3  ;;  %v1120_v61 = vpop.f32.mrf.mxu0  ;;  %v1663_v26 = vrot.slane %v1584_v15, 6  ;;  %v1664_v27 = vrot.slane %v1584_v15, 1 }
 0x137   :  { %v1121_v0 = vadd.f32 %v1120_v61, %v2626_v55  ;;  %v1133_v1 = vpop.f32.mrf.mxu1 }
 0x138   :  { %v1134_v2 = vadd.f32 %v1133_v1, %v2626_v55  ;;  %v1770_v18 = vsel %vm1687_vm9, %v1663_v26, %v1664_v27 }
 0x139   :  { %v1479_v5 = vmul.f32 0.2, %v1121_v0  ;;  %vm1415_vm6 = vcmp.ge.f32.partialorder %v1121_v0, 0.0  ;;  %v1771_v43 = vsel %vm1691_vm10, %v1767_v40, %v1770_v18 }
 0x13a   :  { %vm1416_vm7 = vcmp.ge.f32.partialorder %v1134_v2, 0.0  ;;  %v1480_v6 = vmul.f32 0.2, %v1134_v2 }
 0x13b   :  { %v1543_v11 = vsel %vm1415_vm6, %v1121_v0, %v1479_v5 }
 0x13c   :  { %v1544_v13 = vsel %vm1416_vm7, %v1134_v2, %v1480_v6 }
 0x13d   :  { %v1146_v14 = vpop.f32.mrf.mxu2  ;;  %v1585_v23 = vpack.c.bf16 %v1544_v13, %v1543_v11 }
 0x13e   :  { %v1147_v16 = vadd.f32 %v1146_v14, %v2626_v55  ;;  %v1159_v17 = vpop.f32.mrf.mxu3  ;;  %v1122_v19 = vpop.f32.mrf.mxu0 }
 0x13f   :  { %v1160_v20 = vadd.f32 %v1159_v17, %v2626_v55  ;;  %v1135_v21 = vpop.f32.mrf.mxu1  ;;  %v1665_v31 = vrot.slane %v1585_v23, 4  ;;  %v1666_v32 = vrot.slane %v1585_v23, 7 }
 0x140   :  { %vm1417_vm12 = vcmp.ge.f32.partialorder %v1147_v16, 0.0  ;;  %v1481_v24 = vmul.f32 0.2, %v1147_v16 }
 0x141   :  { %vm1418_vm13 = vcmp.ge.f32.partialorder %v1160_v20, 0.0  ;;  %v1482_v25 = vmul.f32 0.2, %v1160_v20  ;;  %v1774_v41 = vsel %vm1693_vm11, %v1665_v31, %v1666_v32 }
 0x142   :  { %v1545_v28 = vsel %vm1417_vm12, %v1147_v16, %v1481_v24 }
 0x143   :  { %v1546_v29 = vsel %vm1418_vm13, %v1160_v20, %v1482_v25 }
 0x144   :  { %v1586_v33 = vpack.c.bf16 %v1546_v29, %v1545_v28 }
 0x145   :  { %v1148_v34 = vpop.f32.mrf.mxu2 }
 0x146   :  { %v1667_v35 = vrot.slane %v1586_v33, 2  ;;  %v1668_v36 = vrot.slane %v1586_v33, 5  ;;  %v1161_v37 = vpop.f32.mrf.mxu3  ;;  %v1172_v38 = vpop.f32.mrf.mxu0 }
 0x147   :  { %v1185_v39 = vpop.f32.mrf.mxu1  ;;  %v1173_v52 = vadd.f32 %v1172_v38, %v2626_v55 }
 0x148   :  { %v1777_v42 = vsel %vm1697_vm14, %v1667_v35, %v1668_v36  ;;  %v1186_v53 = vadd.f32 %v1185_v39, %v2626_v55 }
 0x149   :  { %v1778_v44 = vsel %vm1701_vm15, %v1774_v41, %v1777_v42  ;;  %vm1419_vm0 = vcmp.ge.f32.partialorder %v1173_v52, 0.0  ;;  %v1483_v62 = vmul.f32 0.2, %v1173_v52 }
 0x14a   :  { %v1779_v45 = vsel %vm1703_vm2, %v1771_v43, %v1778_v44  ;;  %v1484_v63 = vmul.f32 0.2, %v1186_v53  ;;  %vm1420_vm4 = vcmp.ge.f32.partialorder %v1186_v53, 0.0 }
 0x14b   :  { %1823 = vst [vmem:[%s2985_s3 + $0x28] sm:$0xff] %v1779_v45  ;;  %v1547_v4 = vsel %vm1419_vm0, %v1173_v52, %v1483_v62 }
 0x14c   :  { %v1548_v5 = vsel %vm1420_vm4, %v1186_v53, %v1484_v63 }
 0x14d   :  { %v1198_v46 = vpop.f32.mrf.mxu2  ;;  %v1587_v16 = vpack.c.bf16 %v1548_v5, %v1547_v4 }
 0x14e   :  { %v1211_v47 = vpop.f32.mrf.mxu3  ;;  %v1174_v48 = vpop.f32.mrf.mxu0  ;;  %v1199_v50 = vadd.f32 %v1198_v46, %v2626_v55 }
 0x14f   :  { %v1187_v49 = vpop.f32.mrf.mxu1  ;;  %v1212_v51 = vadd.f32 %v1211_v47, %v2626_v55  ;;  %v1669_v25 = vrot.slane %v1587_v16, 3 }
 0x150   :  { %v1485_v57 = vmul.f32 0.2, %v1199_v50  ;;  %vm1421_vm3 = vcmp.ge.f32.partialorder %v1199_v50, 0.0 }
 0x151   :  { %v1486_v58 = vmul.f32 0.2, %v1212_v51  ;;  %vm1422_vm1 = vcmp.ge.f32.partialorder %v1212_v51, 0.0  ;;  %v1782_v35 = vsel %vm1683_vm8, %v1587_v16, %v1669_v25 }
 0x152   :  { %v1549_v2 = vsel %vm1421_vm3, %v1199_v50, %v1485_v57 }
 0x153   :  { %v1550_v3 = vsel %vm1422_vm1, %v1212_v51, %v1486_v58 }
 0x154   :  { %v1588_v9 = vpack.c.bf16 %v1550_v3, %v1549_v2 }
 0x155   :  { %v1200_v54 = vpop.f32.mrf.mxu2 }
 0x156   :  { %v1213_v56 = vpop.f32.mrf.mxu3  ;;  %v1224_v12 = vpop.f32.mrf.mxu0  ;;  %v1670_v21 = vrot.slane %v1588_v9, 6  ;;  %v1671_v22 = vrot.slane %v1588_v9, 1 }
 0x157   :  { %v1225_v59 = vadd.f32 %v1224_v12, %v2626_v55  ;;  %v1237_v60 = vpop.f32.mrf.mxu1 }
 0x158   :  { %v1238_v61 = vadd.f32 %v1237_v60, %v2626_v55  ;;  %v1785_v30 = vsel %vm1687_vm9, %v1670_v21, %v1671_v22 }
 0x159   :  { %v1487_v0 = vmul.f32 0.2, %v1225_v59  ;;  %vm1423_vm5 = vcmp.ge.f32.partialorder %v1225_v59, 0.0  ;;  %v1786_v38 = vsel %vm1691_vm10, %v1782_v35, %v1785_v30 }
 0x15a   :  { %vm1424_vm6 = vcmp.ge.f32.partialorder %v1238_v61, 0.0  ;;  %v1488_v1 = vmul.f32 0.2, %v1238_v61 }
 0x15b   :  { %v1551_v6 = vsel %vm1423_vm5, %v1225_v59, %v1487_v0 }
 0x15c   :  { %v1552_v7 = vsel %vm1424_vm6, %v1238_v61, %v1488_v1 }
 0x15d   :  { %v1250_v8 = vpop.f32.mrf.mxu2  ;;  %v1589_v17 = vpack.c.bf16 %v1552_v7, %v1551_v6 }
 0x15e   :  { %v1251_v10 = vadd.f32 %v1250_v8, %v2626_v55  ;;  %v1263_v11 = vpop.f32.mrf.mxu3  ;;  %v1226_v13 = vpop.f32.mrf.mxu0 }
 0x15f   :  { %v1264_v14 = vadd.f32 %v1263_v11, %v2626_v55  ;;  %v1239_v15 = vpop.f32.mrf.mxu1  ;;  %v1672_v26 = vrot.slane %v1589_v17, 4  ;;  %v1673_v27 = vrot.slane %v1589_v17, 7 }
 0x160   :  { %vm1425_vm7 = vcmp.ge.f32.partialorder %v1251_v10, 0.0  ;;  %v1489_v19 = vmul.f32 0.2, %v1251_v10 }
 0x161   :  { %vm1426_vm12 = vcmp.ge.f32.partialorder %v1264_v14, 0.0  ;;  %v1490_v20 = vmul.f32 0.2, %v1264_v14  ;;  %v1789_v36 = vsel %vm1693_vm11, %v1672_v26, %v1673_v27 }
 0x162   :  { %v1553_v23 = vsel %vm1425_vm7, %v1251_v10, %v1489_v19 }
 0x163   :  { %v1554_v24 = vsel %vm1426_vm12, %v1264_v14, %v1490_v20 }
 0x164   :  { %v1590_v28 = vpack.c.bf16 %v1554_v24, %v1553_v23 }
 0x165   :  { %v1252_v29 = vpop.f32.mrf.mxu2 }
 0x166   :  { %v1674_v31 = vrot.slane %v1590_v28, 2  ;;  %v1675_v32 = vrot.slane %v1590_v28, 5  ;;  %v1265_v33 = vpop.f32.mrf.mxu3  ;;  %v1276_v34 = vpop.f32.mrf.mxu0 }
 0x167   :  { %v1289_v18 = vpop.f32.mrf.mxu1  ;;  %v1277_v47 = vadd.f32 %v1276_v34, %v2626_v55 }
 0x168   :  { %v1792_v37 = vsel %vm1697_vm14, %v1674_v31, %v1675_v32  ;;  %v1290_v48 = vadd.f32 %v1289_v18, %v2626_v55 }
 0x169   :  { %v1793_v39 = vsel %vm1701_vm15, %v1789_v36, %v1792_v37  ;;  %vm1427_vm13 = vcmp.ge.f32.partialorder %v1277_v47, 0.0  ;;  %v1491_v57 = vmul.f32 0.2, %v1277_v47 }
 0x16a   :  { %v1794_v40 = vsel %vm1703_vm2, %v1786_v38, %v1793_v39  ;;  %v1492_v58 = vmul.f32 0.2, %v1290_v48  ;;  %vm1428_vm1 = vcmp.ge.f32.partialorder %v1290_v48, 0.0 }
 0x16b   :  { %1824 = vst [vmem:[%s2985_s3 + $0x30] sm:$0xff] %v1794_v40  ;;  %v1555_v63 = vsel %vm1427_vm13, %v1277_v47, %v1491_v57 }
 0x16c   :  { %v1556_v0 = vsel %vm1428_vm1, %v1290_v48, %v1492_v58 }
 0x16d   :  { %v1302_v41 = vpop.f32.mrf.mxu2  ;;  %v1591_v10 = vpack.c.bf16 %v1556_v0, %v1555_v63 }
 0x16e   :  { %v1315_v42 = vpop.f32.mrf.mxu3  ;;  %v1278_v43 = vpop.f32.mrf.mxu0  ;;  %v1303_v45 = vadd.f32 %v1302_v41, %v2626_v55 }
 0x16f   :  { %v1291_v44 = vpop.f32.mrf.mxu1  ;;  %v1316_v46 = vadd.f32 %v1315_v42, %v2626_v55  ;;  %v1676_v20 = vrot.slane %v1591_v10, 3 }
 0x170   :  { %v1493_v52 = vmul.f32 0.2, %v1303_v45  ;;  %vm1429_vm0 = vcmp.ge.f32.partialorder %v1303_v45, 0.0 }
 0x171   :  { %v1494_v53 = vmul.f32 0.2, %v1316_v46  ;;  %vm1430_vm3 = vcmp.ge.f32.partialorder %v1316_v46, 0.0  ;;  %v1797_v28 = vsel %vm1683_vm8, %v1591_v10, %v1676_v20 }
 0x172   :  { %v1557_v61 = vsel %vm1429_vm0, %v1303_v45, %v1493_v52 }
 0x173   :  { %v1558_v62 = vsel %vm1430_vm3, %v1316_v46, %v1494_v53 }
 0x174   :  { %v1592_v4 = vpack.c.bf16 %v1558_v62, %v1557_v61 }
 0x175   :  { %v1304_v49 = vpop.f32.mrf.mxu2 }
 0x176   :  { %v1317_v50 = vpop.f32.mrf.mxu3  ;;  %v1328_v51 = vpop.f32.mrf.mxu0  ;;  %v1677_v15 = vrot.slane %v1592_v4, 6  ;;  %v1678_v16 = vrot.slane %v1592_v4, 1 }
 0x177   :  { %v1329_v54 = vadd.f32 %v1328_v51, %v2626_v55  ;;  %v1341_v56 = vpop.f32.mrf.mxu1 }
 0x178   :  { %v1342_v12 = vadd.f32 %v1341_v56, %v2626_v55  ;;  %v1800_v25 = vsel %vm1687_vm9, %v1677_v15, %v1678_v16 }
 0x179   :  { %v1495_v59 = vmul.f32 0.2, %v1329_v54  ;;  %vm1431_vm4 = vcmp.ge.f32.partialorder %v1329_v54, 0.0  ;;  %v1801_v31 = vsel %vm1691_vm10, %v1797_v28, %v1800_v25 }
 0x17a   :  { %vm1432_vm5 = vcmp.ge.f32.partialorder %v1342_v12, 0.0  ;;  %v1496_v60 = vmul.f32 0.2, %v1342_v12 }
 0x17b   :  { %v1559_v1 = vsel %vm1431_vm4, %v1329_v54, %v1495_v59 }
 0x17c   :  { %v1560_v2 = vsel %vm1432_vm5, %v1342_v12, %v1496_v60 }
 0x17d   :  { %v1354_v3 = vpop.f32.mrf.mxu2  ;;  %v1593_v11 = vpack.c.bf16 %v1560_v2, %v1559_v1 }
 0x17e   :  { %v1355_v5 = vadd.f32 %v1354_v3, %v2626_v55  ;;  %v1367_v6 = vpop.f32.mrf.mxu3  ;;  %v1330_v7 = vpop.f32.mrf.mxu0 }
 0x17f   :  { %v1368_v8 = vadd.f32 %v1367_v6, %v2626_v55  ;;  %v1343_v9 = vpop.f32.mrf.mxu1  ;;  %v1679_v21 = vrot.slane %v1593_v11, 4  ;;  %v1680_v22 = vrot.slane %v1593_v11, 7 }
 0x180   :  { %vm1433_vm6 = vcmp.ge.f32.partialorder %v1355_v5, 0.0  ;;  %v1497_v13 = vmul.f32 0.2, %v1355_v5 }
 0x181   :  { %vm1434_vm7 = vcmp.ge.f32.partialorder %v1368_v8, 0.0  ;;  %v1498_v14 = vmul.f32 0.2, %v1368_v8  ;;  %v1804_v29 = vsel %vm1693_vm11, %v1679_v21, %v1680_v22 }
 0x182   :  { %v1561_v17 = vsel %vm1433_vm6, %v1355_v5, %v1497_v13 }
 0x183   :  { %v1562_v19 = vsel %vm1434_vm7, %v1368_v8, %v1498_v14 }
 0x184   :  { %v1594_v23 = vpack.c.bf16 %v1562_v19, %v1561_v17 }
 0x185   :  { %v1356_v24 = vpop.f32.mrf.mxu2 }
 0x186   :  { %v1681_v26 = vrot.slane %v1594_v23, 2  ;;  %v1682_v55 = vrot.slane %v1594_v23, 5  ;;  %v1369_v27 = vpop.f32.mrf.mxu3 }
 0x188   :  { %v1807_v30 = vsel %vm1697_vm14, %v1681_v26, %v1682_v55 }
 0x189   :  { %v1808_v32 = vsel %vm1701_vm15, %v1804_v29, %v1807_v30 }
 0x18a   :  { %v1809_v33 = vsel %vm1703_vm2, %v1801_v31, %v1808_v32 }
 0x18b   :  { %1825 = vst [vmem:[%s2985_s3 + $0x38] sm:$0xff] %v1809_v33 }

// kernel: autoencoder_fwd.31
= control target key start
LH: loop header
LB: loop body
LE: loop exit
PB: predicated region body
PF: predicated region fallthrough
CT: control target
= control target key end

     0   :  { %s725_s1 = inlined_call_operand.vmem [shape: bf16[128,256], index: 1, kind: input, shape index: {}]   ;;  %s726_s0 = inlined_call_operand.vmem [shape: bf16[128,128], index: 0, kind: input, shape index: {}]   ;;  %s727_s2 = inlined_call_operand.vmem [shape: f32[1,256], index: 2, kind: input, shape index: {}]   ;;  %s728_s3 = inlined_call_operand.vmem [shape: f32[128,256], index: 3, kind: output, shape index: {}]  }
   0x1   :  { %v404_v0 = vld [vmem:[%s725_s1 + $0x70] sm:$0xf]  ;;  %v433_v1 = vld [vmem:[%s725_s1 + $0x74] sm:$0xf0]  ;;  %v432_v2 = vld [vmem:[%s725_s1 + $0x74] sm:$0xf] }
   0x2   :  { %v405_v3 = vor.u32 %v433_v1, %v404_v0  ;;  %v406_v4 = vld [vmem:[%s725_s1 + $0x78] sm:$0xf0]  ;;  %v396_v5 = vld [vmem:[%s725_s1 + $0x60] sm:$0xf]  ;;  %v431_v6 = vld [vmem:[%s725_s1 + $0x64] sm:$0xf0] }
   0x3   :  { %v409_v7 = vor.u32 %v432_v2, %v406_v4  ;;  %v430_v8 = vld [vmem:[%s725_s1 + $0x64] sm:$0xf]  ;;  %v398_v9 = vld [vmem:[%s725_s1 + $0x68] sm:$0xf0]  ;;  %v397_v10 = vor.u32 %v431_v6, %v396_v5  ;;  %v388_v12 = vld [vmem:[%s725_s1 + $0x50] sm:$0xf] }
   0x4   :  { %180 = vmatpush.bf16.msra.mxu0 %v405_v3  ;;  %434 = vmatpush.bf16.msra.mxu2 %v405_v3  ;;  %v401_v11 = vor.u32 %v430_v8, %v398_v9  ;;  %v429_v13 = vld [vmem:[%s725_s1 + $0x54] sm:$0xf0]  ;;  %v428_v14 = vld [vmem:[%s725_s1 + $0x54] sm:$0xf]  ;;  %v390_v15 = vld [vmem:[%s725_s1 + $0x58] sm:$0xf0] }
   0x5   :  { %229 = vmatpush.bf16.msra.mxu1 %v409_v7  ;;  %442 = vmatpush.bf16.msra.mxu3 %v409_v7  ;;  %v389_v16 = vor.u32 %v429_v13, %v388_v12  ;;  %v393_v17 = vor.u32 %v428_v14, %v390_v15  ;;  %v380_v18 = vld [vmem:[%s725_s1 + $0x40] sm:$0xf]  ;;  %v427_v19 = vld [vmem:[%s725_s1 + $0x44] sm:$0xf0]  ;;  %v426_v20 = vld [vmem:[%s725_s1 + $0x44] sm:$0xf] }
   0x6   :  { %v382_v21 = vld [vmem:[%s725_s1 + $0x48] sm:$0xf0]  ;;  %v381_v22 = vor.u32 %v427_v19, %v380_v18  ;;  %v372_v24 = vld [vmem:[%s725_s1 + $0x30] sm:$0xf]  ;;  %v425_v25 = vld [vmem:[%s725_s1 + $0x34] sm:$0xf0] }
   0x7   :  { %v385_v23 = vor.u32 %v426_v20, %v382_v21  ;;  %v424_v26 = vld [vmem:[%s725_s1 + $0x34] sm:$0xf]  ;;  %v374_v27 = vld [vmem:[%s725_s1 + $0x38] sm:$0xf0]  ;;  %v373_v28 = vor.u32 %v425_v25, %v372_v24  ;;  %v364_v30 = vld [vmem:[%s725_s1 + $0x20] sm:$0xf] }
   0x8   :  { %181 = vmatpush.bf16.msra.mxu0 %v397_v10  ;;  %435 = vmatpush.bf16.msra.mxu2 %v397_v10  ;;  %v377_v29 = vor.u32 %v424_v26, %v374_v27  ;;  %v423_v31 = vld [vmem:[%s725_s1 + $0x24] sm:$0xf0]  ;;  %v422_v32 = vld [vmem:[%s725_s1 + $0x24] sm:$0xf]  ;;  %v366_v33 = vld [vmem:[%s725_s1 + $0x28] sm:$0xf0] }
   0x9   :  { %230 = vmatpush.bf16.msra.mxu1 %v401_v11  ;;  %443 = vmatpush.bf16.msra.mxu3 %v401_v11  ;;  %v365_v34 = vor.u32 %v423_v31, %v364_v30  ;;  %v369_v35 = vor.u32 %v422_v32, %v366_v33  ;;  %v356_v36 = vld [vmem:[%s725_s1 + $0x10] sm:$0xf]  ;;  %v421_v37 = vld [vmem:[%s725_s1 + $0x14] sm:$0xf0]  ;;  %v420_v38 = vld [vmem:[%s725_s1 + $0x14] sm:$0xf] }
   0xa   :  { %v358_v39 = vld [vmem:[%s725_s1 + $0x18] sm:$0xf0]  ;;  %v357_v40 = vor.u32 %v421_v37, %v356_v36  ;;  %v348_v42 = vld [vmem:[%s725_s1] sm:$0xf]  ;;  %v419_v43 = vld [vmem:[%s725_s1 + $0x4] sm:$0xf0] }
   0xb   :  { %v361_v41 = vor.u32 %v420_v38, %v358_v39  ;;  %v418_v44 = vld [vmem:[%s725_s1 + $0x4] sm:$0xf]  ;;  %v350_v45 = vld [vmem:[%s725_s1 + $0x8] sm:$0xf0]  ;;  %v349_v46 = vor.u32 %v419_v43, %v348_v42  ;;  %v412_v52 = vld [vmem:[%s726_s0 + $0x10] sm:$0xff] }
   0xc   :  { %182 = vmatpush.bf16.msra.mxu0 %v389_v16  ;;  %436 = vmatpush.bf16.msra.mxu2 %v389_v16  ;;  %v353_v47 = vor.u32 %v418_v44, %v350_v45  ;;  %v410_v48 = vld [vmem:[%s726_s0] sm:$0xff]  ;;  %v411_v50 = vld [vmem:[%s726_s0 + $0x8] sm:$0xff]  ;;  %v416_v53 = vld [vmem:[%s726_s0 + $0x30] sm:$0xff] }
   0xd   :  { %231 = vmatpush.bf16.msra.mxu1 %v393_v17  ;;  %444 = vmatpush.bf16.msra.mxu3 %v393_v17  ;;  %v414_v49 = vld [vmem:[%s726_s0 + $0x20] sm:$0xff]  ;;  %v415_v51 = vld [vmem:[%s726_s0 + $0x28] sm:$0xff]  ;;  %v413_v54 = vld [vmem:[%s726_s0 + $0x18] sm:$0xff] }
   0xe   :  { %v417_v55 = vld [vmem:[%s726_s0 + $0x38] sm:$0xff]  ;;  %v46_v56 = vld [vmem:[%s727_s2] sm:$0x3] }
   0xf   :  { %v593_v57 = vperm.slane %v46_v56, 0  ;;  %v595_v58 = vperm.slane %v46_v56, 1 }
  0x10   :  { %183 = vmatpush.bf16.msra.mxu0 %v381_v22  ;;  %437 = vmatpush.bf16.msra.mxu2 %v381_v22 }
  0x11   :  { %232 = vmatpush.bf16.msra.mxu1 %v385_v23  ;;  %445 = vmatpush.bf16.msra.mxu3 %v385_v23 }
  0x14   :  { %184 = vmatpush.bf16.msra.mxu0 %v373_v28  ;;  %438 = vmatpush.bf16.msra.mxu2 %v373_v28 }
  0x15   :  { %233 = vmatpush.bf16.msra.mxu1 %v377_v29  ;;  %446 = vmatpush.bf16.msra.mxu3 %v377_v29 }
  0x18   :  { %185 = vmatpush.bf16.msra.mxu0 %v365_v34  ;;  %439 = vmatpush.bf16.msra.mxu2 %v365_v34 }
  0x19   :  { %234 = vmatpush.bf16.msra.mxu1 %v369_v35  ;;  %447 = vmatpush.bf16.msra.mxu3 %v369_v35 }
  0x1c   :  { %186 = vmatpush.bf16.msra.mxu0 %v357_v40  ;;  %440 = vmatpush.bf16.msra.mxu2 %v357_v40 }
  0x1d   :  { %235 = vmatpush.bf16.msra.mxu1 %v361_v41  ;;  %448 = vmatpush.bf16.msra.mxu3 %v361_v41 }
  0x20   :  { %187 = vmatpush.bf16.msra.mxu0 %v349_v46  ;;  %441 = vmatpush.bf16.msra.mxu2 %v349_v46 }
  0x21   :  { %236 = vmatpush.bf16.msra.mxu1 %v353_v47  ;;  %449 = vmatpush.bf16.msra.mxu3 %v353_v47 }
  0x23   :  { %188 = vmatmul.bf16.vlgmr.msra.gmra.mxu0 %v410_v48  ;;  %208 = vmatmul.bf16.vlgmr.msra.gmra.mxu2 %v414_v49 }
  0x24   :  { %237 = vmatmul.bf16.vlgmr.msra.gmra.mxu1 %v410_v48  ;;  %257 = vmatmul.bf16.vlgmr.msra.gmra.mxu3 %v414_v49 }
  0x33   :  { %193 = vmatmul.bf16.gmra.mxu0 %v411_v50  ;;  %213 = vmatmul.bf16.gmra.mxu2 %v415_v51 }
  0x34   :  { %242 = vmatmul.bf16.gmra.mxu1 %v411_v50  ;;  %262 = vmatmul.bf16.gmra.mxu3 %v415_v51 }
  0x43   :  { %198 = vmatmul.bf16.gmra.mxu0 %v412_v52  ;;  %218 = vmatmul.bf16.gmra.mxu2 %v416_v53 }
  0x44   :  { %247 = vmatmul.bf16.gmra.mxu1 %v412_v52  ;;  %267 = vmatmul.bf16.gmra.mxu3 %v416_v53 }
  0x53   :  { %203 = vmatmul.bf16.gmra.mxu0 %v413_v54  ;;  %223 = vmatmul.bf16.gmra.mxu2 %v417_v55 }
  0x54   :  { %252 = vmatmul.bf16.gmra.mxu1 %v413_v54  ;;  %272 = vmatmul.bf16.gmra.mxu3 %v417_v55 }
  0xa0   :  { %v189_v59 = vpop.f32.mrf.mxu0 }
  0xa1   :  { %v190_v60 = vadd.f32 %v189_v59, %v593_v57  ;;  %v238_v61 = vpop.f32.mrf.mxu1 }
  0xa2   :  { %v239_v62 = vadd.f32 %v238_v61, %v595_v58 }
  0xa3   :  { %278 = vst [vmem:[%s728_s3] sm:$0xff] %v190_v60 }
  0xa4   :  { %279 = vst [vmem:[%s728_s3 + $0x8] sm:$0xff] %v239_v62 }
  0xa6   :  { %v209_v63 = vpop.f32.mrf.mxu2 }
  0xa7   :  { %v210_v0 = vadd.f32 %v209_v63, %v593_v57  ;;  %v258_v1 = vpop.f32.mrf.mxu3 }
  0xa8   :  { %v259_v2 = vadd.f32 %v258_v1, %v595_v58  ;;  %v191_v3 = vpop.f32.mrf.mxu0 }
  0xa9   :  { %294 = vst [vmem:[%s728_s3 + $0x80] sm:$0xff] %v210_v0  ;;  %v192_v4 = vadd.f32 %v191_v3, %v593_v57  ;;  %v240_v5 = vpop.f32.mrf.mxu1 }
  0xaa   :  { %295 = vst [vmem:[%s728_s3 + $0x88] sm:$0xff] %v259_v2  ;;  %v241_v6 = vadd.f32 %v240_v5, %v595_v58 }
  0xab   :  { %280 = vst [vmem:[%s728_s3 + $0x10] sm:$0xff] %v192_v4 }
  0xac   :  { %281 = vst [vmem:[%s728_s3 + $0x18] sm:$0xff] %v241_v6 }
  0xae   :  { %v211_v7 = vpop.f32.mrf.mxu2 }
  0xaf   :  { %v212_v8 = vadd.f32 %v211_v7, %v593_v57  ;;  %v260_v9 = vpop.f32.mrf.mxu3 }
  0xb0   :  { %v261_v10 = vadd.f32 %v260_v9, %v595_v58  ;;  %v194_v11 = vpop.f32.mrf.mxu0 }
  0xb1   :  { %296 = vst [vmem:[%s728_s3 + $0x90] sm:$0xff] %v212_v8  ;;  %v195_v12 = vadd.f32 %v194_v11, %v593_v57  ;;  %v243_v13 = vpop.f32.mrf.mxu1 }
  0xb2   :  { %297 = vst [vmem:[%s728_s3 + $0x98] sm:$0xff] %v261_v10  ;;  %v244_v14 = vadd.f32 %v243_v13, %v595_v58 }
  0xb3   :  { %282 = vst [vmem:[%s728_s3 + $0x20] sm:$0xff] %v195_v12 }
  0xb4   :  { %283 = vst [vmem:[%s728_s3 + $0x28] sm:$0xff] %v244_v14 }
  0xb6   :  { %v214_v15 = vpop.f32.mrf.mxu2 }
  0xb7   :  { %v215_v16 = vadd.f32 %v214_v15, %v593_v57  ;;  %v263_v17 = vpop.f32.mrf.mxu3 }
  0xb8   :  { %v264_v18 = vadd.f32 %v263_v17, %v595_v58  ;;  %v196_v19 = vpop.f32.mrf.mxu0 }
  0xb9   :  { %298 = vst [vmem:[%s728_s3 + $0xa0] sm:$0xff] %v215_v16  ;;  %v197_v20 = vadd.f32 %v196_v19, %v593_v57  ;;  %v245_v21 = vpop.f32.mrf.mxu1 }
  0xba   :  { %299 = vst [vmem:[%s728_s3 + $0xa8] sm:$0xff] %v264_v18  ;;  %v246_v22 = vadd.f32 %v245_v21, %v595_v58 }
  0xbb   :  { %284 = vst [vmem:[%s728_s3 + $0x30] sm:$0xff] %v197_v20 }
  0xbc   :  { %285 = vst [vmem:[%s728_s3 + $0x38] sm:$0xff] %v246_v22 }
  0xbe   :  { %v216_v23 = vpop.f32.mrf.mxu2 }
  0xbf   :  { %v217_v24 = vadd.f32 %v216_v23, %v593_v57  ;;  %v265_v25 = vpop.f32.mrf.mxu3 }
  0xc0   :  { %v266_v26 = vadd.f32 %v265_v25, %v595_v58  ;;  %v199_v27 = vpop.f32.mrf.mxu0 }
  0xc1   :  { %300 = vst [vmem:[%s728_s3 + $0xb0] sm:$0xff] %v217_v24  ;;  %v200_v28 = vadd.f32 %v199_v27, %v593_v57  ;;  %v248_v29 = vpop.f32.mrf.mxu1 }
  0xc2   :  { %301 = vst [vmem:[%s728_s3 + $0xb8] sm:$0xff] %v266_v26  ;;  %v249_v30 = vadd.f32 %v248_v29, %v595_v58 }
  0xc3   :  { %286 = vst [vmem:[%s728_s3 + $0x40] sm:$0xff] %v200_v28 }
  0xc4   :  { %287 = vst [vmem:[%s728_s3 + $0x48] sm:$0xff] %v249_v30 }
  0xc6   :  { %v219_v31 = vpop.f32.mrf.mxu2 }
  0xc7   :  { %v220_v32 = vadd.f32 %v219_v31, %v593_v57  ;;  %v268_v33 = vpop.f32.mrf.mxu3 }
  0xc8   :  { %v269_v34 = vadd.f32 %v268_v33, %v595_v58  ;;  %v201_v35 = vpop.f32.mrf.mxu0 }
  0xc9   :  { %302 = vst [vmem:[%s728_s3 + $0xc0] sm:$0xff] %v220_v32  ;;  %v202_v36 = vadd.f32 %v201_v35, %v593_v57  ;;  %v250_v37 = vpop.f32.mrf.mxu1 }
  0xca   :  { %303 = vst [vmem:[%s728_s3 + $0xc8] sm:$0xff] %v269_v34  ;;  %v251_v38 = vadd.f32 %v250_v37, %v595_v58 }
  0xcb   :  { %288 = vst [vmem:[%s728_s3 + $0x50] sm:$0xff] %v202_v36 }
  0xcc   :  { %289 = vst [vmem:[%s728_s3 + $0x58] sm:$0xff] %v251_v38 }
  0xce   :  { %v221_v39 = vpop.f32.mrf.mxu2 }
  0xcf   :  { %v222_v40 = vadd.f32 %v221_v39, %v593_v57  ;;  %v270_v41 = vpop.f32.mrf.mxu3 }
  0xd0   :  { %v271_v42 = vadd.f32 %v270_v41, %v595_v58  ;;  %v204_v43 = vpop.f32.mrf.mxu0 }
  0xd1   :  { %304 = vst [vmem:[%s728_s3 + $0xd0] sm:$0xff] %v222_v40  ;;  %v205_v44 = vadd.f32 %v204_v43, %v593_v57  ;;  %v253_v45 = vpop.f32.mrf.mxu1 }
  0xd2   :  { %305 = vst [vmem:[%s728_s3 + $0xd8] sm:$0xff] %v271_v42  ;;  %v254_v46 = vadd.f32 %v253_v45, %v595_v58 }
  0xd3   :  { %290 = vst [vmem:[%s728_s3 + $0x60] sm:$0xff] %v205_v44 }
  0xd4   :  { %291 = vst [vmem:[%s728_s3 + $0x68] sm:$0xff] %v254_v46 }
  0xd6   :  { %v224_v47 = vpop.f32.mrf.mxu2 }
  0xd7   :  { %v225_v48 = vadd.f32 %v224_v47, %v593_v57  ;;  %v273_v49 = vpop.f32.mrf.mxu3 }
  0xd8   :  { %v274_v50 = vadd.f32 %v273_v49, %v595_v58  ;;  %v206_v51 = vpop.f32.mrf.mxu0 }
  0xd9   :  { %306 = vst [vmem:[%s728_s3 + $0xe0] sm:$0xff] %v225_v48  ;;  %v207_v52 = vadd.f32 %v206_v51, %v593_v57  ;;  %v255_v53 = vpop.f32.mrf.mxu1 }
  0xda   :  { %307 = vst [vmem:[%s728_s3 + $0xe8] sm:$0xff] %v274_v50  ;;  %v256_v54 = vadd.f32 %v255_v53, %v595_v58 }
  0xdb   :  { %292 = vst [vmem:[%s728_s3 + $0x70] sm:$0xff] %v207_v52 }
  0xdc   :  { %293 = vst [vmem:[%s728_s3 + $0x78] sm:$0xff] %v256_v54 }
  0xde   :  { %v226_v55 = vpop.f32.mrf.mxu2 }
  0xdf   :  { %v227_v56 = vadd.f32 %v226_v55, %v593_v57  ;;  %v275_v59 = vpop.f32.mrf.mxu3 }
  0xe0   :  { %v276_v60 = vadd.f32 %v275_v59, %v595_v58 }
  0xe1   :  { %308 = vst [vmem:[%s728_s3 + $0xf0] sm:$0xff] %v227_v56 }
  0xe2   :  { %309 = vst [vmem:[%s728_s3 + $0xf8] sm:$0xff] %v276_v60 }

</bundles_post_ra>
